<compile_context>
chip_gen: v7x
topology: tpu7x:2x2x1
jax: 0.10.0
libtpu: 0.0.40
codegen_flags: <defaults>
</compile_context>

<pallas_src>
import jax
import jax.numpy as jnp
from jax.experimental import pallas as pl
from jax.experimental.pallas import tpu as pltpu

BN_EPS = 1e-5
NUM_LAYERS = 10
STREAMED_LAYERS = (1, 2)  # fc2, fc3 (0-based layer index): streamed from HBM in-kernel

EMBED_SPECS = [  # (name, num_embeddings, embed_dim) for the last 7 columns
    ("sex", 3, 2),
    ("access_freq", 5, 2),
    ("multi_a", 2561, 13),
    ("multi_b", 291, 6),
    ("multi_c", 428, 7),
    ("multi_d", 1556, 11),
    ("multi_e", 2, 1),
]

FC_DIMS = [2048, 1024, 512, 256, 128, 64, 32, 16, 8]  # hidden widths


# ----------------------------------------------------------------------------
# Bias-slab layout helpers (128-lane aligned segments)
# ----------------------------------------------------------------------------
def _seg_len(d):
    return max(((d + 127) // 128) * 128, 128)


def _bias_offsets(out_dims):
    offs, off = [], 0
    for d in out_dims:
        offs.append(off)
        off += _seg_len(d)
    return tuple(offs)


def _slab_len(out_dims):
    return sum(_seg_len(d) for d in out_dims)


# ----------------------------------------------------------------------------
# Fused 10-layer kernel (no grid, weights VMEM-resident; fc2/fc3 streamed)
# ----------------------------------------------------------------------------
def _make_fused_kernel(out_dims, bias_offsets):
    def kernel(x_ref,
               w1_ref, w2_hbm, w3_hbm, w4_ref, w5_ref, w6_ref, w7_ref,
               w8_ref, w9_ref, w10_ref,
               bias_ref, out_ref,
               w2_vmem, w3_vmem, dma_sem):
        # Start streaming the two big weights from HBM immediately so the DMA
        # overlaps the fc1 / fc2 matmuls instead of serializing before compute.
        cp2 = pltpu.make_async_copy(w2_hbm, w2_vmem, dma_sem.at[0])
        cp2.start()
        cp3 = pltpu.make_async_copy(w3_hbm, w3_vmem, dma_sem.at[1])
        cp3.start()

        def layer(h, w_ref, i, relu=True):
            if relu:
                h = jnp.maximum(h, 0.0)                       # VPU
            off, d = bias_offsets[i], out_dims[i]
            return (jnp.dot(h.astype(jnp.bfloat16), w_ref[...],
                            preferred_element_type=jnp.float32)   # MXU, f32 acc
                    + bias_ref[:, off:off + d])

        # Layer 0: bn0 and bn1 are pre-folded into (W1, b1) -> plain matmul.
        h = layer(x_ref[...], w1_ref, 0, relu=False)
        cp2.wait()
        h = layer(h, w2_vmem, 1)
        cp3.wait()
        h = layer(h, w3_vmem, 2)
        for i, w_ref in enumerate(
                (w4_ref, w5_ref, w6_ref, w7_ref, w8_ref, w9_ref, w10_ref),
                start=3):
            h = layer(h, w_ref, i)
        out_ref[...] = h

    return kernel


def fused_mlp(x, weights, bias_slab):
    """x: (B, D0) f32; weights: 10 bf16 [in,out] arrays; bias_slab: (1, S) f32."""
    B = x.shape[0]
    out_dims = tuple(int(w.shape[1]) for w in weights)
    bias_offsets = _bias_offsets(out_dims)
    kernel = _make_fused_kernel(out_dims, bias_offsets)

    vmem_spec = pl.BlockSpec(memory_space=pltpu.MemorySpace.VMEM)  # whole array, no pipeline bufs
    hbm_spec = pl.BlockSpec(memory_space=pl.ANY)                   # stays in HBM, DMA'd manually

    in_specs = [vmem_spec]                                         # x
    in_specs += [hbm_spec if i in STREAMED_LAYERS else vmem_spec
                 for i in range(NUM_LAYERS)]                       # W1..W10
    in_specs += [vmem_spec]                                        # bias slab

    return pl.pallas_call(
        kernel,
        out_shape=jax.ShapeDtypeStruct((B, out_dims[-1]), jnp.float32),
        in_specs=in_specs,
        out_specs=vmem_spec,
        scratch_shapes=[
            pltpu.VMEM(tuple(weights[1].shape), jnp.bfloat16),     # fc2 landing buffer
            pltpu.VMEM(tuple(weights[2].shape), jnp.bfloat16),     # fc3 landing buffer
            pltpu.SemaphoreType.DMA((2,)),
        ],
        compiler_params=pltpu.CompilerParams(
            vmem_limit_bytes=32 * 1024 * 1024,
        ),
    )(x, *weights, bias_slab)


# ----------------------------------------------------------------------------
# Parameter construction / full BN folding
# ----------------------------------------------------------------------------
def init_params(key, in_dim, out_dim=2):
    eff_in = in_dim + 1 + 1 + 12 + 5 + 6 + 10      # == (in_dim - 7) + 42
    params = {}
    keys = jax.random.split(key, 80)
    ki = 0
    for name, n, d in EMBED_SPECS:                 # PyTorch default: N(0,1)
        params[f"emb_{name}"] = jax.random.normal(keys[ki], (n, d), jnp.float32)
        ki += 1
    dims = [eff_in] + FC_DIMS + [out_dim]
    for i in range(NUM_LAYERS):
        d_in, d_out = dims[i], dims[i + 1]
        bound = 1.0 / jnp.sqrt(d_in)
        params[f"fc{i + 1}_w"] = jax.random.uniform(
            keys[ki], (d_in, d_out), jnp.float32, -bound, bound); ki += 1
        params[f"fc{i + 1}_b"] = jax.random.uniform(
            keys[ki], (d_out,), jnp.float32, -bound, bound); ki += 1
        params[f"bn{i}_gamma"] = 1.0 + 0.1 * jax.random.normal(
            keys[ki], (d_in,), jnp.float32); ki += 1
        params[f"bn{i}_beta"] = 0.1 * jax.random.normal(
            keys[ki], (d_in,), jnp.float32); ki += 1
        params[f"bn{i}_mean"] = 0.1 * jax.random.normal(
            keys[ki], (d_in,), jnp.float32); ki += 1
        params[f"bn{i}_var"] = 0.5 + jnp.abs(jax.random.normal(
            keys[ki], (d_in,), jnp.float32)); ki += 1
    return params


def prepare_fused_params(params):
    """Fold ALL eval-mode BatchNorms into the Linear weights / biases.

    bn_i(x) = a_i*x + c_i with a_i = gamma/sqrt(var+eps), c_i = beta - mean*a_i.
      fc1(bn0(x))   -> x @ (diag(a0) W1) + (c0 @ W1 + b1)
      bn_i(fc_i(z)) -> z @ (W_i * a_i[None,:]) + (b_i * a_i + c_i)
    The net collapses to 10 matmuls with ReLU between them.  Weights -> bf16,
    biases packed into one lane-aligned f32 slab (kernel input count: 12).
    """
    a, c = [], []
    for i in range(NUM_LAYERS):
        ai = params[f"bn{i}_gamma"] * jax.lax.rsqrt(params[f"bn{i}_var"] + BN_EPS)
        ci = params[f"bn{i}_beta"] - params[f"bn{i}_mean"] * ai
        a.append(ai)
        c.append(ci)

    weights, biases = [], []
    for i in range(NUM_LAYERS):
        W = params[f"fc{i + 1}_w"]                 # (d_in, d_out) f32
        b = params[f"fc{i + 1}_b"]
        if i == 0:                                 # bn0 -> input side of fc1
            b = b + c[0] @ W
            W = W * a[0][:, None]
        if i + 1 < NUM_LAYERS:                     # bn_{i+1} -> output side of fc_{i+1}
            W = W * a[i + 1][None, :]
            b = b * a[i + 1] + c[i + 1]
        weights.append(W.astype(jnp.bfloat16))
        biases.append(b.astype(jnp.float32))

    out_dims = tuple(int(w.shape[1]) for w in weights)
    offs = _bias_offsets(out_dims)
    slab = jnp.zeros((1, _slab_len(out_dims)), jnp.float32)
    for i, b in enumerate(biases):
        slab = slab.at[0, offs[i]:offs[i] + out_dims[i]].set(b)
    return weights, slab


# ----------------------------------------------------------------------------
# Forward pass + references
# ----------------------------------------------------------------------------
def embed_and_concat(emb_tables, x):
    idx = x[:, -7:].astype(jnp.int32)
    pieces = [x[:, :-7]]
    for i, (name, _, _) in enumerate(EMBED_SPECS):
        pieces.append(jnp.take(emb_tables[f"emb_{name}"], idx[:, i], axis=0))
    return jnp.concatenate(pieces, axis=1)


def mynet_forward(emb_tables, weights, bias_slab, x):
    h0 = embed_and_concat(emb_tables, x)
    return fused_mlp(h0, weights, bias_slab)


def mynet_forward_ref_matched(emb_tables, weights, bias_slab, x):
    """Plain-JAX mirror of the kernel's folded-BN / bf16 numerics (plumbing check)."""
    h = embed_and_concat(emb_tables, x)
    out_dims = tuple(int(w.shape[1]) for w in weights)
    offs = _bias_offsets(out_dims)
    for i, w in enumerate(weights):
        if i > 0:
            h = jnp.maximum(h, 0.0)
        b = bias_slab[:, offs[i]:offs[i] + out_dims[i]]
        h = jnp.dot(h.astype(jnp.bfloat16), w,
                    preferred_element_type=jnp.float32) + b
    return h


def mynet_forward_ref_f32(params, x):
    """Full-precision f32 reference matching the PyTorch module semantics."""
    emb_tables = {f"emb_{n}": params[f"emb_{n}"] for n, _, _ in EMBED_SPECS}
    out = embed_and_concat(emb_tables, x)
    for i in range(NUM_LAYERS):
        g, bta = params[f"bn{i}_gamma"], params[f"bn{i}_beta"]
        m, v = params[f"bn{i}_mean"], params[f"bn{i}_var"]
        h = (out - m) * g / jnp.sqrt(v + BN_EPS) + bta
        if i > 0:
            h = jnp.maximum(h, 0.0)
        out = jnp.dot(h, params[f"fc{i + 1}_w"],
                      precision=jax.lax.Precision.HIGHEST) + params[f"fc{i + 1}_b"]
    return out


if __name__ == "__main__":
    B = 16          # batch (multiple of 8 for clean sublane tiling)
    IN_DIM = 16     # total columns of x: 9 continuous + 7 categorical
    OUT_DIM = 2

    key = jax.random.PRNGKey(0)
    k_params, k_cont, k_idx = jax.random.split(key, 3)

    params = init_params(k_params, IN_DIM, OUT_DIM)
    weights, bias_slab = prepare_fused_params(params)    # fold all BN once (host side)
    emb_tables = {f"emb_{n}": params[f"emb_{n}"] for n, _, _ in EMBED_SPECS}

    cont = jax.random.normal(k_cont, (B, IN_DIM - 7), jnp.float32)
    idx_keys = jax.random.split(k_idx, 7)
    idx_cols = [
        jax.random.randint(idx_keys[i], (B, 1), 0, EMBED_SPECS[i][1], jnp.int32)
        for i in range(7)
    ]
    x = jnp.concatenate(
        [cont, jnp.concatenate(idx_cols, axis=1).astype(jnp.float32)], axis=1)

    fwd = jax.jit(mynet_forward)
    out = jax.block_until_ready(fwd(emb_tables, weights, bias_slab, x))

    ref_same_numerics = mynet_forward_ref_matched(emb_tables, weights, bias_slab, x)
    ref_f32 = mynet_forward_ref_f32(params, x)

    assert out.shape == (B, OUT_DIM)
    # Same folded-bf16 numerics as the kernel: tight check (validates plumbing).
    assert jnp.allclose(out, ref_same_numerics, atol=1e-2, rtol=1e-2), \
        "mismatch vs matched-numerics reference"
    # Module-semantics f32 reference: loose check (bf16 weight quantization).
    assert jnp.allclose(out, ref_f32, atol=1e-1, rtol=1e-1), \
        "mismatch vs f32 reference"

    print("KERNEL_OK")
</pallas_src>

<mosaic_0001>
module attributes {stable_mosaic.version = 11 : i64} {
  func.func @kernel(%arg0: memref<16x51xf32, #tpu.memory_space<vmem>>, %arg1: memref<51x2048xbf16, #tpu.memory_space<vmem>>, %arg2: memref<2048x1024xbf16, #tpu.memory_space<any>>, %arg3: memref<1024x512xbf16, #tpu.memory_space<any>>, %arg4: memref<512x256xbf16, #tpu.memory_space<vmem>>, %arg5: memref<256x128xbf16, #tpu.memory_space<vmem>>, %arg6: memref<128x64xbf16, #tpu.memory_space<vmem>>, %arg7: memref<64x32xbf16, #tpu.memory_space<vmem>>, %arg8: memref<32x16xbf16, #tpu.memory_space<vmem>>, %arg9: memref<16x8xbf16, #tpu.memory_space<vmem>>, %arg10: memref<8x2xbf16, #tpu.memory_space<vmem>>, %arg11: memref<1x4608xf32, #tpu.memory_space<vmem>>, %arg12: memref<16x2xf32, #tpu.memory_space<vmem>>, %arg13: memref<2048x1024xbf16, #tpu.memory_space<vmem>>, %arg14: memref<1024x512xbf16, #tpu.memory_space<vmem>>, %arg15: memref<2x!tpu.dma_semaphore, #tpu.memory_space<semaphore_mem>>) attributes {dimension_semantics = [], scalar_prefetch = 0 : i64, scratch_operands = 3 : i64, tpu.core_type = #tpu.core_type<tc>} {
    %c0_i32 = arith.constant 0 : i32
    %0 = tpu.memref_slice %arg15[%c0_i32] : memref<2x!tpu.dma_semaphore, #tpu.memory_space<semaphore_mem>> -> memref<1x!tpu.dma_semaphore, #tpu.memory_space<semaphore_mem>>
    %1 = tpu.memref_squeeze %0 : memref<1x!tpu.dma_semaphore, #tpu.memory_space<semaphore_mem>> -> memref<!tpu.dma_semaphore, #tpu.memory_space<semaphore_mem>>
    tpu.enqueue_dma source(%arg2 : memref<2048x1024xbf16, #tpu.memory_space<any>>) target(%arg13 : memref<2048x1024xbf16, #tpu.memory_space<vmem>>) target_semaphore(%1 : memref<!tpu.dma_semaphore, #tpu.memory_space<semaphore_mem>>)
    %c1_i32 = arith.constant 1 : i32
    %2 = tpu.memref_slice %arg15[%c1_i32] : memref<2x!tpu.dma_semaphore, #tpu.memory_space<semaphore_mem>> -> memref<1x!tpu.dma_semaphore, #tpu.memory_space<semaphore_mem>>
    %3 = tpu.memref_squeeze %2 : memref<1x!tpu.dma_semaphore, #tpu.memory_space<semaphore_mem>> -> memref<!tpu.dma_semaphore, #tpu.memory_space<semaphore_mem>>
    tpu.enqueue_dma source(%arg3 : memref<1024x512xbf16, #tpu.memory_space<any>>) target(%arg14 : memref<1024x512xbf16, #tpu.memory_space<vmem>>) target_semaphore(%3 : memref<!tpu.dma_semaphore, #tpu.memory_space<semaphore_mem>>)
    %c0 = arith.constant 0 : index
    %c0_0 = arith.constant 0 : index
    %4 = vector.load %arg0[%c0, %c0_0] : memref<16x51xf32, #tpu.memory_space<vmem>>, vector<16x51xf32>
    %5 = arith.truncf %4 : vector<16x51xf32> to vector<16x51xbf16>
    %c0_1 = arith.constant 0 : index
    %c0_2 = arith.constant 0 : index
    %6 = vector.load %arg1[%c0_1, %c0_2] : memref<51x2048xbf16, #tpu.memory_space<vmem>>, vector<51x2048xbf16>
    %cst = arith.constant dense<0.000000e+00> : vector<16x2048xf32>
    %7 = tpu.matmul %5, %6, %cst {dimension_numbers = #tpu.dot_dimension_numbers<[1], [0], [0], [1], [0, 0, 1, 1], [], []>} : vector<16x51xbf16>, vector<51x2048xbf16>, vector<16x2048xf32> -> vector<16x2048xf32>
    %c0_3 = arith.constant 0 : index
    %c0_4 = arith.constant 0 : index
    %8 = vector.load %arg11[%c0_3, %c0_4] : memref<1x4608xf32, #tpu.memory_space<vmem>>, vector<1x2048xf32>
    %9 = vector.broadcast %8 : vector<1x2048xf32> to vector<16x2048xf32>
    %10 = arith.addf %7, %9 : vector<16x2048xf32>
    %c0_i32_5 = arith.constant 0 : i32
    %11 = tpu.memref_slice %arg15[%c0_i32_5] : memref<2x!tpu.dma_semaphore, #tpu.memory_space<semaphore_mem>> -> memref<1x!tpu.dma_semaphore, #tpu.memory_space<semaphore_mem>>
    %12 = tpu.memref_squeeze %11 : memref<1x!tpu.dma_semaphore, #tpu.memory_space<semaphore_mem>> -> memref<!tpu.dma_semaphore, #tpu.memory_space<semaphore_mem>>
    tpu.wait_dma2 semaphore(%12 : memref<!tpu.dma_semaphore, #tpu.memory_space<semaphore_mem>>) src(%arg2 : memref<2048x1024xbf16, #tpu.memory_space<any>>) dst(%arg13 : memref<2048x1024xbf16, #tpu.memory_space<vmem>>)
    %cst_6 = arith.constant 0.000000e+00 : f32
    %13 = vector.broadcast %cst_6 : f32 to vector<16x2048xf32>
    %14 = arith.maximumf %10, %13 : vector<16x2048xf32>
    %15 = arith.truncf %14 : vector<16x2048xf32> to vector<16x2048xbf16>
    %c0_7 = arith.constant 0 : index
    %c0_8 = arith.constant 0 : index
    %16 = vector.load %arg13[%c0_7, %c0_8] : memref<2048x1024xbf16, #tpu.memory_space<vmem>>, vector<2048x1024xbf16>
    %cst_9 = arith.constant dense<0.000000e+00> : vector<16x1024xf32>
    %17 = tpu.matmul %15, %16, %cst_9 {dimension_numbers = #tpu.dot_dimension_numbers<[1], [0], [0], [1], [0, 0, 1, 1], [], []>} : vector<16x2048xbf16>, vector<2048x1024xbf16>, vector<16x1024xf32> -> vector<16x1024xf32>
    %c0_10 = arith.constant 0 : index
    %c2048 = arith.constant 2048 : index
    %18 = vector.load %arg11[%c0_10, %c2048] : memref<1x4608xf32, #tpu.memory_space<vmem>>, vector<1x1024xf32>
    %19 = vector.broadcast %18 : vector<1x1024xf32> to vector<16x1024xf32>
    %20 = arith.addf %17, %19 : vector<16x1024xf32>
    %c1_i32_11 = arith.constant 1 : i32
    %21 = tpu.memref_slice %arg15[%c1_i32_11] : memref<2x!tpu.dma_semaphore, #tpu.memory_space<semaphore_mem>> -> memref<1x!tpu.dma_semaphore, #tpu.memory_space<semaphore_mem>>
    %22 = tpu.memref_squeeze %21 : memref<1x!tpu.dma_semaphore, #tpu.memory_space<semaphore_mem>> -> memref<!tpu.dma_semaphore, #tpu.memory_space<semaphore_mem>>
    tpu.wait_dma2 semaphore(%22 : memref<!tpu.dma_semaphore, #tpu.memory_space<semaphore_mem>>) src(%arg3 : memref<1024x512xbf16, #tpu.memory_space<any>>) dst(%arg14 : memref<1024x512xbf16, #tpu.memory_space<vmem>>)
    %cst_12 = arith.constant 0.000000e+00 : f32
    %23 = vector.broadcast %cst_12 : f32 to vector<16x1024xf32>
    %24 = arith.maximumf %20, %23 : vector<16x1024xf32>
    %25 = arith.truncf %24 : vector<16x1024xf32> to vector<16x1024xbf16>
    %c0_13 = arith.constant 0 : index
    %c0_14 = arith.constant 0 : index
    %26 = vector.load %arg14[%c0_13, %c0_14] : memref<1024x512xbf16, #tpu.memory_space<vmem>>, vector<1024x512xbf16>
    %cst_15 = arith.constant dense<0.000000e+00> : vector<16x512xf32>
    %27 = tpu.matmul %25, %26, %cst_15 {dimension_numbers = #tpu.dot_dimension_numbers<[1], [0], [0], [1], [0, 0, 1, 1], [], []>} : vector<16x1024xbf16>, vector<1024x512xbf16>, vector<16x512xf32> -> vector<16x512xf32>
    %c0_16 = arith.constant 0 : index
    %c3072 = arith.constant 3072 : index
    %28 = vector.load %arg11[%c0_16, %c3072] : memref<1x4608xf32, #tpu.memory_space<vmem>>, vector<1x512xf32>
    %29 = vector.broadcast %28 : vector<1x512xf32> to vector<16x512xf32>
    %30 = arith.addf %27, %29 : vector<16x512xf32>
    %cst_17 = arith.constant 0.000000e+00 : f32
    %31 = vector.broadcast %cst_17 : f32 to vector<16x512xf32>
    %32 = arith.maximumf %30, %31 : vector<16x512xf32>
    %33 = arith.truncf %32 : vector<16x512xf32> to vector<16x512xbf16>
    %c0_18 = arith.constant 0 : index
    %c0_19 = arith.constant 0 : index
    %34 = vector.load %arg4[%c0_18, %c0_19] : memref<512x256xbf16, #tpu.memory_space<vmem>>, vector<512x256xbf16>
    %cst_20 = arith.constant dense<0.000000e+00> : vector<16x256xf32>
    %35 = tpu.matmul %33, %34, %cst_20 {dimension_numbers = #tpu.dot_dimension_numbers<[1], [0], [0], [1], [0, 0, 1, 1], [], []>} : vector<16x512xbf16>, vector<512x256xbf16>, vector<16x256xf32> -> vector<16x256xf32>
    %c0_21 = arith.constant 0 : index
    %c3584 = arith.constant 3584 : index
    %36 = vector.load %arg11[%c0_21, %c3584] : memref<1x4608xf32, #tpu.memory_space<vmem>>, vector<1x256xf32>
    %37 = vector.broadcast %36 : vector<1x256xf32> to vector<16x256xf32>
    %38 = arith.addf %35, %37 : vector<16x256xf32>
    %cst_22 = arith.constant 0.000000e+00 : f32
    %39 = vector.broadcast %cst_22 : f32 to vector<16x256xf32>
    %40 = arith.maximumf %38, %39 : vector<16x256xf32>
    %41 = arith.truncf %40 : vector<16x256xf32> to vector<16x256xbf16>
    %c0_23 = arith.constant 0 : index
    %c0_24 = arith.constant 0 : index
    %42 = vector.load %arg5[%c0_23, %c0_24] : memref<256x128xbf16, #tpu.memory_space<vmem>>, vector<256x128xbf16>
    %cst_25 = arith.constant dense<0.000000e+00> : vector<16x128xf32>
    %43 = tpu.matmul %41, %42, %cst_25 {dimension_numbers = #tpu.dot_dimension_numbers<[1], [0], [0], [1], [0, 0, 1, 1], [], []>} : vector<16x256xbf16>, vector<256x128xbf16>, vector<16x128xf32> -> vector<16x128xf32>
    %c0_26 = arith.constant 0 : index
    %c3840 = arith.constant 3840 : index
    %44 = vector.load %arg11[%c0_26, %c3840] : memref<1x4608xf32, #tpu.memory_space<vmem>>, vector<1x128xf32>
    %45 = vector.broadcast %44 : vector<1x128xf32> to vector<16x128xf32>
    %46 = arith.addf %43, %45 : vector<16x128xf32>
    %cst_27 = arith.constant 0.000000e+00 : f32
    %47 = vector.broadcast %cst_27 : f32 to vector<16x128xf32>
    %48 = arith.maximumf %46, %47 : vector<16x128xf32>
    %49 = arith.truncf %48 : vector<16x128xf32> to vector<16x128xbf16>
    %c0_28 = arith.constant 0 : index
    %c0_29 = arith.constant 0 : index
    %50 = vector.load %arg6[%c0_28, %c0_29] : memref<128x64xbf16, #tpu.memory_space<vmem>>, vector<128x64xbf16>
    %cst_30 = arith.constant dense<0.000000e+00> : vector<16x64xf32>
    %51 = tpu.matmul %49, %50, %cst_30 {dimension_numbers = #tpu.dot_dimension_numbers<[1], [0], [0], [1], [0, 0, 1, 1], [], []>} : vector<16x128xbf16>, vector<128x64xbf16>, vector<16x64xf32> -> vector<16x64xf32>
    %c0_31 = arith.constant 0 : index
    %c3968 = arith.constant 3968 : index
    %52 = vector.load %arg11[%c0_31, %c3968] : memref<1x4608xf32, #tpu.memory_space<vmem>>, vector<1x64xf32>
    %53 = vector.broadcast %52 : vector<1x64xf32> to vector<16x64xf32>
    %54 = arith.addf %51, %53 : vector<16x64xf32>
    %cst_32 = arith.constant 0.000000e+00 : f32
    %55 = vector.broadcast %cst_32 : f32 to vector<16x64xf32>
    %56 = arith.maximumf %54, %55 : vector<16x64xf32>
    %57 = arith.truncf %56 : vector<16x64xf32> to vector<16x64xbf16>
    %c0_33 = arith.constant 0 : index
    %c0_34 = arith.constant 0 : index
    %58 = vector.load %arg7[%c0_33, %c0_34] : memref<64x32xbf16, #tpu.memory_space<vmem>>, vector<64x32xbf16>
    %cst_35 = arith.constant dense<0.000000e+00> : vector<16x32xf32>
    %59 = tpu.matmul %57, %58, %cst_35 {dimension_numbers = #tpu.dot_dimension_numbers<[1], [0], [0], [1], [0, 0, 1, 1], [], []>} : vector<16x64xbf16>, vector<64x32xbf16>, vector<16x32xf32> -> vector<16x32xf32>
    %c0_36 = arith.constant 0 : index
    %c4096 = arith.constant 4096 : index
    %60 = vector.load %arg11[%c0_36, %c4096] : memref<1x4608xf32, #tpu.memory_space<vmem>>, vector<1x32xf32>
    %61 = vector.broadcast %60 : vector<1x32xf32> to vector<16x32xf32>
    %62 = arith.addf %59, %61 : vector<16x32xf32>
    %cst_37 = arith.constant 0.000000e+00 : f32
    %63 = vector.broadcast %cst_37 : f32 to vector<16x32xf32>
    %64 = arith.maximumf %62, %63 : vector<16x32xf32>
    %65 = arith.truncf %64 : vector<16x32xf32> to vector<16x32xbf16>
    %c0_38 = arith.constant 0 : index
    %c0_39 = arith.constant 0 : index
    %66 = vector.load %arg8[%c0_38, %c0_39] : memref<32x16xbf16, #tpu.memory_space<vmem>>, vector<32x16xbf16>
    %cst_40 = arith.constant dense<0.000000e+00> : vector<16x16xf32>
    %67 = tpu.matmul %65, %66, %cst_40 {dimension_numbers = #tpu.dot_dimension_numbers<[1], [0], [0], [1], [0, 0, 1, 1], [], []>} : vector<16x32xbf16>, vector<32x16xbf16>, vector<16x16xf32> -> vector<16x16xf32>
    %c0_41 = arith.constant 0 : index
    %c4224 = arith.constant 4224 : index
    %68 = vector.load %arg11[%c0_41, %c4224] : memref<1x4608xf32, #tpu.memory_space<vmem>>, vector<1x16xf32>
    %69 = vector.broadcast %68 : vector<1x16xf32> to vector<16x16xf32>
    %70 = arith.addf %67, %69 : vector<16x16xf32>
    %cst_42 = arith.constant 0.000000e+00 : f32
    %71 = vector.broadcast %cst_42 : f32 to vector<16x16xf32>
    %72 = arith.maximumf %70, %71 : vector<16x16xf32>
    %73 = arith.truncf %72 : vector<16x16xf32> to vector<16x16xbf16>
    %c0_43 = arith.constant 0 : index
    %c0_44 = arith.constant 0 : index
    %74 = vector.load %arg9[%c0_43, %c0_44] : memref<16x8xbf16, #tpu.memory_space<vmem>>, vector<16x8xbf16>
    %cst_45 = arith.constant dense<0.000000e+00> : vector<16x8xf32>
    %75 = tpu.matmul %73, %74, %cst_45 {dimension_numbers = #tpu.dot_dimension_numbers<[1], [0], [0], [1], [0, 0, 1, 1], [], []>} : vector<16x16xbf16>, vector<16x8xbf16>, vector<16x8xf32> -> vector<16x8xf32>
    %c0_46 = arith.constant 0 : index
    %c4352 = arith.constant 4352 : index
    %76 = vector.load %arg11[%c0_46, %c4352] : memref<1x4608xf32, #tpu.memory_space<vmem>>, vector<1x8xf32>
    %77 = vector.broadcast %76 : vector<1x8xf32> to vector<16x8xf32>
    %78 = arith.addf %75, %77 : vector<16x8xf32>
    %cst_47 = arith.constant 0.000000e+00 : f32
    %79 = vector.broadcast %cst_47 : f32 to vector<16x8xf32>
    %80 = arith.maximumf %78, %79 : vector<16x8xf32>
    %81 = arith.truncf %80 : vector<16x8xf32> to vector<16x8xbf16>
    %c0_48 = arith.constant 0 : index
    %c0_49 = arith.constant 0 : index
    %82 = vector.load %arg10[%c0_48, %c0_49] : memref<8x2xbf16, #tpu.memory_space<vmem>>, vector<8x2xbf16>
    %cst_50 = arith.constant dense<0.000000e+00> : vector<16x2xf32>
    %83 = tpu.matmul %81, %82, %cst_50 {dimension_numbers = #tpu.dot_dimension_numbers<[1], [0], [0], [1], [0, 0, 1, 1], [], []>} : vector<16x8xbf16>, vector<8x2xbf16>, vector<16x2xf32> -> vector<16x2xf32>
    %c0_51 = arith.constant 0 : index
    %c4480 = arith.constant 4480 : index
    %84 = vector.load %arg11[%c0_51, %c4480] : memref<1x4608xf32, #tpu.memory_space<vmem>>, vector<1x2xf32>
    %85 = vector.broadcast %84 : vector<1x2xf32> to vector<16x2xf32>
    %86 = arith.addf %83, %85 : vector<16x2xf32>
    %c0_52 = arith.constant 0 : index
    %c0_53 = arith.constant 0 : index
    %87 = vector.load %arg12[%c0_52, %c0_53] : memref<16x2xf32, #tpu.memory_space<vmem>>, vector<16x2xf32>
    tpu.vector_store %arg12[%c0_52, %c0_53], %86 {strides = array<i32>} : memref<16x2xf32, #tpu.memory_space<vmem>>, vector<16x2xf32>,
    return
  }
}

</mosaic_0001>

<bundles_post_ra>
// kernel: mynet_forward.1
= control target key start
LH: loop header
LB: loop body
LE: loop exit
PB: predicated region body
PF: predicated region fallthrough
CT: control target
= control target key end

     0   :  { %s42_s21 = sld [smem:[#allocation0]]   ;;  %s9966_s22 = smov [#allocation2]   ;;  %s12258_s0 = inlined_call_operand.vmem [shape: f32[16,51], index: 0, kind: input, shape index: {}]   ;;  %s12259_s1 = inlined_call_operand.vmem [shape: bf16[51,2048], index: 1, kind: input, shape index: {}]   ;;  %s12260_s2 = inlined_call_operand.hbm [shape: bf16[2048,1024], index: 2, kind: input, shape index: {}]   ;;  %s12261_s3 = inlined_call_operand.vmem [shape: bf16[1024,512], index: 3, kind: input, shape index: {}]   ;;  %s12262_s4 = inlined_call_operand.vmem [shape: bf16[512,256], index: 4, kind: input, shape index: {}]   ;;  %s12263_s5 = inlined_call_operand.vmem [shape: bf16[256,128], index: 5, kind: input, shape index: {}]   ;;  %s12264_s6 = inlined_call_operand.vmem [shape: bf16[128,64], index: 6, kind: input, shape index: {}]   ;;  %s12265_s7 = inlined_call_operand.vmem [shape: bf16[64,32], index: 7, kind: input, shape index: {}]   ;;  %s12266_s8 = inlined_call_operand.vmem [shape: bf16[32,16], index: 8, kind: input, shape index: {}]   ;;  %s12267_s9 = inlined_call_operand.vmem [shape: bf16[16,8], index: 9, kind: input, shape index: {}]   ;;  %s12268_s10 = inlined_call_operand.vmem [shape: bf16[8,2], index: 10, kind: input, shape index: {}]   ;;  %s12269_s11 = inlined_call_operand.vmem [shape: f32[1,4608], index: 11, kind: input, shape index: {}]   ;;  %s12270_s12 = inlined_call_operand.vmem [shape: f32[16,2], index: 12, kind: output, shape index: {}]  }
   0x1   :  { %s50_s23 = sshll.u32 %s9966_s22, 4  ;;  %s9967_s24 = smov 1024   ;;  %s51_s23 = int_to_ptr.vmem [resolvable:$true] %s50_s23 }
   0x2   :  { %54 = sst [smem:[#allocation6]] %s9967_s24  ;;  %s9968_s25 = smov 8  }
   0x3   :  { %56 = sst [smem:[#allocation6 + $0x1]] %s9967_s24  ;;  %s9969_s26 = smov 64  }
   0x4   :  { %58 = sst [smem:[#allocation6 + $0x2]] %s9968_s25  ;;  %s9970_s28 = smov 128  }
   0x5   :  { %60 = sst [smem:[#allocation6 + $0x3]] %s9969_s26  ;;  %s9971_s30 = smov 2  }
   0x6   :  { %s9356_s27 = sshll.u32 %s42_s21, 26  ;;  %62 = sst [smem:[#allocation6 + $0x4]] %s9970_s28 }
   0x7   :  { %s9357_s29 = sadd.s32 134217728, %s9356_s27  ;;  %64 = sst [smem:[#allocation6 + $0x5]] %s9971_s30 }
   0x8   :  { %s9972_s13 = smov 512   ;;  %68 = sst [smem:[#allocation6 + $0x7]] %s9969_s26 }
   0x9   :  { %66 = sst [smem:[#allocation6 + $0x6]] %s9972_s13  ;;  %s9973_s14 = smov 4  }
   0xa   :  { %70 = sst [smem:[#allocation6 + $0x8]] %s9973_s14  ;;  %s9974_s15 = smov [#allocation4]  }
   0xb   :  { %s9975_s16 = smov [#allocation5]  }
   0xc   :  { %72 = dma.general %s12260_s2, 131072, %s51_s23, %s9974_s15, %s9975_s16, [#allocation6], %s9357_s29, 0  }
   0xd   :  { %v91_v0 = vld [vmem:[%s12261_s3] sm:$0xf]  ;;  %v93_v1 = vld [vmem:[%s12261_s3 + $0x10] sm:$0xf]  ;;  %v95_v2 = vld [vmem:[%s12261_s3 + $0x4] sm:$0xf] }
   0xe   :  { %92 = vst [vmem:[#allocation3] sm:$0xf] %v91_v0  ;;  %94 = vst [vmem:[#allocation3 + $0x4] sm:$0xf] %v93_v1  ;;  %v97_v3 = vld [vmem:[%s12261_s3 + $0x14] sm:$0xf] }
   0xf   :  { %96 = vst [vmem:[#allocation3 + $0x8] sm:$0xf] %v95_v2  ;;  %v99_v4 = vld [vmem:[%s12261_s3 + $0x8] sm:$0xf]  ;;  %v101_v5 = vld [vmem:[%s12261_s3 + $0x18] sm:$0xf] }
  0x10   :  { %98 = vst [vmem:[#allocation3 + $0xc] sm:$0xf] %v97_v3  ;;  %100 = vst [vmem:[#allocation3 + $0x10] sm:$0xf] %v99_v4  ;;  %v103_v6 = vld [vmem:[%s12261_s3 + $0xc] sm:$0xf] }
  0x11   :  { %102 = vst [vmem:[#allocation3 + $0x14] sm:$0xf] %v101_v5  ;;  %v105_v7 = vld [vmem:[%s12261_s3 + $0x1c] sm:$0xff]   ;;  %v109_v8 = vld [vmem:[%s12261_s3 + $0x30] sm:$0xf] }
  0x12   :  { %104 = vst [vmem:[#allocation3 + $0x18] sm:$0xf] %v103_v6  ;;  %106 = vst [vmem:[#allocation3 + $0x1c] sm:$0xff] %v105_v7   ;;  %v111_v9 = vld [vmem:[%s12261_s3 + $0x24] sm:$0xf]  ;;  %v121_v14 = vld [vmem:[%s12261_s3 + $0x3c] sm:$0xff]  }
  0x13   :  { %110 = vst [vmem:[#allocation3 + $0x24] sm:$0xf] %v109_v8  ;;  %v113_v10 = vld [vmem:[%s12261_s3 + $0x34] sm:$0xf]  ;;  %v115_v11 = vld [vmem:[%s12261_s3 + $0x28] sm:$0xf] }
  0x14   :  { %112 = vst [vmem:[#allocation3 + $0x28] sm:$0xf] %v111_v9  ;;  %114 = vst [vmem:[#allocation3 + $0x2c] sm:$0xf] %v113_v10  ;;  %v117_v12 = vld [vmem:[%s12261_s3 + $0x38] sm:$0xf] }
  0x15   :  { %116 = vst [vmem:[#allocation3 + $0x30] sm:$0xf] %v115_v11  ;;  %v119_v13 = vld [vmem:[%s12261_s3 + $0x2c] sm:$0xf]  ;;  %118 = vst [vmem:[#allocation3 + $0x34] sm:$0xf] %v117_v12 }
  0x16   :  { %120 = vst [vmem:[#allocation3 + $0x38] sm:$0xf] %v119_v13  ;;  %122 = vst [vmem:[#allocation3 + $0x3c] sm:$0xff] %v121_v14   ;;  %v125_v15 = vld [vmem:[%s12261_s3 + $0x50] sm:$0xf]  ;;  %v137_v21 = vld [vmem:[%s12261_s3 + $0x5c] sm:$0xff]  }
  0x17   :  { %v127_v16 = vld [vmem:[%s12261_s3 + $0x44] sm:$0xf]  ;;  %v129_v17 = vld [vmem:[%s12261_s3 + $0x54] sm:$0xf]  ;;  %126 = vst [vmem:[#allocation3 + $0x44] sm:$0xf] %v125_v15 }
  0x18   :  { %128 = vst [vmem:[#allocation3 + $0x48] sm:$0xf] %v127_v16  ;;  %130 = vst [vmem:[#allocation3 + $0x4c] sm:$0xf] %v129_v17  ;;  %v131_v18 = vld [vmem:[%s12261_s3 + $0x48] sm:$0xf] }
  0x19   :  { %v133_v19 = vld [vmem:[%s12261_s3 + $0x58] sm:$0xf]  ;;  %v135_v20 = vld [vmem:[%s12261_s3 + $0x4c] sm:$0xf]  ;;  %132 = vst [vmem:[#allocation3 + $0x50] sm:$0xf] %v131_v18 }
  0x1a   :  { %134 = vst [vmem:[#allocation3 + $0x54] sm:$0xf] %v133_v19  ;;  %136 = vst [vmem:[#allocation3 + $0x58] sm:$0xf] %v135_v20  ;;  %v141_v22 = vld [vmem:[%s12261_s3 + $0x70] sm:$0xf] }
  0x1b   :  { %v143_v23 = vld [vmem:[%s12261_s3 + $0x64] sm:$0xf]  ;;  %138 = vst [vmem:[#allocation3 + $0x5c] sm:$0xff] %v137_v21   ;;  %142 = vst [vmem:[#allocation3 + $0x64] sm:$0xf] %v141_v22  ;;  %v153_v28 = vld [vmem:[%s12261_s3 + $0x7c] sm:$0xff]  }
  0x1c   :  { %144 = vst [vmem:[#allocation3 + $0x68] sm:$0xf] %v143_v23  ;;  %v145_v24 = vld [vmem:[%s12261_s3 + $0x74] sm:$0xf]  ;;  %v147_v25 = vld [vmem:[%s12261_s3 + $0x68] sm:$0xf] }
  0x1d   :  { %v149_v26 = vld [vmem:[%s12261_s3 + $0x78] sm:$0xf]  ;;  %146 = vst [vmem:[#allocation3 + $0x6c] sm:$0xf] %v145_v24  ;;  %148 = vst [vmem:[#allocation3 + $0x70] sm:$0xf] %v147_v25 }
  0x1e   :  { %150 = vst [vmem:[#allocation3 + $0x74] sm:$0xf] %v149_v26  ;;  %v151_v27 = vld [vmem:[%s12261_s3 + $0x6c] sm:$0xf]  ;;  %v157_v29 = vld [vmem:[%s12261_s3 + $0x90] sm:$0xf] }
  0x1f   :  { %152 = vst [vmem:[#allocation3 + $0x78] sm:$0xf] %v151_v27  ;;  %154 = vst [vmem:[#allocation3 + $0x7c] sm:$0xff] %v153_v28   ;;  %v159_v30 = vld [vmem:[%s12261_s3 + $0x84] sm:$0xf]  ;;  %v169_v35 = vld [vmem:[%s12261_s3 + $0x9c] sm:$0xff]  }
  0x20   :  { %158 = vst [vmem:[#allocation3 + $0x84] sm:$0xf] %v157_v29  ;;  %v161_v31 = vld [vmem:[%s12261_s3 + $0x94] sm:$0xf]  ;;  %v163_v32 = vld [vmem:[%s12261_s3 + $0x88] sm:$0xf] }
  0x21   :  { %160 = vst [vmem:[#allocation3 + $0x88] sm:$0xf] %v159_v30  ;;  %162 = vst [vmem:[#allocation3 + $0x8c] sm:$0xf] %v161_v31  ;;  %v165_v33 = vld [vmem:[%s12261_s3 + $0x98] sm:$0xf] }
  0x22   :  { %164 = vst [vmem:[#allocation3 + $0x90] sm:$0xf] %v163_v32  ;;  %v167_v34 = vld [vmem:[%s12261_s3 + $0x8c] sm:$0xf]  ;;  %166 = vst [vmem:[#allocation3 + $0x94] sm:$0xf] %v165_v33 }
  0x23   :  { %168 = vst [vmem:[#allocation3 + $0x98] sm:$0xf] %v167_v34  ;;  %170 = vst [vmem:[#allocation3 + $0x9c] sm:$0xff] %v169_v35   ;;  %v173_v36 = vld [vmem:[%s12261_s3 + $0xb0] sm:$0xf]  ;;  %v185_v42 = vld [vmem:[%s12261_s3 + $0xbc] sm:$0xff]  }
  0x24   :  { %v175_v37 = vld [vmem:[%s12261_s3 + $0xa4] sm:$0xf]  ;;  %v177_v38 = vld [vmem:[%s12261_s3 + $0xb4] sm:$0xf]  ;;  %174 = vst [vmem:[#allocation3 + $0xa4] sm:$0xf] %v173_v36 }
  0x25   :  { %176 = vst [vmem:[#allocation3 + $0xa8] sm:$0xf] %v175_v37  ;;  %178 = vst [vmem:[#allocation3 + $0xac] sm:$0xf] %v177_v38  ;;  %v179_v39 = vld [vmem:[%s12261_s3 + $0xa8] sm:$0xf] }
  0x26   :  { %v181_v40 = vld [vmem:[%s12261_s3 + $0xb8] sm:$0xf]  ;;  %v183_v41 = vld [vmem:[%s12261_s3 + $0xac] sm:$0xf]  ;;  %180 = vst [vmem:[#allocation3 + $0xb0] sm:$0xf] %v179_v39 }
  0x27   :  { %182 = vst [vmem:[#allocation3 + $0xb4] sm:$0xf] %v181_v40  ;;  %184 = vst [vmem:[#allocation3 + $0xb8] sm:$0xf] %v183_v41  ;;  %v189_v43 = vld [vmem:[%s12261_s3 + $0xd0] sm:$0xf] }
  0x28   :  { %v191_v44 = vld [vmem:[%s12261_s3 + $0xc4] sm:$0xf]  ;;  %186 = vst [vmem:[#allocation3 + $0xbc] sm:$0xff] %v185_v42   ;;  %190 = vst [vmem:[#allocation3 + $0xc4] sm:$0xf] %v189_v43  ;;  %v201_v49 = vld [vmem:[%s12261_s3 + $0xdc] sm:$0xff]  }
  0x29   :  { %192 = vst [vmem:[#allocation3 + $0xc8] sm:$0xf] %v191_v44  ;;  %v193_v45 = vld [vmem:[%s12261_s3 + $0xd4] sm:$0xf]  ;;  %v195_v46 = vld [vmem:[%s12261_s3 + $0xc8] sm:$0xf] }
  0x2a   :  { %v197_v47 = vld [vmem:[%s12261_s3 + $0xd8] sm:$0xf]  ;;  %194 = vst [vmem:[#allocation3 + $0xcc] sm:$0xf] %v193_v45  ;;  %196 = vst [vmem:[#allocation3 + $0xd0] sm:$0xf] %v195_v46 }
  0x2b   :  { %198 = vst [vmem:[#allocation3 + $0xd4] sm:$0xf] %v197_v47  ;;  %v199_v48 = vld [vmem:[%s12261_s3 + $0xcc] sm:$0xf]  ;;  %v205_v50 = vld [vmem:[%s12261_s3 + $0xf0] sm:$0xf] }
  0x2c   :  { %200 = vst [vmem:[#allocation3 + $0xd8] sm:$0xf] %v199_v48  ;;  %202 = vst [vmem:[#allocation3 + $0xdc] sm:$0xff] %v201_v49   ;;  %v207_v51 = vld [vmem:[%s12261_s3 + $0xe4] sm:$0xf]  ;;  %v217_v56 = vld [vmem:[%s12261_s3 + $0xfc] sm:$0xff]  }
  0x2d   :  { %206 = vst [vmem:[#allocation3 + $0xe4] sm:$0xf] %v205_v50  ;;  %v209_v52 = vld [vmem:[%s12261_s3 + $0xf4] sm:$0xf]  ;;  %v211_v53 = vld [vmem:[%s12261_s3 + $0xe8] sm:$0xf] }
  0x2e   :  { %208 = vst [vmem:[#allocation3 + $0xe8] sm:$0xf] %v207_v51  ;;  %210 = vst [vmem:[#allocation3 + $0xec] sm:$0xf] %v209_v52  ;;  %v213_v54 = vld [vmem:[%s12261_s3 + $0xf8] sm:$0xf] }
  0x2f   :  { %212 = vst [vmem:[#allocation3 + $0xf0] sm:$0xf] %v211_v53  ;;  %v215_v55 = vld [vmem:[%s12261_s3 + $0xec] sm:$0xf]  ;;  %214 = vst [vmem:[#allocation3 + $0xf4] sm:$0xf] %v213_v54 }
  0x30   :  { %216 = vst [vmem:[#allocation3 + $0xf8] sm:$0xf] %v215_v55  ;;  %218 = vst [vmem:[#allocation3 + $0xfc] sm:$0xff] %v217_v56   ;;  %v221_v57 = vld [vmem:[%s12261_s3 + $0x110] sm:$0xf]  ;;  %v233_v63 = vld [vmem:[%s12261_s3 + $0x11c] sm:$0xff]  }
  0x31   :  { %v223_v58 = vld [vmem:[%s12261_s3 + $0x104] sm:$0xf]  ;;  %v225_v59 = vld [vmem:[%s12261_s3 + $0x114] sm:$0xf]  ;;  %222 = vst [vmem:[#allocation3 + $0x104] sm:$0xf] %v221_v57 }
  0x32   :  { %224 = vst [vmem:[#allocation3 + $0x108] sm:$0xf] %v223_v58  ;;  %226 = vst [vmem:[#allocation3 + $0x10c] sm:$0xf] %v225_v59  ;;  %v227_v60 = vld [vmem:[%s12261_s3 + $0x108] sm:$0xf] }
  0x33   :  { %v229_v61 = vld [vmem:[%s12261_s3 + $0x118] sm:$0xf]  ;;  %v231_v62 = vld [vmem:[%s12261_s3 + $0x10c] sm:$0xf]  ;;  %228 = vst [vmem:[#allocation3 + $0x110] sm:$0xf] %v227_v60 }
  0x34   :  { %230 = vst [vmem:[#allocation3 + $0x114] sm:$0xf] %v229_v61  ;;  %232 = vst [vmem:[#allocation3 + $0x118] sm:$0xf] %v231_v62  ;;  %v237_v0 = vld [vmem:[%s12261_s3 + $0x130] sm:$0xf] }
  0x35   :  { %v239_v1 = vld [vmem:[%s12261_s3 + $0x124] sm:$0xf]  ;;  %234 = vst [vmem:[#allocation3 + $0x11c] sm:$0xff] %v233_v63   ;;  %238 = vst [vmem:[#allocation3 + $0x124] sm:$0xf] %v237_v0  ;;  %v249_v6 = vld [vmem:[%s12261_s3 + $0x13c] sm:$0xff]  }
  0x36   :  { %240 = vst [vmem:[#allocation3 + $0x128] sm:$0xf] %v239_v1  ;;  %v241_v2 = vld [vmem:[%s12261_s3 + $0x134] sm:$0xf]  ;;  %v243_v3 = vld [vmem:[%s12261_s3 + $0x128] sm:$0xf] }
  0x37   :  { %v245_v4 = vld [vmem:[%s12261_s3 + $0x138] sm:$0xf]  ;;  %242 = vst [vmem:[#allocation3 + $0x12c] sm:$0xf] %v241_v2  ;;  %244 = vst [vmem:[#allocation3 + $0x130] sm:$0xf] %v243_v3 }
  0x38   :  { %246 = vst [vmem:[#allocation3 + $0x134] sm:$0xf] %v245_v4  ;;  %v247_v5 = vld [vmem:[%s12261_s3 + $0x12c] sm:$0xf]  ;;  %v253_v7 = vld [vmem:[%s12261_s3 + $0x150] sm:$0xf] }
  0x39   :  { %248 = vst [vmem:[#allocation3 + $0x138] sm:$0xf] %v247_v5  ;;  %250 = vst [vmem:[#allocation3 + $0x13c] sm:$0xff] %v249_v6   ;;  %v255_v8 = vld [vmem:[%s12261_s3 + $0x144] sm:$0xf]  ;;  %v265_v13 = vld [vmem:[%s12261_s3 + $0x15c] sm:$0xff]  }
  0x3a   :  { %254 = vst [vmem:[#allocation3 + $0x144] sm:$0xf] %v253_v7  ;;  %v257_v9 = vld [vmem:[%s12261_s3 + $0x154] sm:$0xf]  ;;  %v259_v10 = vld [vmem:[%s12261_s3 + $0x148] sm:$0xf] }
  0x3b   :  { %256 = vst [vmem:[#allocation3 + $0x148] sm:$0xf] %v255_v8  ;;  %258 = vst [vmem:[#allocation3 + $0x14c] sm:$0xf] %v257_v9  ;;  %v261_v11 = vld [vmem:[%s12261_s3 + $0x158] sm:$0xf] }
  0x3c   :  { %260 = vst [vmem:[#allocation3 + $0x150] sm:$0xf] %v259_v10  ;;  %v263_v12 = vld [vmem:[%s12261_s3 + $0x14c] sm:$0xf]  ;;  %262 = vst [vmem:[#allocation3 + $0x154] sm:$0xf] %v261_v11 }
  0x3d   :  { %264 = vst [vmem:[#allocation3 + $0x158] sm:$0xf] %v263_v12  ;;  %266 = vst [vmem:[#allocation3 + $0x15c] sm:$0xff] %v265_v13   ;;  %v269_v14 = vld [vmem:[%s12261_s3 + $0x170] sm:$0xf]  ;;  %v281_v20 = vld [vmem:[%s12261_s3 + $0x17c] sm:$0xff]  }
  0x3e   :  { %v271_v15 = vld [vmem:[%s12261_s3 + $0x164] sm:$0xf]  ;;  %v273_v16 = vld [vmem:[%s12261_s3 + $0x174] sm:$0xf]  ;;  %270 = vst [vmem:[#allocation3 + $0x164] sm:$0xf] %v269_v14 }
  0x3f   :  { %272 = vst [vmem:[#allocation3 + $0x168] sm:$0xf] %v271_v15  ;;  %274 = vst [vmem:[#allocation3 + $0x16c] sm:$0xf] %v273_v16  ;;  %v275_v17 = vld [vmem:[%s12261_s3 + $0x168] sm:$0xf] }
  0x40   :  { %v277_v18 = vld [vmem:[%s12261_s3 + $0x178] sm:$0xf]  ;;  %v279_v19 = vld [vmem:[%s12261_s3 + $0x16c] sm:$0xf]  ;;  %276 = vst [vmem:[#allocation3 + $0x170] sm:$0xf] %v275_v17 }
  0x41   :  { %278 = vst [vmem:[#allocation3 + $0x174] sm:$0xf] %v277_v18  ;;  %280 = vst [vmem:[#allocation3 + $0x178] sm:$0xf] %v279_v19  ;;  %v285_v21 = vld [vmem:[%s12261_s3 + $0x190] sm:$0xf] }
  0x42   :  { %v287_v22 = vld [vmem:[%s12261_s3 + $0x184] sm:$0xf]  ;;  %282 = vst [vmem:[#allocation3 + $0x17c] sm:$0xff] %v281_v20   ;;  %286 = vst [vmem:[#allocation3 + $0x184] sm:$0xf] %v285_v21  ;;  %v297_v27 = vld [vmem:[%s12261_s3 + $0x19c] sm:$0xff]  }
  0x43   :  { %288 = vst [vmem:[#allocation3 + $0x188] sm:$0xf] %v287_v22  ;;  %v289_v23 = vld [vmem:[%s12261_s3 + $0x194] sm:$0xf]  ;;  %v291_v24 = vld [vmem:[%s12261_s3 + $0x188] sm:$0xf] }
  0x44   :  { %v293_v25 = vld [vmem:[%s12261_s3 + $0x198] sm:$0xf]  ;;  %290 = vst [vmem:[#allocation3 + $0x18c] sm:$0xf] %v289_v23  ;;  %292 = vst [vmem:[#allocation3 + $0x190] sm:$0xf] %v291_v24 }
  0x45   :  { %294 = vst [vmem:[#allocation3 + $0x194] sm:$0xf] %v293_v25  ;;  %v295_v26 = vld [vmem:[%s12261_s3 + $0x18c] sm:$0xf]  ;;  %v301_v28 = vld [vmem:[%s12261_s3 + $0x1b0] sm:$0xf] }
  0x46   :  { %296 = vst [vmem:[#allocation3 + $0x198] sm:$0xf] %v295_v26  ;;  %298 = vst [vmem:[#allocation3 + $0x19c] sm:$0xff] %v297_v27   ;;  %v303_v29 = vld [vmem:[%s12261_s3 + $0x1a4] sm:$0xf]  ;;  %v313_v34 = vld [vmem:[%s12261_s3 + $0x1bc] sm:$0xff]  }
  0x47   :  { %302 = vst [vmem:[#allocation3 + $0x1a4] sm:$0xf] %v301_v28  ;;  %v305_v30 = vld [vmem:[%s12261_s3 + $0x1b4] sm:$0xf]  ;;  %v307_v31 = vld [vmem:[%s12261_s3 + $0x1a8] sm:$0xf] }
  0x48   :  { %304 = vst [vmem:[#allocation3 + $0x1a8] sm:$0xf] %v303_v29  ;;  %306 = vst [vmem:[#allocation3 + $0x1ac] sm:$0xf] %v305_v30  ;;  %v309_v32 = vld [vmem:[%s12261_s3 + $0x1b8] sm:$0xf] }
  0x49   :  { %308 = vst [vmem:[#allocation3 + $0x1b0] sm:$0xf] %v307_v31  ;;  %v311_v33 = vld [vmem:[%s12261_s3 + $0x1ac] sm:$0xf]  ;;  %310 = vst [vmem:[#allocation3 + $0x1b4] sm:$0xf] %v309_v32 }
  0x4a   :  { %312 = vst [vmem:[#allocation3 + $0x1b8] sm:$0xf] %v311_v33  ;;  %314 = vst [vmem:[#allocation3 + $0x1bc] sm:$0xff] %v313_v34   ;;  %v317_v35 = vld [vmem:[%s12261_s3 + $0x1d0] sm:$0xf]  ;;  %v329_v41 = vld [vmem:[%s12261_s3 + $0x1dc] sm:$0xff]  }
  0x4b   :  { %v319_v36 = vld [vmem:[%s12261_s3 + $0x1c4] sm:$0xf]  ;;  %v321_v37 = vld [vmem:[%s12261_s3 + $0x1d4] sm:$0xf]  ;;  %318 = vst [vmem:[#allocation3 + $0x1c4] sm:$0xf] %v317_v35 }
  0x4c   :  { %320 = vst [vmem:[#allocation3 + $0x1c8] sm:$0xf] %v319_v36  ;;  %322 = vst [vmem:[#allocation3 + $0x1cc] sm:$0xf] %v321_v37  ;;  %v323_v38 = vld [vmem:[%s12261_s3 + $0x1c8] sm:$0xf] }
  0x4d   :  { %v325_v39 = vld [vmem:[%s12261_s3 + $0x1d8] sm:$0xf]  ;;  %v327_v40 = vld [vmem:[%s12261_s3 + $0x1cc] sm:$0xf]  ;;  %324 = vst [vmem:[#allocation3 + $0x1d0] sm:$0xf] %v323_v38 }
  0x4e   :  { %326 = vst [vmem:[#allocation3 + $0x1d4] sm:$0xf] %v325_v39  ;;  %328 = vst [vmem:[#allocation3 + $0x1d8] sm:$0xf] %v327_v40  ;;  %v333_v42 = vld [vmem:[%s12261_s3 + $0x1f0] sm:$0xf] }
  0x4f   :  { %v335_v43 = vld [vmem:[%s12261_s3 + $0x1e4] sm:$0xf]  ;;  %330 = vst [vmem:[#allocation3 + $0x1dc] sm:$0xff] %v329_v41   ;;  %334 = vst [vmem:[#allocation3 + $0x1e4] sm:$0xf] %v333_v42  ;;  %v345_v48 = vld [vmem:[%s12261_s3 + $0x1fc] sm:$0xff]  }
  0x50   :  { %336 = vst [vmem:[#allocation3 + $0x1e8] sm:$0xf] %v335_v43  ;;  %v337_v44 = vld [vmem:[%s12261_s3 + $0x1f4] sm:$0xf]  ;;  %v339_v45 = vld [vmem:[%s12261_s3 + $0x1e8] sm:$0xf] }
  0x51   :  { %v341_v46 = vld [vmem:[%s12261_s3 + $0x1f8] sm:$0xf]  ;;  %338 = vst [vmem:[#allocation3 + $0x1ec] sm:$0xf] %v337_v44  ;;  %340 = vst [vmem:[#allocation3 + $0x1f0] sm:$0xf] %v339_v45 }
  0x52   :  { %342 = vst [vmem:[#allocation3 + $0x1f4] sm:$0xf] %v341_v46  ;;  %v343_v47 = vld [vmem:[%s12261_s3 + $0x1ec] sm:$0xf]  ;;  %v349_v49 = vld [vmem:[%s12261_s3 + $0x210] sm:$0xf] }
  0x53   :  { %344 = vst [vmem:[#allocation3 + $0x1f8] sm:$0xf] %v343_v47  ;;  %346 = vst [vmem:[#allocation3 + $0x1fc] sm:$0xff] %v345_v48   ;;  %v351_v50 = vld [vmem:[%s12261_s3 + $0x204] sm:$0xf]  ;;  %v361_v55 = vld [vmem:[%s12261_s3 + $0x21c] sm:$0xff]  }
  0x54   :  { %350 = vst [vmem:[#allocation3 + $0x204] sm:$0xf] %v349_v49  ;;  %v353_v51 = vld [vmem:[%s12261_s3 + $0x214] sm:$0xf]  ;;  %v355_v52 = vld [vmem:[%s12261_s3 + $0x208] sm:$0xf] }
  0x55   :  { %352 = vst [vmem:[#allocation3 + $0x208] sm:$0xf] %v351_v50  ;;  %354 = vst [vmem:[#allocation3 + $0x20c] sm:$0xf] %v353_v51  ;;  %v357_v53 = vld [vmem:[%s12261_s3 + $0x218] sm:$0xf] }
  0x56   :  { %356 = vst [vmem:[#allocation3 + $0x210] sm:$0xf] %v355_v52  ;;  %v359_v54 = vld [vmem:[%s12261_s3 + $0x20c] sm:$0xf]  ;;  %358 = vst [vmem:[#allocation3 + $0x214] sm:$0xf] %v357_v53 }
  0x57   :  { %360 = vst [vmem:[#allocation3 + $0x218] sm:$0xf] %v359_v54  ;;  %362 = vst [vmem:[#allocation3 + $0x21c] sm:$0xff] %v361_v55   ;;  %v365_v56 = vld [vmem:[%s12261_s3 + $0x230] sm:$0xf]  ;;  %v377_v62 = vld [vmem:[%s12261_s3 + $0x23c] sm:$0xff]  }
  0x58   :  { %v367_v57 = vld [vmem:[%s12261_s3 + $0x224] sm:$0xf]  ;;  %v369_v58 = vld [vmem:[%s12261_s3 + $0x234] sm:$0xf]  ;;  %366 = vst [vmem:[#allocation3 + $0x224] sm:$0xf] %v365_v56 }
  0x59   :  { %368 = vst [vmem:[#allocation3 + $0x228] sm:$0xf] %v367_v57  ;;  %370 = vst [vmem:[#allocation3 + $0x22c] sm:$0xf] %v369_v58  ;;  %v371_v59 = vld [vmem:[%s12261_s3 + $0x228] sm:$0xf] }
  0x5a   :  { %v373_v60 = vld [vmem:[%s12261_s3 + $0x238] sm:$0xf]  ;;  %v375_v61 = vld [vmem:[%s12261_s3 + $0x22c] sm:$0xf]  ;;  %372 = vst [vmem:[#allocation3 + $0x230] sm:$0xf] %v371_v59 }
  0x5b   :  { %374 = vst [vmem:[#allocation3 + $0x234] sm:$0xf] %v373_v60  ;;  %376 = vst [vmem:[#allocation3 + $0x238] sm:$0xf] %v375_v61  ;;  %v381_v63 = vld [vmem:[%s12261_s3 + $0x250] sm:$0xf] }
  0x5c   :  { %v383_v0 = vld [vmem:[%s12261_s3 + $0x244] sm:$0xf]  ;;  %378 = vst [vmem:[#allocation3 + $0x23c] sm:$0xff] %v377_v62   ;;  %382 = vst [vmem:[#allocation3 + $0x244] sm:$0xf] %v381_v63  ;;  %v393_v5 = vld [vmem:[%s12261_s3 + $0x25c] sm:$0xff]  }
  0x5d   :  { %384 = vst [vmem:[#allocation3 + $0x248] sm:$0xf] %v383_v0  ;;  %v385_v1 = vld [vmem:[%s12261_s3 + $0x254] sm:$0xf]  ;;  %v387_v2 = vld [vmem:[%s12261_s3 + $0x248] sm:$0xf] }
  0x5e   :  { %v389_v3 = vld [vmem:[%s12261_s3 + $0x258] sm:$0xf]  ;;  %386 = vst [vmem:[#allocation3 + $0x24c] sm:$0xf] %v385_v1  ;;  %388 = vst [vmem:[#allocation3 + $0x250] sm:$0xf] %v387_v2 }
  0x5f   :  { %390 = vst [vmem:[#allocation3 + $0x254] sm:$0xf] %v389_v3  ;;  %v391_v4 = vld [vmem:[%s12261_s3 + $0x24c] sm:$0xf]  ;;  %v397_v6 = vld [vmem:[%s12261_s3 + $0x270] sm:$0xf] }
  0x60   :  { %392 = vst [vmem:[#allocation3 + $0x258] sm:$0xf] %v391_v4  ;;  %394 = vst [vmem:[#allocation3 + $0x25c] sm:$0xff] %v393_v5   ;;  %v399_v7 = vld [vmem:[%s12261_s3 + $0x264] sm:$0xf]  ;;  %v409_v12 = vld [vmem:[%s12261_s3 + $0x27c] sm:$0xff]  }
  0x61   :  { %398 = vst [vmem:[#allocation3 + $0x264] sm:$0xf] %v397_v6  ;;  %v401_v8 = vld [vmem:[%s12261_s3 + $0x274] sm:$0xf]  ;;  %v403_v9 = vld [vmem:[%s12261_s3 + $0x268] sm:$0xf] }
  0x62   :  { %400 = vst [vmem:[#allocation3 + $0x268] sm:$0xf] %v399_v7  ;;  %402 = vst [vmem:[#allocation3 + $0x26c] sm:$0xf] %v401_v8  ;;  %v405_v10 = vld [vmem:[%s12261_s3 + $0x278] sm:$0xf] }
  0x63   :  { %404 = vst [vmem:[#allocation3 + $0x270] sm:$0xf] %v403_v9  ;;  %v407_v11 = vld [vmem:[%s12261_s3 + $0x26c] sm:$0xf]  ;;  %406 = vst [vmem:[#allocation3 + $0x274] sm:$0xf] %v405_v10 }
  0x64   :  { %408 = vst [vmem:[#allocation3 + $0x278] sm:$0xf] %v407_v11  ;;  %410 = vst [vmem:[#allocation3 + $0x27c] sm:$0xff] %v409_v12   ;;  %v413_v13 = vld [vmem:[%s12261_s3 + $0x290] sm:$0xf]  ;;  %v425_v19 = vld [vmem:[%s12261_s3 + $0x29c] sm:$0xff]  }
  0x65   :  { %v415_v14 = vld [vmem:[%s12261_s3 + $0x284] sm:$0xf]  ;;  %v417_v15 = vld [vmem:[%s12261_s3 + $0x294] sm:$0xf]  ;;  %414 = vst [vmem:[#allocation3 + $0x284] sm:$0xf] %v413_v13 }
  0x66   :  { %416 = vst [vmem:[#allocation3 + $0x288] sm:$0xf] %v415_v14  ;;  %418 = vst [vmem:[#allocation3 + $0x28c] sm:$0xf] %v417_v15  ;;  %v419_v16 = vld [vmem:[%s12261_s3 + $0x288] sm:$0xf] }
  0x67   :  { %v421_v17 = vld [vmem:[%s12261_s3 + $0x298] sm:$0xf]  ;;  %v423_v18 = vld [vmem:[%s12261_s3 + $0x28c] sm:$0xf]  ;;  %420 = vst [vmem:[#allocation3 + $0x290] sm:$0xf] %v419_v16 }
  0x68   :  { %422 = vst [vmem:[#allocation3 + $0x294] sm:$0xf] %v421_v17  ;;  %424 = vst [vmem:[#allocation3 + $0x298] sm:$0xf] %v423_v18  ;;  %v429_v20 = vld [vmem:[%s12261_s3 + $0x2b0] sm:$0xf] }
  0x69   :  { %v431_v21 = vld [vmem:[%s12261_s3 + $0x2a4] sm:$0xf]  ;;  %426 = vst [vmem:[#allocation3 + $0x29c] sm:$0xff] %v425_v19   ;;  %430 = vst [vmem:[#allocation3 + $0x2a4] sm:$0xf] %v429_v20  ;;  %v441_v26 = vld [vmem:[%s12261_s3 + $0x2bc] sm:$0xff]  }
  0x6a   :  { %432 = vst [vmem:[#allocation3 + $0x2a8] sm:$0xf] %v431_v21  ;;  %v433_v22 = vld [vmem:[%s12261_s3 + $0x2b4] sm:$0xf]  ;;  %v435_v23 = vld [vmem:[%s12261_s3 + $0x2a8] sm:$0xf] }
  0x6b   :  { %v437_v24 = vld [vmem:[%s12261_s3 + $0x2b8] sm:$0xf]  ;;  %434 = vst [vmem:[#allocation3 + $0x2ac] sm:$0xf] %v433_v22  ;;  %436 = vst [vmem:[#allocation3 + $0x2b0] sm:$0xf] %v435_v23 }
  0x6c   :  { %438 = vst [vmem:[#allocation3 + $0x2b4] sm:$0xf] %v437_v24  ;;  %v439_v25 = vld [vmem:[%s12261_s3 + $0x2ac] sm:$0xf]  ;;  %v445_v27 = vld [vmem:[%s12261_s3 + $0x2d0] sm:$0xf] }
  0x6d   :  { %440 = vst [vmem:[#allocation3 + $0x2b8] sm:$0xf] %v439_v25  ;;  %442 = vst [vmem:[#allocation3 + $0x2bc] sm:$0xff] %v441_v26   ;;  %v447_v28 = vld [vmem:[%s12261_s3 + $0x2c4] sm:$0xf]  ;;  %v457_v33 = vld [vmem:[%s12261_s3 + $0x2dc] sm:$0xff]  }
  0x6e   :  { %446 = vst [vmem:[#allocation3 + $0x2c4] sm:$0xf] %v445_v27  ;;  %v449_v29 = vld [vmem:[%s12261_s3 + $0x2d4] sm:$0xf]  ;;  %v451_v30 = vld [vmem:[%s12261_s3 + $0x2c8] sm:$0xf] }
  0x6f   :  { %448 = vst [vmem:[#allocation3 + $0x2c8] sm:$0xf] %v447_v28  ;;  %450 = vst [vmem:[#allocation3 + $0x2cc] sm:$0xf] %v449_v29  ;;  %v453_v31 = vld [vmem:[%s12261_s3 + $0x2d8] sm:$0xf] }
  0x70   :  { %452 = vst [vmem:[#allocation3 + $0x2d0] sm:$0xf] %v451_v30  ;;  %v455_v32 = vld [vmem:[%s12261_s3 + $0x2cc] sm:$0xf]  ;;  %454 = vst [vmem:[#allocation3 + $0x2d4] sm:$0xf] %v453_v31 }
  0x71   :  { %456 = vst [vmem:[#allocation3 + $0x2d8] sm:$0xf] %v455_v32  ;;  %458 = vst [vmem:[#allocation3 + $0x2dc] sm:$0xff] %v457_v33   ;;  %v461_v34 = vld [vmem:[%s12261_s3 + $0x2f0] sm:$0xf]  ;;  %v473_v40 = vld [vmem:[%s12261_s3 + $0x2fc] sm:$0xff]  }
  0x72   :  { %v463_v35 = vld [vmem:[%s12261_s3 + $0x2e4] sm:$0xf]  ;;  %v465_v36 = vld [vmem:[%s12261_s3 + $0x2f4] sm:$0xf]  ;;  %462 = vst [vmem:[#allocation3 + $0x2e4] sm:$0xf] %v461_v34 }
  0x73   :  { %464 = vst [vmem:[#allocation3 + $0x2e8] sm:$0xf] %v463_v35  ;;  %466 = vst [vmem:[#allocation3 + $0x2ec] sm:$0xf] %v465_v36  ;;  %v467_v37 = vld [vmem:[%s12261_s3 + $0x2e8] sm:$0xf] }
  0x74   :  { %v469_v38 = vld [vmem:[%s12261_s3 + $0x2f8] sm:$0xf]  ;;  %v471_v39 = vld [vmem:[%s12261_s3 + $0x2ec] sm:$0xf]  ;;  %468 = vst [vmem:[#allocation3 + $0x2f0] sm:$0xf] %v467_v37 }
  0x75   :  { %470 = vst [vmem:[#allocation3 + $0x2f4] sm:$0xf] %v469_v38  ;;  %472 = vst [vmem:[#allocation3 + $0x2f8] sm:$0xf] %v471_v39  ;;  %v477_v41 = vld [vmem:[%s12261_s3 + $0x310] sm:$0xf] }
  0x76   :  { %v479_v42 = vld [vmem:[%s12261_s3 + $0x304] sm:$0xf]  ;;  %474 = vst [vmem:[#allocation3 + $0x2fc] sm:$0xff] %v473_v40   ;;  %478 = vst [vmem:[#allocation3 + $0x304] sm:$0xf] %v477_v41  ;;  %v489_v47 = vld [vmem:[%s12261_s3 + $0x31c] sm:$0xff]  }
  0x77   :  { %480 = vst [vmem:[#allocation3 + $0x308] sm:$0xf] %v479_v42  ;;  %v481_v43 = vld [vmem:[%s12261_s3 + $0x314] sm:$0xf]  ;;  %v483_v44 = vld [vmem:[%s12261_s3 + $0x308] sm:$0xf] }
  0x78   :  { %v485_v45 = vld [vmem:[%s12261_s3 + $0x318] sm:$0xf]  ;;  %482 = vst [vmem:[#allocation3 + $0x30c] sm:$0xf] %v481_v43  ;;  %484 = vst [vmem:[#allocation3 + $0x310] sm:$0xf] %v483_v44 }
  0x79   :  { %486 = vst [vmem:[#allocation3 + $0x314] sm:$0xf] %v485_v45  ;;  %v487_v46 = vld [vmem:[%s12261_s3 + $0x30c] sm:$0xf]  ;;  %v493_v48 = vld [vmem:[%s12261_s3 + $0x330] sm:$0xf] }
  0x7a   :  { %488 = vst [vmem:[#allocation3 + $0x318] sm:$0xf] %v487_v46  ;;  %490 = vst [vmem:[#allocation3 + $0x31c] sm:$0xff] %v489_v47   ;;  %v495_v49 = vld [vmem:[%s12261_s3 + $0x324] sm:$0xf]  ;;  %v505_v54 = vld [vmem:[%s12261_s3 + $0x33c] sm:$0xff]  }
  0x7b   :  { %494 = vst [vmem:[#allocation3 + $0x324] sm:$0xf] %v493_v48  ;;  %v497_v50 = vld [vmem:[%s12261_s3 + $0x334] sm:$0xf]  ;;  %v499_v51 = vld [vmem:[%s12261_s3 + $0x328] sm:$0xf] }
  0x7c   :  { %496 = vst [vmem:[#allocation3 + $0x328] sm:$0xf] %v495_v49  ;;  %498 = vst [vmem:[#allocation3 + $0x32c] sm:$0xf] %v497_v50  ;;  %v501_v52 = vld [vmem:[%s12261_s3 + $0x338] sm:$0xf] }
  0x7d   :  { %500 = vst [vmem:[#allocation3 + $0x330] sm:$0xf] %v499_v51  ;;  %v503_v53 = vld [vmem:[%s12261_s3 + $0x32c] sm:$0xf]  ;;  %502 = vst [vmem:[#allocation3 + $0x334] sm:$0xf] %v501_v52 }
  0x7e   :  { %504 = vst [vmem:[#allocation3 + $0x338] sm:$0xf] %v503_v53  ;;  %506 = vst [vmem:[#allocation3 + $0x33c] sm:$0xff] %v505_v54   ;;  %v509_v55 = vld [vmem:[%s12261_s3 + $0x350] sm:$0xf]  ;;  %v521_v61 = vld [vmem:[%s12261_s3 + $0x35c] sm:$0xff]  }
  0x7f   :  { %v511_v56 = vld [vmem:[%s12261_s3 + $0x344] sm:$0xf]  ;;  %v513_v57 = vld [vmem:[%s12261_s3 + $0x354] sm:$0xf]  ;;  %510 = vst [vmem:[#allocation3 + $0x344] sm:$0xf] %v509_v55 }
  0x80   :  { %512 = vst [vmem:[#allocation3 + $0x348] sm:$0xf] %v511_v56  ;;  %514 = vst [vmem:[#allocation3 + $0x34c] sm:$0xf] %v513_v57  ;;  %v515_v58 = vld [vmem:[%s12261_s3 + $0x348] sm:$0xf] }
  0x81   :  { %v517_v59 = vld [vmem:[%s12261_s3 + $0x358] sm:$0xf]  ;;  %v519_v60 = vld [vmem:[%s12261_s3 + $0x34c] sm:$0xf]  ;;  %516 = vst [vmem:[#allocation3 + $0x350] sm:$0xf] %v515_v58 }
  0x82   :  { %518 = vst [vmem:[#allocation3 + $0x354] sm:$0xf] %v517_v59  ;;  %520 = vst [vmem:[#allocation3 + $0x358] sm:$0xf] %v519_v60  ;;  %v525_v62 = vld [vmem:[%s12261_s3 + $0x370] sm:$0xf] }
  0x83   :  { %v527_v63 = vld [vmem:[%s12261_s3 + $0x364] sm:$0xf]  ;;  %522 = vst [vmem:[#allocation3 + $0x35c] sm:$0xff] %v521_v61   ;;  %526 = vst [vmem:[#allocation3 + $0x364] sm:$0xf] %v525_v62  ;;  %v537_v4 = vld [vmem:[%s12261_s3 + $0x37c] sm:$0xff]  }
  0x84   :  { %528 = vst [vmem:[#allocation3 + $0x368] sm:$0xf] %v527_v63  ;;  %v529_v0 = vld [vmem:[%s12261_s3 + $0x374] sm:$0xf]  ;;  %v531_v1 = vld [vmem:[%s12261_s3 + $0x368] sm:$0xf] }
  0x85   :  { %v533_v2 = vld [vmem:[%s12261_s3 + $0x378] sm:$0xf]  ;;  %530 = vst [vmem:[#allocation3 + $0x36c] sm:$0xf] %v529_v0  ;;  %532 = vst [vmem:[#allocation3 + $0x370] sm:$0xf] %v531_v1 }
  0x86   :  { %534 = vst [vmem:[#allocation3 + $0x374] sm:$0xf] %v533_v2  ;;  %v535_v3 = vld [vmem:[%s12261_s3 + $0x36c] sm:$0xf]  ;;  %v541_v5 = vld [vmem:[%s12261_s3 + $0x390] sm:$0xf] }
  0x87   :  { %536 = vst [vmem:[#allocation3 + $0x378] sm:$0xf] %v535_v3  ;;  %538 = vst [vmem:[#allocation3 + $0x37c] sm:$0xff] %v537_v4   ;;  %v543_v6 = vld [vmem:[%s12261_s3 + $0x384] sm:$0xf]  ;;  %v553_v11 = vld [vmem:[%s12261_s3 + $0x39c] sm:$0xff]  }
  0x88   :  { %542 = vst [vmem:[#allocation3 + $0x384] sm:$0xf] %v541_v5  ;;  %v545_v7 = vld [vmem:[%s12261_s3 + $0x394] sm:$0xf]  ;;  %v547_v8 = vld [vmem:[%s12261_s3 + $0x388] sm:$0xf] }
  0x89   :  { %544 = vst [vmem:[#allocation3 + $0x388] sm:$0xf] %v543_v6  ;;  %546 = vst [vmem:[#allocation3 + $0x38c] sm:$0xf] %v545_v7  ;;  %v549_v9 = vld [vmem:[%s12261_s3 + $0x398] sm:$0xf] }
  0x8a   :  { %548 = vst [vmem:[#allocation3 + $0x390] sm:$0xf] %v547_v8  ;;  %v551_v10 = vld [vmem:[%s12261_s3 + $0x38c] sm:$0xf]  ;;  %550 = vst [vmem:[#allocation3 + $0x394] sm:$0xf] %v549_v9 }
  0x8b   :  { %552 = vst [vmem:[#allocation3 + $0x398] sm:$0xf] %v551_v10  ;;  %554 = vst [vmem:[#allocation3 + $0x39c] sm:$0xff] %v553_v11   ;;  %v557_v12 = vld [vmem:[%s12261_s3 + $0x3b0] sm:$0xf]  ;;  %v569_v18 = vld [vmem:[%s12261_s3 + $0x3bc] sm:$0xff]  }
  0x8c   :  { %v559_v13 = vld [vmem:[%s12261_s3 + $0x3a4] sm:$0xf]  ;;  %v561_v14 = vld [vmem:[%s12261_s3 + $0x3b4] sm:$0xf]  ;;  %558 = vst [vmem:[#allocation3 + $0x3a4] sm:$0xf] %v557_v12 }
  0x8d   :  { %560 = vst [vmem:[#allocation3 + $0x3a8] sm:$0xf] %v559_v13  ;;  %562 = vst [vmem:[#allocation3 + $0x3ac] sm:$0xf] %v561_v14  ;;  %v563_v15 = vld [vmem:[%s12261_s3 + $0x3a8] sm:$0xf] }
  0x8e   :  { %v565_v16 = vld [vmem:[%s12261_s3 + $0x3b8] sm:$0xf]  ;;  %v567_v17 = vld [vmem:[%s12261_s3 + $0x3ac] sm:$0xf]  ;;  %564 = vst [vmem:[#allocation3 + $0x3b0] sm:$0xf] %v563_v15 }
  0x8f   :  { %566 = vst [vmem:[#allocation3 + $0x3b4] sm:$0xf] %v565_v16  ;;  %568 = vst [vmem:[#allocation3 + $0x3b8] sm:$0xf] %v567_v17  ;;  %v573_v19 = vld [vmem:[%s12261_s3 + $0x3d0] sm:$0xf] }
  0x90   :  { %v575_v20 = vld [vmem:[%s12261_s3 + $0x3c4] sm:$0xf]  ;;  %570 = vst [vmem:[#allocation3 + $0x3bc] sm:$0xff] %v569_v18   ;;  %574 = vst [vmem:[#allocation3 + $0x3c4] sm:$0xf] %v573_v19  ;;  %v585_v25 = vld [vmem:[%s12261_s3 + $0x3dc] sm:$0xff]  }
  0x91   :  { %576 = vst [vmem:[#allocation3 + $0x3c8] sm:$0xf] %v575_v20  ;;  %v577_v21 = vld [vmem:[%s12261_s3 + $0x3d4] sm:$0xf]  ;;  %v579_v22 = vld [vmem:[%s12261_s3 + $0x3c8] sm:$0xf] }
  0x92   :  { %v581_v23 = vld [vmem:[%s12261_s3 + $0x3d8] sm:$0xf]  ;;  %578 = vst [vmem:[#allocation3 + $0x3cc] sm:$0xf] %v577_v21  ;;  %580 = vst [vmem:[#allocation3 + $0x3d0] sm:$0xf] %v579_v22 }
  0x93   :  { %582 = vst [vmem:[#allocation3 + $0x3d4] sm:$0xf] %v581_v23  ;;  %v583_v24 = vld [vmem:[%s12261_s3 + $0x3cc] sm:$0xf]  ;;  %v589_v26 = vld [vmem:[%s12261_s3 + $0x3f0] sm:$0xf] }
  0x94   :  { %584 = vst [vmem:[#allocation3 + $0x3d8] sm:$0xf] %v583_v24  ;;  %586 = vst [vmem:[#allocation3 + $0x3dc] sm:$0xff] %v585_v25   ;;  %v591_v27 = vld [vmem:[%s12261_s3 + $0x3e4] sm:$0xf]  ;;  %v601_v32 = vld [vmem:[%s12261_s3 + $0x3fc] sm:$0xff]  }
  0x95   :  { %590 = vst [vmem:[#allocation3 + $0x3e4] sm:$0xf] %v589_v26  ;;  %v593_v28 = vld [vmem:[%s12261_s3 + $0x3f4] sm:$0xf]  ;;  %v595_v29 = vld [vmem:[%s12261_s3 + $0x3e8] sm:$0xf] }
  0x96   :  { %592 = vst [vmem:[#allocation3 + $0x3e8] sm:$0xf] %v591_v27  ;;  %594 = vst [vmem:[#allocation3 + $0x3ec] sm:$0xf] %v593_v28  ;;  %v597_v30 = vld [vmem:[%s12261_s3 + $0x3f8] sm:$0xf] }
  0x97   :  { %596 = vst [vmem:[#allocation3 + $0x3f0] sm:$0xf] %v595_v29  ;;  %v599_v31 = vld [vmem:[%s12261_s3 + $0x3ec] sm:$0xf]  ;;  %598 = vst [vmem:[#allocation3 + $0x3f4] sm:$0xf] %v597_v30 }
  0x98   :  { %600 = vst [vmem:[#allocation3 + $0x3f8] sm:$0xf] %v599_v31  ;;  %602 = vst [vmem:[#allocation3 + $0x3fc] sm:$0xff] %v601_v32   ;;  %v605_v33 = vld [vmem:[%s12261_s3 + $0x410] sm:$0xf]  ;;  %v617_v39 = vld [vmem:[%s12261_s3 + $0x41c] sm:$0xff]  }
  0x99   :  { %v607_v34 = vld [vmem:[%s12261_s3 + $0x404] sm:$0xf]  ;;  %v609_v35 = vld [vmem:[%s12261_s3 + $0x414] sm:$0xf]  ;;  %606 = vst [vmem:[#allocation3 + $0x404] sm:$0xf] %v605_v33 }
  0x9a   :  { %608 = vst [vmem:[#allocation3 + $0x408] sm:$0xf] %v607_v34  ;;  %610 = vst [vmem:[#allocation3 + $0x40c] sm:$0xf] %v609_v35  ;;  %v611_v36 = vld [vmem:[%s12261_s3 + $0x408] sm:$0xf] }
  0x9b   :  { %v613_v37 = vld [vmem:[%s12261_s3 + $0x418] sm:$0xf]  ;;  %v615_v38 = vld [vmem:[%s12261_s3 + $0x40c] sm:$0xf]  ;;  %612 = vst [vmem:[#allocation3 + $0x410] sm:$0xf] %v611_v36 }
  0x9c   :  { %614 = vst [vmem:[#allocation3 + $0x414] sm:$0xf] %v613_v37  ;;  %616 = vst [vmem:[#allocation3 + $0x418] sm:$0xf] %v615_v38  ;;  %v621_v40 = vld [vmem:[%s12261_s3 + $0x430] sm:$0xf] }
  0x9d   :  { %v623_v41 = vld [vmem:[%s12261_s3 + $0x424] sm:$0xf]  ;;  %618 = vst [vmem:[#allocation3 + $0x41c] sm:$0xff] %v617_v39   ;;  %622 = vst [vmem:[#allocation3 + $0x424] sm:$0xf] %v621_v40  ;;  %v633_v46 = vld [vmem:[%s12261_s3 + $0x43c] sm:$0xff]  }
  0x9e   :  { %624 = vst [vmem:[#allocation3 + $0x428] sm:$0xf] %v623_v41  ;;  %v625_v42 = vld [vmem:[%s12261_s3 + $0x434] sm:$0xf]  ;;  %v627_v43 = vld [vmem:[%s12261_s3 + $0x428] sm:$0xf] }
  0x9f   :  { %v629_v44 = vld [vmem:[%s12261_s3 + $0x438] sm:$0xf]  ;;  %626 = vst [vmem:[#allocation3 + $0x42c] sm:$0xf] %v625_v42  ;;  %628 = vst [vmem:[#allocation3 + $0x430] sm:$0xf] %v627_v43 }
  0xa0   :  { %630 = vst [vmem:[#allocation3 + $0x434] sm:$0xf] %v629_v44  ;;  %v631_v45 = vld [vmem:[%s12261_s3 + $0x42c] sm:$0xf]  ;;  %v637_v47 = vld [vmem:[%s12261_s3 + $0x450] sm:$0xf] }
  0xa1   :  { %632 = vst [vmem:[#allocation3 + $0x438] sm:$0xf] %v631_v45  ;;  %634 = vst [vmem:[#allocation3 + $0x43c] sm:$0xff] %v633_v46   ;;  %v639_v48 = vld [vmem:[%s12261_s3 + $0x444] sm:$0xf]  ;;  %v649_v53 = vld [vmem:[%s12261_s3 + $0x45c] sm:$0xff]  }
  0xa2   :  { %638 = vst [vmem:[#allocation3 + $0x444] sm:$0xf] %v637_v47  ;;  %v641_v49 = vld [vmem:[%s12261_s3 + $0x454] sm:$0xf]  ;;  %v643_v50 = vld [vmem:[%s12261_s3 + $0x448] sm:$0xf] }
  0xa3   :  { %640 = vst [vmem:[#allocation3 + $0x448] sm:$0xf] %v639_v48  ;;  %642 = vst [vmem:[#allocation3 + $0x44c] sm:$0xf] %v641_v49  ;;  %v645_v51 = vld [vmem:[%s12261_s3 + $0x458] sm:$0xf] }
  0xa4   :  { %644 = vst [vmem:[#allocation3 + $0x450] sm:$0xf] %v643_v50  ;;  %v647_v52 = vld [vmem:[%s12261_s3 + $0x44c] sm:$0xf]  ;;  %646 = vst [vmem:[#allocation3 + $0x454] sm:$0xf] %v645_v51 }
  0xa5   :  { %648 = vst [vmem:[#allocation3 + $0x458] sm:$0xf] %v647_v52  ;;  %650 = vst [vmem:[#allocation3 + $0x45c] sm:$0xff] %v649_v53   ;;  %v653_v54 = vld [vmem:[%s12261_s3 + $0x470] sm:$0xf]  ;;  %v665_v60 = vld [vmem:[%s12261_s3 + $0x47c] sm:$0xff]  }
  0xa6   :  { %v655_v55 = vld [vmem:[%s12261_s3 + $0x464] sm:$0xf]  ;;  %v657_v56 = vld [vmem:[%s12261_s3 + $0x474] sm:$0xf]  ;;  %654 = vst [vmem:[#allocation3 + $0x464] sm:$0xf] %v653_v54 }
  0xa7   :  { %656 = vst [vmem:[#allocation3 + $0x468] sm:$0xf] %v655_v55  ;;  %658 = vst [vmem:[#allocation3 + $0x46c] sm:$0xf] %v657_v56  ;;  %v659_v57 = vld [vmem:[%s12261_s3 + $0x468] sm:$0xf] }
  0xa8   :  { %v661_v58 = vld [vmem:[%s12261_s3 + $0x478] sm:$0xf]  ;;  %v663_v59 = vld [vmem:[%s12261_s3 + $0x46c] sm:$0xf]  ;;  %660 = vst [vmem:[#allocation3 + $0x470] sm:$0xf] %v659_v57 }
  0xa9   :  { %662 = vst [vmem:[#allocation3 + $0x474] sm:$0xf] %v661_v58  ;;  %664 = vst [vmem:[#allocation3 + $0x478] sm:$0xf] %v663_v59  ;;  %v669_v61 = vld [vmem:[%s12261_s3 + $0x490] sm:$0xf] }
  0xaa   :  { %v671_v62 = vld [vmem:[%s12261_s3 + $0x484] sm:$0xf]  ;;  %666 = vst [vmem:[#allocation3 + $0x47c] sm:$0xff] %v665_v60   ;;  %670 = vst [vmem:[#allocation3 + $0x484] sm:$0xf] %v669_v61  ;;  %v681_v3 = vld [vmem:[%s12261_s3 + $0x49c] sm:$0xff]  }
  0xab   :  { %672 = vst [vmem:[#allocation3 + $0x488] sm:$0xf] %v671_v62  ;;  %v673_v63 = vld [vmem:[%s12261_s3 + $0x494] sm:$0xf]  ;;  %v675_v0 = vld [vmem:[%s12261_s3 + $0x488] sm:$0xf] }
  0xac   :  { %v677_v1 = vld [vmem:[%s12261_s3 + $0x498] sm:$0xf]  ;;  %674 = vst [vmem:[#allocation3 + $0x48c] sm:$0xf] %v673_v63  ;;  %676 = vst [vmem:[#allocation3 + $0x490] sm:$0xf] %v675_v0 }
  0xad   :  { %678 = vst [vmem:[#allocation3 + $0x494] sm:$0xf] %v677_v1  ;;  %v679_v2 = vld [vmem:[%s12261_s3 + $0x48c] sm:$0xf]  ;;  %v685_v4 = vld [vmem:[%s12261_s3 + $0x4b0] sm:$0xf] }
  0xae   :  { %680 = vst [vmem:[#allocation3 + $0x498] sm:$0xf] %v679_v2  ;;  %682 = vst [vmem:[#allocation3 + $0x49c] sm:$0xff] %v681_v3   ;;  %v687_v5 = vld [vmem:[%s12261_s3 + $0x4a4] sm:$0xf]  ;;  %v697_v10 = vld [vmem:[%s12261_s3 + $0x4bc] sm:$0xff]  }
  0xaf   :  { %686 = vst [vmem:[#allocation3 + $0x4a4] sm:$0xf] %v685_v4  ;;  %v689_v6 = vld [vmem:[%s12261_s3 + $0x4b4] sm:$0xf]  ;;  %v691_v7 = vld [vmem:[%s12261_s3 + $0x4a8] sm:$0xf] }
  0xb0   :  { %688 = vst [vmem:[#allocation3 + $0x4a8] sm:$0xf] %v687_v5  ;;  %690 = vst [vmem:[#allocation3 + $0x4ac] sm:$0xf] %v689_v6  ;;  %v693_v8 = vld [vmem:[%s12261_s3 + $0x4b8] sm:$0xf] }
  0xb1   :  { %692 = vst [vmem:[#allocation3 + $0x4b0] sm:$0xf] %v691_v7  ;;  %v695_v9 = vld [vmem:[%s12261_s3 + $0x4ac] sm:$0xf]  ;;  %694 = vst [vmem:[#allocation3 + $0x4b4] sm:$0xf] %v693_v8 }
  0xb2   :  { %696 = vst [vmem:[#allocation3 + $0x4b8] sm:$0xf] %v695_v9  ;;  %698 = vst [vmem:[#allocation3 + $0x4bc] sm:$0xff] %v697_v10   ;;  %v701_v11 = vld [vmem:[%s12261_s3 + $0x4d0] sm:$0xf]  ;;  %v713_v17 = vld [vmem:[%s12261_s3 + $0x4dc] sm:$0xff]  }
  0xb3   :  { %v703_v12 = vld [vmem:[%s12261_s3 + $0x4c4] sm:$0xf]  ;;  %v705_v13 = vld [vmem:[%s12261_s3 + $0x4d4] sm:$0xf]  ;;  %702 = vst [vmem:[#allocation3 + $0x4c4] sm:$0xf] %v701_v11 }
  0xb4   :  { %704 = vst [vmem:[#allocation3 + $0x4c8] sm:$0xf] %v703_v12  ;;  %706 = vst [vmem:[#allocation3 + $0x4cc] sm:$0xf] %v705_v13  ;;  %v707_v14 = vld [vmem:[%s12261_s3 + $0x4c8] sm:$0xf] }
  0xb5   :  { %v709_v15 = vld [vmem:[%s12261_s3 + $0x4d8] sm:$0xf]  ;;  %v711_v16 = vld [vmem:[%s12261_s3 + $0x4cc] sm:$0xf]  ;;  %708 = vst [vmem:[#allocation3 + $0x4d0] sm:$0xf] %v707_v14 }
  0xb6   :  { %710 = vst [vmem:[#allocation3 + $0x4d4] sm:$0xf] %v709_v15  ;;  %712 = vst [vmem:[#allocation3 + $0x4d8] sm:$0xf] %v711_v16  ;;  %v717_v18 = vld [vmem:[%s12261_s3 + $0x4f0] sm:$0xf] }
  0xb7   :  { %v719_v19 = vld [vmem:[%s12261_s3 + $0x4e4] sm:$0xf]  ;;  %714 = vst [vmem:[#allocation3 + $0x4dc] sm:$0xff] %v713_v17   ;;  %718 = vst [vmem:[#allocation3 + $0x4e4] sm:$0xf] %v717_v18  ;;  %v729_v24 = vld [vmem:[%s12261_s3 + $0x4fc] sm:$0xff]  }
  0xb8   :  { %720 = vst [vmem:[#allocation3 + $0x4e8] sm:$0xf] %v719_v19  ;;  %v721_v20 = vld [vmem:[%s12261_s3 + $0x4f4] sm:$0xf]  ;;  %v723_v21 = vld [vmem:[%s12261_s3 + $0x4e8] sm:$0xf] }
  0xb9   :  { %v725_v22 = vld [vmem:[%s12261_s3 + $0x4f8] sm:$0xf]  ;;  %722 = vst [vmem:[#allocation3 + $0x4ec] sm:$0xf] %v721_v20  ;;  %724 = vst [vmem:[#allocation3 + $0x4f0] sm:$0xf] %v723_v21 }
  0xba   :  { %726 = vst [vmem:[#allocation3 + $0x4f4] sm:$0xf] %v725_v22  ;;  %v727_v23 = vld [vmem:[%s12261_s3 + $0x4ec] sm:$0xf]  ;;  %v733_v25 = vld [vmem:[%s12261_s3 + $0x510] sm:$0xf] }
  0xbb   :  { %728 = vst [vmem:[#allocation3 + $0x4f8] sm:$0xf] %v727_v23  ;;  %730 = vst [vmem:[#allocation3 + $0x4fc] sm:$0xff] %v729_v24   ;;  %v735_v26 = vld [vmem:[%s12261_s3 + $0x504] sm:$0xf]  ;;  %v745_v31 = vld [vmem:[%s12261_s3 + $0x51c] sm:$0xff]  }
  0xbc   :  { %734 = vst [vmem:[#allocation3 + $0x504] sm:$0xf] %v733_v25  ;;  %v737_v27 = vld [vmem:[%s12261_s3 + $0x514] sm:$0xf]  ;;  %v739_v28 = vld [vmem:[%s12261_s3 + $0x508] sm:$0xf] }
  0xbd   :  { %736 = vst [vmem:[#allocation3 + $0x508] sm:$0xf] %v735_v26  ;;  %738 = vst [vmem:[#allocation3 + $0x50c] sm:$0xf] %v737_v27  ;;  %v741_v29 = vld [vmem:[%s12261_s3 + $0x518] sm:$0xf] }
  0xbe   :  { %740 = vst [vmem:[#allocation3 + $0x510] sm:$0xf] %v739_v28  ;;  %v743_v30 = vld [vmem:[%s12261_s3 + $0x50c] sm:$0xf]  ;;  %742 = vst [vmem:[#allocation3 + $0x514] sm:$0xf] %v741_v29 }
  0xbf   :  { %744 = vst [vmem:[#allocation3 + $0x518] sm:$0xf] %v743_v30  ;;  %746 = vst [vmem:[#allocation3 + $0x51c] sm:$0xff] %v745_v31   ;;  %v749_v32 = vld [vmem:[%s12261_s3 + $0x530] sm:$0xf]  ;;  %v761_v38 = vld [vmem:[%s12261_s3 + $0x53c] sm:$0xff]  }
  0xc0   :  { %v751_v33 = vld [vmem:[%s12261_s3 + $0x524] sm:$0xf]  ;;  %v753_v34 = vld [vmem:[%s12261_s3 + $0x534] sm:$0xf]  ;;  %750 = vst [vmem:[#allocation3 + $0x524] sm:$0xf] %v749_v32 }
  0xc1   :  { %752 = vst [vmem:[#allocation3 + $0x528] sm:$0xf] %v751_v33  ;;  %754 = vst [vmem:[#allocation3 + $0x52c] sm:$0xf] %v753_v34  ;;  %v755_v35 = vld [vmem:[%s12261_s3 + $0x528] sm:$0xf] }
  0xc2   :  { %v757_v36 = vld [vmem:[%s12261_s3 + $0x538] sm:$0xf]  ;;  %v759_v37 = vld [vmem:[%s12261_s3 + $0x52c] sm:$0xf]  ;;  %756 = vst [vmem:[#allocation3 + $0x530] sm:$0xf] %v755_v35 }
  0xc3   :  { %758 = vst [vmem:[#allocation3 + $0x534] sm:$0xf] %v757_v36  ;;  %760 = vst [vmem:[#allocation3 + $0x538] sm:$0xf] %v759_v37  ;;  %v765_v39 = vld [vmem:[%s12261_s3 + $0x550] sm:$0xf] }
  0xc4   :  { %v767_v40 = vld [vmem:[%s12261_s3 + $0x544] sm:$0xf]  ;;  %762 = vst [vmem:[#allocation3 + $0x53c] sm:$0xff] %v761_v38   ;;  %766 = vst [vmem:[#allocation3 + $0x544] sm:$0xf] %v765_v39  ;;  %v777_v45 = vld [vmem:[%s12261_s3 + $0x55c] sm:$0xff]  }
  0xc5   :  { %768 = vst [vmem:[#allocation3 + $0x548] sm:$0xf] %v767_v40  ;;  %v769_v41 = vld [vmem:[%s12261_s3 + $0x554] sm:$0xf]  ;;  %v771_v42 = vld [vmem:[%s12261_s3 + $0x548] sm:$0xf] }
  0xc6   :  { %v773_v43 = vld [vmem:[%s12261_s3 + $0x558] sm:$0xf]  ;;  %770 = vst [vmem:[#allocation3 + $0x54c] sm:$0xf] %v769_v41  ;;  %772 = vst [vmem:[#allocation3 + $0x550] sm:$0xf] %v771_v42 }
  0xc7   :  { %774 = vst [vmem:[#allocation3 + $0x554] sm:$0xf] %v773_v43  ;;  %v775_v44 = vld [vmem:[%s12261_s3 + $0x54c] sm:$0xf]  ;;  %v781_v46 = vld [vmem:[%s12261_s3 + $0x570] sm:$0xf] }
  0xc8   :  { %776 = vst [vmem:[#allocation3 + $0x558] sm:$0xf] %v775_v44  ;;  %778 = vst [vmem:[#allocation3 + $0x55c] sm:$0xff] %v777_v45   ;;  %v783_v47 = vld [vmem:[%s12261_s3 + $0x564] sm:$0xf]  ;;  %v793_v52 = vld [vmem:[%s12261_s3 + $0x57c] sm:$0xff]  }
  0xc9   :  { %782 = vst [vmem:[#allocation3 + $0x564] sm:$0xf] %v781_v46  ;;  %v785_v48 = vld [vmem:[%s12261_s3 + $0x574] sm:$0xf]  ;;  %v787_v49 = vld [vmem:[%s12261_s3 + $0x568] sm:$0xf] }
  0xca   :  { %784 = vst [vmem:[#allocation3 + $0x568] sm:$0xf] %v783_v47  ;;  %786 = vst [vmem:[#allocation3 + $0x56c] sm:$0xf] %v785_v48  ;;  %v789_v50 = vld [vmem:[%s12261_s3 + $0x578] sm:$0xf] }
  0xcb   :  { %788 = vst [vmem:[#allocation3 + $0x570] sm:$0xf] %v787_v49  ;;  %v791_v51 = vld [vmem:[%s12261_s3 + $0x56c] sm:$0xf]  ;;  %790 = vst [vmem:[#allocation3 + $0x574] sm:$0xf] %v789_v50 }
  0xcc   :  { %792 = vst [vmem:[#allocation3 + $0x578] sm:$0xf] %v791_v51  ;;  %794 = vst [vmem:[#allocation3 + $0x57c] sm:$0xff] %v793_v52   ;;  %v797_v53 = vld [vmem:[%s12261_s3 + $0x590] sm:$0xf]  ;;  %v809_v59 = vld [vmem:[%s12261_s3 + $0x59c] sm:$0xff]  }
  0xcd   :  { %v799_v54 = vld [vmem:[%s12261_s3 + $0x584] sm:$0xf]  ;;  %v801_v55 = vld [vmem:[%s12261_s3 + $0x594] sm:$0xf]  ;;  %798 = vst [vmem:[#allocation3 + $0x584] sm:$0xf] %v797_v53 }
  0xce   :  { %800 = vst [vmem:[#allocation3 + $0x588] sm:$0xf] %v799_v54  ;;  %802 = vst [vmem:[#allocation3 + $0x58c] sm:$0xf] %v801_v55  ;;  %v803_v56 = vld [vmem:[%s12261_s3 + $0x588] sm:$0xf] }
  0xcf   :  { %v805_v57 = vld [vmem:[%s12261_s3 + $0x598] sm:$0xf]  ;;  %v807_v58 = vld [vmem:[%s12261_s3 + $0x58c] sm:$0xf]  ;;  %804 = vst [vmem:[#allocation3 + $0x590] sm:$0xf] %v803_v56 }
  0xd0   :  { %806 = vst [vmem:[#allocation3 + $0x594] sm:$0xf] %v805_v57  ;;  %808 = vst [vmem:[#allocation3 + $0x598] sm:$0xf] %v807_v58  ;;  %v813_v60 = vld [vmem:[%s12261_s3 + $0x5b0] sm:$0xf] }
  0xd1   :  { %v815_v61 = vld [vmem:[%s12261_s3 + $0x5a4] sm:$0xf]  ;;  %810 = vst [vmem:[#allocation3 + $0x59c] sm:$0xff] %v809_v59   ;;  %814 = vst [vmem:[#allocation3 + $0x5a4] sm:$0xf] %v813_v60  ;;  %v825_v2 = vld [vmem:[%s12261_s3 + $0x5bc] sm:$0xff]  }
  0xd2   :  { %816 = vst [vmem:[#allocation3 + $0x5a8] sm:$0xf] %v815_v61  ;;  %v817_v62 = vld [vmem:[%s12261_s3 + $0x5b4] sm:$0xf]  ;;  %v819_v63 = vld [vmem:[%s12261_s3 + $0x5a8] sm:$0xf] }
  0xd3   :  { %v821_v0 = vld [vmem:[%s12261_s3 + $0x5b8] sm:$0xf]  ;;  %818 = vst [vmem:[#allocation3 + $0x5ac] sm:$0xf] %v817_v62  ;;  %820 = vst [vmem:[#allocation3 + $0x5b0] sm:$0xf] %v819_v63 }
  0xd4   :  { %822 = vst [vmem:[#allocation3 + $0x5b4] sm:$0xf] %v821_v0  ;;  %v823_v1 = vld [vmem:[%s12261_s3 + $0x5ac] sm:$0xf]  ;;  %v829_v3 = vld [vmem:[%s12261_s3 + $0x5d0] sm:$0xf] }
  0xd5   :  { %824 = vst [vmem:[#allocation3 + $0x5b8] sm:$0xf] %v823_v1  ;;  %826 = vst [vmem:[#allocation3 + $0x5bc] sm:$0xff] %v825_v2   ;;  %v831_v4 = vld [vmem:[%s12261_s3 + $0x5c4] sm:$0xf]  ;;  %v841_v9 = vld [vmem:[%s12261_s3 + $0x5dc] sm:$0xff]  }
  0xd6   :  { %830 = vst [vmem:[#allocation3 + $0x5c4] sm:$0xf] %v829_v3  ;;  %v833_v5 = vld [vmem:[%s12261_s3 + $0x5d4] sm:$0xf]  ;;  %v835_v6 = vld [vmem:[%s12261_s3 + $0x5c8] sm:$0xf] }
  0xd7   :  { %832 = vst [vmem:[#allocation3 + $0x5c8] sm:$0xf] %v831_v4  ;;  %834 = vst [vmem:[#allocation3 + $0x5cc] sm:$0xf] %v833_v5  ;;  %v837_v7 = vld [vmem:[%s12261_s3 + $0x5d8] sm:$0xf] }
  0xd8   :  { %836 = vst [vmem:[#allocation3 + $0x5d0] sm:$0xf] %v835_v6  ;;  %v839_v8 = vld [vmem:[%s12261_s3 + $0x5cc] sm:$0xf]  ;;  %838 = vst [vmem:[#allocation3 + $0x5d4] sm:$0xf] %v837_v7 }
  0xd9   :  { %840 = vst [vmem:[#allocation3 + $0x5d8] sm:$0xf] %v839_v8  ;;  %842 = vst [vmem:[#allocation3 + $0x5dc] sm:$0xff] %v841_v9   ;;  %v845_v10 = vld [vmem:[%s12261_s3 + $0x5f0] sm:$0xf]  ;;  %v857_v16 = vld [vmem:[%s12261_s3 + $0x5fc] sm:$0xff]  }
  0xda   :  { %v847_v11 = vld [vmem:[%s12261_s3 + $0x5e4] sm:$0xf]  ;;  %v849_v12 = vld [vmem:[%s12261_s3 + $0x5f4] sm:$0xf]  ;;  %846 = vst [vmem:[#allocation3 + $0x5e4] sm:$0xf] %v845_v10 }
  0xdb   :  { %848 = vst [vmem:[#allocation3 + $0x5e8] sm:$0xf] %v847_v11  ;;  %850 = vst [vmem:[#allocation3 + $0x5ec] sm:$0xf] %v849_v12  ;;  %v851_v13 = vld [vmem:[%s12261_s3 + $0x5e8] sm:$0xf] }
  0xdc   :  { %v853_v14 = vld [vmem:[%s12261_s3 + $0x5f8] sm:$0xf]  ;;  %v855_v15 = vld [vmem:[%s12261_s3 + $0x5ec] sm:$0xf]  ;;  %852 = vst [vmem:[#allocation3 + $0x5f0] sm:$0xf] %v851_v13 }
  0xdd   :  { %854 = vst [vmem:[#allocation3 + $0x5f4] sm:$0xf] %v853_v14  ;;  %856 = vst [vmem:[#allocation3 + $0x5f8] sm:$0xf] %v855_v15  ;;  %v861_v17 = vld [vmem:[%s12261_s3 + $0x610] sm:$0xf] }
  0xde   :  { %v863_v18 = vld [vmem:[%s12261_s3 + $0x604] sm:$0xf]  ;;  %858 = vst [vmem:[#allocation3 + $0x5fc] sm:$0xff] %v857_v16   ;;  %862 = vst [vmem:[#allocation3 + $0x604] sm:$0xf] %v861_v17  ;;  %v873_v23 = vld [vmem:[%s12261_s3 + $0x61c] sm:$0xff]  }
  0xdf   :  { %864 = vst [vmem:[#allocation3 + $0x608] sm:$0xf] %v863_v18  ;;  %v865_v19 = vld [vmem:[%s12261_s3 + $0x614] sm:$0xf]  ;;  %v867_v20 = vld [vmem:[%s12261_s3 + $0x608] sm:$0xf] }
  0xe0   :  { %v869_v21 = vld [vmem:[%s12261_s3 + $0x618] sm:$0xf]  ;;  %866 = vst [vmem:[#allocation3 + $0x60c] sm:$0xf] %v865_v19  ;;  %868 = vst [vmem:[#allocation3 + $0x610] sm:$0xf] %v867_v20 }
  0xe1   :  { %870 = vst [vmem:[#allocation3 + $0x614] sm:$0xf] %v869_v21  ;;  %v871_v22 = vld [vmem:[%s12261_s3 + $0x60c] sm:$0xf]  ;;  %v877_v24 = vld [vmem:[%s12261_s3 + $0x630] sm:$0xf] }
  0xe2   :  { %872 = vst [vmem:[#allocation3 + $0x618] sm:$0xf] %v871_v22  ;;  %874 = vst [vmem:[#allocation3 + $0x61c] sm:$0xff] %v873_v23   ;;  %v879_v25 = vld [vmem:[%s12261_s3 + $0x624] sm:$0xf]  ;;  %v889_v30 = vld [vmem:[%s12261_s3 + $0x63c] sm:$0xff]  }
  0xe3   :  { %878 = vst [vmem:[#allocation3 + $0x624] sm:$0xf] %v877_v24  ;;  %v881_v26 = vld [vmem:[%s12261_s3 + $0x634] sm:$0xf]  ;;  %v883_v27 = vld [vmem:[%s12261_s3 + $0x628] sm:$0xf] }
  0xe4   :  { %880 = vst [vmem:[#allocation3 + $0x628] sm:$0xf] %v879_v25  ;;  %882 = vst [vmem:[#allocation3 + $0x62c] sm:$0xf] %v881_v26  ;;  %v885_v28 = vld [vmem:[%s12261_s3 + $0x638] sm:$0xf] }
  0xe5   :  { %884 = vst [vmem:[#allocation3 + $0x630] sm:$0xf] %v883_v27  ;;  %v887_v29 = vld [vmem:[%s12261_s3 + $0x62c] sm:$0xf]  ;;  %886 = vst [vmem:[#allocation3 + $0x634] sm:$0xf] %v885_v28 }
  0xe6   :  { %888 = vst [vmem:[#allocation3 + $0x638] sm:$0xf] %v887_v29  ;;  %890 = vst [vmem:[#allocation3 + $0x63c] sm:$0xff] %v889_v30   ;;  %v893_v31 = vld [vmem:[%s12261_s3 + $0x650] sm:$0xf]  ;;  %v905_v37 = vld [vmem:[%s12261_s3 + $0x65c] sm:$0xff]  }
  0xe7   :  { %v895_v32 = vld [vmem:[%s12261_s3 + $0x644] sm:$0xf]  ;;  %v897_v33 = vld [vmem:[%s12261_s3 + $0x654] sm:$0xf]  ;;  %894 = vst [vmem:[#allocation3 + $0x644] sm:$0xf] %v893_v31 }
  0xe8   :  { %896 = vst [vmem:[#allocation3 + $0x648] sm:$0xf] %v895_v32  ;;  %898 = vst [vmem:[#allocation3 + $0x64c] sm:$0xf] %v897_v33  ;;  %v899_v34 = vld [vmem:[%s12261_s3 + $0x648] sm:$0xf] }
  0xe9   :  { %v901_v35 = vld [vmem:[%s12261_s3 + $0x658] sm:$0xf]  ;;  %v903_v36 = vld [vmem:[%s12261_s3 + $0x64c] sm:$0xf]  ;;  %900 = vst [vmem:[#allocation3 + $0x650] sm:$0xf] %v899_v34 }
  0xea   :  { %902 = vst [vmem:[#allocation3 + $0x654] sm:$0xf] %v901_v35  ;;  %904 = vst [vmem:[#allocation3 + $0x658] sm:$0xf] %v903_v36  ;;  %v909_v38 = vld [vmem:[%s12261_s3 + $0x670] sm:$0xf] }
  0xeb   :  { %v911_v39 = vld [vmem:[%s12261_s3 + $0x664] sm:$0xf]  ;;  %906 = vst [vmem:[#allocation3 + $0x65c] sm:$0xff] %v905_v37   ;;  %910 = vst [vmem:[#allocation3 + $0x664] sm:$0xf] %v909_v38  ;;  %v921_v44 = vld [vmem:[%s12261_s3 + $0x67c] sm:$0xff]  }
  0xec   :  { %912 = vst [vmem:[#allocation3 + $0x668] sm:$0xf] %v911_v39  ;;  %v913_v40 = vld [vmem:[%s12261_s3 + $0x674] sm:$0xf]  ;;  %v915_v41 = vld [vmem:[%s12261_s3 + $0x668] sm:$0xf] }
  0xed   :  { %v917_v42 = vld [vmem:[%s12261_s3 + $0x678] sm:$0xf]  ;;  %914 = vst [vmem:[#allocation3 + $0x66c] sm:$0xf] %v913_v40  ;;  %916 = vst [vmem:[#allocation3 + $0x670] sm:$0xf] %v915_v41 }
  0xee   :  { %918 = vst [vmem:[#allocation3 + $0x674] sm:$0xf] %v917_v42  ;;  %v919_v43 = vld [vmem:[%s12261_s3 + $0x66c] sm:$0xf]  ;;  %v925_v45 = vld [vmem:[%s12261_s3 + $0x690] sm:$0xf] }
  0xef   :  { %920 = vst [vmem:[#allocation3 + $0x678] sm:$0xf] %v919_v43  ;;  %922 = vst [vmem:[#allocation3 + $0x67c] sm:$0xff] %v921_v44   ;;  %v927_v46 = vld [vmem:[%s12261_s3 + $0x684] sm:$0xf]  ;;  %v937_v51 = vld [vmem:[%s12261_s3 + $0x69c] sm:$0xff]  }
  0xf0   :  { %926 = vst [vmem:[#allocation3 + $0x684] sm:$0xf] %v925_v45  ;;  %v929_v47 = vld [vmem:[%s12261_s3 + $0x694] sm:$0xf]  ;;  %v931_v48 = vld [vmem:[%s12261_s3 + $0x688] sm:$0xf] }
  0xf1   :  { %928 = vst [vmem:[#allocation3 + $0x688] sm:$0xf] %v927_v46  ;;  %930 = vst [vmem:[#allocation3 + $0x68c] sm:$0xf] %v929_v47  ;;  %v933_v49 = vld [vmem:[%s12261_s3 + $0x698] sm:$0xf] }
  0xf2   :  { %932 = vst [vmem:[#allocation3 + $0x690] sm:$0xf] %v931_v48  ;;  %v935_v50 = vld [vmem:[%s12261_s3 + $0x68c] sm:$0xf]  ;;  %934 = vst [vmem:[#allocation3 + $0x694] sm:$0xf] %v933_v49 }
  0xf3   :  { %936 = vst [vmem:[#allocation3 + $0x698] sm:$0xf] %v935_v50  ;;  %938 = vst [vmem:[#allocation3 + $0x69c] sm:$0xff] %v937_v51   ;;  %v941_v52 = vld [vmem:[%s12261_s3 + $0x6b0] sm:$0xf]  ;;  %v953_v58 = vld [vmem:[%s12261_s3 + $0x6bc] sm:$0xff]  }
  0xf4   :  { %v943_v53 = vld [vmem:[%s12261_s3 + $0x6a4] sm:$0xf]  ;;  %v945_v54 = vld [vmem:[%s12261_s3 + $0x6b4] sm:$0xf]  ;;  %942 = vst [vmem:[#allocation3 + $0x6a4] sm:$0xf] %v941_v52 }
  0xf5   :  { %944 = vst [vmem:[#allocation3 + $0x6a8] sm:$0xf] %v943_v53  ;;  %946 = vst [vmem:[#allocation3 + $0x6ac] sm:$0xf] %v945_v54  ;;  %v947_v55 = vld [vmem:[%s12261_s3 + $0x6a8] sm:$0xf] }
  0xf6   :  { %v949_v56 = vld [vmem:[%s12261_s3 + $0x6b8] sm:$0xf]  ;;  %v951_v57 = vld [vmem:[%s12261_s3 + $0x6ac] sm:$0xf]  ;;  %948 = vst [vmem:[#allocation3 + $0x6b0] sm:$0xf] %v947_v55 }
  0xf7   :  { %950 = vst [vmem:[#allocation3 + $0x6b4] sm:$0xf] %v949_v56  ;;  %952 = vst [vmem:[#allocation3 + $0x6b8] sm:$0xf] %v951_v57  ;;  %v957_v59 = vld [vmem:[%s12261_s3 + $0x6d0] sm:$0xf] }
  0xf8   :  { %v959_v60 = vld [vmem:[%s12261_s3 + $0x6c4] sm:$0xf]  ;;  %954 = vst [vmem:[#allocation3 + $0x6bc] sm:$0xff] %v953_v58   ;;  %958 = vst [vmem:[#allocation3 + $0x6c4] sm:$0xf] %v957_v59  ;;  %v969_v1 = vld [vmem:[%s12261_s3 + $0x6dc] sm:$0xff]  }
  0xf9   :  { %960 = vst [vmem:[#allocation3 + $0x6c8] sm:$0xf] %v959_v60  ;;  %v961_v61 = vld [vmem:[%s12261_s3 + $0x6d4] sm:$0xf]  ;;  %v963_v62 = vld [vmem:[%s12261_s3 + $0x6c8] sm:$0xf] }
  0xfa   :  { %v965_v63 = vld [vmem:[%s12261_s3 + $0x6d8] sm:$0xf]  ;;  %962 = vst [vmem:[#allocation3 + $0x6cc] sm:$0xf] %v961_v61  ;;  %964 = vst [vmem:[#allocation3 + $0x6d0] sm:$0xf] %v963_v62 }
  0xfb   :  { %966 = vst [vmem:[#allocation3 + $0x6d4] sm:$0xf] %v965_v63  ;;  %v967_v0 = vld [vmem:[%s12261_s3 + $0x6cc] sm:$0xf]  ;;  %v973_v2 = vld [vmem:[%s12261_s3 + $0x6f0] sm:$0xf] }
  0xfc   :  { %968 = vst [vmem:[#allocation3 + $0x6d8] sm:$0xf] %v967_v0  ;;  %970 = vst [vmem:[#allocation3 + $0x6dc] sm:$0xff] %v969_v1   ;;  %v975_v3 = vld [vmem:[%s12261_s3 + $0x6e4] sm:$0xf]  ;;  %v985_v8 = vld [vmem:[%s12261_s3 + $0x6fc] sm:$0xff]  }
  0xfd   :  { %974 = vst [vmem:[#allocation3 + $0x6e4] sm:$0xf] %v973_v2  ;;  %v977_v4 = vld [vmem:[%s12261_s3 + $0x6f4] sm:$0xf]  ;;  %v979_v5 = vld [vmem:[%s12261_s3 + $0x6e8] sm:$0xf] }
  0xfe   :  { %976 = vst [vmem:[#allocation3 + $0x6e8] sm:$0xf] %v975_v3  ;;  %978 = vst [vmem:[#allocation3 + $0x6ec] sm:$0xf] %v977_v4  ;;  %v981_v6 = vld [vmem:[%s12261_s3 + $0x6f8] sm:$0xf] }
  0xff   :  { %980 = vst [vmem:[#allocation3 + $0x6f0] sm:$0xf] %v979_v5  ;;  %v983_v7 = vld [vmem:[%s12261_s3 + $0x6ec] sm:$0xf]  ;;  %982 = vst [vmem:[#allocation3 + $0x6f4] sm:$0xf] %v981_v6 }
 0x100   :  { %984 = vst [vmem:[#allocation3 + $0x6f8] sm:$0xf] %v983_v7  ;;  %986 = vst [vmem:[#allocation3 + $0x6fc] sm:$0xff] %v985_v8   ;;  %v989_v9 = vld [vmem:[%s12261_s3 + $0x710] sm:$0xf]  ;;  %v1001_v15 = vld [vmem:[%s12261_s3 + $0x71c] sm:$0xff]  }
 0x101   :  { %v991_v10 = vld [vmem:[%s12261_s3 + $0x704] sm:$0xf]  ;;  %v993_v11 = vld [vmem:[%s12261_s3 + $0x714] sm:$0xf]  ;;  %990 = vst [vmem:[#allocation3 + $0x704] sm:$0xf] %v989_v9 }
 0x102   :  { %992 = vst [vmem:[#allocation3 + $0x708] sm:$0xf] %v991_v10  ;;  %994 = vst [vmem:[#allocation3 + $0x70c] sm:$0xf] %v993_v11  ;;  %v995_v12 = vld [vmem:[%s12261_s3 + $0x708] sm:$0xf] }
 0x103   :  { %v997_v13 = vld [vmem:[%s12261_s3 + $0x718] sm:$0xf]  ;;  %v999_v14 = vld [vmem:[%s12261_s3 + $0x70c] sm:$0xf]  ;;  %996 = vst [vmem:[#allocation3 + $0x710] sm:$0xf] %v995_v12 }
 0x104   :  { %998 = vst [vmem:[#allocation3 + $0x714] sm:$0xf] %v997_v13  ;;  %1000 = vst [vmem:[#allocation3 + $0x718] sm:$0xf] %v999_v14  ;;  %v1005_v16 = vld [vmem:[%s12261_s3 + $0x730] sm:$0xf] }
 0x105   :  { %v1007_v17 = vld [vmem:[%s12261_s3 + $0x724] sm:$0xf]  ;;  %1002 = vst [vmem:[#allocation3 + $0x71c] sm:$0xff] %v1001_v15   ;;  %1006 = vst [vmem:[#allocation3 + $0x724] sm:$0xf] %v1005_v16  ;;  %v1017_v22 = vld [vmem:[%s12261_s3 + $0x73c] sm:$0xff]  }
 0x106   :  { %1008 = vst [vmem:[#allocation3 + $0x728] sm:$0xf] %v1007_v17  ;;  %v1009_v18 = vld [vmem:[%s12261_s3 + $0x734] sm:$0xf]  ;;  %v1011_v19 = vld [vmem:[%s12261_s3 + $0x728] sm:$0xf] }
 0x107   :  { %v1013_v20 = vld [vmem:[%s12261_s3 + $0x738] sm:$0xf]  ;;  %1010 = vst [vmem:[#allocation3 + $0x72c] sm:$0xf] %v1009_v18  ;;  %1012 = vst [vmem:[#allocation3 + $0x730] sm:$0xf] %v1011_v19 }
 0x108   :  { %1014 = vst [vmem:[#allocation3 + $0x734] sm:$0xf] %v1013_v20  ;;  %v1015_v21 = vld [vmem:[%s12261_s3 + $0x72c] sm:$0xf]  ;;  %v1021_v23 = vld [vmem:[%s12261_s3 + $0x750] sm:$0xf] }
 0x109   :  { %1016 = vst [vmem:[#allocation3 + $0x738] sm:$0xf] %v1015_v21  ;;  %1018 = vst [vmem:[#allocation3 + $0x73c] sm:$0xff] %v1017_v22   ;;  %v1023_v24 = vld [vmem:[%s12261_s3 + $0x744] sm:$0xf]  ;;  %v1033_v29 = vld [vmem:[%s12261_s3 + $0x75c] sm:$0xff]  }
 0x10a   :  { %1022 = vst [vmem:[#allocation3 + $0x744] sm:$0xf] %v1021_v23  ;;  %v1025_v25 = vld [vmem:[%s12261_s3 + $0x754] sm:$0xf]  ;;  %v1027_v26 = vld [vmem:[%s12261_s3 + $0x748] sm:$0xf] }
 0x10b   :  { %1024 = vst [vmem:[#allocation3 + $0x748] sm:$0xf] %v1023_v24  ;;  %1026 = vst [vmem:[#allocation3 + $0x74c] sm:$0xf] %v1025_v25  ;;  %v1029_v27 = vld [vmem:[%s12261_s3 + $0x758] sm:$0xf] }
 0x10c   :  { %1028 = vst [vmem:[#allocation3 + $0x750] sm:$0xf] %v1027_v26  ;;  %v1031_v28 = vld [vmem:[%s12261_s3 + $0x74c] sm:$0xf]  ;;  %1030 = vst [vmem:[#allocation3 + $0x754] sm:$0xf] %v1029_v27 }
 0x10d   :  { %1032 = vst [vmem:[#allocation3 + $0x758] sm:$0xf] %v1031_v28  ;;  %1034 = vst [vmem:[#allocation3 + $0x75c] sm:$0xff] %v1033_v29   ;;  %v1037_v30 = vld [vmem:[%s12261_s3 + $0x770] sm:$0xf]  ;;  %v1049_v36 = vld [vmem:[%s12261_s3 + $0x77c] sm:$0xff]  }
 0x10e   :  { %v1039_v31 = vld [vmem:[%s12261_s3 + $0x764] sm:$0xf]  ;;  %v1041_v32 = vld [vmem:[%s12261_s3 + $0x774] sm:$0xf]  ;;  %1038 = vst [vmem:[#allocation3 + $0x764] sm:$0xf] %v1037_v30 }
 0x10f   :  { %1040 = vst [vmem:[#allocation3 + $0x768] sm:$0xf] %v1039_v31  ;;  %1042 = vst [vmem:[#allocation3 + $0x76c] sm:$0xf] %v1041_v32  ;;  %v1043_v33 = vld [vmem:[%s12261_s3 + $0x768] sm:$0xf] }
 0x110   :  { %v1045_v34 = vld [vmem:[%s12261_s3 + $0x778] sm:$0xf]  ;;  %v1047_v35 = vld [vmem:[%s12261_s3 + $0x76c] sm:$0xf]  ;;  %1044 = vst [vmem:[#allocation3 + $0x770] sm:$0xf] %v1043_v33 }
 0x111   :  { %1046 = vst [vmem:[#allocation3 + $0x774] sm:$0xf] %v1045_v34  ;;  %1048 = vst [vmem:[#allocation3 + $0x778] sm:$0xf] %v1047_v35  ;;  %v1053_v37 = vld [vmem:[%s12261_s3 + $0x790] sm:$0xf] }
 0x112   :  { %v1055_v38 = vld [vmem:[%s12261_s3 + $0x784] sm:$0xf]  ;;  %1050 = vst [vmem:[#allocation3 + $0x77c] sm:$0xff] %v1049_v36   ;;  %1054 = vst [vmem:[#allocation3 + $0x784] sm:$0xf] %v1053_v37  ;;  %v1065_v43 = vld [vmem:[%s12261_s3 + $0x79c] sm:$0xff]  }
 0x113   :  { %1056 = vst [vmem:[#allocation3 + $0x788] sm:$0xf] %v1055_v38  ;;  %v1057_v39 = vld [vmem:[%s12261_s3 + $0x794] sm:$0xf]  ;;  %v1059_v40 = vld [vmem:[%s12261_s3 + $0x788] sm:$0xf] }
 0x114   :  { %v1061_v41 = vld [vmem:[%s12261_s3 + $0x798] sm:$0xf]  ;;  %1058 = vst [vmem:[#allocation3 + $0x78c] sm:$0xf] %v1057_v39  ;;  %1060 = vst [vmem:[#allocation3 + $0x790] sm:$0xf] %v1059_v40 }
 0x115   :  { %1062 = vst [vmem:[#allocation3 + $0x794] sm:$0xf] %v1061_v41  ;;  %v1063_v42 = vld [vmem:[%s12261_s3 + $0x78c] sm:$0xf]  ;;  %v1069_v44 = vld [vmem:[%s12261_s3 + $0x7b0] sm:$0xf] }
 0x116   :  { %1064 = vst [vmem:[#allocation3 + $0x798] sm:$0xf] %v1063_v42  ;;  %1066 = vst [vmem:[#allocation3 + $0x79c] sm:$0xff] %v1065_v43   ;;  %v1071_v45 = vld [vmem:[%s12261_s3 + $0x7a4] sm:$0xf]  ;;  %v1081_v50 = vld [vmem:[%s12261_s3 + $0x7bc] sm:$0xff]  }
 0x117   :  { %1070 = vst [vmem:[#allocation3 + $0x7a4] sm:$0xf] %v1069_v44  ;;  %v1073_v46 = vld [vmem:[%s12261_s3 + $0x7b4] sm:$0xf]  ;;  %v1075_v47 = vld [vmem:[%s12261_s3 + $0x7a8] sm:$0xf] }
 0x118   :  { %1072 = vst [vmem:[#allocation3 + $0x7a8] sm:$0xf] %v1071_v45  ;;  %1074 = vst [vmem:[#allocation3 + $0x7ac] sm:$0xf] %v1073_v46  ;;  %v1077_v48 = vld [vmem:[%s12261_s3 + $0x7b8] sm:$0xf] }
 0x119   :  { %1076 = vst [vmem:[#allocation3 + $0x7b0] sm:$0xf] %v1075_v47  ;;  %v1079_v49 = vld [vmem:[%s12261_s3 + $0x7ac] sm:$0xf]  ;;  %1078 = vst [vmem:[#allocation3 + $0x7b4] sm:$0xf] %v1077_v48 }
 0x11a   :  { %1080 = vst [vmem:[#allocation3 + $0x7b8] sm:$0xf] %v1079_v49  ;;  %1082 = vst [vmem:[#allocation3 + $0x7bc] sm:$0xff] %v1081_v50   ;;  %v1085_v51 = vld [vmem:[%s12261_s3 + $0x7d0] sm:$0xf]  ;;  %v1097_v57 = vld [vmem:[%s12261_s3 + $0x7dc] sm:$0xff]  }
 0x11b   :  { %v1087_v52 = vld [vmem:[%s12261_s3 + $0x7c4] sm:$0xf]  ;;  %v1089_v53 = vld [vmem:[%s12261_s3 + $0x7d4] sm:$0xf]  ;;  %1086 = vst [vmem:[#allocation3 + $0x7c4] sm:$0xf] %v1085_v51 }
 0x11c   :  { %1088 = vst [vmem:[#allocation3 + $0x7c8] sm:$0xf] %v1087_v52  ;;  %1090 = vst [vmem:[#allocation3 + $0x7cc] sm:$0xf] %v1089_v53  ;;  %v1091_v54 = vld [vmem:[%s12261_s3 + $0x7c8] sm:$0xf] }
 0x11d   :  { %v1093_v55 = vld [vmem:[%s12261_s3 + $0x7d8] sm:$0xf]  ;;  %v1095_v56 = vld [vmem:[%s12261_s3 + $0x7cc] sm:$0xf]  ;;  %1092 = vst [vmem:[#allocation3 + $0x7d0] sm:$0xf] %v1091_v54 }
 0x11e   :  { %1094 = vst [vmem:[#allocation3 + $0x7d4] sm:$0xf] %v1093_v55  ;;  %1096 = vst [vmem:[#allocation3 + $0x7d8] sm:$0xf] %v1095_v56  ;;  %v1101_v58 = vld [vmem:[%s12261_s3 + $0x7f0] sm:$0xf] }
 0x11f   :  { %v1103_v59 = vld [vmem:[%s12261_s3 + $0x7e4] sm:$0xf]  ;;  %1098 = vst [vmem:[#allocation3 + $0x7dc] sm:$0xff] %v1097_v57   ;;  %1102 = vst [vmem:[#allocation3 + $0x7e4] sm:$0xf] %v1101_v58 }
 0x120   :  { %1104 = vst [vmem:[#allocation3 + $0x7e8] sm:$0xf] %v1103_v59  ;;  %v1105_v60 = vld [vmem:[%s12261_s3 + $0x7f4] sm:$0xf]  ;;  %v1107_v61 = vld [vmem:[%s12261_s3 + $0x7e8] sm:$0xf] }
 0x121   :  { %v1109_v62 = vld [vmem:[%s12261_s3 + $0x7f8] sm:$0xf]  ;;  %1106 = vst [vmem:[#allocation3 + $0x7ec] sm:$0xf] %v1105_v60  ;;  %1108 = vst [vmem:[#allocation3 + $0x7f0] sm:$0xf] %v1107_v61 }
 0x122   :  { %1110 = vst [vmem:[#allocation3 + $0x7f4] sm:$0xf] %v1109_v62  ;;  %v1111_v63 = vld [vmem:[%s12261_s3 + $0x7ec] sm:$0xf]  ;;  %v1113_v0 = vld [vmem:[%s12261_s3 + $0x7fc] sm:$0xf] }
 0x123   :  { %1112 = vst [vmem:[#allocation3 + $0x7f8] sm:$0xf] %v1111_v63  ;;  %1114 = vst [vmem:[#allocation3 + $0x7fc] sm:$0xf] %v1113_v0 }
 0x124   :  { %4250 = vsyncadd [#allocation4 + $0x1], 32768  ;;  %v4254_v1 = vld [vmem:[%s12259_s1] sm:$0xff]  ;;  %vm4678_vm0 = vcmask 1040384   ;;  %v9976_v11 = vmov 0   ;;  %vm4679_vm1 = vcmask 1041408  }
 0x125   :  { %v4262_v2 = vld [vmem:[%s12259_s1 + $0x40] sm:$0xff]  ;;  %4762 = vmatprep.mubr.bf16.mxu1 %v9976_v11  ;;  %4848 = vmatprep.mubr.bf16.mxu0 %v9976_v11  ;;  %v9977_v12 = vmov 65535   ;;  %v4256_v17 = vld [vmem:[%s12259_s1 + $0x10] sm:$0xff]  ;;  %v4255_v31 = vld [vmem:[%s12259_s1 + $0x8] sm:$0xff]  ;;  %vm4674_vm2 = vcmask 416768  }
 0x126   :  { %v9363_v3 = vcombine.high %v4254_v1, %v4262_v2  ;;  %v9362_v4 = vcombine.low %v4254_v1, %v4262_v2  ;;  %v4270_v5 = vld [vmem:[%s12259_s1 + $0x80] sm:$0xff]  ;;  %v4680_v13 = vsel %vm4678_vm0, 4294967295, %v9977_v12  ;;  %v4264_v19 = vld [vmem:[%s12259_s1 + $0x50] sm:$0xff]  ;;  %v4263_v32 = vld [vmem:[%s12259_s1 + $0x48] sm:$0xff] }
 0x127   :  { %v4278_v6 = vld [vmem:[%s12259_s1 + $0xc0] sm:$0xff]  ;;  %v11421_v18 = vsel %vm4679_vm1, %v4680_v13, 0  ;;  %v9367_v20 = vcombine.high %v4256_v17, %v4264_v19  ;;  %v9366_v21 = vcombine.low %v4256_v17, %v4264_v19  ;;  %v4272_v22 = vld [vmem:[%s12259_s1 + $0x90] sm:$0xff]  ;;  %v4252_v38 = vld [vmem:[%s12258_s0 + $0x8] sm:$0xff]  ;;  %v9365_v39 = vcombine.high %v4255_v31, %v4263_v32 }
 0x128   :  { %v9379_v7 = vcombine.high %v4270_v5, %v4278_v6  ;;  %v4286_v8 = vld [vmem:[%s12259_s1 + $0x100] sm:$0xff]  ;;  %4730 = vmatprep.subr.bf16.mxu1 %v9363_v3  ;;  %v9378_v14 = vcombine.low %v4270_v5, %v4278_v6  ;;  %v4280_v23 = vld [vmem:[%s12259_s1 + $0xd0] sm:$0xff]  ;;  %v4271_v40 = vld [vmem:[%s12259_s1 + $0x88] sm:$0xff]  ;;  %v9364_v46 = vcombine.low %v4255_v31, %v4263_v32 }
 0x129   :  { %v4294_v9 = vld [vmem:[%s12259_s1 + $0x140] sm:$0xff]  ;;  %4731 = vmatpush1.bf16.msra.mxu1 %v9362_v4  ;;  %v9383_v26 = vcombine.high %v4272_v22, %v4280_v23  ;;  %v4288_v27 = vld [vmem:[%s12259_s1 + $0x110] sm:$0xff]  ;;  %4816 = vmatprep.subr.bf16.mxu0 %v9367_v20  ;;  %v9382_v33 = vcombine.low %v4272_v22, %v4280_v23  ;;  %v4279_v41 = vld [vmem:[%s12259_s1 + $0xc8] sm:$0xff] }
 0x12a   :  { %v4302_v10 = vld [vmem:[%s12259_s1 + $0x180] sm:$0x33]  ;;  %4732 = vmatprep.subr.bf16.mxu1 %v9379_v7  ;;  %v9395_v15 = vcombine.high %v4286_v8, %v4294_v9  ;;  %v9394_v24 = vcombine.low %v4286_v8, %v4294_v9  ;;  %v4296_v28 = vld [vmem:[%s12259_s1 + $0x150] sm:$0xff]  ;;  %4817 = vmatpush1.bf16.msra.mxu0 %v9366_v21  ;;  %v9381_v49 = vcombine.high %v4271_v40, %v4279_v41  ;;  %v4287_v50 = vld [vmem:[%s12259_s1 + $0x108] sm:$0xff] }
 0x12b   :  { %v9411_v16 = vcombine.high %v4302_v10, %v4302_v10  ;;  %v9410_v25 = vcombine.low %v4302_v10, %v4302_v10  ;;  %v4304_v30 = vld [vmem:[%s12259_s1 + $0x190] sm:$0x33]  ;;  %4818 = vmatprep.subr.bf16.mxu0 %v9383_v26  ;;  %v9399_v34 = vcombine.high %v4288_v27, %v4296_v28  ;;  %v4251_v37 = vld [vmem:[%s12258_s0] sm:$0xff]  ;;  %v9398_v42 = vcombine.low %v4288_v27, %v4296_v28  ;;  %v4295_v51 = vld [vmem:[%s12259_s1 + $0x148] sm:$0xff] }
 0x12c   :  { %v9415_v35 = vcombine.high %v4304_v30, %v4304_v30  ;;  %v9414_v43 = vcombine.low %v4304_v30, %v4304_v30  ;;  %v11461_v44 = vpack.c.bf16 %v4252_v38, %v4251_v37  ;;  %v4258_v47 = vld [vmem:[%s12259_s1 + $0x20] sm:$0xff]  ;;  %v4303_v52 = vld [vmem:[%s12259_s1 + $0x188] sm:$0x33]  ;;  %v9380_v55 = vcombine.low %v4271_v40, %v4279_v41  ;;  %v4257_v4 = vld [vmem:[%s12259_s1 + $0x18] sm:$0xff] }
 0x12d   :  { %4733 = vmatpush1.bf16.msra.mxu1 %v9378_v14  ;;  %v4686_v29 = vand.u32 %v9411_v16, %v11421_v18  ;;  %v4683_v36 = vand.u32 %v9410_v25, %v11421_v18  ;;  %v4266_v48 = vld [vmem:[%s12259_s1 + $0x60] sm:$0xff]  ;;  %v9397_v58 = vcombine.high %v4287_v50, %v4295_v51  ;;  %v9413_v59 = vcombine.high %v4303_v52, %v4303_v52  ;;  %v4265_v5 = vld [vmem:[%s12259_s1 + $0x58] sm:$0xff]  ;;  %v4260_v19 = vld [vmem:[%s12259_s1 + $0x30] sm:$0xff] }
 0x12e   :  { %4734 = vmatprep.subr.bf16.mxu1 %v9395_v15  ;;  %4819 = vmatpush1.bf16.msra.mxu0 %v9382_v33  ;;  %v4698_v45 = vand.u32 %v9415_v35, %v11421_v18  ;;  %v4695_v53 = vand.u32 %v9414_v43, %v11421_v18  ;;  %v9371_v54 = vcombine.high %v4258_v47, %v4266_v48  ;;  %v4274_v56 = vld [vmem:[%s12259_s1 + $0xa0] sm:$0xff]  ;;  %v4273_v12 = vld [vmem:[%s12259_s1 + $0x98] sm:$0xff]  ;;  %v4268_v20 = vld [vmem:[%s12259_s1 + $0x70] sm:$0xff] }
 0x12f   :  { %4820 = vmatprep.subr.bf16.mxu0 %v9399_v34  ;;  %v4282_v57 = vld [vmem:[%s12259_s1 + $0xe0] sm:$0xff]  ;;  %v9370_v60 = vcombine.low %v4258_v47, %v4266_v48  ;;  %v9396_v62 = vcombine.low %v4287_v50, %v4295_v51  ;;  %v9412_v63 = vcombine.low %v4303_v52, %v4303_v52  ;;  %v4692_v3 = vand.u32 %v9413_v59, %v11421_v18  ;;  %v4281_v13 = vld [vmem:[%s12259_s1 + $0xd8] sm:$0xff]  ;;  %v4276_v28 = vld [vmem:[%s12259_s1 + $0xb0] sm:$0xff] }
 0x130   :  { %v9387_v61 = vcombine.high %v4274_v56, %v4282_v57  ;;  %v4290_v0 = vld [vmem:[%s12259_s1 + $0x120] sm:$0xff]  ;;  %v9386_v6 = vcombine.low %v4274_v56, %v4282_v57  ;;  %v9369_v10 = vcombine.high %v4257_v4, %v4265_v5  ;;  %v9368_v17 = vcombine.low %v4257_v4, %v4265_v5  ;;  %v4289_v22 = vld [vmem:[%s12259_s1 + $0x118] sm:$0xff]  ;;  %v4300_v37 = vld [vmem:[%s12259_s1 + $0x170] sm:$0xff] }
 0x131   :  { %4735 = vmatpush1.bf16.msra.mxu1 %v9394_v24  ;;  %v4298_v1 = vld [vmem:[%s12259_s1 + $0x160] sm:$0xff]  ;;  %v4689_v9 = vand.u32 %v9412_v63, %v11421_v18  ;;  %v9385_v21 = vcombine.high %v4273_v12, %v4281_v13  ;;  %v4297_v23 = vld [vmem:[%s12259_s1 + $0x158] sm:$0xff]  ;;  %v9375_v26 = vcombine.high %v4260_v19, %v4268_v20  ;;  %v9384_v27 = vcombine.low %v4273_v12, %v4281_v13  ;;  %v4308_v38 = vld [vmem:[%s12259_s1 + $0x1b0] sm:$0x33] }
 0x132   :  { %4736 = vmatprep.subr.bf16.mxu1 %v4686_v29  ;;  %4821 = vmatpush1.bf16.msra.mxu0 %v9398_v42  ;;  %v4306_v2 = vld [vmem:[%s12259_s1 + $0x1a0] sm:$0x33]  ;;  %v9403_v7 = vcombine.high %v4290_v0, %v4298_v1  ;;  %v9402_v14 = vcombine.low %v4290_v0, %v4298_v1  ;;  %v4305_v24 = vld [vmem:[%s12259_s1 + $0x198] sm:$0x33]  ;;  %v4284_v29 = vld [vmem:[%s12259_s1 + $0xf0] sm:$0xff]  ;;  %v9401_v30 = vcombine.high %v4289_v22, %v4297_v23 }
 0x133   :  { %4822 = vmatprep.subr.bf16.mxu0 %v4698_v45  ;;  %v9419_v8 = vcombine.high %v4306_v2, %v4306_v2  ;;  %v9418_v15 = vcombine.low %v4306_v2, %v4306_v2  ;;  %v9417_v31 = vcombine.high %v4305_v24, %v4305_v24  ;;  %v9374_v32 = vcombine.low %v4260_v19, %v4268_v20  ;;  %v4259_v40 = vld [vmem:[%s12259_s1 + $0x28] sm:$0xff]  ;;  %v4261_v1 = vld [vmem:[%s12259_s1 + $0x38] sm:$0xff] }
 0x134   :  { %v9391_v33 = vcombine.high %v4276_v28, %v4284_v29  ;;  %v9400_v34 = vcombine.low %v4289_v22, %v4297_v23  ;;  %v9416_v35 = vcombine.low %v4305_v24, %v4305_v24  ;;  %v4267_v41 = vld [vmem:[%s12259_s1 + $0x68] sm:$0xff]  ;;  %v9390_v42 = vcombine.low %v4276_v28, %v4284_v29  ;;  %v4269_v2 = vld [vmem:[%s12259_s1 + $0x78] sm:$0xff]  ;;  %v4310_v23 = vld [vmem:[%s12269_s11] sm:$0xff] }
 0x135   :  { %4737 = vmatpush1.bf16.msra.mxu1 %v4683_v36  ;;  %v4710_v16 = vand.u32 %v9419_v8, %v11421_v18  ;;  %v4707_v25 = vand.u32 %v9418_v15, %v11421_v18  ;;  %v4292_v36 = vld [vmem:[%s12259_s1 + $0x130] sm:$0xff]  ;;  %v9423_v45 = vcombine.high %v4308_v38, %v4308_v38  ;;  %v9373_v47 = vcombine.high %v4259_v40, %v4267_v41  ;;  %v4275_v48 = vld [vmem:[%s12259_s1 + $0xa8] sm:$0xff]  ;;  %v4277_v5 = vld [vmem:[%s12259_s1 + $0xb8] sm:$0xff] }
 0x136   :  { %4773 = vmatprep.subr.bf16.mxu1 %v9365_v39  ;;  %4823 = vmatpush1.bf16.msra.mxu0 %v4695_v53  ;;  %v4704_v39 = vand.u32 %v9417_v31, %v11421_v18  ;;  %v9407_v43 = vcombine.high %v4292_v36, %v4300_v37  ;;  %v9406_v50 = vcombine.low %v4292_v36, %v4300_v37  ;;  %v4299_v56 = vld [vmem:[%s12259_s1 + $0x168] sm:$0xff]  ;;  %v4309_v12 = vld [vmem:[%s12259_s1 + $0x1b8] sm:$0x33] }
 0x137   :  { %4902 = vmatprep.subr.bf16.mxu0 %v9371_v54  ;;  %v9422_v51 = vcombine.low %v4308_v38, %v4308_v38  ;;  %v4722_v52 = vand.u32 %v9423_v45, %v11421_v18  ;;  %v9372_v53 = vcombine.low %v4259_v40, %v4267_v41  ;;  %v4307_v57 = vld [vmem:[%s12259_s1 + $0x1a8] sm:$0x33]  ;;  %v9377_v4 = vcombine.high %v4261_v1, %v4269_v2 }
 0x138   :  { %9426 = vmatmul.mubr.msk.bf16.vlgmr.msra.gmra.mrb[0].mxu1 %vm4674_vm2, %v11461_v44  ;;  %v9420_v63 = vcombine.low %v4307_v57, %v4307_v57  ;;  %v9425_v15 = vcombine.high %v4309_v12, %v4309_v12 }
 0x139   :  { %4774 = vmatpush1.bf16.msra.mxu1 %v9364_v46  ;;  %4805 = vmatprep.mubr.bf16.mxu1 %v9976_v11  ;;  %v4701_v46 = vand.u32 %v9416_v35, %v11421_v18 }
 0x13a   :  { %4775 = vmatprep.subr.bf16.mxu1 %v9381_v49  ;;  %9428 = vmatmul.mubr.msk.bf16.vlgmr.msra.gmra.mrb[0].mxu0 %vm4674_vm2, %v11461_v44  ;;  %v4283_v49 = vld [vmem:[%s12259_s1 + $0xe8] sm:$0xff]  ;;  %v4728_v19 = vand.u32 %v9425_v15, %v11421_v18 }
 0x13b   :  { %4903 = vmatpush1.bf16.msra.mxu0 %v9370_v60  ;;  %4934 = vmatprep.mubr.bf16.mxu0 %v9976_v11  ;;  %v9389_v54 = vcombine.high %v4275_v48, %v4283_v49  ;;  %v9388_v59 = vcombine.low %v4275_v48, %v4283_v49 }
 0x13c   :  { %4904 = vmatprep.subr.bf16.mxu0 %v9387_v61  ;;  %v9421_v61 = vcombine.high %v4307_v57, %v4307_v57 }
 0x13d   :  { %4776 = vmatpush1.bf16.msra.mxu1 %v9380_v55  ;;  %v4291_v55 = vld [vmem:[%s12259_s1 + $0x128] sm:$0xff] }
 0x13e   :  { %4777 = vmatprep.subr.bf16.mxu1 %v9397_v58  ;;  %v4719_v58 = vand.u32 %v9422_v51, %v11421_v18  ;;  %v9405_v60 = vcombine.high %v4291_v55, %v4299_v56  ;;  %v4716_v0 = vand.u32 %v9421_v61, %v11421_v18  ;;  %v4311_v51 = vld [vmem:[%s12269_s11 + $0x8] sm:$0xff] }
 0x13f   :  { %4905 = vmatpush1.bf16.msra.mxu0 %v9386_v6  ;;  %v4285_v6 = vld [vmem:[%s12259_s1 + $0xf8] sm:$0xff] }
 0x140   :  { %4906 = vmatprep.subr.bf16.mxu0 %v9403_v7  ;;  %v9376_v7 = vcombine.low %v4261_v1, %v4269_v2  ;;  %v9393_v8 = vcombine.high %v4277_v5, %v4285_v6  ;;  %v9392_v13 = vcombine.low %v4277_v5, %v4285_v6 }
 0x141   :  { %4778 = vmatpush1.bf16.msra.mxu1 %v9396_v62  ;;  %v9404_v62 = vcombine.low %v4291_v55, %v4299_v56 }
 0x142   :  { %4779 = vmatprep.subr.bf16.mxu1 %v4692_v3  ;;  %v4713_v3 = vand.u32 %v9420_v63, %v11421_v18 }
 0x143   :  { %4907 = vmatpush1.bf16.msra.mxu0 %v9402_v14 }
 0x144   :  { %4908 = vmatprep.subr.bf16.mxu0 %v4710_v16 }
 0x145   :  { %4780 = vmatpush1.bf16.msra.mxu1 %v4689_v9  ;;  %v4293_v9 = vld [vmem:[%s12259_s1 + $0x138] sm:$0xff] }
 0x146   :  { %4859 = vmatprep.subr.bf16.mxu1 %v9369_v10  ;;  %v4301_v10 = vld [vmem:[%s12259_s1 + $0x178] sm:$0xff] }
 0x147   :  { %4909 = vmatpush1.bf16.msra.mxu0 %v4707_v25  ;;  %v9409_v14 = vcombine.high %v4293_v9, %v4301_v10  ;;  %v9408_v16 = vcombine.low %v4293_v9, %v4301_v10 }
 0x148   :  { %9427 = vmatmul.mubr.msk.bf16.vlgmr.msra.gmra.mrb[4].mxu1 %vm4674_vm2, %v11461_v44  ;;  %4988 = vmatprep.subr.bf16.mxu0 %v9375_v26 }
 0x149   :  { %4860 = vmatpush1.bf16.msra.mxu1 %v9368_v17  ;;  %4891 = vmatprep.mubr.bf16.mxu1 %v9976_v11  ;;  %v9424_v17 = vcombine.low %v4309_v12, %v4309_v12 }
 0x14a   :  { %4861 = vmatprep.subr.bf16.mxu1 %v9385_v21  ;;  %9430 = vmatmul.mubr.msk.bf16.vlgmr.msra.gmra.mrb[4].mxu0 %vm4674_vm2, %v11461_v44  ;;  %v4314_v21 = vlaneseq }
 0x14b   :  { %4989 = vmatpush1.bf16.msra.mxu0 %v9374_v32  ;;  %5020 = vmatprep.mubr.bf16.mxu0 %v9976_v11  ;;  %v4725_v20 = vand.u32 %v9424_v17, %v11421_v18 }
 0x14c   :  { %4990 = vmatprep.subr.bf16.mxu0 %v9391_v33  ;;  %v4315_v22 = vshrl.u32 %v4314_v21, 7 }
 0x14d   :  { %4862 = vmatpush1.bf16.msra.mxu1 %v9384_v27 }
 0x14e   :  { %4863 = vmatprep.subr.bf16.mxu1 %v9401_v30  ;;  %v11618_v24 = vsub.s32 1, %v4315_v22  ;;  %v11622_v18 = vsub.s32 4, %v4315_v22  ;;  %v11624_v28 = vsub.s32 5, %v4315_v22  ;;  %v11667_v2 = vsub.s32 6, %v4315_v22 }
 0x14f   :  { %4991 = vmatpush1.bf16.msra.mxu0 %v9390_v42  ;;  %v11640_v42 = vsub.s32 2, %v4315_v22  ;;  %v11671_v5 = vsub.s32 7, %v4315_v22 }
 0x150   :  { %4992 = vmatprep.subr.bf16.mxu0 %v9407_v43  ;;  %v4321_v26 = vrot.slane %v4310_v23, %v11618_v24  ;;  %v4337_v36 = vrot.slane %v4310_v23, %v11624_v28  ;;  %v4365_v17 = vrot.slane %v4311_v51, %v11622_v18 }
 0x151   :  { %4864 = vmatpush1.bf16.msra.mxu1 %v9400_v34  ;;  %v4333_v34 = vrot.slane %v4310_v23, %v11622_v18  ;;  %v4325_v48 = vrot.slane %v4310_v23, %v11640_v42 }
 0x152   :  { %4865 = vmatprep.subr.bf16.mxu1 %v4704_v39 }
 0x153   :  { %4993 = vmatpush1.bf16.msra.mxu0 %v9406_v50 }
 0x154   :  { %4994 = vmatprep.subr.bf16.mxu0 %v4722_v52 }
 0x155   :  { %4866 = vmatpush1.bf16.msra.mxu1 %v4701_v46  ;;  %v11644_v46 = vsub.s32 3, %v4315_v22 }
 0x156   :  { %4945 = vmatprep.subr.bf16.mxu1 %v9373_v47 }
 0x157   :  { %4995 = vmatpush1.bf16.msra.mxu0 %v4719_v58  ;;  %v4329_v49 = vrot.slane %v4310_v23, %v11644_v46 }
 0x158   :  { %9429 = vmatmul.mubr.msk.bf16.vlgmr.msra.gmra.mrb[8].mxu1 %vm4674_vm2, %v11461_v44 }
 0x159   :  { %4946 = vmatpush1.bf16.msra.mxu1 %v9372_v53  ;;  %4977 = vmatprep.mubr.bf16.mxu1 %v9976_v11 }
 0x15a   :  { %4947 = vmatprep.subr.bf16.mxu1 %v9389_v54  ;;  %9432 = vmatmul.mubr.msk.bf16.vlgmr.msra.gmra.mrb[8].mxu0 %vm4674_vm2, %v11461_v44 }
 0x15d   :  { %4948 = vmatpush1.bf16.msra.mxu1 %v9388_v59 }
 0x15e   :  { %4949 = vmatprep.subr.bf16.mxu1 %v9405_v60  ;;  %v4353_v60 = vrot.slane %v4311_v51, %v11618_v24 }
 0x161   :  { %4950 = vmatpush1.bf16.msra.mxu1 %v9404_v62 }
 0x162   :  { %4951 = vmatprep.subr.bf16.mxu1 %v4716_v0 }
 0x165   :  { %4952 = vmatpush1.bf16.msra.mxu1 %v4713_v3 }
 0x166   :  { %5031 = vmatprep.subr.bf16.mxu1 %v9377_v4 }
 0x168   :  { %9431 = vmatmul.mubr.msk.bf16.vlgmr.msra.gmra.mrb[12].mxu1 %vm4674_vm2, %v11461_v44 }
 0x169   :  { %5032 = vmatpush1.bf16.msra.mxu1 %v9376_v7  ;;  %5063 = vmatprep.mubr.bf16.mxu1 %v9976_v11  ;;  %v11613_v11 = vsub.s32 0, %v4315_v22  ;;  %v4341_v7 = vrot.slane %v4310_v23, %v11667_v2 }
 0x16a   :  { %5033 = vmatprep.subr.bf16.mxu1 %v9393_v8  ;;  %v4345_v8 = vrot.slane %v4310_v23, %v11671_v5 }
 0x16b   :  { %v4317_v25 = vrot.slane %v4310_v23, %v11613_v11  ;;  %v4349_v58 = vrot.slane %v4311_v51, %v11613_v11 }
 0x16d   :  { %5034 = vmatpush1.bf16.msra.mxu1 %v9392_v13 }
 0x16e   :  { %5035 = vmatprep.subr.bf16.mxu1 %v9409_v14 }
 0x171   :  { %5036 = vmatpush1.bf16.msra.mxu1 %v9408_v16 }
 0x172   :  { %5037 = vmatprep.subr.bf16.mxu1 %v4728_v19 }
 0x175   :  { %5038 = vmatpush1.bf16.msra.mxu1 %v4725_v20  ;;  %v4369_v20 = vrot.slane %v4311_v51, %v11624_v28 }
 0x178   :  { %9433 = vmatmul.mubr.msk.bf16.vlgmr.msra.gmra.mrb[16].mxu1 %vm4674_vm2, %v11461_v44 }
 0x20b   :  { %v4764_v27 = vpop.f32.mrb[0].mxu1 }
 0x20c   :  { %v11626_v44 = vadd.f32 %v4764_v27, %v4317_v25  ;;  %v4766_v29 = vpop.f32.mrb[1].mxu1 }
 0x20d   :  { %v11628_v30 = vadd.f32 %v4766_v29, %v4321_v26  ;;  %v4768_v31 = vpop.f32.mrb[2].mxu1  ;;  %v4850_v37 = vpop.f32.mrb[0].mxu0 }
 0x20e   :  { %v11630_v32 = vadd.f32 %v4768_v31, %v4317_v25  ;;  %v4770_v33 = vpop.f32.mrb[3].mxu1  ;;  %v11636_v38 = vadd.f32 %v4850_v37, %v4333_v34  ;;  %v4852_v39 = vpop.f32.mrb[1].mxu0 }
 0x20f   :  { %v11633_v35 = vadd.f32 %v4770_v33, %v4321_v26  ;;  %v11638_v40 = vadd.f32 %v4852_v39, %v4337_v36  ;;  %v4854_v41 = vpop.f32.mrb[2].mxu0  ;;  %v4357_v33 = vrot.slane %v4311_v51, %v11640_v42 }
 0x210   :  { %v11642_v43 = vadd.f32 %v4854_v41, %v4333_v34  ;;  %v4856_v45 = vpop.f32.mrb[3].mxu0  ;;  %v4361_v34 = vrot.slane %v4311_v51, %v11644_v46 }
 0x211   :  { %v11646_v47 = vadd.f32 %v4856_v45, %v4337_v36 }
 0x21b   :  { %v4807_v50 = vpop.f32.mrb[4].mxu1 }
 0x21c   :  { %v11653_v52 = vadd.f32 %v4807_v50, %v4325_v48  ;;  %v4809_v53 = vpop.f32.mrb[5].mxu1 }
 0x21d   :  { %v11655_v54 = vadd.f32 %v4809_v53, %v4329_v49  ;;  %v4811_v55 = vpop.f32.mrb[6].mxu1  ;;  %v4936_v61 = vpop.f32.mrb[4].mxu0  ;;  %v4373_v53 = vrot.slane %v4311_v51, %v11667_v2 }
 0x21e   :  { %v11657_v56 = vadd.f32 %v4811_v55, %v4325_v48  ;;  %v4813_v57 = vpop.f32.mrb[7].mxu1  ;;  %v11663_v62 = vadd.f32 %v4936_v61, %v4349_v58  ;;  %v4938_v63 = vpop.f32.mrb[5].mxu0  ;;  %v4377_v55 = vrot.slane %v4311_v51, %v11671_v5 }
 0x21f   :  { %v11660_v59 = vadd.f32 %v4813_v57, %v4329_v49  ;;  %v11665_v0 = vadd.f32 %v4938_v63, %v4353_v60  ;;  %v4940_v1 = vpop.f32.mrb[6].mxu0 }
 0x220   :  { %v11669_v3 = vadd.f32 %v4940_v1, %v4349_v58  ;;  %v4942_v4 = vpop.f32.mrb[7].mxu0 }
 0x221   :  { %v11673_v6 = vadd.f32 %v4942_v4, %v4353_v60 }
 0x22b   :  { %v4893_v9 = vpop.f32.mrb[8].mxu1 }
 0x22c   :  { %v11677_v10 = vadd.f32 %v4893_v9, %v4341_v7  ;;  %v4895_v12 = vpop.f32.mrb[9].mxu1 }
 0x22d   :  { %v11679_v13 = vadd.f32 %v4895_v12, %v4345_v8  ;;  %v4897_v14 = vpop.f32.mrb[10].mxu1  ;;  %v5022_v21 = vpop.f32.mrb[8].mxu0 }
 0x22e   :  { %v11681_v15 = vadd.f32 %v4897_v14, %v4341_v7  ;;  %v4899_v16 = vpop.f32.mrb[11].mxu1  ;;  %v11687_v22 = vadd.f32 %v5022_v21, %v4365_v17  ;;  %v5024_v23 = vpop.f32.mrb[9].mxu0 }
 0x22f   :  { %v11684_v19 = vadd.f32 %v4899_v16, %v4345_v8  ;;  %v11689_v25 = vadd.f32 %v5024_v23, %v4369_v20  ;;  %v5026_v26 = vpop.f32.mrb[10].mxu0 }
 0x230   :  { %v11691_v27 = vadd.f32 %v5026_v26, %v4365_v17  ;;  %v5028_v29 = vpop.f32.mrb[11].mxu0 }
 0x231   :  { %v11693_v31 = vadd.f32 %v5028_v29, %v4369_v20 }
 0x23b   :  { %v4979_v36 = vpop.f32.mrb[12].mxu1 }
 0x23c   :  { %v11697_v37 = vadd.f32 %v4979_v36, %v4357_v33  ;;  %v4981_v39 = vpop.f32.mrb[13].mxu1 }
 0x23d   :  { %v11699_v41 = vadd.f32 %v4981_v39, %v4361_v34  ;;  %v4983_v45 = vpop.f32.mrb[14].mxu1 }
 0x23e   :  { %v11701_v48 = vadd.f32 %v4983_v45, %v4357_v33  ;;  %v4985_v49 = vpop.f32.mrb[15].mxu1 }
 0x23f   :  { %v11703_v50 = vadd.f32 %v4985_v49, %v4361_v34 }
 0x24b   :  { %v5065_v57 = vpop.f32.mrb[16].mxu1 }
 0x24c   :  { %v11707_v58 = vadd.f32 %v5065_v57, %v4373_v53  ;;  %v5067_v60 = vpop.f32.mrb[17].mxu1 }
 0x24d   :  { %v11709_v61 = vadd.f32 %v5067_v60, %v4377_v55  ;;  %v5069_v63 = vpop.f32.mrb[18].mxu1 }
 0x24e   :  { %v11711_v1 = vadd.f32 %v5069_v63, %v4373_v53  ;;  %v5071_v4 = vpop.f32.mrb[19].mxu1 }
 0x24f   :  { %v11713_v7 = vadd.f32 %v5071_v4, %v4377_v55 }
 0x250   :  { %9962 = dma.done.wait [#allocation4], 131072 }
 0x251   :  { %9963 = vsyncadd [#allocation4], 4294836224  ;;  %v5079_v8 = vmax.f32 %v11628_v30, 0.0  ;;  %v5095_v9 = vmax.f32 %v11633_v35, 0.0  ;;  %v5127_v51 = vld [vmem:[#allocation2 + $0x8] sm:$0xff]  ;;  %v5129_v14 = vld [vmem:[#allocation2 + $0x18] sm:$0xff] }
 0x252   :  { %v5126_v16 = vld [vmem:[#allocation2] sm:$0xff]  ;;  %6192 = vmatprep.subr.bf16.mxu0 %v5127_v51  ;;  %6536 = vmatprep.subr.bf16.mxu1 %v5129_v14  ;;  %v5128_v17 = vld [vmem:[#allocation2 + $0x10] sm:$0xff]  ;;  %v5135_v20 = vld [vmem:[#allocation2 + $0x48] sm:$0xff] }
 0x253   :  { %v11717_v12 = vpack.c.bf16 %v5095_v9, %v5079_v8  ;;  %v5137_v21 = vld [vmem:[#allocation2 + $0x58] sm:$0xff]  ;;  %6193 = vmatpush1.bf16.msra.mxu0 %v5126_v16  ;;  %6537 = vmatpush1.bf16.msra.mxu1 %v5128_v17  ;;  %v5134_v30 = vld [vmem:[#allocation2 + $0x40] sm:$0xff]  ;;  %v5136_v35 = vld [vmem:[#allocation2 + $0x50] sm:$0xff] }
 0x254   :  { %6194 = vmatprep.subr.bf16.mxu0 %v5135_v20  ;;  %6538 = vmatprep.subr.bf16.mxu1 %v5137_v21  ;;  %v5143_v23 = vld [vmem:[#allocation2 + $0x88] sm:$0xff]  ;;  %v5145_v26 = vld [vmem:[#allocation2 + $0x98] sm:$0xff]  ;;  %v5142_v29 = vld [vmem:[#allocation2 + $0x80] sm:$0xff] }
 0x255   :  { %6224 = vmatprep.mubr.bf16.mxu0 %v11717_v12  ;;  %6568 = vmatprep.mubr.bf16.mxu1 %v11717_v12  ;;  %v5144_v33 = vld [vmem:[#allocation2 + $0x90] sm:$0xff]  ;;  %v5151_v34 = vld [vmem:[#allocation2 + $0xc8] sm:$0xff]  ;;  %v5153_v36 = vld [vmem:[#allocation2 + $0xd8] sm:$0xff] }
 0x256   :  { %v5150_v39 = vld [vmem:[#allocation2 + $0xc0] sm:$0xff]  ;;  %v5152_v45 = vld [vmem:[#allocation2 + $0xd0] sm:$0xff]  ;;  %v5159_v49 = vld [vmem:[#allocation2 + $0x108] sm:$0xff] }
 0x257   :  { %6195 = vmatpush1.bf16.msra.mxu0 %v5134_v30  ;;  %6539 = vmatpush1.bf16.msra.mxu1 %v5136_v35  ;;  %v5161_v53 = vld [vmem:[#allocation2 + $0x118] sm:$0xff]  ;;  %v5158_v55 = vld [vmem:[#allocation2 + $0x100] sm:$0xff]  ;;  %v5160_v57 = vld [vmem:[#allocation2 + $0x110] sm:$0xff] }
 0x258   :  { %6196 = vmatprep.subr.bf16.mxu0 %v5143_v23  ;;  %6540 = vmatprep.subr.bf16.mxu1 %v5145_v26  ;;  %v5167_v60 = vld [vmem:[#allocation2 + $0x148] sm:$0xff]  ;;  %v5169_v63 = vld [vmem:[#allocation2 + $0x158] sm:$0xff]  ;;  %v5166_v4 = vld [vmem:[#allocation2 + $0x140] sm:$0xff] }
 0x259   :  { %v5168_v8 = vld [vmem:[#allocation2 + $0x150] sm:$0xff]  ;;  %v5175_v9 = vld [vmem:[#allocation2 + $0x188] sm:$0xff]  ;;  %v5177_v51 = vld [vmem:[#allocation2 + $0x198] sm:$0xff] }
 0x25a   :  { %v5174_v14 = vld [vmem:[#allocation2 + $0x180] sm:$0xff]  ;;  %v5176_v16 = vld [vmem:[#allocation2 + $0x190] sm:$0xff]  ;;  %v5183_v17 = vld [vmem:[#allocation2 + $0x1c8] sm:$0xff] }
 0x25b   :  { %6197 = vmatpush1.bf16.msra.mxu0 %v5142_v29  ;;  %6541 = vmatpush1.bf16.msra.mxu1 %v5144_v33  ;;  %v5185_v20 = vld [vmem:[#allocation2 + $0x1d8] sm:$0xff]  ;;  %v5182_v21 = vld [vmem:[#allocation2 + $0x1c0] sm:$0xff]  ;;  %v5184_v30 = vld [vmem:[#allocation2 + $0x1d0] sm:$0xff] }
 0x25c   :  { %6198 = vmatprep.subr.bf16.mxu0 %v5151_v34  ;;  %6542 = vmatprep.subr.bf16.mxu1 %v5153_v36  ;;  %v5191_v35 = vld [vmem:[#allocation2 + $0x208] sm:$0xff]  ;;  %v5193_v23 = vld [vmem:[#allocation2 + $0x218] sm:$0xff]  ;;  %v5190_v26 = vld [vmem:[#allocation2 + $0x200] sm:$0xff] }
 0x25d   :  { %v5192_v29 = vld [vmem:[#allocation2 + $0x210] sm:$0xff]  ;;  %v5199_v33 = vld [vmem:[#allocation2 + $0x248] sm:$0xff]  ;;  %v5201_v34 = vld [vmem:[#allocation2 + $0x258] sm:$0xff] }
 0x25e   :  { %v5198_v36 = vld [vmem:[#allocation2 + $0x240] sm:$0xff] }
 0x25f   :  { %6199 = vmatpush1.bf16.msra.mxu0 %v5150_v39  ;;  %6543 = vmatpush1.bf16.msra.mxu1 %v5152_v45  ;;  %v5200_v39 = vld [vmem:[#allocation2 + $0x250] sm:$0xff]  ;;  %v5207_v45 = vld [vmem:[#allocation2 + $0x288] sm:$0xff] }
 0x260   :  { %6200 = vmatprep.subr.bf16.mxu0 %v5159_v49  ;;  %6544 = vmatprep.subr.bf16.mxu1 %v5161_v53  ;;  %v5209_v49 = vld [vmem:[#allocation2 + $0x298] sm:$0xff]  ;;  %v5206_v53 = vld [vmem:[#allocation2 + $0x280] sm:$0xff] }
 0x263   :  { %6201 = vmatpush1.bf16.msra.mxu0 %v5158_v55  ;;  %6545 = vmatpush1.bf16.msra.mxu1 %v5160_v57  ;;  %v5208_v55 = vld [vmem:[#allocation2 + $0x290] sm:$0xff]  ;;  %v5215_v57 = vld [vmem:[#allocation2 + $0x2c8] sm:$0xff] }
 0x264   :  { %6202 = vmatprep.subr.bf16.mxu0 %v5167_v60  ;;  %6546 = vmatprep.subr.bf16.mxu1 %v5169_v63  ;;  %v5217_v60 = vld [vmem:[#allocation2 + $0x2d8] sm:$0xff]  ;;  %v5214_v63 = vld [vmem:[#allocation2 + $0x2c0] sm:$0xff] }
 0x267   :  { %6203 = vmatpush1.bf16.msra.mxu0 %v5166_v4  ;;  %6547 = vmatpush1.bf16.msra.mxu1 %v5168_v8  ;;  %v5216_v4 = vld [vmem:[#allocation2 + $0x2d0] sm:$0xff]  ;;  %v5223_v8 = vld [vmem:[#allocation2 + $0x308] sm:$0xff] }
 0x268   :  { %6204 = vmatprep.subr.bf16.mxu0 %v5175_v9  ;;  %6548 = vmatprep.subr.bf16.mxu1 %v5177_v51  ;;  %v5225_v9 = vld [vmem:[#allocation2 + $0x318] sm:$0xff]  ;;  %v5222_v51 = vld [vmem:[#allocation2 + $0x300] sm:$0xff] }
 0x26b   :  { %6205 = vmatpush1.bf16.msra.mxu0 %v5174_v14  ;;  %6549 = vmatpush1.bf16.msra.mxu1 %v5176_v16  ;;  %v5224_v14 = vld [vmem:[#allocation2 + $0x310] sm:$0xff]  ;;  %v5231_v16 = vld [vmem:[#allocation2 + $0x348] sm:$0xff] }
 0x26c   :  { %6206 = vmatprep.subr.bf16.mxu0 %v5183_v17  ;;  %6550 = vmatprep.subr.bf16.mxu1 %v5185_v20  ;;  %v5233_v17 = vld [vmem:[#allocation2 + $0x358] sm:$0xff]  ;;  %v5230_v20 = vld [vmem:[#allocation2 + $0x340] sm:$0xff] }
 0x26f   :  { %6207 = vmatpush1.bf16.msra.mxu0 %v5182_v21  ;;  %6551 = vmatpush1.bf16.msra.mxu1 %v5184_v30  ;;  %v5232_v21 = vld [vmem:[#allocation2 + $0x350] sm:$0xff]  ;;  %v5239_v30 = vld [vmem:[#allocation2 + $0x388] sm:$0xff] }
 0x270   :  { %6208 = vmatprep.subr.bf16.mxu0 %v5191_v35  ;;  %6552 = vmatprep.subr.bf16.mxu1 %v5193_v23  ;;  %v5241_v35 = vld [vmem:[#allocation2 + $0x398] sm:$0xff]  ;;  %v5238_v23 = vld [vmem:[#allocation2 + $0x380] sm:$0xff] }
 0x273   :  { %6209 = vmatpush1.bf16.msra.mxu0 %v5190_v26  ;;  %6553 = vmatpush1.bf16.msra.mxu1 %v5192_v29  ;;  %v5240_v26 = vld [vmem:[#allocation2 + $0x390] sm:$0xff]  ;;  %v5247_v29 = vld [vmem:[#allocation2 + $0x3c8] sm:$0xff] }
 0x274   :  { %6210 = vmatprep.subr.bf16.mxu0 %v5199_v33  ;;  %6554 = vmatprep.subr.bf16.mxu1 %v5201_v34  ;;  %v5249_v33 = vld [vmem:[#allocation2 + $0x3d8] sm:$0xff]  ;;  %v5078_v34 = vmax.f32 %v11626_v44, 0.0  ;;  %v5254_v44 = vld [vmem:[#allocation2 + $0x400] sm:$0xff] }
 0x277   :  { %6211 = vmatpush1.bf16.msra.mxu0 %v5198_v36  ;;  %6555 = vmatpush1.bf16.msra.mxu1 %v5200_v39  ;;  %v5094_v36 = vmax.f32 %v11630_v32, 0.0  ;;  %v5246_v39 = vld [vmem:[#allocation2 + $0x3c0] sm:$0xff]  ;;  %v5256_v32 = vld [vmem:[#allocation2 + $0x410] sm:$0xff] }
 0x278   :  { %6212 = vmatprep.subr.bf16.mxu0 %v5207_v45  ;;  %6556 = vmatprep.subr.bf16.mxu1 %v5209_v49  ;;  %v5248_v45 = vld [vmem:[#allocation2 + $0x3d0] sm:$0xff]  ;;  %v5255_v49 = vld [vmem:[#allocation2 + $0x408] sm:$0xff] }
 0x27b   :  { %6213 = vmatpush1.bf16.msra.mxu0 %v5206_v53  ;;  %6557 = vmatpush1.bf16.msra.mxu1 %v5208_v55  ;;  %v5257_v53 = vld [vmem:[#allocation2 + $0x418] sm:$0xff]  ;;  %v5081_v55 = vmax.f32 %v11655_v54, 0.0  ;;  %v5262_v54 = vld [vmem:[#allocation2 + $0x440] sm:$0xff] }
 0x27c   :  { %6214 = vmatprep.subr.bf16.mxu0 %v5215_v57  ;;  %6558 = vmatprep.subr.bf16.mxu1 %v5217_v60  ;;  %v5097_v57 = vmax.f32 %v11660_v59, 0.0  ;;  %v11725_v60 = vpack.c.bf16 %v5094_v36, %v5078_v34  ;;  %v5264_v59 = vld [vmem:[#allocation2 + $0x450] sm:$0xff]  ;;  %v5297_v34 = vld [vmem:[#allocation2 + $0x558] sm:$0xff]  ;;  %v5294_v36 = vld [vmem:[#allocation2 + $0x540] sm:$0xff] }
 0x27f   :  { %6215 = vmatpush1.bf16.msra.mxu0 %v5214_v63  ;;  %6559 = vmatpush1.bf16.msra.mxu1 %v5216_v4  ;;  %v5263_v63 = vld [vmem:[#allocation2 + $0x448] sm:$0xff]  ;;  %v5265_v4 = vld [vmem:[#allocation2 + $0x458] sm:$0xff] }
 0x280   :  { %6216 = vmatprep.subr.bf16.mxu0 %v5223_v8  ;;  %6560 = vmatprep.subr.bf16.mxu1 %v5225_v9  ;;  %v11727_v8 = vpack.c.bf16 %v5097_v57, %v5081_v55  ;;  %v5271_v9 = vld [vmem:[#allocation2 + $0x488] sm:$0xff]  ;;  %v5304_v55 = vld [vmem:[#allocation2 + $0x590] sm:$0xff] }
 0x281   :  { %v5311_v57 = vld [vmem:[#allocation2 + $0x5c8] sm:$0xff] }
 0x283   :  { %6217 = vmatpush1.bf16.msra.mxu0 %v5222_v51  ;;  %6561 = vmatpush1.bf16.msra.mxu1 %v5224_v14  ;;  %v5273_v51 = vld [vmem:[#allocation2 + $0x498] sm:$0xff]  ;;  %v5270_v14 = vld [vmem:[#allocation2 + $0x480] sm:$0xff] }
 0x284   :  { %6218 = vmatprep.subr.bf16.mxu0 %v5231_v16  ;;  %6562 = vmatprep.subr.bf16.mxu1 %v5233_v17  ;;  %v5272_v16 = vld [vmem:[#allocation2 + $0x490] sm:$0xff]  ;;  %v5279_v17 = vld [vmem:[#allocation2 + $0x4c8] sm:$0xff] }
 0x287   :  { %6219 = vmatpush1.bf16.msra.mxu0 %v5230_v20  ;;  %6563 = vmatpush1.bf16.msra.mxu1 %v5232_v21  ;;  %v5281_v20 = vld [vmem:[#allocation2 + $0x4d8] sm:$0xff]  ;;  %v5278_v21 = vld [vmem:[#allocation2 + $0x4c0] sm:$0xff] }
 0x288   :  { %6220 = vmatprep.subr.bf16.mxu0 %v5239_v30  ;;  %6564 = vmatprep.subr.bf16.mxu1 %v5241_v35  ;;  %v5280_v30 = vld [vmem:[#allocation2 + $0x4d0] sm:$0xff]  ;;  %v5287_v35 = vld [vmem:[#allocation2 + $0x508] sm:$0xff] }
 0x28b   :  { %6221 = vmatpush1.bf16.msra.mxu0 %v5238_v23  ;;  %6565 = vmatpush1.bf16.msra.mxu1 %v5240_v26  ;;  %v5289_v23 = vld [vmem:[#allocation2 + $0x518] sm:$0xff]  ;;  %v5286_v26 = vld [vmem:[#allocation2 + $0x500] sm:$0xff] }
 0x28c   :  { %6222 = vmatprep.subr.bf16.mxu0 %v5247_v29  ;;  %6566 = vmatprep.subr.bf16.mxu1 %v5249_v33  ;;  %v5288_v29 = vld [vmem:[#allocation2 + $0x510] sm:$0xff]  ;;  %v5295_v33 = vld [vmem:[#allocation2 + $0x548] sm:$0xff] }
 0x28f   :  { %6223 = vmatpush1.bf16.msra.mxu0 %v5246_v39  ;;  %6567 = vmatpush1.bf16.msra.mxu1 %v5248_v45  ;;  %v5296_v39 = vld [vmem:[#allocation2 + $0x550] sm:$0xff]  ;;  %v5303_v45 = vld [vmem:[#allocation2 + $0x588] sm:$0xff] }
 0x290   :  { %6235 = vmatprep.subr.bf16.mxu0 %v5255_v49  ;;  %6579 = vmatprep.subr.bf16.mxu1 %v5257_v53  ;;  %v5305_v49 = vld [vmem:[#allocation2 + $0x598] sm:$0xff]  ;;  %v5302_v53 = vld [vmem:[#allocation2 + $0x580] sm:$0xff] }
 0x292   :  { %6225 = vmatmul.mubr.bf16.vlgmr.msra.gmra.mrb[12].mxu0 %v11725_v60  ;;  %6569 = vmatmul.mubr.bf16.vlgmr.msra.gmra.mrb[20].mxu1 %v11725_v60 }
 0x293   :  { %6236 = vmatpush1.bf16.msra.mxu0 %v5254_v44  ;;  %6580 = vmatpush1.bf16.msra.mxu1 %v5256_v32  ;;  %v5313_v44 = vld [vmem:[#allocation2 + $0x5d8] sm:$0xff]  ;;  %v5310_v32 = vld [vmem:[#allocation2 + $0x5c0] sm:$0xff] }
 0x294   :  { %6237 = vmatprep.subr.bf16.mxu0 %v5263_v63  ;;  %6581 = vmatprep.subr.bf16.mxu1 %v5265_v4  ;;  %v5312_v63 = vld [vmem:[#allocation2 + $0x5d0] sm:$0xff]  ;;  %v5319_v4 = vld [vmem:[#allocation2 + $0x608] sm:$0xff] }
 0x295   :  { %6267 = vmatprep.mubr.bf16.mxu0 %v11727_v8  ;;  %6611 = vmatprep.mubr.bf16.mxu1 %v11727_v8 }
 0x297   :  { %6238 = vmatpush1.bf16.msra.mxu0 %v5262_v54  ;;  %6582 = vmatpush1.bf16.msra.mxu1 %v5264_v59  ;;  %v5321_v54 = vld [vmem:[#allocation2 + $0x618] sm:$0xff]  ;;  %v5318_v59 = vld [vmem:[#allocation2 + $0x600] sm:$0xff] }
 0x298   :  { %6239 = vmatprep.subr.bf16.mxu0 %v5271_v9  ;;  %6583 = vmatprep.subr.bf16.mxu1 %v5273_v51  ;;  %v5320_v9 = vld [vmem:[#allocation2 + $0x610] sm:$0xff]  ;;  %v5327_v51 = vld [vmem:[#allocation2 + $0x648] sm:$0xff] }
 0x29b   :  { %6240 = vmatpush1.bf16.msra.mxu0 %v5270_v14  ;;  %6584 = vmatpush1.bf16.msra.mxu1 %v5272_v16  ;;  %v5329_v14 = vld [vmem:[#allocation2 + $0x658] sm:$0xff]  ;;  %v5326_v16 = vld [vmem:[#allocation2 + $0x640] sm:$0xff] }
 0x29c   :  { %6241 = vmatprep.subr.bf16.mxu0 %v5279_v17  ;;  %6585 = vmatprep.subr.bf16.mxu1 %v5281_v20  ;;  %v5328_v17 = vld [vmem:[#allocation2 + $0x650] sm:$0xff]  ;;  %v5335_v20 = vld [vmem:[#allocation2 + $0x688] sm:$0xff] }
 0x29f   :  { %6242 = vmatpush1.bf16.msra.mxu0 %v5278_v21  ;;  %6586 = vmatpush1.bf16.msra.mxu1 %v5280_v30  ;;  %v5337_v21 = vld [vmem:[#allocation2 + $0x698] sm:$0xff]  ;;  %v5334_v30 = vld [vmem:[#allocation2 + $0x680] sm:$0xff] }
 0x2a0   :  { %6243 = vmatprep.subr.bf16.mxu0 %v5287_v35  ;;  %6587 = vmatprep.subr.bf16.mxu1 %v5289_v23  ;;  %v5336_v35 = vld [vmem:[#allocation2 + $0x690] sm:$0xff]  ;;  %v5343_v23 = vld [vmem:[#allocation2 + $0x6c8] sm:$0xff] }
 0x2a3   :  { %6244 = vmatpush1.bf16.msra.mxu0 %v5286_v26  ;;  %6588 = vmatpush1.bf16.msra.mxu1 %v5288_v29  ;;  %v5345_v26 = vld [vmem:[#allocation2 + $0x6d8] sm:$0xff]  ;;  %v5342_v29 = vld [vmem:[#allocation2 + $0x6c0] sm:$0xff] }
 0x2a4   :  { %6245 = vmatprep.subr.bf16.mxu0 %v5295_v33  ;;  %6589 = vmatprep.subr.bf16.mxu1 %v5297_v34  ;;  %v5344_v33 = vld [vmem:[#allocation2 + $0x6d0] sm:$0xff]  ;;  %v5351_v34 = vld [vmem:[#allocation2 + $0x708] sm:$0xff] }
 0x2a7   :  { %6246 = vmatpush1.bf16.msra.mxu0 %v5294_v36  ;;  %6590 = vmatpush1.bf16.msra.mxu1 %v5296_v39  ;;  %v5353_v36 = vld [vmem:[#allocation2 + $0x718] sm:$0xff]  ;;  %v5350_v39 = vld [vmem:[#allocation2 + $0x700] sm:$0xff] }
 0x2a8   :  { %6247 = vmatprep.subr.bf16.mxu0 %v5303_v45  ;;  %6591 = vmatprep.subr.bf16.mxu1 %v5305_v49  ;;  %v5352_v45 = vld [vmem:[#allocation2 + $0x710] sm:$0xff]  ;;  %v5359_v49 = vld [vmem:[#allocation2 + $0x748] sm:$0xff] }
 0x2ab   :  { %6248 = vmatpush1.bf16.msra.mxu0 %v5302_v53  ;;  %6592 = vmatpush1.bf16.msra.mxu1 %v5304_v55  ;;  %v5361_v53 = vld [vmem:[#allocation2 + $0x758] sm:$0xff]  ;;  %v5358_v55 = vld [vmem:[#allocation2 + $0x740] sm:$0xff] }
 0x2ac   :  { %6249 = vmatprep.subr.bf16.mxu0 %v5311_v57  ;;  %6593 = vmatprep.subr.bf16.mxu1 %v5313_v44  ;;  %v5360_v57 = vld [vmem:[#allocation2 + $0x750] sm:$0xff]  ;;  %v5367_v44 = vld [vmem:[#allocation2 + $0x788] sm:$0xff] }
 0x2af   :  { %6250 = vmatpush1.bf16.msra.mxu0 %v5310_v32  ;;  %6594 = vmatpush1.bf16.msra.mxu1 %v5312_v63  ;;  %v5369_v32 = vld [vmem:[#allocation2 + $0x798] sm:$0xff]  ;;  %v5366_v63 = vld [vmem:[#allocation2 + $0x780] sm:$0xff] }
 0x2b0   :  { %6251 = vmatprep.subr.bf16.mxu0 %v5319_v4  ;;  %6595 = vmatprep.subr.bf16.mxu1 %v5321_v54  ;;  %v5368_v4 = vld [vmem:[#allocation2 + $0x790] sm:$0xff]  ;;  %v5375_v54 = vld [vmem:[#allocation2 + $0x7c8] sm:$0xff] }
 0x2b3   :  { %6252 = vmatpush1.bf16.msra.mxu0 %v5318_v59  ;;  %6596 = vmatpush1.bf16.msra.mxu1 %v5320_v9  ;;  %v5377_v59 = vld [vmem:[#allocation2 + $0x7d8] sm:$0xff]  ;;  %v5080_v9 = vmax.f32 %v11653_v52, 0.0  ;;  %v5382_v52 = vld [vmem:[#allocation2 + $0x800] sm:$0xff] }
 0x2b4   :  { %6253 = vmatprep.subr.bf16.mxu0 %v5327_v51  ;;  %6597 = vmatprep.subr.bf16.mxu1 %v5329_v14  ;;  %v5096_v51 = vmax.f32 %v11657_v56, 0.0  ;;  %v5374_v14 = vld [vmem:[#allocation2 + $0x7c0] sm:$0xff]  ;;  %v5384_v56 = vld [vmem:[#allocation2 + $0x810] sm:$0xff] }
 0x2b7   :  { %6254 = vmatpush1.bf16.msra.mxu0 %v5326_v16  ;;  %6598 = vmatpush1.bf16.msra.mxu1 %v5328_v17  ;;  %v5376_v16 = vld [vmem:[#allocation2 + $0x7d0] sm:$0xff]  ;;  %v5383_v17 = vld [vmem:[#allocation2 + $0x808] sm:$0xff] }
 0x2b8   :  { %6255 = vmatprep.subr.bf16.mxu0 %v5335_v20  ;;  %6599 = vmatprep.subr.bf16.mxu1 %v5337_v21  ;;  %v5385_v20 = vld [vmem:[#allocation2 + $0x818] sm:$0xff]  ;;  %v5083_v21 = vmax.f32 %v11638_v40, 0.0  ;;  %v5390_v40 = vld [vmem:[#allocation2 + $0x840] sm:$0xff] }
 0x2bb   :  { %6256 = vmatpush1.bf16.msra.mxu0 %v5334_v30  ;;  %6600 = vmatpush1.bf16.msra.mxu1 %v5336_v35  ;;  %v5099_v30 = vmax.f32 %v11646_v47, 0.0  ;;  %v11737_v35 = vpack.c.bf16 %v5096_v51, %v5080_v9  ;;  %v5392_v47 = vld [vmem:[#allocation2 + $0x850] sm:$0xff]  ;;  %v5431_v51 = vld [vmem:[#allocation2 + $0x988] sm:$0xff] }
 0x2bc   :  { %6257 = vmatprep.subr.bf16.mxu0 %v5343_v23  ;;  %6601 = vmatprep.subr.bf16.mxu1 %v5345_v26  ;;  %v5391_v23 = vld [vmem:[#allocation2 + $0x848] sm:$0xff]  ;;  %v5393_v26 = vld [vmem:[#allocation2 + $0x858] sm:$0xff]  ;;  %v5424_v9 = vld [vmem:[#allocation2 + $0x950] sm:$0xff] }
 0x2bf   :  { %6258 = vmatpush1.bf16.msra.mxu0 %v5342_v29  ;;  %6602 = vmatpush1.bf16.msra.mxu1 %v5344_v33  ;;  %v11739_v29 = vpack.c.bf16 %v5099_v30, %v5083_v21  ;;  %v5399_v33 = vld [vmem:[#allocation2 + $0x888] sm:$0xff]  ;;  %v5441_v21 = vld [vmem:[#allocation2 + $0x9d8] sm:$0xff]  ;;  %v5438_v30 = vld [vmem:[#allocation2 + $0x9c0] sm:$0xff] }
 0x2c0   :  { %6259 = vmatprep.subr.bf16.mxu0 %v5351_v34  ;;  %6603 = vmatprep.subr.bf16.mxu1 %v5353_v36  ;;  %v5401_v34 = vld [vmem:[#allocation2 + $0x898] sm:$0xff]  ;;  %v5398_v36 = vld [vmem:[#allocation2 + $0x880] sm:$0xff] }
 0x2c3   :  { %6260 = vmatpush1.bf16.msra.mxu0 %v5350_v39  ;;  %6604 = vmatpush1.bf16.msra.mxu1 %v5352_v45  ;;  %v5400_v39 = vld [vmem:[#allocation2 + $0x890] sm:$0xff]  ;;  %v5407_v45 = vld [vmem:[#allocation2 + $0x8c8] sm:$0xff] }
 0x2c4   :  { %6261 = vmatprep.subr.bf16.mxu0 %v5359_v49  ;;  %6605 = vmatprep.subr.bf16.mxu1 %v5361_v53  ;;  %v5409_v49 = vld [vmem:[#allocation2 + $0x8d8] sm:$0xff]  ;;  %v5406_v53 = vld [vmem:[#allocation2 + $0x8c0] sm:$0xff] }
 0x2c7   :  { %6262 = vmatpush1.bf16.msra.mxu0 %v5358_v55  ;;  %6606 = vmatpush1.bf16.msra.mxu1 %v5360_v57  ;;  %v5408_v55 = vld [vmem:[#allocation2 + $0x8d0] sm:$0xff]  ;;  %v5415_v57 = vld [vmem:[#allocation2 + $0x908] sm:$0xff] }
 0x2c8   :  { %6263 = vmatprep.subr.bf16.mxu0 %v5367_v44  ;;  %6607 = vmatprep.subr.bf16.mxu1 %v5369_v32  ;;  %v5417_v44 = vld [vmem:[#allocation2 + $0x918] sm:$0xff]  ;;  %v5414_v32 = vld [vmem:[#allocation2 + $0x900] sm:$0xff] }
 0x2cb   :  { %6264 = vmatpush1.bf16.msra.mxu0 %v5366_v63  ;;  %6608 = vmatpush1.bf16.msra.mxu1 %v5368_v4  ;;  %v5416_v63 = vld [vmem:[#allocation2 + $0x910] sm:$0xff]  ;;  %v5423_v4 = vld [vmem:[#allocation2 + $0x948] sm:$0xff] }
 0x2cc   :  { %6265 = vmatprep.subr.bf16.mxu0 %v5375_v54  ;;  %6609 = vmatprep.subr.bf16.mxu1 %v5377_v59  ;;  %v5425_v54 = vld [vmem:[#allocation2 + $0x958] sm:$0xff]  ;;  %v5422_v59 = vld [vmem:[#allocation2 + $0x940] sm:$0xff] }
 0x2cf   :  { %6266 = vmatpush1.bf16.msra.mxu0 %v5374_v14  ;;  %6610 = vmatpush1.bf16.msra.mxu1 %v5376_v16  ;;  %v5433_v14 = vld [vmem:[#allocation2 + $0x998] sm:$0xff]  ;;  %v5430_v16 = vld [vmem:[#allocation2 + $0x980] sm:$0xff] }
 0x2d0   :  { %6278 = vmatprep.subr.bf16.mxu0 %v5383_v17  ;;  %6622 = vmatprep.subr.bf16.mxu1 %v5385_v20  ;;  %v5432_v17 = vld [vmem:[#allocation2 + $0x990] sm:$0xff]  ;;  %v5439_v20 = vld [vmem:[#allocation2 + $0x9c8] sm:$0xff] }
 0x2d2   :  { %6268 = vmatmul.mubr.bf16.vlgmr.msra.gmra.mrb[12].mxu0 %v11737_v35  ;;  %6612 = vmatmul.mubr.bf16.vlgmr.msra.gmra.mrb[20].mxu1 %v11737_v35 }
 0x2d3   :  { %6279 = vmatpush1.bf16.msra.mxu0 %v5382_v52  ;;  %6623 = vmatpush1.bf16.msra.mxu1 %v5384_v56  ;;  %v5440_v52 = vld [vmem:[#allocation2 + $0x9d0] sm:$0xff]  ;;  %v5447_v56 = vld [vmem:[#allocation2 + $0xa08] sm:$0xff] }
 0x2d4   :  { %6280 = vmatprep.subr.bf16.mxu0 %v5391_v23  ;;  %6624 = vmatprep.subr.bf16.mxu1 %v5393_v26  ;;  %v5449_v23 = vld [vmem:[#allocation2 + $0xa18] sm:$0xff]  ;;  %v5446_v26 = vld [vmem:[#allocation2 + $0xa00] sm:$0xff] }
 0x2d5   :  { %6310 = vmatprep.mubr.bf16.mxu0 %v11739_v29  ;;  %6654 = vmatprep.mubr.bf16.mxu1 %v11739_v29 }
 0x2d7   :  { %6281 = vmatpush1.bf16.msra.mxu0 %v5390_v40  ;;  %6625 = vmatpush1.bf16.msra.mxu1 %v5392_v47  ;;  %v5448_v40 = vld [vmem:[#allocation2 + $0xa10] sm:$0xff]  ;;  %v5455_v47 = vld [vmem:[#allocation2 + $0xa48] sm:$0xff] }
 0x2d8   :  { %6282 = vmatprep.subr.bf16.mxu0 %v5399_v33  ;;  %6626 = vmatprep.subr.bf16.mxu1 %v5401_v34  ;;  %v5457_v33 = vld [vmem:[#allocation2 + $0xa58] sm:$0xff]  ;;  %v5454_v34 = vld [vmem:[#allocation2 + $0xa40] sm:$0xff] }
 0x2db   :  { %6283 = vmatpush1.bf16.msra.mxu0 %v5398_v36  ;;  %6627 = vmatpush1.bf16.msra.mxu1 %v5400_v39  ;;  %v5456_v36 = vld [vmem:[#allocation2 + $0xa50] sm:$0xff]  ;;  %v5463_v39 = vld [vmem:[#allocation2 + $0xa88] sm:$0xff] }
 0x2dc   :  { %6284 = vmatprep.subr.bf16.mxu0 %v5407_v45  ;;  %6628 = vmatprep.subr.bf16.mxu1 %v5409_v49  ;;  %v5465_v45 = vld [vmem:[#allocation2 + $0xa98] sm:$0xff]  ;;  %v5462_v49 = vld [vmem:[#allocation2 + $0xa80] sm:$0xff] }
 0x2df   :  { %6285 = vmatpush1.bf16.msra.mxu0 %v5406_v53  ;;  %6629 = vmatpush1.bf16.msra.mxu1 %v5408_v55  ;;  %v5464_v53 = vld [vmem:[#allocation2 + $0xa90] sm:$0xff]  ;;  %v5471_v55 = vld [vmem:[#allocation2 + $0xac8] sm:$0xff] }
 0x2e0   :  { %6286 = vmatprep.subr.bf16.mxu0 %v5415_v57  ;;  %6630 = vmatprep.subr.bf16.mxu1 %v5417_v44  ;;  %v5473_v57 = vld [vmem:[#allocation2 + $0xad8] sm:$0xff]  ;;  %v5470_v44 = vld [vmem:[#allocation2 + $0xac0] sm:$0xff] }
 0x2e3   :  { %6287 = vmatpush1.bf16.msra.mxu0 %v5414_v32  ;;  %6631 = vmatpush1.bf16.msra.mxu1 %v5416_v63  ;;  %v5472_v32 = vld [vmem:[#allocation2 + $0xad0] sm:$0xff]  ;;  %v5479_v63 = vld [vmem:[#allocation2 + $0xb08] sm:$0xff] }
 0x2e4   :  { %6288 = vmatprep.subr.bf16.mxu0 %v5423_v4  ;;  %6632 = vmatprep.subr.bf16.mxu1 %v5425_v54  ;;  %v5481_v4 = vld [vmem:[#allocation2 + $0xb18] sm:$0xff]  ;;  %v5478_v54 = vld [vmem:[#allocation2 + $0xb00] sm:$0xff] }
 0x2e7   :  { %6289 = vmatpush1.bf16.msra.mxu0 %v5422_v59  ;;  %6633 = vmatpush1.bf16.msra.mxu1 %v5424_v9  ;;  %v5480_v59 = vld [vmem:[#allocation2 + $0xb10] sm:$0xff]  ;;  %v5487_v9 = vld [vmem:[#allocation2 + $0xb48] sm:$0xff] }
 0x2e8   :  { %6290 = vmatprep.subr.bf16.mxu0 %v5431_v51  ;;  %6634 = vmatprep.subr.bf16.mxu1 %v5433_v14  ;;  %v5489_v51 = vld [vmem:[#allocation2 + $0xb58] sm:$0xff]  ;;  %v5486_v14 = vld [vmem:[#allocation2 + $0xb40] sm:$0xff] }
 0x2eb   :  { %6291 = vmatpush1.bf16.msra.mxu0 %v5430_v16  ;;  %6635 = vmatpush1.bf16.msra.mxu1 %v5432_v17  ;;  %v5488_v16 = vld [vmem:[#allocation2 + $0xb50] sm:$0xff]  ;;  %v5495_v17 = vld [vmem:[#allocation2 + $0xb88] sm:$0xff] }
 0x2ec   :  { %6292 = vmatprep.subr.bf16.mxu0 %v5439_v20  ;;  %6636 = vmatprep.subr.bf16.mxu1 %v5441_v21  ;;  %v5497_v20 = vld [vmem:[#allocation2 + $0xb98] sm:$0xff]  ;;  %v5494_v21 = vld [vmem:[#allocation2 + $0xb80] sm:$0xff] }
 0x2ef   :  { %6293 = vmatpush1.bf16.msra.mxu0 %v5438_v30  ;;  %6637 = vmatpush1.bf16.msra.mxu1 %v5440_v52  ;;  %v5496_v30 = vld [vmem:[#allocation2 + $0xb90] sm:$0xff]  ;;  %v5503_v52 = vld [vmem:[#allocation2 + $0xbc8] sm:$0xff] }
 0x2f0   :  { %6294 = vmatprep.subr.bf16.mxu0 %v5447_v56  ;;  %6638 = vmatprep.subr.bf16.mxu1 %v5449_v23  ;;  %v5505_v56 = vld [vmem:[#allocation2 + $0xbd8] sm:$0xff]  ;;  %v5082_v23 = vmax.f32 %v11636_v38, 0.0  ;;  %v5510_v38 = vld [vmem:[#allocation2 + $0xc00] sm:$0xff] }
 0x2f3   :  { %6295 = vmatpush1.bf16.msra.mxu0 %v5446_v26  ;;  %6639 = vmatpush1.bf16.msra.mxu1 %v5448_v40  ;;  %v5098_v26 = vmax.f32 %v11642_v43, 0.0  ;;  %v5502_v40 = vld [vmem:[#allocation2 + $0xbc0] sm:$0xff]  ;;  %v5512_v43 = vld [vmem:[#allocation2 + $0xc10] sm:$0xff] }
 0x2f4   :  { %6296 = vmatprep.subr.bf16.mxu0 %v5455_v47  ;;  %6640 = vmatprep.subr.bf16.mxu1 %v5457_v33  ;;  %v5504_v47 = vld [vmem:[#allocation2 + $0xbd0] sm:$0xff]  ;;  %v5511_v33 = vld [vmem:[#allocation2 + $0xc08] sm:$0xff] }
 0x2f7   :  { %6297 = vmatpush1.bf16.msra.mxu0 %v5454_v34  ;;  %6641 = vmatpush1.bf16.msra.mxu1 %v5456_v36  ;;  %v5513_v34 = vld [vmem:[#allocation2 + $0xc18] sm:$0xff]  ;;  %v5085_v36 = vmax.f32 %v11679_v13, 0.0  ;;  %v5518_v13 = vld [vmem:[#allocation2 + $0xc40] sm:$0xff] }
 0x2f8   :  { %6298 = vmatprep.subr.bf16.mxu0 %v5463_v39  ;;  %6642 = vmatprep.subr.bf16.mxu1 %v5465_v45  ;;  %v5101_v39 = vmax.f32 %v11684_v19, 0.0  ;;  %v11749_v45 = vpack.c.bf16 %v5098_v26, %v5082_v23  ;;  %v5520_v19 = vld [vmem:[#allocation2 + $0xc50] sm:$0xff]  ;;  %v5561_v23 = vld [vmem:[#allocation2 + $0xd98] sm:$0xff]  ;;  %v5558_v26 = vld [vmem:[#allocation2 + $0xd80] sm:$0xff] }
 0x2fb   :  { %6299 = vmatpush1.bf16.msra.mxu0 %v5462_v49  ;;  %6643 = vmatpush1.bf16.msra.mxu1 %v5464_v53  ;;  %v5519_v49 = vld [vmem:[#allocation2 + $0xc48] sm:$0xff]  ;;  %v5521_v53 = vld [vmem:[#allocation2 + $0xc58] sm:$0xff] }
 0x2fc   :  { %6300 = vmatprep.subr.bf16.mxu0 %v5471_v55  ;;  %6644 = vmatprep.subr.bf16.mxu1 %v5473_v57  ;;  %v11751_v55 = vpack.c.bf16 %v5101_v39, %v5085_v36  ;;  %v5527_v57 = vld [vmem:[#allocation2 + $0xc88] sm:$0xff]  ;;  %v5568_v36 = vld [vmem:[#allocation2 + $0xdd0] sm:$0xff] }
 0x2fd   :  { %v5575_v39 = vld [vmem:[#allocation2 + $0xe08] sm:$0xff] }
 0x2ff   :  { %6301 = vmatpush1.bf16.msra.mxu0 %v5470_v44  ;;  %6645 = vmatpush1.bf16.msra.mxu1 %v5472_v32  ;;  %v5529_v44 = vld [vmem:[#allocation2 + $0xc98] sm:$0xff]  ;;  %v5526_v32 = vld [vmem:[#allocation2 + $0xc80] sm:$0xff] }
 0x300   :  { %6302 = vmatprep.subr.bf16.mxu0 %v5479_v63  ;;  %6646 = vmatprep.subr.bf16.mxu1 %v5481_v4  ;;  %v5528_v63 = vld [vmem:[#allocation2 + $0xc90] sm:$0xff]  ;;  %v5535_v4 = vld [vmem:[#allocation2 + $0xcc8] sm:$0xff] }
 0x303   :  { %6303 = vmatpush1.bf16.msra.mxu0 %v5478_v54  ;;  %6647 = vmatpush1.bf16.msra.mxu1 %v5480_v59  ;;  %v5537_v54 = vld [vmem:[#allocation2 + $0xcd8] sm:$0xff]  ;;  %v5534_v59 = vld [vmem:[#allocation2 + $0xcc0] sm:$0xff] }
 0x304   :  { %6304 = vmatprep.subr.bf16.mxu0 %v5487_v9  ;;  %6648 = vmatprep.subr.bf16.mxu1 %v5489_v51  ;;  %v5536_v9 = vld [vmem:[#allocation2 + $0xcd0] sm:$0xff]  ;;  %v5543_v51 = vld [vmem:[#allocation2 + $0xd08] sm:$0xff] }
 0x307   :  { %6305 = vmatpush1.bf16.msra.mxu0 %v5486_v14  ;;  %6649 = vmatpush1.bf16.msra.mxu1 %v5488_v16  ;;  %v5545_v14 = vld [vmem:[#allocation2 + $0xd18] sm:$0xff]  ;;  %v5542_v16 = vld [vmem:[#allocation2 + $0xd00] sm:$0xff] }
 0x308   :  { %6306 = vmatprep.subr.bf16.mxu0 %v5495_v17  ;;  %6650 = vmatprep.subr.bf16.mxu1 %v5497_v20  ;;  %v5544_v17 = vld [vmem:[#allocation2 + $0xd10] sm:$0xff]  ;;  %v5551_v20 = vld [vmem:[#allocation2 + $0xd48] sm:$0xff] }
 0x30b   :  { %6307 = vmatpush1.bf16.msra.mxu0 %v5494_v21  ;;  %6651 = vmatpush1.bf16.msra.mxu1 %v5496_v30  ;;  %v5553_v21 = vld [vmem:[#allocation2 + $0xd58] sm:$0xff]  ;;  %v5550_v30 = vld [vmem:[#allocation2 + $0xd40] sm:$0xff] }
 0x30c   :  { %6308 = vmatprep.subr.bf16.mxu0 %v5503_v52  ;;  %6652 = vmatprep.subr.bf16.mxu1 %v5505_v56  ;;  %v5552_v52 = vld [vmem:[#allocation2 + $0xd50] sm:$0xff]  ;;  %v5559_v56 = vld [vmem:[#allocation2 + $0xd88] sm:$0xff] }
 0x30f   :  { %6309 = vmatpush1.bf16.msra.mxu0 %v5502_v40  ;;  %6653 = vmatpush1.bf16.msra.mxu1 %v5504_v47  ;;  %v5560_v40 = vld [vmem:[#allocation2 + $0xd90] sm:$0xff]  ;;  %v5567_v47 = vld [vmem:[#allocation2 + $0xdc8] sm:$0xff] }
 0x310   :  { %6321 = vmatprep.subr.bf16.mxu0 %v5511_v33  ;;  %6665 = vmatprep.subr.bf16.mxu1 %v5513_v34  ;;  %v5569_v33 = vld [vmem:[#allocation2 + $0xdd8] sm:$0xff]  ;;  %v5566_v34 = vld [vmem:[#allocation2 + $0xdc0] sm:$0xff] }
 0x312   :  { %6311 = vmatmul.mubr.bf16.vlgmr.msra.gmra.mrb[12].mxu0 %v11749_v45  ;;  %6655 = vmatmul.mubr.bf16.vlgmr.msra.gmra.mrb[20].mxu1 %v11749_v45 }
 0x313   :  { %6322 = vmatpush1.bf16.msra.mxu0 %v5510_v38  ;;  %6666 = vmatpush1.bf16.msra.mxu1 %v5512_v43  ;;  %v5577_v38 = vld [vmem:[#allocation2 + $0xe18] sm:$0xff]  ;;  %v5574_v43 = vld [vmem:[#allocation2 + $0xe00] sm:$0xff] }
 0x314   :  { %6323 = vmatprep.subr.bf16.mxu0 %v5519_v49  ;;  %6667 = vmatprep.subr.bf16.mxu1 %v5521_v53  ;;  %v5576_v49 = vld [vmem:[#allocation2 + $0xe10] sm:$0xff]  ;;  %v5583_v53 = vld [vmem:[#allocation2 + $0xe48] sm:$0xff] }
 0x315   :  { %6353 = vmatprep.mubr.bf16.mxu0 %v11751_v55  ;;  %6697 = vmatprep.mubr.bf16.mxu1 %v11751_v55 }
 0x317   :  { %6324 = vmatpush1.bf16.msra.mxu0 %v5518_v13  ;;  %6668 = vmatpush1.bf16.msra.mxu1 %v5520_v19  ;;  %v5585_v13 = vld [vmem:[#allocation2 + $0xe58] sm:$0xff]  ;;  %v5582_v19 = vld [vmem:[#allocation2 + $0xe40] sm:$0xff] }
 0x318   :  { %6325 = vmatprep.subr.bf16.mxu0 %v5527_v57  ;;  %6669 = vmatprep.subr.bf16.mxu1 %v5529_v44  ;;  %v5584_v57 = vld [vmem:[#allocation2 + $0xe50] sm:$0xff]  ;;  %v5591_v44 = vld [vmem:[#allocation2 + $0xe88] sm:$0xff] }
 0x31b   :  { %6326 = vmatpush1.bf16.msra.mxu0 %v5526_v32  ;;  %6670 = vmatpush1.bf16.msra.mxu1 %v5528_v63  ;;  %v5593_v32 = vld [vmem:[#allocation2 + $0xe98] sm:$0xff]  ;;  %v5590_v63 = vld [vmem:[#allocation2 + $0xe80] sm:$0xff] }
 0x31c   :  { %6327 = vmatprep.subr.bf16.mxu0 %v5535_v4  ;;  %6671 = vmatprep.subr.bf16.mxu1 %v5537_v54  ;;  %v5592_v4 = vld [vmem:[#allocation2 + $0xe90] sm:$0xff]  ;;  %v5599_v54 = vld [vmem:[#allocation2 + $0xec8] sm:$0xff] }
 0x31f   :  { %6328 = vmatpush1.bf16.msra.mxu0 %v5534_v59  ;;  %6672 = vmatpush1.bf16.msra.mxu1 %v5536_v9  ;;  %v5601_v59 = vld [vmem:[#allocation2 + $0xed8] sm:$0xff]  ;;  %v5598_v9 = vld [vmem:[#allocation2 + $0xec0] sm:$0xff] }
 0x320   :  { %6329 = vmatprep.subr.bf16.mxu0 %v5543_v51  ;;  %6673 = vmatprep.subr.bf16.mxu1 %v5545_v14  ;;  %v5600_v51 = vld [vmem:[#allocation2 + $0xed0] sm:$0xff]  ;;  %v5607_v14 = vld [vmem:[#allocation2 + $0xf08] sm:$0xff] }
 0x323   :  { %6330 = vmatpush1.bf16.msra.mxu0 %v5542_v16  ;;  %6674 = vmatpush1.bf16.msra.mxu1 %v5544_v17  ;;  %v5609_v16 = vld [vmem:[#allocation2 + $0xf18] sm:$0xff]  ;;  %v5606_v17 = vld [vmem:[#allocation2 + $0xf00] sm:$0xff] }
 0x324   :  { %6331 = vmatprep.subr.bf16.mxu0 %v5551_v20  ;;  %6675 = vmatprep.subr.bf16.mxu1 %v5553_v21  ;;  %v5608_v20 = vld [vmem:[#allocation2 + $0xf10] sm:$0xff]  ;;  %v5615_v21 = vld [vmem:[#allocation2 + $0xf48] sm:$0xff] }
 0x327   :  { %6332 = vmatpush1.bf16.msra.mxu0 %v5550_v30  ;;  %6676 = vmatpush1.bf16.msra.mxu1 %v5552_v52  ;;  %v5617_v30 = vld [vmem:[#allocation2 + $0xf58] sm:$0xff]  ;;  %v5614_v52 = vld [vmem:[#allocation2 + $0xf40] sm:$0xff] }
 0x328   :  { %6333 = vmatprep.subr.bf16.mxu0 %v5559_v56  ;;  %6677 = vmatprep.subr.bf16.mxu1 %v5561_v23  ;;  %v5616_v56 = vld [vmem:[#allocation2 + $0xf50] sm:$0xff]  ;;  %v5623_v23 = vld [vmem:[#allocation2 + $0xf88] sm:$0xff] }
 0x32b   :  { %6334 = vmatpush1.bf16.msra.mxu0 %v5558_v26  ;;  %6678 = vmatpush1.bf16.msra.mxu1 %v5560_v40  ;;  %v5625_v26 = vld [vmem:[#allocation2 + $0xf98] sm:$0xff]  ;;  %v5622_v40 = vld [vmem:[#allocation2 + $0xf80] sm:$0xff] }
 0x32c   :  { %6335 = vmatprep.subr.bf16.mxu0 %v5567_v47  ;;  %6679 = vmatprep.subr.bf16.mxu1 %v5569_v33  ;;  %v5624_v47 = vld [vmem:[#allocation2 + $0xf90] sm:$0xff]  ;;  %v5631_v33 = vld [vmem:[#allocation2 + $0xfc8] sm:$0xff] }
 0x32f   :  { %6336 = vmatpush1.bf16.msra.mxu0 %v5566_v34  ;;  %6680 = vmatpush1.bf16.msra.mxu1 %v5568_v36  ;;  %v5633_v34 = vld [vmem:[#allocation2 + $0xfd8] sm:$0xff]  ;;  %v5084_v36 = vmax.f32 %v11677_v10, 0.0  ;;  %v5638_v10 = vld [vmem:[#allocation2 + $0x1000] sm:$0xff] }
 0x330   :  { %6337 = vmatprep.subr.bf16.mxu0 %v5575_v39  ;;  %6681 = vmatprep.subr.bf16.mxu1 %v5577_v38  ;;  %v5100_v39 = vmax.f32 %v11681_v15, 0.0  ;;  %v5630_v38 = vld [vmem:[#allocation2 + $0xfc0] sm:$0xff]  ;;  %v5640_v15 = vld [vmem:[#allocation2 + $0x1010] sm:$0xff] }
 0x333   :  { %6338 = vmatpush1.bf16.msra.mxu0 %v5574_v43  ;;  %6682 = vmatpush1.bf16.msra.mxu1 %v5576_v49  ;;  %v5632_v43 = vld [vmem:[#allocation2 + $0xfd0] sm:$0xff]  ;;  %v5639_v49 = vld [vmem:[#allocation2 + $0x1008] sm:$0xff] }
 0x334   :  { %6339 = vmatprep.subr.bf16.mxu0 %v5583_v53  ;;  %6683 = vmatprep.subr.bf16.mxu1 %v5585_v13  ;;  %v5641_v53 = vld [vmem:[#allocation2 + $0x1018] sm:$0xff]  ;;  %v5087_v13 = vmax.f32 %v11665_v0, 0.0  ;;  %v5646_v0 = vld [vmem:[#allocation2 + $0x1040] sm:$0xff] }
 0x337   :  { %6340 = vmatpush1.bf16.msra.mxu0 %v5582_v19  ;;  %6684 = vmatpush1.bf16.msra.mxu1 %v5584_v57  ;;  %v5103_v19 = vmax.f32 %v11673_v6, 0.0  ;;  %v11761_v57 = vpack.c.bf16 %v5100_v39, %v5084_v36  ;;  %v5648_v6 = vld [vmem:[#allocation2 + $0x1050] sm:$0xff]  ;;  %v5695_v39 = vld [vmem:[#allocation2 + $0x11c8] sm:$0xff] }
 0x338   :  { %6341 = vmatprep.subr.bf16.mxu0 %v5591_v44  ;;  %6685 = vmatprep.subr.bf16.mxu1 %v5593_v32  ;;  %v5647_v44 = vld [vmem:[#allocation2 + $0x1048] sm:$0xff]  ;;  %v5649_v32 = vld [vmem:[#allocation2 + $0x1058] sm:$0xff]  ;;  %v5688_v36 = vld [vmem:[#allocation2 + $0x1190] sm:$0xff] }
 0x33b   :  { %6342 = vmatpush1.bf16.msra.mxu0 %v5590_v63  ;;  %6686 = vmatpush1.bf16.msra.mxu1 %v5592_v4  ;;  %v11763_v63 = vpack.c.bf16 %v5103_v19, %v5087_v13  ;;  %v5655_v4 = vld [vmem:[#allocation2 + $0x1088] sm:$0xff]  ;;  %v5705_v13 = vld [vmem:[#allocation2 + $0x1218] sm:$0xff]  ;;  %v5702_v19 = vld [vmem:[#allocation2 + $0x1200] sm:$0xff] }
 0x33c   :  { %6343 = vmatprep.subr.bf16.mxu0 %v5599_v54  ;;  %6687 = vmatprep.subr.bf16.mxu1 %v5601_v59  ;;  %v5657_v54 = vld [vmem:[#allocation2 + $0x1098] sm:$0xff]  ;;  %v5654_v59 = vld [vmem:[#allocation2 + $0x1080] sm:$0xff] }
 0x33f   :  { %6344 = vmatpush1.bf16.msra.mxu0 %v5598_v9  ;;  %6688 = vmatpush1.bf16.msra.mxu1 %v5600_v51  ;;  %v5656_v9 = vld [vmem:[#allocation2 + $0x1090] sm:$0xff]  ;;  %v5663_v51 = vld [vmem:[#allocation2 + $0x10c8] sm:$0xff] }
 0x340   :  { %6345 = vmatprep.subr.bf16.mxu0 %v5607_v14  ;;  %6689 = vmatprep.subr.bf16.mxu1 %v5609_v16  ;;  %v5665_v14 = vld [vmem:[#allocation2 + $0x10d8] sm:$0xff]  ;;  %v5662_v16 = vld [vmem:[#allocation2 + $0x10c0] sm:$0xff] }
 0x343   :  { %6346 = vmatpush1.bf16.msra.mxu0 %v5606_v17  ;;  %6690 = vmatpush1.bf16.msra.mxu1 %v5608_v20  ;;  %v5664_v17 = vld [vmem:[#allocation2 + $0x10d0] sm:$0xff]  ;;  %v5671_v20 = vld [vmem:[#allocation2 + $0x1108] sm:$0xff] }
 0x344   :  { %6347 = vmatprep.subr.bf16.mxu0 %v5615_v21  ;;  %6691 = vmatprep.subr.bf16.mxu1 %v5617_v30  ;;  %v5673_v21 = vld [vmem:[#allocation2 + $0x1118] sm:$0xff]  ;;  %v5670_v30 = vld [vmem:[#allocation2 + $0x1100] sm:$0xff] }
 0x347   :  { %6348 = vmatpush1.bf16.msra.mxu0 %v5614_v52  ;;  %6692 = vmatpush1.bf16.msra.mxu1 %v5616_v56  ;;  %v5672_v52 = vld [vmem:[#allocation2 + $0x1110] sm:$0xff]  ;;  %v5679_v56 = vld [vmem:[#allocation2 + $0x1148] sm:$0xff] }
 0x348   :  { %6349 = vmatprep.subr.bf16.mxu0 %v5623_v23  ;;  %6693 = vmatprep.subr.bf16.mxu1 %v5625_v26  ;;  %v5681_v23 = vld [vmem:[#allocation2 + $0x1158] sm:$0xff]  ;;  %v5678_v26 = vld [vmem:[#allocation2 + $0x1140] sm:$0xff] }
 0x34b   :  { %6350 = vmatpush1.bf16.msra.mxu0 %v5622_v40  ;;  %6694 = vmatpush1.bf16.msra.mxu1 %v5624_v47  ;;  %v5680_v40 = vld [vmem:[#allocation2 + $0x1150] sm:$0xff]  ;;  %v5687_v47 = vld [vmem:[#allocation2 + $0x1188] sm:$0xff] }
 0x34c   :  { %6351 = vmatprep.subr.bf16.mxu0 %v5631_v33  ;;  %6695 = vmatprep.subr.bf16.mxu1 %v5633_v34  ;;  %v5689_v33 = vld [vmem:[#allocation2 + $0x1198] sm:$0xff]  ;;  %v5686_v34 = vld [vmem:[#allocation2 + $0x1180] sm:$0xff] }
 0x34f   :  { %6352 = vmatpush1.bf16.msra.mxu0 %v5630_v38  ;;  %6696 = vmatpush1.bf16.msra.mxu1 %v5632_v43  ;;  %v5697_v38 = vld [vmem:[#allocation2 + $0x11d8] sm:$0xff]  ;;  %v5694_v43 = vld [vmem:[#allocation2 + $0x11c0] sm:$0xff] }
 0x350   :  { %6364 = vmatprep.subr.bf16.mxu0 %v5639_v49  ;;  %6708 = vmatprep.subr.bf16.mxu1 %v5641_v53  ;;  %v5696_v49 = vld [vmem:[#allocation2 + $0x11d0] sm:$0xff]  ;;  %v5703_v53 = vld [vmem:[#allocation2 + $0x1208] sm:$0xff] }
 0x352   :  { %6354 = vmatmul.mubr.bf16.vlgmr.msra.gmra.mrb[12].mxu0 %v11761_v57  ;;  %6698 = vmatmul.mubr.bf16.vlgmr.msra.gmra.mrb[20].mxu1 %v11761_v57 }
 0x353   :  { %6365 = vmatpush1.bf16.msra.mxu0 %v5638_v10  ;;  %6709 = vmatpush1.bf16.msra.mxu1 %v5640_v15  ;;  %v5704_v10 = vld [vmem:[#allocation2 + $0x1210] sm:$0xff]  ;;  %v5711_v15 = vld [vmem:[#allocation2 + $0x1248] sm:$0xff] }
 0x354   :  { %6366 = vmatprep.subr.bf16.mxu0 %v5647_v44  ;;  %6710 = vmatprep.subr.bf16.mxu1 %v5649_v32  ;;  %v5713_v44 = vld [vmem:[#allocation2 + $0x1258] sm:$0xff]  ;;  %v5710_v32 = vld [vmem:[#allocation2 + $0x1240] sm:$0xff] }
 0x355   :  { %6396 = vmatprep.mubr.bf16.mxu0 %v11763_v63  ;;  %6740 = vmatprep.mubr.bf16.mxu1 %v11763_v63 }
 0x357   :  { %6367 = vmatpush1.bf16.msra.mxu0 %v5646_v0  ;;  %6711 = vmatpush1.bf16.msra.mxu1 %v5648_v6  ;;  %v5712_v0 = vld [vmem:[#allocation2 + $0x1250] sm:$0xff]  ;;  %v5719_v6 = vld [vmem:[#allocation2 + $0x1288] sm:$0xff] }
 0x358   :  { %6368 = vmatprep.subr.bf16.mxu0 %v5655_v4  ;;  %6712 = vmatprep.subr.bf16.mxu1 %v5657_v54  ;;  %v5721_v4 = vld [vmem:[#allocation2 + $0x1298] sm:$0xff]  ;;  %v5718_v54 = vld [vmem:[#allocation2 + $0x1280] sm:$0xff] }
 0x35b   :  { %6369 = vmatpush1.bf16.msra.mxu0 %v5654_v59  ;;  %6713 = vmatpush1.bf16.msra.mxu1 %v5656_v9  ;;  %v5720_v59 = vld [vmem:[#allocation2 + $0x1290] sm:$0xff]  ;;  %v5727_v9 = vld [vmem:[#allocation2 + $0x12c8] sm:$0xff] }
 0x35c   :  { %6370 = vmatprep.subr.bf16.mxu0 %v5663_v51  ;;  %6714 = vmatprep.subr.bf16.mxu1 %v5665_v14  ;;  %v5729_v51 = vld [vmem:[#allocation2 + $0x12d8] sm:$0xff]  ;;  %v5726_v14 = vld [vmem:[#allocation2 + $0x12c0] sm:$0xff] }
 0x35f   :  { %6371 = vmatpush1.bf16.msra.mxu0 %v5662_v16  ;;  %6715 = vmatpush1.bf16.msra.mxu1 %v5664_v17  ;;  %v5728_v16 = vld [vmem:[#allocation2 + $0x12d0] sm:$0xff]  ;;  %v5735_v17 = vld [vmem:[#allocation2 + $0x1308] sm:$0xff] }
 0x360   :  { %6372 = vmatprep.subr.bf16.mxu0 %v5671_v20  ;;  %6716 = vmatprep.subr.bf16.mxu1 %v5673_v21  ;;  %v5737_v20 = vld [vmem:[#allocation2 + $0x1318] sm:$0xff]  ;;  %v5734_v21 = vld [vmem:[#allocation2 + $0x1300] sm:$0xff] }
 0x363   :  { %6373 = vmatpush1.bf16.msra.mxu0 %v5670_v30  ;;  %6717 = vmatpush1.bf16.msra.mxu1 %v5672_v52  ;;  %v5736_v30 = vld [vmem:[#allocation2 + $0x1310] sm:$0xff]  ;;  %v5743_v52 = vld [vmem:[#allocation2 + $0x1348] sm:$0xff] }
 0x364   :  { %6374 = vmatprep.subr.bf16.mxu0 %v5679_v56  ;;  %6718 = vmatprep.subr.bf16.mxu1 %v5681_v23  ;;  %v5745_v56 = vld [vmem:[#allocation2 + $0x1358] sm:$0xff]  ;;  %v5742_v23 = vld [vmem:[#allocation2 + $0x1340] sm:$0xff] }
 0x367   :  { %6375 = vmatpush1.bf16.msra.mxu0 %v5678_v26  ;;  %6719 = vmatpush1.bf16.msra.mxu1 %v5680_v40  ;;  %v5744_v26 = vld [vmem:[#allocation2 + $0x1350] sm:$0xff]  ;;  %v5751_v40 = vld [vmem:[#allocation2 + $0x1388] sm:$0xff] }
 0x368   :  { %6376 = vmatprep.subr.bf16.mxu0 %v5687_v47  ;;  %6720 = vmatprep.subr.bf16.mxu1 %v5689_v33  ;;  %v5753_v47 = vld [vmem:[#allocation2 + $0x1398] sm:$0xff]  ;;  %v5750_v33 = vld [vmem:[#allocation2 + $0x1380] sm:$0xff] }
 0x36b   :  { %6377 = vmatpush1.bf16.msra.mxu0 %v5686_v34  ;;  %6721 = vmatpush1.bf16.msra.mxu1 %v5688_v36  ;;  %v5752_v34 = vld [vmem:[#allocation2 + $0x1390] sm:$0xff]  ;;  %v5759_v36 = vld [vmem:[#allocation2 + $0x13c8] sm:$0xff] }
 0x36c   :  { %6378 = vmatprep.subr.bf16.mxu0 %v5695_v39  ;;  %6722 = vmatprep.subr.bf16.mxu1 %v5697_v38  ;;  %v5761_v39 = vld [vmem:[#allocation2 + $0x13d8] sm:$0xff]  ;;  %v5086_v38 = vmax.f32 %v11663_v62, 0.0  ;;  %v5766_v62 = vld [vmem:[#allocation2 + $0x1400] sm:$0xff] }
 0x36f   :  { %6379 = vmatpush1.bf16.msra.mxu0 %v5694_v43  ;;  %6723 = vmatpush1.bf16.msra.mxu1 %v5696_v49  ;;  %v5102_v43 = vmax.f32 %v11669_v3, 0.0  ;;  %v5758_v49 = vld [vmem:[#allocation2 + $0x13c0] sm:$0xff]  ;;  %v5768_v3 = vld [vmem:[#allocation2 + $0x1410] sm:$0xff] }
 0x370   :  { %6380 = vmatprep.subr.bf16.mxu0 %v5703_v53  ;;  %6724 = vmatprep.subr.bf16.mxu1 %v5705_v13  ;;  %v5760_v53 = vld [vmem:[#allocation2 + $0x13d0] sm:$0xff]  ;;  %v5767_v13 = vld [vmem:[#allocation2 + $0x1408] sm:$0xff] }
 0x373   :  { %6381 = vmatpush1.bf16.msra.mxu0 %v5702_v19  ;;  %6725 = vmatpush1.bf16.msra.mxu1 %v5704_v10  ;;  %v5769_v19 = vld [vmem:[#allocation2 + $0x1418] sm:$0xff]  ;;  %v5089_v10 = vmax.f32 %v11699_v41, 0.0  ;;  %v5774_v41 = vld [vmem:[#allocation2 + $0x1440] sm:$0xff] }
 0x374   :  { %6382 = vmatprep.subr.bf16.mxu0 %v5711_v15  ;;  %6726 = vmatprep.subr.bf16.mxu1 %v5713_v44  ;;  %v5105_v15 = vmax.f32 %v11703_v50, 0.0  ;;  %v11773_v44 = vpack.c.bf16 %v5102_v43, %v5086_v38  ;;  %v5776_v50 = vld [vmem:[#allocation2 + $0x1450] sm:$0xff]  ;;  %v5825_v38 = vld [vmem:[#allocation2 + $0x15d8] sm:$0xff]  ;;  %v5822_v43 = vld [vmem:[#allocation2 + $0x15c0] sm:$0xff] }
 0x377   :  { %6383 = vmatpush1.bf16.msra.mxu0 %v5710_v32  ;;  %6727 = vmatpush1.bf16.msra.mxu1 %v5712_v0  ;;  %v5775_v32 = vld [vmem:[#allocation2 + $0x1448] sm:$0xff]  ;;  %v5777_v0 = vld [vmem:[#allocation2 + $0x1458] sm:$0xff] }
 0x378   :  { %6384 = vmatprep.subr.bf16.mxu0 %v5719_v6  ;;  %6728 = vmatprep.subr.bf16.mxu1 %v5721_v4  ;;  %v11775_v6 = vpack.c.bf16 %v5105_v15, %v5089_v10  ;;  %v5783_v4 = vld [vmem:[#allocation2 + $0x1488] sm:$0xff]  ;;  %v5832_v10 = vld [vmem:[#allocation2 + $0x1610] sm:$0xff] }
 0x379   :  { %v5839_v15 = vld [vmem:[#allocation2 + $0x1648] sm:$0xff] }
 0x37b   :  { %6385 = vmatpush1.bf16.msra.mxu0 %v5718_v54  ;;  %6729 = vmatpush1.bf16.msra.mxu1 %v5720_v59  ;;  %v5785_v54 = vld [vmem:[#allocation2 + $0x1498] sm:$0xff]  ;;  %v5782_v59 = vld [vmem:[#allocation2 + $0x1480] sm:$0xff] }
 0x37c   :  { %6386 = vmatprep.subr.bf16.mxu0 %v5727_v9  ;;  %6730 = vmatprep.subr.bf16.mxu1 %v5729_v51  ;;  %v5784_v9 = vld [vmem:[#allocation2 + $0x1490] sm:$0xff]  ;;  %v5791_v51 = vld [vmem:[#allocation2 + $0x14c8] sm:$0xff] }
 0x37f   :  { %6387 = vmatpush1.bf16.msra.mxu0 %v5726_v14  ;;  %6731 = vmatpush1.bf16.msra.mxu1 %v5728_v16  ;;  %v5793_v14 = vld [vmem:[#allocation2 + $0x14d8] sm:$0xff]  ;;  %v5790_v16 = vld [vmem:[#allocation2 + $0x14c0] sm:$0xff] }
 0x380   :  { %6388 = vmatprep.subr.bf16.mxu0 %v5735_v17  ;;  %6732 = vmatprep.subr.bf16.mxu1 %v5737_v20  ;;  %v5792_v17 = vld [vmem:[#allocation2 + $0x14d0] sm:$0xff]  ;;  %v5799_v20 = vld [vmem:[#allocation2 + $0x1508] sm:$0xff] }
 0x383   :  { %6389 = vmatpush1.bf16.msra.mxu0 %v5734_v21  ;;  %6733 = vmatpush1.bf16.msra.mxu1 %v5736_v30  ;;  %v5801_v21 = vld [vmem:[#allocation2 + $0x1518] sm:$0xff]  ;;  %v5798_v30 = vld [vmem:[#allocation2 + $0x1500] sm:$0xff] }
 0x384   :  { %6390 = vmatprep.subr.bf16.mxu0 %v5743_v52  ;;  %6734 = vmatprep.subr.bf16.mxu1 %v5745_v56  ;;  %v5800_v52 = vld [vmem:[#allocation2 + $0x1510] sm:$0xff]  ;;  %v5807_v56 = vld [vmem:[#allocation2 + $0x1548] sm:$0xff] }
 0x387   :  { %6391 = vmatpush1.bf16.msra.mxu0 %v5742_v23  ;;  %6735 = vmatpush1.bf16.msra.mxu1 %v5744_v26  ;;  %v5809_v23 = vld [vmem:[#allocation2 + $0x1558] sm:$0xff]  ;;  %v5806_v26 = vld [vmem:[#allocation2 + $0x1540] sm:$0xff] }
 0x388   :  { %6392 = vmatprep.subr.bf16.mxu0 %v5751_v40  ;;  %6736 = vmatprep.subr.bf16.mxu1 %v5753_v47  ;;  %v5808_v40 = vld [vmem:[#allocation2 + $0x1550] sm:$0xff]  ;;  %v5815_v47 = vld [vmem:[#allocation2 + $0x1588] sm:$0xff] }
 0x38b   :  { %6393 = vmatpush1.bf16.msra.mxu0 %v5750_v33  ;;  %6737 = vmatpush1.bf16.msra.mxu1 %v5752_v34  ;;  %v5817_v33 = vld [vmem:[#allocation2 + $0x1598] sm:$0xff]  ;;  %v5814_v34 = vld [vmem:[#allocation2 + $0x1580] sm:$0xff] }
 0x38c   :  { %6394 = vmatprep.subr.bf16.mxu0 %v5759_v36  ;;  %6738 = vmatprep.subr.bf16.mxu1 %v5761_v39  ;;  %v5816_v36 = vld [vmem:[#allocation2 + $0x1590] sm:$0xff]  ;;  %v5823_v39 = vld [vmem:[#allocation2 + $0x15c8] sm:$0xff] }
 0x38f   :  { %6395 = vmatpush1.bf16.msra.mxu0 %v5758_v49  ;;  %6739 = vmatpush1.bf16.msra.mxu1 %v5760_v53  ;;  %v5824_v49 = vld [vmem:[#allocation2 + $0x15d0] sm:$0xff]  ;;  %v5831_v53 = vld [vmem:[#allocation2 + $0x1608] sm:$0xff] }
 0x390   :  { %6407 = vmatprep.subr.bf16.mxu0 %v5767_v13  ;;  %6751 = vmatprep.subr.bf16.mxu1 %v5769_v19  ;;  %v5833_v13 = vld [vmem:[#allocation2 + $0x1618] sm:$0xff]  ;;  %v5830_v19 = vld [vmem:[#allocation2 + $0x1600] sm:$0xff] }
 0x392   :  { %6397 = vmatmul.mubr.bf16.vlgmr.msra.gmra.mrb[12].mxu0 %v11773_v44  ;;  %6741 = vmatmul.mubr.bf16.vlgmr.msra.gmra.mrb[20].mxu1 %v11773_v44 }
 0x393   :  { %6408 = vmatpush1.bf16.msra.mxu0 %v5766_v62  ;;  %6752 = vmatpush1.bf16.msra.mxu1 %v5768_v3  ;;  %v5841_v62 = vld [vmem:[#allocation2 + $0x1658] sm:$0xff]  ;;  %v5838_v3 = vld [vmem:[#allocation2 + $0x1640] sm:$0xff] }
 0x394   :  { %6409 = vmatprep.subr.bf16.mxu0 %v5775_v32  ;;  %6753 = vmatprep.subr.bf16.mxu1 %v5777_v0  ;;  %v5840_v32 = vld [vmem:[#allocation2 + $0x1650] sm:$0xff]  ;;  %v5847_v0 = vld [vmem:[#allocation2 + $0x1688] sm:$0xff] }
 0x395   :  { %6439 = vmatprep.mubr.bf16.mxu0 %v11775_v6  ;;  %6783 = vmatprep.mubr.bf16.mxu1 %v11775_v6 }
 0x397   :  { %6410 = vmatpush1.bf16.msra.mxu0 %v5774_v41  ;;  %6754 = vmatpush1.bf16.msra.mxu1 %v5776_v50  ;;  %v5849_v41 = vld [vmem:[#allocation2 + $0x1698] sm:$0xff]  ;;  %v5846_v50 = vld [vmem:[#allocation2 + $0x1680] sm:$0xff] }
 0x398   :  { %6411 = vmatprep.subr.bf16.mxu0 %v5783_v4  ;;  %6755 = vmatprep.subr.bf16.mxu1 %v5785_v54  ;;  %v5848_v4 = vld [vmem:[#allocation2 + $0x1690] sm:$0xff]  ;;  %v5855_v54 = vld [vmem:[#allocation2 + $0x16c8] sm:$0xff] }
 0x39b   :  { %6412 = vmatpush1.bf16.msra.mxu0 %v5782_v59  ;;  %6756 = vmatpush1.bf16.msra.mxu1 %v5784_v9  ;;  %v5857_v59 = vld [vmem:[#allocation2 + $0x16d8] sm:$0xff]  ;;  %v5854_v9 = vld [vmem:[#allocation2 + $0x16c0] sm:$0xff] }
 0x39c   :  { %6413 = vmatprep.subr.bf16.mxu0 %v5791_v51  ;;  %6757 = vmatprep.subr.bf16.mxu1 %v5793_v14  ;;  %v5856_v51 = vld [vmem:[#allocation2 + $0x16d0] sm:$0xff]  ;;  %v5863_v14 = vld [vmem:[#allocation2 + $0x1708] sm:$0xff] }
 0x39f   :  { %6414 = vmatpush1.bf16.msra.mxu0 %v5790_v16  ;;  %6758 = vmatpush1.bf16.msra.mxu1 %v5792_v17  ;;  %v5865_v16 = vld [vmem:[#allocation2 + $0x1718] sm:$0xff]  ;;  %v5862_v17 = vld [vmem:[#allocation2 + $0x1700] sm:$0xff] }
 0x3a0   :  { %6415 = vmatprep.subr.bf16.mxu0 %v5799_v20  ;;  %6759 = vmatprep.subr.bf16.mxu1 %v5801_v21  ;;  %v5864_v20 = vld [vmem:[#allocation2 + $0x1710] sm:$0xff]  ;;  %v5871_v21 = vld [vmem:[#allocation2 + $0x1748] sm:$0xff] }
 0x3a3   :  { %6416 = vmatpush1.bf16.msra.mxu0 %v5798_v30  ;;  %6760 = vmatpush1.bf16.msra.mxu1 %v5800_v52  ;;  %v5873_v30 = vld [vmem:[#allocation2 + $0x1758] sm:$0xff]  ;;  %v5870_v52 = vld [vmem:[#allocation2 + $0x1740] sm:$0xff] }
 0x3a4   :  { %6417 = vmatprep.subr.bf16.mxu0 %v5807_v56  ;;  %6761 = vmatprep.subr.bf16.mxu1 %v5809_v23  ;;  %v5872_v56 = vld [vmem:[#allocation2 + $0x1750] sm:$0xff]  ;;  %v5879_v23 = vld [vmem:[#allocation2 + $0x1788] sm:$0xff] }
 0x3a7   :  { %6418 = vmatpush1.bf16.msra.mxu0 %v5806_v26  ;;  %6762 = vmatpush1.bf16.msra.mxu1 %v5808_v40  ;;  %v5881_v26 = vld [vmem:[#allocation2 + $0x1798] sm:$0xff]  ;;  %v5878_v40 = vld [vmem:[#allocation2 + $0x1780] sm:$0xff] }
 0x3a8   :  { %6419 = vmatprep.subr.bf16.mxu0 %v5815_v47  ;;  %6763 = vmatprep.subr.bf16.mxu1 %v5817_v33  ;;  %v5880_v47 = vld [vmem:[#allocation2 + $0x1790] sm:$0xff]  ;;  %v5887_v33 = vld [vmem:[#allocation2 + $0x17c8] sm:$0xff] }
 0x3ab   :  { %6420 = vmatpush1.bf16.msra.mxu0 %v5814_v34  ;;  %6764 = vmatpush1.bf16.msra.mxu1 %v5816_v36  ;;  %v5889_v34 = vld [vmem:[#allocation2 + $0x17d8] sm:$0xff]  ;;  %v5088_v36 = vmax.f32 %v11697_v37, 0.0  ;;  %v5894_v37 = vld [vmem:[#allocation2 + $0x1800] sm:$0xff] }
 0x3ac   :  { %6421 = vmatprep.subr.bf16.mxu0 %v5823_v39  ;;  %6765 = vmatprep.subr.bf16.mxu1 %v5825_v38  ;;  %v5104_v39 = vmax.f32 %v11701_v48, 0.0  ;;  %v5886_v38 = vld [vmem:[#allocation2 + $0x17c0] sm:$0xff]  ;;  %v5896_v48 = vld [vmem:[#allocation2 + $0x1810] sm:$0xff] }
 0x3af   :  { %6422 = vmatpush1.bf16.msra.mxu0 %v5822_v43  ;;  %6766 = vmatpush1.bf16.msra.mxu1 %v5824_v49  ;;  %v5888_v43 = vld [vmem:[#allocation2 + $0x17d0] sm:$0xff]  ;;  %v5895_v49 = vld [vmem:[#allocation2 + $0x1808] sm:$0xff] }
 0x3b0   :  { %6423 = vmatprep.subr.bf16.mxu0 %v5831_v53  ;;  %6767 = vmatprep.subr.bf16.mxu1 %v5833_v13  ;;  %v5897_v53 = vld [vmem:[#allocation2 + $0x1818] sm:$0xff]  ;;  %v5091_v13 = vmax.f32 %v11689_v25, 0.0  ;;  %v5902_v25 = vld [vmem:[#allocation2 + $0x1840] sm:$0xff] }
 0x3b3   :  { %6424 = vmatpush1.bf16.msra.mxu0 %v5830_v19  ;;  %6768 = vmatpush1.bf16.msra.mxu1 %v5832_v10  ;;  %v5107_v19 = vmax.f32 %v11693_v31, 0.0  ;;  %v11785_v10 = vpack.c.bf16 %v5104_v39, %v5088_v36  ;;  %v5904_v31 = vld [vmem:[#allocation2 + $0x1850] sm:$0xff]  ;;  %v5959_v39 = vld [vmem:[#allocation2 + $0x1a08] sm:$0xff] }
 0x3b4   :  { %6425 = vmatprep.subr.bf16.mxu0 %v5839_v15  ;;  %6769 = vmatprep.subr.bf16.mxu1 %v5841_v62  ;;  %v5903_v15 = vld [vmem:[#allocation2 + $0x1848] sm:$0xff]  ;;  %v5905_v62 = vld [vmem:[#allocation2 + $0x1858] sm:$0xff]  ;;  %v5952_v36 = vld [vmem:[#allocation2 + $0x19d0] sm:$0xff] }
 0x3b7   :  { %6426 = vmatpush1.bf16.msra.mxu0 %v5838_v3  ;;  %6770 = vmatpush1.bf16.msra.mxu1 %v5840_v32  ;;  %v11787_v3 = vpack.c.bf16 %v5107_v19, %v5091_v13  ;;  %v5911_v32 = vld [vmem:[#allocation2 + $0x1888] sm:$0xff]  ;;  %v5969_v13 = vld [vmem:[#allocation2 + $0x1a58] sm:$0xff]  ;;  %v5966_v19 = vld [vmem:[#allocation2 + $0x1a40] sm:$0xff] }
 0x3b8   :  { %6427 = vmatprep.subr.bf16.mxu0 %v5847_v0  ;;  %6771 = vmatprep.subr.bf16.mxu1 %v5849_v41  ;;  %v5913_v0 = vld [vmem:[#allocation2 + $0x1898] sm:$0xff]  ;;  %v5910_v41 = vld [vmem:[#allocation2 + $0x1880] sm:$0xff] }
 0x3bb   :  { %6428 = vmatpush1.bf16.msra.mxu0 %v5846_v50  ;;  %6772 = vmatpush1.bf16.msra.mxu1 %v5848_v4  ;;  %v5912_v50 = vld [vmem:[#allocation2 + $0x1890] sm:$0xff]  ;;  %v5919_v4 = vld [vmem:[#allocation2 + $0x18c8] sm:$0xff] }
 0x3bc   :  { %6429 = vmatprep.subr.bf16.mxu0 %v5855_v54  ;;  %6773 = vmatprep.subr.bf16.mxu1 %v5857_v59  ;;  %v5921_v54 = vld [vmem:[#allocation2 + $0x18d8] sm:$0xff]  ;;  %v5918_v59 = vld [vmem:[#allocation2 + $0x18c0] sm:$0xff] }
 0x3bf   :  { %6430 = vmatpush1.bf16.msra.mxu0 %v5854_v9  ;;  %6774 = vmatpush1.bf16.msra.mxu1 %v5856_v51  ;;  %v5920_v9 = vld [vmem:[#allocation2 + $0x18d0] sm:$0xff]  ;;  %v5927_v51 = vld [vmem:[#allocation2 + $0x1908] sm:$0xff] }
 0x3c0   :  { %6431 = vmatprep.subr.bf16.mxu0 %v5863_v14  ;;  %6775 = vmatprep.subr.bf16.mxu1 %v5865_v16  ;;  %v5929_v14 = vld [vmem:[#allocation2 + $0x1918] sm:$0xff]  ;;  %v5926_v16 = vld [vmem:[#allocation2 + $0x1900] sm:$0xff] }
 0x3c3   :  { %6432 = vmatpush1.bf16.msra.mxu0 %v5862_v17  ;;  %6776 = vmatpush1.bf16.msra.mxu1 %v5864_v20  ;;  %v5928_v17 = vld [vmem:[#allocation2 + $0x1910] sm:$0xff]  ;;  %v5935_v20 = vld [vmem:[#allocation2 + $0x1948] sm:$0xff] }
 0x3c4   :  { %6433 = vmatprep.subr.bf16.mxu0 %v5871_v21  ;;  %6777 = vmatprep.subr.bf16.mxu1 %v5873_v30  ;;  %v5937_v21 = vld [vmem:[#allocation2 + $0x1958] sm:$0xff]  ;;  %v5934_v30 = vld [vmem:[#allocation2 + $0x1940] sm:$0xff] }
 0x3c7   :  { %6434 = vmatpush1.bf16.msra.mxu0 %v5870_v52  ;;  %6778 = vmatpush1.bf16.msra.mxu1 %v5872_v56  ;;  %v5936_v52 = vld [vmem:[#allocation2 + $0x1950] sm:$0xff]  ;;  %v5943_v56 = vld [vmem:[#allocation2 + $0x1988] sm:$0xff] }
 0x3c8   :  { %6435 = vmatprep.subr.bf16.mxu0 %v5879_v23  ;;  %6779 = vmatprep.subr.bf16.mxu1 %v5881_v26  ;;  %v5945_v23 = vld [vmem:[#allocation2 + $0x1998] sm:$0xff]  ;;  %v5942_v26 = vld [vmem:[#allocation2 + $0x1980] sm:$0xff] }
 0x3cb   :  { %6436 = vmatpush1.bf16.msra.mxu0 %v5878_v40  ;;  %6780 = vmatpush1.bf16.msra.mxu1 %v5880_v47  ;;  %v5944_v40 = vld [vmem:[#allocation2 + $0x1990] sm:$0xff]  ;;  %v5951_v47 = vld [vmem:[#allocation2 + $0x19c8] sm:$0xff] }
 0x3cc   :  { %6437 = vmatprep.subr.bf16.mxu0 %v5887_v33  ;;  %6781 = vmatprep.subr.bf16.mxu1 %v5889_v34  ;;  %v5953_v33 = vld [vmem:[#allocation2 + $0x19d8] sm:$0xff]  ;;  %v5950_v34 = vld [vmem:[#allocation2 + $0x19c0] sm:$0xff] }
 0x3cf   :  { %6438 = vmatpush1.bf16.msra.mxu0 %v5886_v38  ;;  %6782 = vmatpush1.bf16.msra.mxu1 %v5888_v43  ;;  %v5961_v38 = vld [vmem:[#allocation2 + $0x1a18] sm:$0xff]  ;;  %v5958_v43 = vld [vmem:[#allocation2 + $0x1a00] sm:$0xff] }
 0x3d0   :  { %6450 = vmatprep.subr.bf16.mxu0 %v5895_v49  ;;  %6794 = vmatprep.subr.bf16.mxu1 %v5897_v53  ;;  %v5960_v49 = vld [vmem:[#allocation2 + $0x1a10] sm:$0xff]  ;;  %v5967_v53 = vld [vmem:[#allocation2 + $0x1a48] sm:$0xff] }
 0x3d2   :  { %6440 = vmatmul.mubr.bf16.vlgmr.msra.gmra.mrb[12].mxu0 %v11785_v10  ;;  %6784 = vmatmul.mubr.bf16.vlgmr.msra.gmra.mrb[20].mxu1 %v11785_v10 }
 0x3d3   :  { %6451 = vmatpush1.bf16.msra.mxu0 %v5894_v37  ;;  %6795 = vmatpush1.bf16.msra.mxu1 %v5896_v48  ;;  %v5968_v37 = vld [vmem:[#allocation2 + $0x1a50] sm:$0xff]  ;;  %v5975_v48 = vld [vmem:[#allocation2 + $0x1a88] sm:$0xff] }
 0x3d4   :  { %6452 = vmatprep.subr.bf16.mxu0 %v5903_v15  ;;  %6796 = vmatprep.subr.bf16.mxu1 %v5905_v62  ;;  %v5977_v15 = vld [vmem:[#allocation2 + $0x1a98] sm:$0xff]  ;;  %v5974_v62 = vld [vmem:[#allocation2 + $0x1a80] sm:$0xff] }
 0x3d5   :  { %6482 = vmatprep.mubr.bf16.mxu0 %v11787_v3  ;;  %6826 = vmatprep.mubr.bf16.mxu1 %v11787_v3 }
 0x3d7   :  { %6453 = vmatpush1.bf16.msra.mxu0 %v5902_v25  ;;  %6797 = vmatpush1.bf16.msra.mxu1 %v5904_v31  ;;  %v5976_v25 = vld [vmem:[#allocation2 + $0x1a90] sm:$0xff]  ;;  %v5983_v31 = vld [vmem:[#allocation2 + $0x1ac8] sm:$0xff] }
 0x3d8   :  { %6454 = vmatprep.subr.bf16.mxu0 %v5911_v32  ;;  %6798 = vmatprep.subr.bf16.mxu1 %v5913_v0  ;;  %v5985_v32 = vld [vmem:[#allocation2 + $0x1ad8] sm:$0xff]  ;;  %v5982_v0 = vld [vmem:[#allocation2 + $0x1ac0] sm:$0xff] }
 0x3db   :  { %6455 = vmatpush1.bf16.msra.mxu0 %v5910_v41  ;;  %6799 = vmatpush1.bf16.msra.mxu1 %v5912_v50  ;;  %v5984_v41 = vld [vmem:[#allocation2 + $0x1ad0] sm:$0xff]  ;;  %v5991_v50 = vld [vmem:[#allocation2 + $0x1b08] sm:$0xff] }
 0x3dc   :  { %6456 = vmatprep.subr.bf16.mxu0 %v5919_v4  ;;  %6800 = vmatprep.subr.bf16.mxu1 %v5921_v54  ;;  %v5993_v4 = vld [vmem:[#allocation2 + $0x1b18] sm:$0xff]  ;;  %v5990_v54 = vld [vmem:[#allocation2 + $0x1b00] sm:$0xff] }
 0x3df   :  { %6457 = vmatpush1.bf16.msra.mxu0 %v5918_v59  ;;  %6801 = vmatpush1.bf16.msra.mxu1 %v5920_v9  ;;  %v5992_v59 = vld [vmem:[#allocation2 + $0x1b10] sm:$0xff]  ;;  %v5999_v9 = vld [vmem:[#allocation2 + $0x1b48] sm:$0xff] }
 0x3e0   :  { %6458 = vmatprep.subr.bf16.mxu0 %v5927_v51  ;;  %6802 = vmatprep.subr.bf16.mxu1 %v5929_v14  ;;  %v6001_v51 = vld [vmem:[#allocation2 + $0x1b58] sm:$0xff]  ;;  %v5998_v14 = vld [vmem:[#allocation2 + $0x1b40] sm:$0xff] }
 0x3e3   :  { %6459 = vmatpush1.bf16.msra.mxu0 %v5926_v16  ;;  %6803 = vmatpush1.bf16.msra.mxu1 %v5928_v17  ;;  %v6000_v16 = vld [vmem:[#allocation2 + $0x1b50] sm:$0xff]  ;;  %v6007_v17 = vld [vmem:[#allocation2 + $0x1b88] sm:$0xff] }
 0x3e4   :  { %6460 = vmatprep.subr.bf16.mxu0 %v5935_v20  ;;  %6804 = vmatprep.subr.bf16.mxu1 %v5937_v21  ;;  %v6009_v20 = vld [vmem:[#allocation2 + $0x1b98] sm:$0xff]  ;;  %v6006_v21 = vld [vmem:[#allocation2 + $0x1b80] sm:$0xff] }
 0x3e7   :  { %6461 = vmatpush1.bf16.msra.mxu0 %v5934_v30  ;;  %6805 = vmatpush1.bf16.msra.mxu1 %v5936_v52  ;;  %v6008_v30 = vld [vmem:[#allocation2 + $0x1b90] sm:$0xff]  ;;  %v6015_v52 = vld [vmem:[#allocation2 + $0x1bc8] sm:$0xff] }
 0x3e8   :  { %6462 = vmatprep.subr.bf16.mxu0 %v5943_v56  ;;  %6806 = vmatprep.subr.bf16.mxu1 %v5945_v23  ;;  %v6017_v56 = vld [vmem:[#allocation2 + $0x1bd8] sm:$0xff]  ;;  %v5090_v23 = vmax.f32 %v11687_v22, 0.0  ;;  %v6022_v22 = vld [vmem:[#allocation2 + $0x1c00] sm:$0xff] }
 0x3eb   :  { %6463 = vmatpush1.bf16.msra.mxu0 %v5942_v26  ;;  %6807 = vmatpush1.bf16.msra.mxu1 %v5944_v40  ;;  %v5106_v26 = vmax.f32 %v11691_v27, 0.0  ;;  %v6014_v40 = vld [vmem:[#allocation2 + $0x1bc0] sm:$0xff]  ;;  %v6024_v27 = vld [vmem:[#allocation2 + $0x1c10] sm:$0xff] }
 0x3ec   :  { %6464 = vmatprep.subr.bf16.mxu0 %v5951_v47  ;;  %6808 = vmatprep.subr.bf16.mxu1 %v5953_v33  ;;  %v6016_v47 = vld [vmem:[#allocation2 + $0x1bd0] sm:$0xff]  ;;  %v6023_v33 = vld [vmem:[#allocation2 + $0x1c08] sm:$0xff] }
 0x3ef   :  { %6465 = vmatpush1.bf16.msra.mxu0 %v5950_v34  ;;  %6809 = vmatpush1.bf16.msra.mxu1 %v5952_v36  ;;  %v6025_v34 = vld [vmem:[#allocation2 + $0x1c18] sm:$0xff]  ;;  %v5093_v36 = vmax.f32 %v11709_v61, 0.0  ;;  %v6030_v61 = vld [vmem:[#allocation2 + $0x1c40] sm:$0xff] }
 0x3f0   :  { %6466 = vmatprep.subr.bf16.mxu0 %v5959_v39  ;;  %6810 = vmatprep.subr.bf16.mxu1 %v5961_v38  ;;  %v5109_v39 = vmax.f32 %v11713_v7, 0.0  ;;  %v11797_v38 = vpack.c.bf16 %v5106_v26, %v5090_v23  ;;  %v6032_v7 = vld [vmem:[#allocation2 + $0x1c50] sm:$0xff]  ;;  %v6089_v23 = vld [vmem:[#allocation2 + $0x1e18] sm:$0xff]  ;;  %v6086_v26 = vld [vmem:[#allocation2 + $0x1e00] sm:$0xff] }
 0x3f3   :  { %6467 = vmatpush1.bf16.msra.mxu0 %v5958_v43  ;;  %6811 = vmatpush1.bf16.msra.mxu1 %v5960_v49  ;;  %v6031_v43 = vld [vmem:[#allocation2 + $0x1c48] sm:$0xff]  ;;  %v6033_v49 = vld [vmem:[#allocation2 + $0x1c58] sm:$0xff] }
 0x3f4   :  { %6468 = vmatprep.subr.bf16.mxu0 %v5967_v53  ;;  %6812 = vmatprep.subr.bf16.mxu1 %v5969_v13  ;;  %v11799_v53 = vpack.c.bf16 %v5109_v39, %v5093_v36  ;;  %v6039_v13 = vld [vmem:[#allocation2 + $0x1c88] sm:$0xff]  ;;  %v6096_v36 = vld [vmem:[#allocation2 + $0x1e50] sm:$0xff] }
 0x3f5   :  { %v6103_v39 = vld [vmem:[#allocation2 + $0x1e88] sm:$0xff] }
 0x3f7   :  { %6469 = vmatpush1.bf16.msra.mxu0 %v5966_v19  ;;  %6813 = vmatpush1.bf16.msra.mxu1 %v5968_v37  ;;  %v6041_v19 = vld [vmem:[#allocation2 + $0x1c98] sm:$0xff]  ;;  %v6038_v37 = vld [vmem:[#allocation2 + $0x1c80] sm:$0xff] }
 0x3f8   :  { %6470 = vmatprep.subr.bf16.mxu0 %v5975_v48  ;;  %6814 = vmatprep.subr.bf16.mxu1 %v5977_v15  ;;  %v6040_v48 = vld [vmem:[#allocation2 + $0x1c90] sm:$0xff]  ;;  %v6047_v15 = vld [vmem:[#allocation2 + $0x1cc8] sm:$0xff] }
 0x3fb   :  { %6471 = vmatpush1.bf16.msra.mxu0 %v5974_v62  ;;  %6815 = vmatpush1.bf16.msra.mxu1 %v5976_v25  ;;  %v6049_v62 = vld [vmem:[#allocation2 + $0x1cd8] sm:$0xff]  ;;  %v6046_v25 = vld [vmem:[#allocation2 + $0x1cc0] sm:$0xff] }
 0x3fc   :  { %6472 = vmatprep.subr.bf16.mxu0 %v5983_v31  ;;  %6816 = vmatprep.subr.bf16.mxu1 %v5985_v32  ;;  %v6048_v31 = vld [vmem:[#allocation2 + $0x1cd0] sm:$0xff]  ;;  %v6055_v32 = vld [vmem:[#allocation2 + $0x1d08] sm:$0xff] }
 0x3ff   :  { %6473 = vmatpush1.bf16.msra.mxu0 %v5982_v0  ;;  %6817 = vmatpush1.bf16.msra.mxu1 %v5984_v41  ;;  %v6057_v0 = vld [vmem:[#allocation2 + $0x1d18] sm:$0xff]  ;;  %v6054_v41 = vld [vmem:[#allocation2 + $0x1d00] sm:$0xff] }
 0x400   :  { %6474 = vmatprep.subr.bf16.mxu0 %v5991_v50  ;;  %6818 = vmatprep.subr.bf16.mxu1 %v5993_v4  ;;  %v6056_v50 = vld [vmem:[#allocation2 + $0x1d10] sm:$0xff]  ;;  %v6063_v4 = vld [vmem:[#allocation2 + $0x1d48] sm:$0xff] }
 0x403   :  { %6475 = vmatpush1.bf16.msra.mxu0 %v5990_v54  ;;  %6819 = vmatpush1.bf16.msra.mxu1 %v5992_v59  ;;  %v6065_v54 = vld [vmem:[#allocation2 + $0x1d58] sm:$0xff]  ;;  %v6062_v59 = vld [vmem:[#allocation2 + $0x1d40] sm:$0xff] }
 0x404   :  { %6476 = vmatprep.subr.bf16.mxu0 %v5999_v9  ;;  %6820 = vmatprep.subr.bf16.mxu1 %v6001_v51  ;;  %v6064_v9 = vld [vmem:[#allocation2 + $0x1d50] sm:$0xff]  ;;  %v6071_v51 = vld [vmem:[#allocation2 + $0x1d88] sm:$0xff] }
 0x407   :  { %6477 = vmatpush1.bf16.msra.mxu0 %v5998_v14  ;;  %6821 = vmatpush1.bf16.msra.mxu1 %v6000_v16  ;;  %v6073_v14 = vld [vmem:[#allocation2 + $0x1d98] sm:$0xff]  ;;  %v6070_v16 = vld [vmem:[#allocation2 + $0x1d80] sm:$0xff] }
 0x408   :  { %6478 = vmatprep.subr.bf16.mxu0 %v6007_v17  ;;  %6822 = vmatprep.subr.bf16.mxu1 %v6009_v20  ;;  %v6072_v17 = vld [vmem:[#allocation2 + $0x1d90] sm:$0xff]  ;;  %v6079_v20 = vld [vmem:[#allocation2 + $0x1dc8] sm:$0xff] }
 0x40b   :  { %6479 = vmatpush1.bf16.msra.mxu0 %v6006_v21  ;;  %6823 = vmatpush1.bf16.msra.mxu1 %v6008_v30  ;;  %v6081_v21 = vld [vmem:[#allocation2 + $0x1dd8] sm:$0xff]  ;;  %v6078_v30 = vld [vmem:[#allocation2 + $0x1dc0] sm:$0xff] }
 0x40c   :  { %6480 = vmatprep.subr.bf16.mxu0 %v6015_v52  ;;  %6824 = vmatprep.subr.bf16.mxu1 %v6017_v56  ;;  %v6080_v52 = vld [vmem:[#allocation2 + $0x1dd0] sm:$0xff]  ;;  %v6087_v56 = vld [vmem:[#allocation2 + $0x1e08] sm:$0xff] }
 0x40f   :  { %6481 = vmatpush1.bf16.msra.mxu0 %v6014_v40  ;;  %6825 = vmatpush1.bf16.msra.mxu1 %v6016_v47  ;;  %v6088_v40 = vld [vmem:[#allocation2 + $0x1e10] sm:$0xff]  ;;  %v6095_v47 = vld [vmem:[#allocation2 + $0x1e48] sm:$0xff] }
 0x410   :  { %6493 = vmatprep.subr.bf16.mxu0 %v6023_v33  ;;  %6837 = vmatprep.subr.bf16.mxu1 %v6025_v34  ;;  %v6097_v33 = vld [vmem:[#allocation2 + $0x1e58] sm:$0xff]  ;;  %v6094_v34 = vld [vmem:[#allocation2 + $0x1e40] sm:$0xff] }
 0x412   :  { %6483 = vmatmul.mubr.bf16.vlgmr.msra.gmra.mrb[12].mxu0 %v11797_v38  ;;  %6827 = vmatmul.mubr.bf16.vlgmr.msra.gmra.mrb[20].mxu1 %v11797_v38 }
 0x413   :  { %6494 = vmatpush1.bf16.msra.mxu0 %v6022_v22  ;;  %6838 = vmatpush1.bf16.msra.mxu1 %v6024_v27  ;;  %v6105_v22 = vld [vmem:[#allocation2 + $0x1e98] sm:$0xff]  ;;  %v6102_v27 = vld [vmem:[#allocation2 + $0x1e80] sm:$0xff] }
 0x414   :  { %6495 = vmatprep.subr.bf16.mxu0 %v6031_v43  ;;  %6839 = vmatprep.subr.bf16.mxu1 %v6033_v49  ;;  %v6104_v43 = vld [vmem:[#allocation2 + $0x1e90] sm:$0xff]  ;;  %v6111_v49 = vld [vmem:[#allocation2 + $0x1ec8] sm:$0xff] }
 0x415   :  { %6525 = vmatprep.mubr.bf16.mxu0 %v11799_v53  ;;  %6869 = vmatprep.mubr.bf16.mxu1 %v11799_v53 }
 0x417   :  { %6496 = vmatpush1.bf16.msra.mxu0 %v6030_v61  ;;  %6840 = vmatpush1.bf16.msra.mxu1 %v6032_v7  ;;  %v6113_v61 = vld [vmem:[#allocation2 + $0x1ed8] sm:$0xff]  ;;  %v6110_v7 = vld [vmem:[#allocation2 + $0x1ec0] sm:$0xff] }
 0x418   :  { %6497 = vmatprep.subr.bf16.mxu0 %v6039_v13  ;;  %6841 = vmatprep.subr.bf16.mxu1 %v6041_v19  ;;  %v6112_v13 = vld [vmem:[#allocation2 + $0x1ed0] sm:$0xff]  ;;  %v6119_v19 = vld [vmem:[#allocation2 + $0x1f08] sm:$0xff] }
 0x41b   :  { %6498 = vmatpush1.bf16.msra.mxu0 %v6038_v37  ;;  %6842 = vmatpush1.bf16.msra.mxu1 %v6040_v48  ;;  %v6121_v37 = vld [vmem:[#allocation2 + $0x1f18] sm:$0xff]  ;;  %v6118_v48 = vld [vmem:[#allocation2 + $0x1f00] sm:$0xff] }
 0x41c   :  { %6499 = vmatprep.subr.bf16.mxu0 %v6047_v15  ;;  %6843 = vmatprep.subr.bf16.mxu1 %v6049_v62  ;;  %v6120_v15 = vld [vmem:[#allocation2 + $0x1f10] sm:$0xff]  ;;  %v6127_v62 = vld [vmem:[#allocation2 + $0x1f48] sm:$0xff] }
 0x41f   :  { %6500 = vmatpush1.bf16.msra.mxu0 %v6046_v25  ;;  %6844 = vmatpush1.bf16.msra.mxu1 %v6048_v31  ;;  %v6129_v25 = vld [vmem:[#allocation2 + $0x1f58] sm:$0xff]  ;;  %v6126_v31 = vld [vmem:[#allocation2 + $0x1f40] sm:$0xff] }
 0x420   :  { %6501 = vmatprep.subr.bf16.mxu0 %v6055_v32  ;;  %6845 = vmatprep.subr.bf16.mxu1 %v6057_v0  ;;  %v6128_v32 = vld [vmem:[#allocation2 + $0x1f50] sm:$0xff]  ;;  %v6135_v0 = vld [vmem:[#allocation2 + $0x1f88] sm:$0xff] }
 0x423   :  { %6502 = vmatpush1.bf16.msra.mxu0 %v6054_v41  ;;  %6846 = vmatpush1.bf16.msra.mxu1 %v6056_v50  ;;  %v6137_v41 = vld [vmem:[#allocation2 + $0x1f98] sm:$0xff]  ;;  %v6134_v50 = vld [vmem:[#allocation2 + $0x1f80] sm:$0xff] }
 0x424   :  { %6503 = vmatprep.subr.bf16.mxu0 %v6063_v4  ;;  %6847 = vmatprep.subr.bf16.mxu1 %v6065_v54  ;;  %v6136_v4 = vld [vmem:[#allocation2 + $0x1f90] sm:$0xff]  ;;  %v6143_v54 = vld [vmem:[#allocation2 + $0x1fc8] sm:$0xff] }
 0x427   :  { %6504 = vmatpush1.bf16.msra.mxu0 %v6062_v59  ;;  %6848 = vmatpush1.bf16.msra.mxu1 %v6064_v9  ;;  %v6145_v59 = vld [vmem:[#allocation2 + $0x1fd8] sm:$0xff]  ;;  %v5092_v9 = vmax.f32 %v11707_v58, 0.0 }
 0x428   :  { %6505 = vmatprep.subr.bf16.mxu0 %v6071_v51  ;;  %6849 = vmatprep.subr.bf16.mxu1 %v6073_v14  ;;  %v5108_v51 = vmax.f32 %v11711_v1, 0.0  ;;  %v6142_v14 = vld [vmem:[#allocation2 + $0x1fc0] sm:$0xff]  ;;  %v5141_v58 = vld [vmem:[#allocation2 + $0x78] sm:$0xff] }
 0x429   :  { %v5138_v1 = vld [vmem:[#allocation2 + $0x60] sm:$0xff] }
 0x42b   :  { %6506 = vmatpush1.bf16.msra.mxu0 %v6070_v16  ;;  %6850 = vmatpush1.bf16.msra.mxu1 %v6072_v17  ;;  %v6144_v16 = vld [vmem:[#allocation2 + $0x1fd0] sm:$0xff]  ;;  %v5131_v17 = vld [vmem:[#allocation2 + $0x28] sm:$0xff] }
 0x42c   :  { %6507 = vmatprep.subr.bf16.mxu0 %v6079_v20  ;;  %6851 = vmatprep.subr.bf16.mxu1 %v6081_v21  ;;  %v5133_v20 = vld [vmem:[#allocation2 + $0x38] sm:$0xff]  ;;  %v11807_v21 = vpack.c.bf16 %v5108_v51, %v5092_v9  ;;  %v5202_v51 = vld [vmem:[#allocation2 + $0x260] sm:$0xff] }
 0x42d   :  { %v5205_v9 = vld [vmem:[#allocation2 + $0x278] sm:$0xff] }
 0x42f   :  { %6508 = vmatpush1.bf16.msra.mxu0 %v6078_v30  ;;  %6852 = vmatpush1.bf16.msra.mxu1 %v6080_v52  ;;  %v5130_v30 = vld [vmem:[#allocation2 + $0x20] sm:$0xff]  ;;  %v5132_v52 = vld [vmem:[#allocation2 + $0x30] sm:$0xff] }
 0x430   :  { %6509 = vmatprep.subr.bf16.mxu0 %v6087_v56  ;;  %6853 = vmatprep.subr.bf16.mxu1 %v6089_v23  ;;  %v5139_v56 = vld [vmem:[#allocation2 + $0x68] sm:$0xff]  ;;  %v5140_v23 = vld [vmem:[#allocation2 + $0x70] sm:$0xff] }
 0x433   :  { %6510 = vmatpush1.bf16.msra.mxu0 %v6086_v26  ;;  %6854 = vmatpush1.bf16.msra.mxu1 %v6088_v40  ;;  %v5147_v26 = vld [vmem:[#allocation2 + $0xa8] sm:$0xff]  ;;  %v5149_v40 = vld [vmem:[#allocation2 + $0xb8] sm:$0xff] }
 0x434   :  { %6511 = vmatprep.subr.bf16.mxu0 %v6095_v47  ;;  %6855 = vmatprep.subr.bf16.mxu1 %v6097_v33  ;;  %v5146_v47 = vld [vmem:[#allocation2 + $0xa0] sm:$0xff]  ;;  %v5148_v33 = vld [vmem:[#allocation2 + $0xb0] sm:$0xff] }
 0x437   :  { %6512 = vmatpush1.bf16.msra.mxu0 %v6094_v34  ;;  %6856 = vmatpush1.bf16.msra.mxu1 %v6096_v36  ;;  %v5155_v34 = vld [vmem:[#allocation2 + $0xe8] sm:$0xff]  ;;  %v5157_v36 = vld [vmem:[#allocation2 + $0xf8] sm:$0xff] }
 0x438   :  { %6513 = vmatprep.subr.bf16.mxu0 %v6103_v39  ;;  %6857 = vmatprep.subr.bf16.mxu1 %v6105_v22  ;;  %v5154_v39 = vld [vmem:[#allocation2 + $0xe0] sm:$0xff]  ;;  %v5156_v22 = vld [vmem:[#allocation2 + $0xf0] sm:$0xff] }
 0x43b   :  { %6514 = vmatpush1.bf16.msra.mxu0 %v6102_v27  ;;  %6858 = vmatpush1.bf16.msra.mxu1 %v6104_v43  ;;  %v5163_v27 = vld [vmem:[#allocation2 + $0x128] sm:$0xff]  ;;  %v5165_v43 = vld [vmem:[#allocation2 + $0x138] sm:$0xff] }
 0x43c   :  { %6515 = vmatprep.subr.bf16.mxu0 %v6111_v49  ;;  %6859 = vmatprep.subr.bf16.mxu1 %v6113_v61  ;;  %v5164_v49 = vld [vmem:[#allocation2 + $0x130] sm:$0xff]  ;;  %v5171_v61 = vld [vmem:[#allocation2 + $0x168] sm:$0xff] }
 0x43f   :  { %6516 = vmatpush1.bf16.msra.mxu0 %v6110_v7  ;;  %6860 = vmatpush1.bf16.msra.mxu1 %v6112_v13  ;;  %v5173_v7 = vld [vmem:[#allocation2 + $0x178] sm:$0xff]  ;;  %v5170_v13 = vld [vmem:[#allocation2 + $0x160] sm:$0xff] }
 0x440   :  { %6517 = vmatprep.subr.bf16.mxu0 %v6119_v19  ;;  %6861 = vmatprep.subr.bf16.mxu1 %v6121_v37  ;;  %v5172_v19 = vld [vmem:[#allocation2 + $0x170] sm:$0xff]  ;;  %v5179_v37 = vld [vmem:[#allocation2 + $0x1a8] sm:$0xff] }
 0x443   :  { %6518 = vmatpush1.bf16.msra.mxu0 %v6118_v48  ;;  %6862 = vmatpush1.bf16.msra.mxu1 %v6120_v15  ;;  %v5181_v48 = vld [vmem:[#allocation2 + $0x1b8] sm:$0xff]  ;;  %v5178_v15 = vld [vmem:[#allocation2 + $0x1a0] sm:$0xff] }
 0x444   :  { %6519 = vmatprep.subr.bf16.mxu0 %v6127_v62  ;;  %6863 = vmatprep.subr.bf16.mxu1 %v6129_v25  ;;  %v5180_v62 = vld [vmem:[#allocation2 + $0x1b0] sm:$0xff]  ;;  %v5187_v25 = vld [vmem:[#allocation2 + $0x1e8] sm:$0xff] }
 0x447   :  { %6520 = vmatpush1.bf16.msra.mxu0 %v6126_v31  ;;  %6864 = vmatpush1.bf16.msra.mxu1 %v6128_v32  ;;  %v5189_v31 = vld [vmem:[#allocation2 + $0x1f8] sm:$0xff]  ;;  %v5186_v32 = vld [vmem:[#allocation2 + $0x1e0] sm:$0xff] }
 0x448   :  { %6521 = vmatprep.subr.bf16.mxu0 %v6135_v0  ;;  %6865 = vmatprep.subr.bf16.mxu1 %v6137_v41  ;;  %v5188_v0 = vld [vmem:[#allocation2 + $0x1f0] sm:$0xff]  ;;  %v5195_v41 = vld [vmem:[#allocation2 + $0x228] sm:$0xff] }
 0x44b   :  { %6522 = vmatpush1.bf16.msra.mxu0 %v6134_v50  ;;  %6866 = vmatpush1.bf16.msra.mxu1 %v6136_v4  ;;  %v5197_v50 = vld [vmem:[#allocation2 + $0x238] sm:$0xff]  ;;  %v5194_v4 = vld [vmem:[#allocation2 + $0x220] sm:$0xff] }
 0x44c   :  { %6523 = vmatprep.subr.bf16.mxu0 %v6143_v54  ;;  %6867 = vmatprep.subr.bf16.mxu1 %v6145_v59  ;;  %v5196_v54 = vld [vmem:[#allocation2 + $0x230] sm:$0xff]  ;;  %v5203_v59 = vld [vmem:[#allocation2 + $0x268] sm:$0xff] }
 0x44f   :  { %6524 = vmatpush1.bf16.msra.mxu0 %v6142_v14  ;;  %6868 = vmatpush1.bf16.msra.mxu1 %v6144_v16  ;;  %v5204_v14 = vld [vmem:[#allocation2 + $0x270] sm:$0xff]  ;;  %v5211_v16 = vld [vmem:[#allocation2 + $0x2a8] sm:$0xff] }
 0x450   :  { %6880 = vmatprep.subr.bf16.mxu0 %v5131_v17  ;;  %7224 = vmatprep.subr.bf16.mxu1 %v5133_v20  ;;  %v5213_v17 = vld [vmem:[#allocation2 + $0x2b8] sm:$0xff]  ;;  %v5210_v20 = vld [vmem:[#allocation2 + $0x2a0] sm:$0xff] }
 0x452   :  { %6526 = vmatmul.mubr.bf16.vlgmr.msra.gmra.mrb[12].mxu0 %v11807_v21  ;;  %6870 = vmatmul.mubr.bf16.vlgmr.msra.gmra.mrb[20].mxu1 %v11807_v21 }
 0x453   :  { %6881 = vmatpush1.bf16.msra.mxu0 %v5130_v30  ;;  %7225 = vmatpush1.bf16.msra.mxu1 %v5132_v52  ;;  %v5212_v30 = vld [vmem:[#allocation2 + $0x2b0] sm:$0xff]  ;;  %v5219_v52 = vld [vmem:[#allocation2 + $0x2e8] sm:$0xff] }
 0x454   :  { %6882 = vmatprep.subr.bf16.mxu0 %v5139_v56  ;;  %7226 = vmatprep.subr.bf16.mxu1 %v5141_v58  ;;  %v5221_v56 = vld [vmem:[#allocation2 + $0x2f8] sm:$0xff]  ;;  %v5218_v58 = vld [vmem:[#allocation2 + $0x2e0] sm:$0xff] }
 0x455   :  { %6912 = vmatprep.mubr.bf16.mxu0 %v11717_v12  ;;  %7256 = vmatprep.mubr.bf16.mxu1 %v11717_v12  ;;  %v5162_v12 = vld [vmem:[#allocation2 + $0x120] sm:$0xff] }
 0x457   :  { %6883 = vmatpush1.bf16.msra.mxu0 %v5138_v1  ;;  %7227 = vmatpush1.bf16.msra.mxu1 %v5140_v23  ;;  %v5220_v1 = vld [vmem:[#allocation2 + $0x2f0] sm:$0xff]  ;;  %v5227_v23 = vld [vmem:[#allocation2 + $0x328] sm:$0xff] }
 0x458   :  { %6884 = vmatprep.subr.bf16.mxu0 %v5147_v26  ;;  %7228 = vmatprep.subr.bf16.mxu1 %v5149_v40  ;;  %v5229_v26 = vld [vmem:[#allocation2 + $0x338] sm:$0xff]  ;;  %v5226_v40 = vld [vmem:[#allocation2 + $0x320] sm:$0xff] }
 0x45b   :  { %6885 = vmatpush1.bf16.msra.mxu0 %v5146_v47  ;;  %7229 = vmatpush1.bf16.msra.mxu1 %v5148_v33  ;;  %v5228_v47 = vld [vmem:[#allocation2 + $0x330] sm:$0xff]  ;;  %v5235_v33 = vld [vmem:[#allocation2 + $0x368] sm:$0xff] }
 0x45c   :  { %6886 = vmatprep.subr.bf16.mxu0 %v5155_v34  ;;  %7230 = vmatprep.subr.bf16.mxu1 %v5157_v36  ;;  %v5237_v34 = vld [vmem:[#allocation2 + $0x378] sm:$0xff]  ;;  %v5234_v36 = vld [vmem:[#allocation2 + $0x360] sm:$0xff] }
 0x45f   :  { %6887 = vmatpush1.bf16.msra.mxu0 %v5154_v39  ;;  %7231 = vmatpush1.bf16.msra.mxu1 %v5156_v22  ;;  %v5236_v39 = vld [vmem:[#allocation2 + $0x370] sm:$0xff]  ;;  %v5243_v22 = vld [vmem:[#allocation2 + $0x3a8] sm:$0xff] }
 0x460   :  { %6888 = vmatprep.subr.bf16.mxu0 %v5163_v27  ;;  %7232 = vmatprep.subr.bf16.mxu1 %v5165_v43  ;;  %v5245_v27 = vld [vmem:[#allocation2 + $0x3b8] sm:$0xff]  ;;  %v5242_v43 = vld [vmem:[#allocation2 + $0x3a0] sm:$0xff] }
 0x463   :  { %6889 = vmatpush1.bf16.msra.mxu0 %v5162_v12  ;;  %7233 = vmatpush1.bf16.msra.mxu1 %v5164_v49  ;;  %v5244_v12 = vld [vmem:[#allocation2 + $0x3b0] sm:$0xff]  ;;  %v5251_v49 = vld [vmem:[#allocation2 + $0x3e8] sm:$0xff] }
 0x464   :  { %6890 = vmatprep.subr.bf16.mxu0 %v5171_v61  ;;  %7234 = vmatprep.subr.bf16.mxu1 %v5173_v7  ;;  %v5253_v61 = vld [vmem:[#allocation2 + $0x3f8] sm:$0xff]  ;;  %v5250_v7 = vld [vmem:[#allocation2 + $0x3e0] sm:$0xff] }
 0x467   :  { %6891 = vmatpush1.bf16.msra.mxu0 %v5170_v13  ;;  %7235 = vmatpush1.bf16.msra.mxu1 %v5172_v19  ;;  %v5252_v13 = vld [vmem:[#allocation2 + $0x3f0] sm:$0xff]  ;;  %v5259_v19 = vld [vmem:[#allocation2 + $0x428] sm:$0xff] }
 0x468   :  { %6892 = vmatprep.subr.bf16.mxu0 %v5179_v37  ;;  %7236 = vmatprep.subr.bf16.mxu1 %v5181_v48  ;;  %v5261_v37 = vld [vmem:[#allocation2 + $0x438] sm:$0xff]  ;;  %v5258_v48 = vld [vmem:[#allocation2 + $0x420] sm:$0xff] }
 0x46b   :  { %6893 = vmatpush1.bf16.msra.mxu0 %v5178_v15  ;;  %7237 = vmatpush1.bf16.msra.mxu1 %v5180_v62  ;;  %v5260_v15 = vld [vmem:[#allocation2 + $0x430] sm:$0xff]  ;;  %v5267_v62 = vld [vmem:[#allocation2 + $0x468] sm:$0xff] }
 0x46c   :  { %6894 = vmatprep.subr.bf16.mxu0 %v5187_v25  ;;  %7238 = vmatprep.subr.bf16.mxu1 %v5189_v31  ;;  %v5269_v25 = vld [vmem:[#allocation2 + $0x478] sm:$0xff]  ;;  %v5266_v31 = vld [vmem:[#allocation2 + $0x460] sm:$0xff] }
 0x46f   :  { %6895 = vmatpush1.bf16.msra.mxu0 %v5186_v32  ;;  %7239 = vmatpush1.bf16.msra.mxu1 %v5188_v0  ;;  %v5268_v32 = vld [vmem:[#allocation2 + $0x470] sm:$0xff]  ;;  %v5275_v0 = vld [vmem:[#allocation2 + $0x4a8] sm:$0xff] }
 0x470   :  { %6896 = vmatprep.subr.bf16.mxu0 %v5195_v41  ;;  %7240 = vmatprep.subr.bf16.mxu1 %v5197_v50  ;;  %v5277_v41 = vld [vmem:[#allocation2 + $0x4b8] sm:$0xff]  ;;  %v5274_v50 = vld [vmem:[#allocation2 + $0x4a0] sm:$0xff] }
 0x473   :  { %6897 = vmatpush1.bf16.msra.mxu0 %v5194_v4  ;;  %7241 = vmatpush1.bf16.msra.mxu1 %v5196_v54  ;;  %v5276_v4 = vld [vmem:[#allocation2 + $0x4b0] sm:$0xff]  ;;  %v5283_v54 = vld [vmem:[#allocation2 + $0x4e8] sm:$0xff] }
 0x474   :  { %6898 = vmatprep.subr.bf16.mxu0 %v5203_v59  ;;  %7242 = vmatprep.subr.bf16.mxu1 %v5205_v9  ;;  %v5282_v59 = vld [vmem:[#allocation2 + $0x4e0] sm:$0xff]  ;;  %v5284_v9 = vld [vmem:[#allocation2 + $0x4f0] sm:$0xff] }
 0x477   :  { %6899 = vmatpush1.bf16.msra.mxu0 %v5202_v51  ;;  %7243 = vmatpush1.bf16.msra.mxu1 %v5204_v14  ;;  %v5291_v51 = vld [vmem:[#allocation2 + $0x528] sm:$0xff]  ;;  %v5293_v14 = vld [vmem:[#allocation2 + $0x538] sm:$0xff] }
 0x478   :  { %6900 = vmatprep.subr.bf16.mxu0 %v5211_v16  ;;  %7244 = vmatprep.subr.bf16.mxu1 %v5213_v17  ;;  %v5292_v16 = vld [vmem:[#allocation2 + $0x530] sm:$0xff]  ;;  %v5299_v17 = vld [vmem:[#allocation2 + $0x568] sm:$0xff] }
 0x47b   :  { %6901 = vmatpush1.bf16.msra.mxu0 %v5210_v20  ;;  %7245 = vmatpush1.bf16.msra.mxu1 %v5212_v30  ;;  %v5301_v20 = vld [vmem:[#allocation2 + $0x578] sm:$0xff]  ;;  %v5298_v30 = vld [vmem:[#allocation2 + $0x560] sm:$0xff] }
 0x47c   :  { %6902 = vmatprep.subr.bf16.mxu0 %v5219_v52  ;;  %7246 = vmatprep.subr.bf16.mxu1 %v5221_v56  ;;  %v5300_v52 = vld [vmem:[#allocation2 + $0x570] sm:$0xff]  ;;  %v5307_v56 = vld [vmem:[#allocation2 + $0x5a8] sm:$0xff] }
 0x47f   :  { %6903 = vmatpush1.bf16.msra.mxu0 %v5218_v58  ;;  %7247 = vmatpush1.bf16.msra.mxu1 %v5220_v1  ;;  %v5309_v58 = vld [vmem:[#allocation2 + $0x5b8] sm:$0xff]  ;;  %v5306_v1 = vld [vmem:[#allocation2 + $0x5a0] sm:$0xff] }
 0x480   :  { %6904 = vmatprep.subr.bf16.mxu0 %v5227_v23  ;;  %7248 = vmatprep.subr.bf16.mxu1 %v5229_v26  ;;  %v5308_v23 = vld [vmem:[#allocation2 + $0x5b0] sm:$0xff]  ;;  %v5315_v26 = vld [vmem:[#allocation2 + $0x5e8] sm:$0xff] }
 0x483   :  { %6905 = vmatpush1.bf16.msra.mxu0 %v5226_v40  ;;  %7249 = vmatpush1.bf16.msra.mxu1 %v5228_v47  ;;  %v5317_v40 = vld [vmem:[#allocation2 + $0x5f8] sm:$0xff]  ;;  %v5314_v47 = vld [vmem:[#allocation2 + $0x5e0] sm:$0xff] }
 0x484   :  { %6906 = vmatprep.subr.bf16.mxu0 %v5235_v33  ;;  %7250 = vmatprep.subr.bf16.mxu1 %v5237_v34  ;;  %v5316_v33 = vld [vmem:[#allocation2 + $0x5f0] sm:$0xff]  ;;  %v5323_v34 = vld [vmem:[#allocation2 + $0x628] sm:$0xff] }
 0x487   :  { %6907 = vmatpush1.bf16.msra.mxu0 %v5234_v36  ;;  %7251 = vmatpush1.bf16.msra.mxu1 %v5236_v39  ;;  %v5325_v36 = vld [vmem:[#allocation2 + $0x638] sm:$0xff]  ;;  %v5322_v39 = vld [vmem:[#allocation2 + $0x620] sm:$0xff] }
 0x488   :  { %6908 = vmatprep.subr.bf16.mxu0 %v5243_v22  ;;  %7252 = vmatprep.subr.bf16.mxu1 %v5245_v27  ;;  %v5324_v22 = vld [vmem:[#allocation2 + $0x630] sm:$0xff]  ;;  %v5331_v27 = vld [vmem:[#allocation2 + $0x668] sm:$0xff] }
 0x48b   :  { %6909 = vmatpush1.bf16.msra.mxu0 %v5242_v43  ;;  %7253 = vmatpush1.bf16.msra.mxu1 %v5244_v12  ;;  %v5333_v43 = vld [vmem:[#allocation2 + $0x678] sm:$0xff]  ;;  %v5330_v12 = vld [vmem:[#allocation2 + $0x660] sm:$0xff] }
 0x48c   :  { %6910 = vmatprep.subr.bf16.mxu0 %v5251_v49  ;;  %7254 = vmatprep.subr.bf16.mxu1 %v5253_v61  ;;  %v5332_v49 = vld [vmem:[#allocation2 + $0x670] sm:$0xff]  ;;  %v5339_v61 = vld [vmem:[#allocation2 + $0x6a8] sm:$0xff] }
 0x48f   :  { %6911 = vmatpush1.bf16.msra.mxu0 %v5250_v7  ;;  %7255 = vmatpush1.bf16.msra.mxu1 %v5252_v13  ;;  %v5341_v7 = vld [vmem:[#allocation2 + $0x6b8] sm:$0xff]  ;;  %v5338_v13 = vld [vmem:[#allocation2 + $0x6a0] sm:$0xff] }
 0x490   :  { %6923 = vmatprep.subr.bf16.mxu0 %v5259_v19  ;;  %7267 = vmatprep.subr.bf16.mxu1 %v5261_v37  ;;  %v5340_v19 = vld [vmem:[#allocation2 + $0x6b0] sm:$0xff]  ;;  %v5347_v37 = vld [vmem:[#allocation2 + $0x6e8] sm:$0xff] }
 0x492   :  { %6913 = vmatmul.mubr.bf16.vlgmr.msra.gmra.mrb[16].mxu0 %v11725_v60  ;;  %7257 = vmatmul.mubr.bf16.vlgmr.msra.gmra.mrb[24].mxu1 %v11725_v60  ;;  %v5285_v60 = vld [vmem:[#allocation2 + $0x4f8] sm:$0xff] }
 0x493   :  { %6924 = vmatpush1.bf16.msra.mxu0 %v5258_v48  ;;  %7268 = vmatpush1.bf16.msra.mxu1 %v5260_v15  ;;  %v5349_v48 = vld [vmem:[#allocation2 + $0x6f8] sm:$0xff]  ;;  %v5346_v15 = vld [vmem:[#allocation2 + $0x6e0] sm:$0xff] }
 0x494   :  { %6925 = vmatprep.subr.bf16.mxu0 %v5267_v62  ;;  %7269 = vmatprep.subr.bf16.mxu1 %v5269_v25  ;;  %v5348_v62 = vld [vmem:[#allocation2 + $0x6f0] sm:$0xff]  ;;  %v5355_v25 = vld [vmem:[#allocation2 + $0x728] sm:$0xff] }
 0x495   :  { %6955 = vmatprep.mubr.bf16.mxu0 %v11727_v8  ;;  %7299 = vmatprep.mubr.bf16.mxu1 %v11727_v8  ;;  %v5290_v8 = vld [vmem:[#allocation2 + $0x520] sm:$0xff] }
 0x497   :  { %6926 = vmatpush1.bf16.msra.mxu0 %v5266_v31  ;;  %7270 = vmatpush1.bf16.msra.mxu1 %v5268_v32  ;;  %v5357_v31 = vld [vmem:[#allocation2 + $0x738] sm:$0xff]  ;;  %v5354_v32 = vld [vmem:[#allocation2 + $0x720] sm:$0xff] }
 0x498   :  { %6927 = vmatprep.subr.bf16.mxu0 %v5275_v0  ;;  %7271 = vmatprep.subr.bf16.mxu1 %v5277_v41  ;;  %v5356_v0 = vld [vmem:[#allocation2 + $0x730] sm:$0xff]  ;;  %v5363_v41 = vld [vmem:[#allocation2 + $0x768] sm:$0xff] }
 0x49b   :  { %6928 = vmatpush1.bf16.msra.mxu0 %v5274_v50  ;;  %7272 = vmatpush1.bf16.msra.mxu1 %v5276_v4  ;;  %v5365_v50 = vld [vmem:[#allocation2 + $0x778] sm:$0xff]  ;;  %v5362_v4 = vld [vmem:[#allocation2 + $0x760] sm:$0xff] }
 0x49c   :  { %6929 = vmatprep.subr.bf16.mxu0 %v5283_v54  ;;  %7273 = vmatprep.subr.bf16.mxu1 %v5285_v60  ;;  %v5364_v54 = vld [vmem:[#allocation2 + $0x770] sm:$0xff]  ;;  %v5371_v60 = vld [vmem:[#allocation2 + $0x7a8] sm:$0xff] }
 0x49f   :  { %6930 = vmatpush1.bf16.msra.mxu0 %v5282_v59  ;;  %7274 = vmatpush1.bf16.msra.mxu1 %v5284_v9  ;;  %v5373_v59 = vld [vmem:[#allocation2 + $0x7b8] sm:$0xff]  ;;  %v5370_v9 = vld [vmem:[#allocation2 + $0x7a0] sm:$0xff] }
 0x4a0   :  { %6931 = vmatprep.subr.bf16.mxu0 %v5291_v51  ;;  %7275 = vmatprep.subr.bf16.mxu1 %v5293_v14  ;;  %v5372_v51 = vld [vmem:[#allocation2 + $0x7b0] sm:$0xff]  ;;  %v5379_v14 = vld [vmem:[#allocation2 + $0x7e8] sm:$0xff] }
 0x4a3   :  { %6932 = vmatpush1.bf16.msra.mxu0 %v5290_v8  ;;  %7276 = vmatpush1.bf16.msra.mxu1 %v5292_v16  ;;  %v5381_v8 = vld [vmem:[#allocation2 + $0x7f8] sm:$0xff]  ;;  %v5378_v16 = vld [vmem:[#allocation2 + $0x7e0] sm:$0xff] }
 0x4a4   :  { %6933 = vmatprep.subr.bf16.mxu0 %v5299_v17  ;;  %7277 = vmatprep.subr.bf16.mxu1 %v5301_v20  ;;  %v5380_v17 = vld [vmem:[#allocation2 + $0x7f0] sm:$0xff]  ;;  %v5387_v20 = vld [vmem:[#allocation2 + $0x828] sm:$0xff] }
 0x4a7   :  { %6934 = vmatpush1.bf16.msra.mxu0 %v5298_v30  ;;  %7278 = vmatpush1.bf16.msra.mxu1 %v5300_v52  ;;  %v5389_v30 = vld [vmem:[#allocation2 + $0x838] sm:$0xff]  ;;  %v5386_v52 = vld [vmem:[#allocation2 + $0x820] sm:$0xff] }
 0x4a8   :  { %6935 = vmatprep.subr.bf16.mxu0 %v5307_v56  ;;  %7279 = vmatprep.subr.bf16.mxu1 %v5309_v58  ;;  %v5388_v56 = vld [vmem:[#allocation2 + $0x830] sm:$0xff]  ;;  %v5395_v58 = vld [vmem:[#allocation2 + $0x868] sm:$0xff] }
 0x4ab   :  { %6936 = vmatpush1.bf16.msra.mxu0 %v5306_v1  ;;  %7280 = vmatpush1.bf16.msra.mxu1 %v5308_v23  ;;  %v5397_v1 = vld [vmem:[#allocation2 + $0x878] sm:$0xff]  ;;  %v5394_v23 = vld [vmem:[#allocation2 + $0x860] sm:$0xff] }
 0x4ac   :  { %6937 = vmatprep.subr.bf16.mxu0 %v5315_v26  ;;  %7281 = vmatprep.subr.bf16.mxu1 %v5317_v40  ;;  %v5396_v26 = vld [vmem:[#allocation2 + $0x870] sm:$0xff]  ;;  %v5403_v40 = vld [vmem:[#allocation2 + $0x8a8] sm:$0xff] }
 0x4af   :  { %6938 = vmatpush1.bf16.msra.mxu0 %v5314_v47  ;;  %7282 = vmatpush1.bf16.msra.mxu1 %v5316_v33  ;;  %v5405_v47 = vld [vmem:[#allocation2 + $0x8b8] sm:$0xff]  ;;  %v5402_v33 = vld [vmem:[#allocation2 + $0x8a0] sm:$0xff] }
 0x4b0   :  { %6939 = vmatprep.subr.bf16.mxu0 %v5323_v34  ;;  %7283 = vmatprep.subr.bf16.mxu1 %v5325_v36  ;;  %v5404_v34 = vld [vmem:[#allocation2 + $0x8b0] sm:$0xff]  ;;  %v5411_v36 = vld [vmem:[#allocation2 + $0x8e8] sm:$0xff] }
 0x4b3   :  { %6940 = vmatpush1.bf16.msra.mxu0 %v5322_v39  ;;  %7284 = vmatpush1.bf16.msra.mxu1 %v5324_v22  ;;  %v5410_v39 = vld [vmem:[#allocation2 + $0x8e0] sm:$0xff]  ;;  %v5412_v22 = vld [vmem:[#allocation2 + $0x8f0] sm:$0xff] }
 0x4b4   :  { %6941 = vmatprep.subr.bf16.mxu0 %v5331_v27  ;;  %7285 = vmatprep.subr.bf16.mxu1 %v5333_v43  ;;  %v5419_v27 = vld [vmem:[#allocation2 + $0x928] sm:$0xff]  ;;  %v5421_v43 = vld [vmem:[#allocation2 + $0x938] sm:$0xff] }
 0x4b7   :  { %6942 = vmatpush1.bf16.msra.mxu0 %v5330_v12  ;;  %7286 = vmatpush1.bf16.msra.mxu1 %v5332_v49  ;;  %v5420_v12 = vld [vmem:[#allocation2 + $0x930] sm:$0xff]  ;;  %v5427_v49 = vld [vmem:[#allocation2 + $0x968] sm:$0xff] }
 0x4b8   :  { %6943 = vmatprep.subr.bf16.mxu0 %v5339_v61  ;;  %7287 = vmatprep.subr.bf16.mxu1 %v5341_v7  ;;  %v5429_v61 = vld [vmem:[#allocation2 + $0x978] sm:$0xff]  ;;  %v5426_v7 = vld [vmem:[#allocation2 + $0x960] sm:$0xff] }
 0x4bb   :  { %6944 = vmatpush1.bf16.msra.mxu0 %v5338_v13  ;;  %7288 = vmatpush1.bf16.msra.mxu1 %v5340_v19  ;;  %v5428_v13 = vld [vmem:[#allocation2 + $0x970] sm:$0xff]  ;;  %v5435_v19 = vld [vmem:[#allocation2 + $0x9a8] sm:$0xff] }
 0x4bc   :  { %6945 = vmatprep.subr.bf16.mxu0 %v5347_v37  ;;  %7289 = vmatprep.subr.bf16.mxu1 %v5349_v48  ;;  %v5437_v37 = vld [vmem:[#allocation2 + $0x9b8] sm:$0xff]  ;;  %v5434_v48 = vld [vmem:[#allocation2 + $0x9a0] sm:$0xff] }
 0x4bf   :  { %6946 = vmatpush1.bf16.msra.mxu0 %v5346_v15  ;;  %7290 = vmatpush1.bf16.msra.mxu1 %v5348_v62  ;;  %v5436_v15 = vld [vmem:[#allocation2 + $0x9b0] sm:$0xff]  ;;  %v5443_v62 = vld [vmem:[#allocation2 + $0x9e8] sm:$0xff] }
 0x4c0   :  { %6947 = vmatprep.subr.bf16.mxu0 %v5355_v25  ;;  %7291 = vmatprep.subr.bf16.mxu1 %v5357_v31  ;;  %v5445_v25 = vld [vmem:[#allocation2 + $0x9f8] sm:$0xff]  ;;  %v5442_v31 = vld [vmem:[#allocation2 + $0x9e0] sm:$0xff] }
 0x4c3   :  { %6948 = vmatpush1.bf16.msra.mxu0 %v5354_v32  ;;  %7292 = vmatpush1.bf16.msra.mxu1 %v5356_v0  ;;  %v5444_v32 = vld [vmem:[#allocation2 + $0x9f0] sm:$0xff]  ;;  %v5451_v0 = vld [vmem:[#allocation2 + $0xa28] sm:$0xff] }
 0x4c4   :  { %6949 = vmatprep.subr.bf16.mxu0 %v5363_v41  ;;  %7293 = vmatprep.subr.bf16.mxu1 %v5365_v50  ;;  %v5453_v41 = vld [vmem:[#allocation2 + $0xa38] sm:$0xff]  ;;  %v5450_v50 = vld [vmem:[#allocation2 + $0xa20] sm:$0xff] }
 0x4c7   :  { %6950 = vmatpush1.bf16.msra.mxu0 %v5362_v4  ;;  %7294 = vmatpush1.bf16.msra.mxu1 %v5364_v54  ;;  %v5452_v4 = vld [vmem:[#allocation2 + $0xa30] sm:$0xff]  ;;  %v5459_v54 = vld [vmem:[#allocation2 + $0xa68] sm:$0xff] }
 0x4c8   :  { %6951 = vmatprep.subr.bf16.mxu0 %v5371_v60  ;;  %7295 = vmatprep.subr.bf16.mxu1 %v5373_v59  ;;  %v5461_v60 = vld [vmem:[#allocation2 + $0xa78] sm:$0xff]  ;;  %v5458_v59 = vld [vmem:[#allocation2 + $0xa60] sm:$0xff] }
 0x4cb   :  { %6952 = vmatpush1.bf16.msra.mxu0 %v5370_v9  ;;  %7296 = vmatpush1.bf16.msra.mxu1 %v5372_v51  ;;  %v5460_v9 = vld [vmem:[#allocation2 + $0xa70] sm:$0xff]  ;;  %v5467_v51 = vld [vmem:[#allocation2 + $0xaa8] sm:$0xff] }
 0x4cc   :  { %6953 = vmatprep.subr.bf16.mxu0 %v5379_v14  ;;  %7297 = vmatprep.subr.bf16.mxu1 %v5381_v8  ;;  %v5469_v14 = vld [vmem:[#allocation2 + $0xab8] sm:$0xff]  ;;  %v5466_v8 = vld [vmem:[#allocation2 + $0xaa0] sm:$0xff] }
 0x4cf   :  { %6954 = vmatpush1.bf16.msra.mxu0 %v5378_v16  ;;  %7298 = vmatpush1.bf16.msra.mxu1 %v5380_v17  ;;  %v5468_v16 = vld [vmem:[#allocation2 + $0xab0] sm:$0xff]  ;;  %v5475_v17 = vld [vmem:[#allocation2 + $0xae8] sm:$0xff] }
 0x4d0   :  { %6966 = vmatprep.subr.bf16.mxu0 %v5387_v20  ;;  %7310 = vmatprep.subr.bf16.mxu1 %v5389_v30  ;;  %v5477_v20 = vld [vmem:[#allocation2 + $0xaf8] sm:$0xff]  ;;  %v5474_v30 = vld [vmem:[#allocation2 + $0xae0] sm:$0xff] }
 0x4d2   :  { %6956 = vmatmul.mubr.bf16.vlgmr.msra.gmra.mrb[16].mxu0 %v11737_v35  ;;  %7300 = vmatmul.mubr.bf16.vlgmr.msra.gmra.mrb[24].mxu1 %v11737_v35  ;;  %v5413_v35 = vld [vmem:[#allocation2 + $0x8f8] sm:$0xff] }
 0x4d3   :  { %6967 = vmatpush1.bf16.msra.mxu0 %v5386_v52  ;;  %7311 = vmatpush1.bf16.msra.mxu1 %v5388_v56  ;;  %v5476_v52 = vld [vmem:[#allocation2 + $0xaf0] sm:$0xff]  ;;  %v5483_v56 = vld [vmem:[#allocation2 + $0xb28] sm:$0xff] }
 0x4d4   :  { %6968 = vmatprep.subr.bf16.mxu0 %v5395_v58  ;;  %7312 = vmatprep.subr.bf16.mxu1 %v5397_v1  ;;  %v5485_v58 = vld [vmem:[#allocation2 + $0xb38] sm:$0xff]  ;;  %v5482_v1 = vld [vmem:[#allocation2 + $0xb20] sm:$0xff] }
 0x4d5   :  { %6998 = vmatprep.mubr.bf16.mxu0 %v11739_v29  ;;  %7342 = vmatprep.mubr.bf16.mxu1 %v11739_v29  ;;  %v5418_v29 = vld [vmem:[#allocation2 + $0x920] sm:$0xff] }
 0x4d7   :  { %6969 = vmatpush1.bf16.msra.mxu0 %v5394_v23  ;;  %7313 = vmatpush1.bf16.msra.mxu1 %v5396_v26  ;;  %v5484_v23 = vld [vmem:[#allocation2 + $0xb30] sm:$0xff]  ;;  %v5491_v26 = vld [vmem:[#allocation2 + $0xb68] sm:$0xff] }
 0x4d8   :  { %6970 = vmatprep.subr.bf16.mxu0 %v5403_v40  ;;  %7314 = vmatprep.subr.bf16.mxu1 %v5405_v47  ;;  %v5493_v40 = vld [vmem:[#allocation2 + $0xb78] sm:$0xff]  ;;  %v5490_v47 = vld [vmem:[#allocation2 + $0xb60] sm:$0xff] }
 0x4db   :  { %6971 = vmatpush1.bf16.msra.mxu0 %v5402_v33  ;;  %7315 = vmatpush1.bf16.msra.mxu1 %v5404_v34  ;;  %v5492_v33 = vld [vmem:[#allocation2 + $0xb70] sm:$0xff]  ;;  %v5499_v34 = vld [vmem:[#allocation2 + $0xba8] sm:$0xff] }
 0x4dc   :  { %6972 = vmatprep.subr.bf16.mxu0 %v5411_v36  ;;  %7316 = vmatprep.subr.bf16.mxu1 %v5413_v35  ;;  %v5501_v36 = vld [vmem:[#allocation2 + $0xbb8] sm:$0xff]  ;;  %v5498_v35 = vld [vmem:[#allocation2 + $0xba0] sm:$0xff] }
 0x4df   :  { %6973 = vmatpush1.bf16.msra.mxu0 %v5410_v39  ;;  %7317 = vmatpush1.bf16.msra.mxu1 %v5412_v22  ;;  %v5500_v39 = vld [vmem:[#allocation2 + $0xbb0] sm:$0xff]  ;;  %v5507_v22 = vld [vmem:[#allocation2 + $0xbe8] sm:$0xff] }
 0x4e0   :  { %6974 = vmatprep.subr.bf16.mxu0 %v5419_v27  ;;  %7318 = vmatprep.subr.bf16.mxu1 %v5421_v43  ;;  %v5509_v27 = vld [vmem:[#allocation2 + $0xbf8] sm:$0xff]  ;;  %v5506_v43 = vld [vmem:[#allocation2 + $0xbe0] sm:$0xff] }
 0x4e3   :  { %6975 = vmatpush1.bf16.msra.mxu0 %v5418_v29  ;;  %7319 = vmatpush1.bf16.msra.mxu1 %v5420_v12  ;;  %v5508_v29 = vld [vmem:[#allocation2 + $0xbf0] sm:$0xff]  ;;  %v5515_v12 = vld [vmem:[#allocation2 + $0xc28] sm:$0xff] }
 0x4e4   :  { %6976 = vmatprep.subr.bf16.mxu0 %v5427_v49  ;;  %7320 = vmatprep.subr.bf16.mxu1 %v5429_v61  ;;  %v5517_v49 = vld [vmem:[#allocation2 + $0xc38] sm:$0xff]  ;;  %v5514_v61 = vld [vmem:[#allocation2 + $0xc20] sm:$0xff] }
 0x4e7   :  { %6977 = vmatpush1.bf16.msra.mxu0 %v5426_v7  ;;  %7321 = vmatpush1.bf16.msra.mxu1 %v5428_v13  ;;  %v5516_v7 = vld [vmem:[#allocation2 + $0xc30] sm:$0xff]  ;;  %v5523_v13 = vld [vmem:[#allocation2 + $0xc68] sm:$0xff] }
 0x4e8   :  { %6978 = vmatprep.subr.bf16.mxu0 %v5435_v19  ;;  %7322 = vmatprep.subr.bf16.mxu1 %v5437_v37  ;;  %v5525_v19 = vld [vmem:[#allocation2 + $0xc78] sm:$0xff]  ;;  %v5522_v37 = vld [vmem:[#allocation2 + $0xc60] sm:$0xff] }
 0x4eb   :  { %6979 = vmatpush1.bf16.msra.mxu0 %v5434_v48  ;;  %7323 = vmatpush1.bf16.msra.mxu1 %v5436_v15  ;;  %v5524_v48 = vld [vmem:[#allocation2 + $0xc70] sm:$0xff]  ;;  %v5531_v15 = vld [vmem:[#allocation2 + $0xca8] sm:$0xff] }
 0x4ec   :  { %6980 = vmatprep.subr.bf16.mxu0 %v5443_v62  ;;  %7324 = vmatprep.subr.bf16.mxu1 %v5445_v25  ;;  %v5533_v62 = vld [vmem:[#allocation2 + $0xcb8] sm:$0xff]  ;;  %v5530_v25 = vld [vmem:[#allocation2 + $0xca0] sm:$0xff] }
 0x4ef   :  { %6981 = vmatpush1.bf16.msra.mxu0 %v5442_v31  ;;  %7325 = vmatpush1.bf16.msra.mxu1 %v5444_v32  ;;  %v5532_v31 = vld [vmem:[#allocation2 + $0xcb0] sm:$0xff]  ;;  %v5539_v32 = vld [vmem:[#allocation2 + $0xce8] sm:$0xff] }
 0x4f0   :  { %6982 = vmatprep.subr.bf16.mxu0 %v5451_v0  ;;  %7326 = vmatprep.subr.bf16.mxu1 %v5453_v41  ;;  %v5538_v0 = vld [vmem:[#allocation2 + $0xce0] sm:$0xff]  ;;  %v5540_v41 = vld [vmem:[#allocation2 + $0xcf0] sm:$0xff] }
 0x4f3   :  { %6983 = vmatpush1.bf16.msra.mxu0 %v5450_v50  ;;  %7327 = vmatpush1.bf16.msra.mxu1 %v5452_v4  ;;  %v5547_v50 = vld [vmem:[#allocation2 + $0xd28] sm:$0xff]  ;;  %v5549_v4 = vld [vmem:[#allocation2 + $0xd38] sm:$0xff] }
 0x4f4   :  { %6984 = vmatprep.subr.bf16.mxu0 %v5459_v54  ;;  %7328 = vmatprep.subr.bf16.mxu1 %v5461_v60  ;;  %v5546_v54 = vld [vmem:[#allocation2 + $0xd20] sm:$0xff]  ;;  %v5548_v60 = vld [vmem:[#allocation2 + $0xd30] sm:$0xff] }
 0x4f7   :  { %6985 = vmatpush1.bf16.msra.mxu0 %v5458_v59  ;;  %7329 = vmatpush1.bf16.msra.mxu1 %v5460_v9  ;;  %v5555_v59 = vld [vmem:[#allocation2 + $0xd68] sm:$0xff]  ;;  %v5557_v9 = vld [vmem:[#allocation2 + $0xd78] sm:$0xff] }
 0x4f8   :  { %6986 = vmatprep.subr.bf16.mxu0 %v5467_v51  ;;  %7330 = vmatprep.subr.bf16.mxu1 %v5469_v14 }
 0x4fb   :  { %6987 = vmatpush1.bf16.msra.mxu0 %v5466_v8  ;;  %7331 = vmatpush1.bf16.msra.mxu1 %v5468_v16 }
 0x4fc   :  { %6988 = vmatprep.subr.bf16.mxu0 %v5475_v17  ;;  %7332 = vmatprep.subr.bf16.mxu1 %v5477_v20  ;;  %v5554_v17 = vld [vmem:[#allocation2 + $0xd60] sm:$0xff]  ;;  %v5556_v20 = vld [vmem:[#allocation2 + $0xd70] sm:$0xff] }
 0x4ff   :  { %6989 = vmatpush1.bf16.msra.mxu0 %v5474_v30  ;;  %7333 = vmatpush1.bf16.msra.mxu1 %v5476_v52 }
 0x500   :  { %6990 = vmatprep.subr.bf16.mxu0 %v5483_v56  ;;  %7334 = vmatprep.subr.bf16.mxu1 %v5485_v58  ;;  %v5563_v56 = vld [vmem:[#allocation2 + $0xda8] sm:$0xff]  ;;  %v5565_v58 = vld [vmem:[#allocation2 + $0xdb8] sm:$0xff] }
 0x503   :  { %6991 = vmatpush1.bf16.msra.mxu0 %v5482_v1  ;;  %7335 = vmatpush1.bf16.msra.mxu1 %v5484_v23 }
 0x504   :  { %6992 = vmatprep.subr.bf16.mxu0 %v5491_v26  ;;  %7336 = vmatprep.subr.bf16.mxu1 %v5493_v40 }
 0x507   :  { %6993 = vmatpush1.bf16.msra.mxu0 %v5490_v47  ;;  %7337 = vmatpush1.bf16.msra.mxu1 %v5492_v33 }
 0x508   :  { %6994 = vmatprep.subr.bf16.mxu0 %v5499_v34  ;;  %7338 = vmatprep.subr.bf16.mxu1 %v5501_v36 }
 0x50b   :  { %6995 = vmatpush1.bf16.msra.mxu0 %v5498_v35  ;;  %7339 = vmatpush1.bf16.msra.mxu1 %v5500_v39 }
 0x50c   :  { %6996 = vmatprep.subr.bf16.mxu0 %v5507_v22  ;;  %7340 = vmatprep.subr.bf16.mxu1 %v5509_v27 }
 0x50f   :  { %6997 = vmatpush1.bf16.msra.mxu0 %v5506_v43  ;;  %7341 = vmatpush1.bf16.msra.mxu1 %v5508_v29  ;;  %v5562_v43 = vld [vmem:[#allocation2 + $0xda0] sm:$0xff]  ;;  %v5564_v29 = vld [vmem:[#allocation2 + $0xdb0] sm:$0xff] }
 0x510   :  { %7009 = vmatprep.subr.bf16.mxu0 %v5515_v12  ;;  %7353 = vmatprep.subr.bf16.mxu1 %v5517_v49 }
 0x512   :  { %6999 = vmatmul.mubr.bf16.vlgmr.msra.gmra.mrb[16].mxu0 %v11749_v45  ;;  %7343 = vmatmul.mubr.bf16.vlgmr.msra.gmra.mrb[24].mxu1 %v11749_v45  ;;  %v5541_v45 = vld [vmem:[#allocation2 + $0xcf8] sm:$0xff] }
 0x513   :  { %7010 = vmatpush1.bf16.msra.mxu0 %v5514_v61  ;;  %7354 = vmatpush1.bf16.msra.mxu1 %v5516_v7  ;;  %v5571_v61 = vld [vmem:[#allocation2 + $0xde8] sm:$0xff]  ;;  %v5573_v7 = vld [vmem:[#allocation2 + $0xdf8] sm:$0xff] }
 0x514   :  { %7011 = vmatprep.subr.bf16.mxu0 %v5523_v13  ;;  %7355 = vmatprep.subr.bf16.mxu1 %v5525_v19  ;;  %v5570_v13 = vld [vmem:[#allocation2 + $0xde0] sm:$0xff]  ;;  %v5572_v19 = vld [vmem:[#allocation2 + $0xdf0] sm:$0xff] }
 0x515   :  { %7041 = vmatprep.mubr.bf16.mxu0 %v11751_v55  ;;  %7385 = vmatprep.mubr.bf16.mxu1 %v11751_v55  ;;  %v6150_v55 = vld [vmem:[%s12269_s11 + $0x10] sm:$0xff] }
 0x516   :  { %v6155_v51 = vrot.slane %v6150_v55, %v11613_v11  ;;  %v6163_v14 = vrot.slane %v6150_v55, %v11640_v42  ;;  %v6159_v8 = vrot.slane %v6150_v55, %v11618_v24  ;;  %v6167_v16 = vrot.slane %v6150_v55, %v11644_v46  ;;  %v5603_v55 = vld [vmem:[#allocation2 + $0xee8] sm:$0xff] }
 0x517   :  { %7012 = vmatpush1.bf16.msra.mxu0 %v5522_v37  ;;  %7356 = vmatpush1.bf16.msra.mxu1 %v5524_v48  ;;  %v5579_v37 = vld [vmem:[#allocation2 + $0xe28] sm:$0xff]  ;;  %v5581_v48 = vld [vmem:[#allocation2 + $0xe38] sm:$0xff] }
 0x518   :  { %7013 = vmatprep.subr.bf16.mxu0 %v5531_v15  ;;  %7357 = vmatprep.subr.bf16.mxu1 %v5533_v62  ;;  %v5578_v15 = vld [vmem:[#allocation2 + $0xe20] sm:$0xff]  ;;  %v5580_v62 = vld [vmem:[#allocation2 + $0xe30] sm:$0xff] }
 0x51b   :  { %7014 = vmatpush1.bf16.msra.mxu0 %v5530_v25  ;;  %7358 = vmatpush1.bf16.msra.mxu1 %v5532_v31  ;;  %v5587_v25 = vld [vmem:[#allocation2 + $0xe68] sm:$0xff]  ;;  %v5589_v31 = vld [vmem:[#allocation2 + $0xe78] sm:$0xff] }
 0x51c   :  { %7015 = vmatprep.subr.bf16.mxu0 %v5539_v32  ;;  %7359 = vmatprep.subr.bf16.mxu1 %v5541_v45  ;;  %v5586_v32 = vld [vmem:[#allocation2 + $0xe60] sm:$0xff]  ;;  %v5588_v45 = vld [vmem:[#allocation2 + $0xe70] sm:$0xff] }
 0x51f   :  { %7016 = vmatpush1.bf16.msra.mxu0 %v5538_v0  ;;  %7360 = vmatpush1.bf16.msra.mxu1 %v5540_v41  ;;  %v5595_v0 = vld [vmem:[#allocation2 + $0xea8] sm:$0xff]  ;;  %v5597_v41 = vld [vmem:[#allocation2 + $0xeb8] sm:$0xff] }
 0x520   :  { %7017 = vmatprep.subr.bf16.mxu0 %v5547_v50  ;;  %7361 = vmatprep.subr.bf16.mxu1 %v5549_v4  ;;  %v5594_v50 = vld [vmem:[#allocation2 + $0xea0] sm:$0xff]  ;;  %v5596_v4 = vld [vmem:[#allocation2 + $0xeb0] sm:$0xff] }
 0x523   :  { %7018 = vmatpush1.bf16.msra.mxu0 %v5546_v54  ;;  %7362 = vmatpush1.bf16.msra.mxu1 %v5548_v60  ;;  %v5605_v54 = vld [vmem:[#allocation2 + $0xef8] sm:$0xff]  ;;  %v5602_v60 = vld [vmem:[#allocation2 + $0xee0] sm:$0xff] }
 0x524   :  { %7019 = vmatprep.subr.bf16.mxu0 %v5555_v59  ;;  %7363 = vmatprep.subr.bf16.mxu1 %v5557_v9  ;;  %v5604_v59 = vld [vmem:[#allocation2 + $0xef0] sm:$0xff]  ;;  %v5611_v9 = vld [vmem:[#allocation2 + $0xf28] sm:$0xff] }
 0x525   :  { %v6527_v30 = vpop.f32.mrb[12].mxu0  ;;  %v6871_v52 = vpop.f32.mrb[20].mxu1 }
 0x526   :  { %v11832_v1 = vadd.f32 %v6527_v30, %v6155_v51  ;;  %v11834_v23 = vadd.f32 %v6871_v52, %v6163_v14  ;;  %v6529_v26 = vpop.f32.mrb[13].mxu0  ;;  %v6873_v40 = vpop.f32.mrb[21].mxu1  ;;  %v5620_v30 = vld [vmem:[#allocation2 + $0xf70] sm:$0xff]  ;;  %v5627_v52 = vld [vmem:[#allocation2 + $0xfa8] sm:$0xff] }
 0x527   :  { %v11836_v47 = vadd.f32 %v6529_v26, %v6159_v8  ;;  %v11838_v33 = vadd.f32 %v6873_v40, %v6167_v16  ;;  %v6531_v34 = vpop.f32.mrb[14].mxu0  ;;  %v6875_v36 = vpop.f32.mrb[22].mxu1  ;;  %7020 = vmatpush1.bf16.msra.mxu0 %v5554_v17  ;;  %7364 = vmatpush1.bf16.msra.mxu1 %v5556_v20  ;;  %v5621_v17 = vld [vmem:[#allocation2 + $0xf78] sm:$0xff]  ;;  %v5618_v20 = vld [vmem:[#allocation2 + $0xf60] sm:$0xff]  ;;  %v5628_v26 = vld [vmem:[#allocation2 + $0xfb0] sm:$0xff] }
 0x528   :  { %v11840_v35 = vadd.f32 %v6531_v34, %v6155_v51  ;;  %v11842_v39 = vadd.f32 %v6875_v36, %v6163_v14  ;;  %v6533_v22 = vpop.f32.mrb[15].mxu0  ;;  %v6877_v27 = vpop.f32.mrb[23].mxu1  ;;  %7021 = vmatprep.subr.bf16.mxu0 %v5563_v56  ;;  %7365 = vmatprep.subr.bf16.mxu1 %v5565_v58  ;;  %v5613_v51 = vld [vmem:[#allocation2 + $0xf38] sm:$0xff]  ;;  %v5610_v14 = vld [vmem:[#allocation2 + $0xf20] sm:$0xff]  ;;  %v5635_v40 = vld [vmem:[#allocation2 + $0xfe8] sm:$0xff] }
 0x529   :  { %v11844_v12 = vadd.f32 %v6533_v22, %v6159_v8  ;;  %v11846_v49 = vadd.f32 %v6877_v27, %v6167_v16  ;;  %v5612_v8 = vld [vmem:[#allocation2 + $0xf30] sm:$0xff]  ;;  %v5619_v16 = vld [vmem:[#allocation2 + $0xf68] sm:$0xff]  ;;  %v5629_v56 = vld [vmem:[#allocation2 + $0xfb8] sm:$0xff] }
 0x52a   :  { %v5626_v58 = vld [vmem:[#allocation2 + $0xfa0] sm:$0xff]  ;;  %v5637_v34 = vld [vmem:[#allocation2 + $0xff8] sm:$0xff]  ;;  %v5636_v22 = vld [vmem:[#allocation2 + $0xff0] sm:$0xff] }
 0x52b   :  { %7022 = vmatpush1.bf16.msra.mxu0 %v5562_v43  ;;  %7366 = vmatpush1.bf16.msra.mxu1 %v5564_v29  ;;  %v5634_v36 = vld [vmem:[#allocation2 + $0xfe0] sm:$0xff]  ;;  %v5643_v27 = vld [vmem:[#allocation2 + $0x1028] sm:$0xff]  ;;  %v5645_v43 = vld [vmem:[#allocation2 + $0x1038] sm:$0xff] }
 0x52c   :  { %7023 = vmatprep.subr.bf16.mxu0 %v5571_v61  ;;  %7367 = vmatprep.subr.bf16.mxu1 %v5573_v7  ;;  %v5642_v29 = vld [vmem:[#allocation2 + $0x1020] sm:$0xff]  ;;  %v5644_v61 = vld [vmem:[#allocation2 + $0x1030] sm:$0xff]  ;;  %v5651_v7 = vld [vmem:[#allocation2 + $0x1068] sm:$0xff] }
 0x52f   :  { %7024 = vmatpush1.bf16.msra.mxu0 %v5570_v13  ;;  %7368 = vmatpush1.bf16.msra.mxu1 %v5572_v19  ;;  %v5653_v13 = vld [vmem:[#allocation2 + $0x1078] sm:$0xff]  ;;  %v5650_v19 = vld [vmem:[#allocation2 + $0x1060] sm:$0xff] }
 0x530   :  { %7025 = vmatprep.subr.bf16.mxu0 %v5579_v37  ;;  %7369 = vmatprep.subr.bf16.mxu1 %v5581_v48  ;;  %v5652_v37 = vld [vmem:[#allocation2 + $0x1070] sm:$0xff]  ;;  %v5659_v48 = vld [vmem:[#allocation2 + $0x10a8] sm:$0xff] }
 0x533   :  { %7026 = vmatpush1.bf16.msra.mxu0 %v5578_v15  ;;  %7370 = vmatpush1.bf16.msra.mxu1 %v5580_v62  ;;  %v5661_v15 = vld [vmem:[#allocation2 + $0x10b8] sm:$0xff]  ;;  %v5658_v62 = vld [vmem:[#allocation2 + $0x10a0] sm:$0xff] }
 0x534   :  { %7027 = vmatprep.subr.bf16.mxu0 %v5587_v25  ;;  %7371 = vmatprep.subr.bf16.mxu1 %v5589_v31  ;;  %v5660_v25 = vld [vmem:[#allocation2 + $0x10b0] sm:$0xff]  ;;  %v5667_v31 = vld [vmem:[#allocation2 + $0x10e8] sm:$0xff] }
 0x537   :  { %7028 = vmatpush1.bf16.msra.mxu0 %v5586_v32  ;;  %7372 = vmatpush1.bf16.msra.mxu1 %v5588_v45  ;;  %v5666_v32 = vld [vmem:[#allocation2 + $0x10e0] sm:$0xff]  ;;  %v5668_v45 = vld [vmem:[#allocation2 + $0x10f0] sm:$0xff] }
 0x538   :  { %7029 = vmatprep.subr.bf16.mxu0 %v5595_v0  ;;  %7373 = vmatprep.subr.bf16.mxu1 %v5597_v41  ;;  %v5675_v0 = vld [vmem:[#allocation2 + $0x1128] sm:$0xff]  ;;  %v5677_v41 = vld [vmem:[#allocation2 + $0x1138] sm:$0xff] }
 0x53b   :  { %7030 = vmatpush1.bf16.msra.mxu0 %v5594_v50  ;;  %7374 = vmatpush1.bf16.msra.mxu1 %v5596_v4  ;;  %v5676_v50 = vld [vmem:[#allocation2 + $0x1130] sm:$0xff]  ;;  %v5683_v4 = vld [vmem:[#allocation2 + $0x1168] sm:$0xff] }
 0x53c   :  { %7031 = vmatprep.subr.bf16.mxu0 %v5603_v55  ;;  %7375 = vmatprep.subr.bf16.mxu1 %v5605_v54  ;;  %v5685_v55 = vld [vmem:[#allocation2 + $0x1178] sm:$0xff]  ;;  %v5682_v54 = vld [vmem:[#allocation2 + $0x1160] sm:$0xff] }
 0x53f   :  { %7032 = vmatpush1.bf16.msra.mxu0 %v5602_v60  ;;  %7376 = vmatpush1.bf16.msra.mxu1 %v5604_v59  ;;  %v5684_v60 = vld [vmem:[#allocation2 + $0x1170] sm:$0xff]  ;;  %v5691_v59 = vld [vmem:[#allocation2 + $0x11a8] sm:$0xff] }
 0x540   :  { %7033 = vmatprep.subr.bf16.mxu0 %v5611_v9  ;;  %7377 = vmatprep.subr.bf16.mxu1 %v5613_v51  ;;  %v5693_v9 = vld [vmem:[#allocation2 + $0x11b8] sm:$0xff]  ;;  %v5690_v51 = vld [vmem:[#allocation2 + $0x11a0] sm:$0xff] }
 0x543   :  { %7034 = vmatpush1.bf16.msra.mxu0 %v5610_v14  ;;  %7378 = vmatpush1.bf16.msra.mxu1 %v5612_v8  ;;  %v5692_v14 = vld [vmem:[#allocation2 + $0x11b0] sm:$0xff]  ;;  %v5699_v8 = vld [vmem:[#allocation2 + $0x11e8] sm:$0xff] }
 0x544   :  { %7035 = vmatprep.subr.bf16.mxu0 %v5619_v16  ;;  %7379 = vmatprep.subr.bf16.mxu1 %v5621_v17  ;;  %v5701_v16 = vld [vmem:[#allocation2 + $0x11f8] sm:$0xff]  ;;  %v5698_v17 = vld [vmem:[#allocation2 + $0x11e0] sm:$0xff] }
 0x547   :  { %7036 = vmatpush1.bf16.msra.mxu0 %v5618_v20  ;;  %7380 = vmatpush1.bf16.msra.mxu1 %v5620_v30  ;;  %v5700_v20 = vld [vmem:[#allocation2 + $0x11f0] sm:$0xff]  ;;  %v5707_v30 = vld [vmem:[#allocation2 + $0x1228] sm:$0xff] }
 0x548   :  { %7037 = vmatprep.subr.bf16.mxu0 %v5627_v52  ;;  %7381 = vmatprep.subr.bf16.mxu1 %v5629_v56  ;;  %v5709_v52 = vld [vmem:[#allocation2 + $0x1238] sm:$0xff]  ;;  %v5706_v56 = vld [vmem:[#allocation2 + $0x1220] sm:$0xff] }
 0x54b   :  { %7038 = vmatpush1.bf16.msra.mxu0 %v5626_v58  ;;  %7382 = vmatpush1.bf16.msra.mxu1 %v5628_v26  ;;  %v5708_v58 = vld [vmem:[#allocation2 + $0x1230] sm:$0xff]  ;;  %v5715_v26 = vld [vmem:[#allocation2 + $0x1268] sm:$0xff] }
 0x54c   :  { %7039 = vmatprep.subr.bf16.mxu0 %v5635_v40  ;;  %7383 = vmatprep.subr.bf16.mxu1 %v5637_v34  ;;  %v5717_v40 = vld [vmem:[#allocation2 + $0x1278] sm:$0xff]  ;;  %v5714_v34 = vld [vmem:[#allocation2 + $0x1260] sm:$0xff] }
 0x54f   :  { %7040 = vmatpush1.bf16.msra.mxu0 %v5634_v36  ;;  %7384 = vmatpush1.bf16.msra.mxu1 %v5636_v22  ;;  %v5716_v36 = vld [vmem:[#allocation2 + $0x1270] sm:$0xff]  ;;  %v5723_v22 = vld [vmem:[#allocation2 + $0x12a8] sm:$0xff] }
 0x550   :  { %7052 = vmatprep.subr.bf16.mxu0 %v5643_v27  ;;  %7396 = vmatprep.subr.bf16.mxu1 %v5645_v43  ;;  %v5725_v27 = vld [vmem:[#allocation2 + $0x12b8] sm:$0xff]  ;;  %v5722_v43 = vld [vmem:[#allocation2 + $0x12a0] sm:$0xff] }
 0x552   :  { %7042 = vmatmul.mubr.bf16.vlgmr.msra.gmra.mrb[16].mxu0 %v11761_v57  ;;  %7386 = vmatmul.mubr.bf16.vlgmr.msra.gmra.mrb[24].mxu1 %v11761_v57  ;;  %v5669_v57 = vld [vmem:[#allocation2 + $0x10f8] sm:$0xff] }
 0x553   :  { %7053 = vmatpush1.bf16.msra.mxu0 %v5642_v29  ;;  %7397 = vmatpush1.bf16.msra.mxu1 %v5644_v61  ;;  %v5724_v29 = vld [vmem:[#allocation2 + $0x12b0] sm:$0xff]  ;;  %v5731_v61 = vld [vmem:[#allocation2 + $0x12e8] sm:$0xff] }
 0x554   :  { %7054 = vmatprep.subr.bf16.mxu0 %v5651_v7  ;;  %7398 = vmatprep.subr.bf16.mxu1 %v5653_v13  ;;  %v5733_v7 = vld [vmem:[#allocation2 + $0x12f8] sm:$0xff]  ;;  %v5730_v13 = vld [vmem:[#allocation2 + $0x12e0] sm:$0xff] }
 0x555   :  { %7084 = vmatprep.mubr.bf16.mxu0 %v11763_v63  ;;  %7428 = vmatprep.mubr.bf16.mxu1 %v11763_v63  ;;  %v5674_v63 = vld [vmem:[#allocation2 + $0x1120] sm:$0xff] }
 0x557   :  { %7055 = vmatpush1.bf16.msra.mxu0 %v5650_v19  ;;  %7399 = vmatpush1.bf16.msra.mxu1 %v5652_v37  ;;  %v5732_v19 = vld [vmem:[#allocation2 + $0x12f0] sm:$0xff]  ;;  %v5739_v37 = vld [vmem:[#allocation2 + $0x1328] sm:$0xff] }
 0x558   :  { %7056 = vmatprep.subr.bf16.mxu0 %v5659_v48  ;;  %7400 = vmatprep.subr.bf16.mxu1 %v5661_v15  ;;  %v5741_v48 = vld [vmem:[#allocation2 + $0x1338] sm:$0xff]  ;;  %v5738_v15 = vld [vmem:[#allocation2 + $0x1320] sm:$0xff] }
 0x55b   :  { %7057 = vmatpush1.bf16.msra.mxu0 %v5658_v62  ;;  %7401 = vmatpush1.bf16.msra.mxu1 %v5660_v25  ;;  %v5740_v62 = vld [vmem:[#allocation2 + $0x1330] sm:$0xff]  ;;  %v5747_v25 = vld [vmem:[#allocation2 + $0x1368] sm:$0xff] }
 0x55c   :  { %7058 = vmatprep.subr.bf16.mxu0 %v5667_v31  ;;  %7402 = vmatprep.subr.bf16.mxu1 %v5669_v57  ;;  %v5749_v31 = vld [vmem:[#allocation2 + $0x1378] sm:$0xff]  ;;  %v5746_v57 = vld [vmem:[#allocation2 + $0x1360] sm:$0xff] }
 0x55f   :  { %7059 = vmatpush1.bf16.msra.mxu0 %v5666_v32  ;;  %7403 = vmatpush1.bf16.msra.mxu1 %v5668_v45  ;;  %v5748_v32 = vld [vmem:[#allocation2 + $0x1370] sm:$0xff]  ;;  %v5755_v45 = vld [vmem:[#allocation2 + $0x13a8] sm:$0xff] }
 0x560   :  { %7060 = vmatprep.subr.bf16.mxu0 %v5675_v0  ;;  %7404 = vmatprep.subr.bf16.mxu1 %v5677_v41  ;;  %v5757_v0 = vld [vmem:[#allocation2 + $0x13b8] sm:$0xff]  ;;  %v5754_v41 = vld [vmem:[#allocation2 + $0x13a0] sm:$0xff] }
 0x563   :  { %7061 = vmatpush1.bf16.msra.mxu0 %v5674_v63  ;;  %7405 = vmatpush1.bf16.msra.mxu1 %v5676_v50  ;;  %v5756_v63 = vld [vmem:[#allocation2 + $0x13b0] sm:$0xff]  ;;  %v5763_v50 = vld [vmem:[#allocation2 + $0x13e8] sm:$0xff] }
 0x564   :  { %7062 = vmatprep.subr.bf16.mxu0 %v5683_v4  ;;  %7406 = vmatprep.subr.bf16.mxu1 %v5685_v55  ;;  %v5765_v4 = vld [vmem:[#allocation2 + $0x13f8] sm:$0xff]  ;;  %v5762_v55 = vld [vmem:[#allocation2 + $0x13e0] sm:$0xff] }
 0x567   :  { %7063 = vmatpush1.bf16.msra.mxu0 %v5682_v54  ;;  %7407 = vmatpush1.bf16.msra.mxu1 %v5684_v60  ;;  %v5764_v54 = vld [vmem:[#allocation2 + $0x13f0] sm:$0xff]  ;;  %v5771_v60 = vld [vmem:[#allocation2 + $0x1428] sm:$0xff] }
 0x568   :  { %7064 = vmatprep.subr.bf16.mxu0 %v5691_v59  ;;  %7408 = vmatprep.subr.bf16.mxu1 %v5693_v9  ;;  %v5773_v59 = vld [vmem:[#allocation2 + $0x1438] sm:$0xff]  ;;  %v5770_v9 = vld [vmem:[#allocation2 + $0x1420] sm:$0xff] }
 0x56b   :  { %7065 = vmatpush1.bf16.msra.mxu0 %v5690_v51  ;;  %7409 = vmatpush1.bf16.msra.mxu1 %v5692_v14  ;;  %v5772_v51 = vld [vmem:[#allocation2 + $0x1430] sm:$0xff]  ;;  %v5779_v14 = vld [vmem:[#allocation2 + $0x1468] sm:$0xff] }
 0x56c   :  { %7066 = vmatprep.subr.bf16.mxu0 %v5699_v8  ;;  %7410 = vmatprep.subr.bf16.mxu1 %v5701_v16  ;;  %v5781_v8 = vld [vmem:[#allocation2 + $0x1478] sm:$0xff]  ;;  %v5778_v16 = vld [vmem:[#allocation2 + $0x1460] sm:$0xff] }
 0x56f   :  { %7067 = vmatpush1.bf16.msra.mxu0 %v5698_v17  ;;  %7411 = vmatpush1.bf16.msra.mxu1 %v5700_v20  ;;  %v5780_v17 = vld [vmem:[#allocation2 + $0x1470] sm:$0xff]  ;;  %v5787_v20 = vld [vmem:[#allocation2 + $0x14a8] sm:$0xff] }
 0x570   :  { %7068 = vmatprep.subr.bf16.mxu0 %v5707_v30  ;;  %7412 = vmatprep.subr.bf16.mxu1 %v5709_v52  ;;  %v5789_v30 = vld [vmem:[#allocation2 + $0x14b8] sm:$0xff]  ;;  %v5786_v52 = vld [vmem:[#allocation2 + $0x14a0] sm:$0xff] }
 0x573   :  { %7069 = vmatpush1.bf16.msra.mxu0 %v5706_v56  ;;  %7413 = vmatpush1.bf16.msra.mxu1 %v5708_v58  ;;  %v5788_v56 = vld [vmem:[#allocation2 + $0x14b0] sm:$0xff]  ;;  %v5795_v58 = vld [vmem:[#allocation2 + $0x14e8] sm:$0xff] }
 0x574   :  { %7070 = vmatprep.subr.bf16.mxu0 %v5715_v26  ;;  %7414 = vmatprep.subr.bf16.mxu1 %v5717_v40  ;;  %v5794_v26 = vld [vmem:[#allocation2 + $0x14e0] sm:$0xff]  ;;  %v5796_v40 = vld [vmem:[#allocation2 + $0x14f0] sm:$0xff] }
 0x577   :  { %7071 = vmatpush1.bf16.msra.mxu0 %v5714_v34  ;;  %7415 = vmatpush1.bf16.msra.mxu1 %v5716_v36  ;;  %v5803_v34 = vld [vmem:[#allocation2 + $0x1528] sm:$0xff]  ;;  %v5805_v36 = vld [vmem:[#allocation2 + $0x1538] sm:$0xff] }
 0x578   :  { %7072 = vmatprep.subr.bf16.mxu0 %v5723_v22  ;;  %7416 = vmatprep.subr.bf16.mxu1 %v5725_v27  ;;  %v5804_v22 = vld [vmem:[#allocation2 + $0x1530] sm:$0xff]  ;;  %v5811_v27 = vld [vmem:[#allocation2 + $0x1568] sm:$0xff] }
 0x57b   :  { %7073 = vmatpush1.bf16.msra.mxu0 %v5722_v43  ;;  %7417 = vmatpush1.bf16.msra.mxu1 %v5724_v29  ;;  %v5813_v43 = vld [vmem:[#allocation2 + $0x1578] sm:$0xff]  ;;  %v5810_v29 = vld [vmem:[#allocation2 + $0x1560] sm:$0xff] }
 0x57c   :  { %7074 = vmatprep.subr.bf16.mxu0 %v5731_v61  ;;  %7418 = vmatprep.subr.bf16.mxu1 %v5733_v7  ;;  %v5812_v61 = vld [vmem:[#allocation2 + $0x1570] sm:$0xff]  ;;  %v5819_v7 = vld [vmem:[#allocation2 + $0x15a8] sm:$0xff] }
 0x57f   :  { %7075 = vmatpush1.bf16.msra.mxu0 %v5730_v13  ;;  %7419 = vmatpush1.bf16.msra.mxu1 %v5732_v19  ;;  %v5821_v13 = vld [vmem:[#allocation2 + $0x15b8] sm:$0xff]  ;;  %v5818_v19 = vld [vmem:[#allocation2 + $0x15a0] sm:$0xff] }
 0x580   :  { %7076 = vmatprep.subr.bf16.mxu0 %v5739_v37  ;;  %7420 = vmatprep.subr.bf16.mxu1 %v5741_v48  ;;  %v5820_v37 = vld [vmem:[#allocation2 + $0x15b0] sm:$0xff]  ;;  %v5827_v48 = vld [vmem:[#allocation2 + $0x15e8] sm:$0xff] }
 0x583   :  { %7077 = vmatpush1.bf16.msra.mxu0 %v5738_v15  ;;  %7421 = vmatpush1.bf16.msra.mxu1 %v5740_v62  ;;  %v5829_v15 = vld [vmem:[#allocation2 + $0x15f8] sm:$0xff]  ;;  %v5826_v62 = vld [vmem:[#allocation2 + $0x15e0] sm:$0xff] }
 0x584   :  { %7078 = vmatprep.subr.bf16.mxu0 %v5747_v25  ;;  %7422 = vmatprep.subr.bf16.mxu1 %v5749_v31  ;;  %v5828_v25 = vld [vmem:[#allocation2 + $0x15f0] sm:$0xff]  ;;  %v5835_v31 = vld [vmem:[#allocation2 + $0x1628] sm:$0xff] }
 0x587   :  { %7079 = vmatpush1.bf16.msra.mxu0 %v5746_v57  ;;  %7423 = vmatpush1.bf16.msra.mxu1 %v5748_v32  ;;  %v5837_v57 = vld [vmem:[#allocation2 + $0x1638] sm:$0xff]  ;;  %v5834_v32 = vld [vmem:[#allocation2 + $0x1620] sm:$0xff] }
 0x588   :  { %7080 = vmatprep.subr.bf16.mxu0 %v5755_v45  ;;  %7424 = vmatprep.subr.bf16.mxu1 %v5757_v0  ;;  %v5836_v45 = vld [vmem:[#allocation2 + $0x1630] sm:$0xff]  ;;  %v5843_v0 = vld [vmem:[#allocation2 + $0x1668] sm:$0xff] }
 0x58b   :  { %7081 = vmatpush1.bf16.msra.mxu0 %v5754_v41  ;;  %7425 = vmatpush1.bf16.msra.mxu1 %v5756_v63  ;;  %v5845_v41 = vld [vmem:[#allocation2 + $0x1678] sm:$0xff]  ;;  %v5842_v63 = vld [vmem:[#allocation2 + $0x1660] sm:$0xff] }
 0x58c   :  { %7082 = vmatprep.subr.bf16.mxu0 %v5763_v50  ;;  %7426 = vmatprep.subr.bf16.mxu1 %v5765_v4  ;;  %v5844_v50 = vld [vmem:[#allocation2 + $0x1670] sm:$0xff]  ;;  %v5851_v4 = vld [vmem:[#allocation2 + $0x16a8] sm:$0xff] }
 0x58f   :  { %7083 = vmatpush1.bf16.msra.mxu0 %v5762_v55  ;;  %7427 = vmatpush1.bf16.msra.mxu1 %v5764_v54  ;;  %v5853_v55 = vld [vmem:[#allocation2 + $0x16b8] sm:$0xff]  ;;  %v5850_v54 = vld [vmem:[#allocation2 + $0x16a0] sm:$0xff] }
 0x590   :  { %7095 = vmatprep.subr.bf16.mxu0 %v5771_v60  ;;  %7439 = vmatprep.subr.bf16.mxu1 %v5773_v59  ;;  %v5852_v60 = vld [vmem:[#allocation2 + $0x16b0] sm:$0xff]  ;;  %v5859_v59 = vld [vmem:[#allocation2 + $0x16e8] sm:$0xff] }
 0x592   :  { %7085 = vmatmul.mubr.bf16.vlgmr.msra.gmra.mrb[16].mxu0 %v11773_v44  ;;  %7429 = vmatmul.mubr.bf16.vlgmr.msra.gmra.mrb[24].mxu1 %v11773_v44  ;;  %v5797_v44 = vld [vmem:[#allocation2 + $0x14f8] sm:$0xff] }
 0x593   :  { %7096 = vmatpush1.bf16.msra.mxu0 %v5770_v9  ;;  %7440 = vmatpush1.bf16.msra.mxu1 %v5772_v51  ;;  %v5861_v9 = vld [vmem:[#allocation2 + $0x16f8] sm:$0xff]  ;;  %v5858_v51 = vld [vmem:[#allocation2 + $0x16e0] sm:$0xff] }
 0x594   :  { %7097 = vmatprep.subr.bf16.mxu0 %v5779_v14  ;;  %7441 = vmatprep.subr.bf16.mxu1 %v5781_v8  ;;  %v5860_v14 = vld [vmem:[#allocation2 + $0x16f0] sm:$0xff]  ;;  %v5867_v8 = vld [vmem:[#allocation2 + $0x1728] sm:$0xff] }
 0x595   :  { %7127 = vmatprep.mubr.bf16.mxu0 %v11775_v6  ;;  %7471 = vmatprep.mubr.bf16.mxu1 %v11775_v6  ;;  %v5802_v6 = vld [vmem:[#allocation2 + $0x1520] sm:$0xff] }
 0x597   :  { %7098 = vmatpush1.bf16.msra.mxu0 %v5778_v16  ;;  %7442 = vmatpush1.bf16.msra.mxu1 %v5780_v17  ;;  %v5869_v16 = vld [vmem:[#allocation2 + $0x1738] sm:$0xff]  ;;  %v5866_v17 = vld [vmem:[#allocation2 + $0x1720] sm:$0xff] }
 0x598   :  { %7099 = vmatprep.subr.bf16.mxu0 %v5787_v20  ;;  %7443 = vmatprep.subr.bf16.mxu1 %v5789_v30  ;;  %v5868_v20 = vld [vmem:[#allocation2 + $0x1730] sm:$0xff]  ;;  %v5875_v30 = vld [vmem:[#allocation2 + $0x1768] sm:$0xff] }
 0x59b   :  { %7100 = vmatpush1.bf16.msra.mxu0 %v5786_v52  ;;  %7444 = vmatpush1.bf16.msra.mxu1 %v5788_v56  ;;  %v5877_v52 = vld [vmem:[#allocation2 + $0x1778] sm:$0xff]  ;;  %v5874_v56 = vld [vmem:[#allocation2 + $0x1760] sm:$0xff] }
 0x59c   :  { %7101 = vmatprep.subr.bf16.mxu0 %v5795_v58  ;;  %7445 = vmatprep.subr.bf16.mxu1 %v5797_v44  ;;  %v5876_v58 = vld [vmem:[#allocation2 + $0x1770] sm:$0xff]  ;;  %v5883_v44 = vld [vmem:[#allocation2 + $0x17a8] sm:$0xff] }
 0x59f   :  { %7102 = vmatpush1.bf16.msra.mxu0 %v5794_v26  ;;  %7446 = vmatpush1.bf16.msra.mxu1 %v5796_v40  ;;  %v5885_v26 = vld [vmem:[#allocation2 + $0x17b8] sm:$0xff]  ;;  %v5882_v40 = vld [vmem:[#allocation2 + $0x17a0] sm:$0xff] }
 0x5a0   :  { %7103 = vmatprep.subr.bf16.mxu0 %v5803_v34  ;;  %7447 = vmatprep.subr.bf16.mxu1 %v5805_v36  ;;  %v5884_v34 = vld [vmem:[#allocation2 + $0x17b0] sm:$0xff]  ;;  %v5891_v36 = vld [vmem:[#allocation2 + $0x17e8] sm:$0xff] }
 0x5a3   :  { %7104 = vmatpush1.bf16.msra.mxu0 %v5802_v6  ;;  %7448 = vmatpush1.bf16.msra.mxu1 %v5804_v22  ;;  %v5893_v6 = vld [vmem:[#allocation2 + $0x17f8] sm:$0xff]  ;;  %v5890_v22 = vld [vmem:[#allocation2 + $0x17e0] sm:$0xff] }
 0x5a4   :  { %7105 = vmatprep.subr.bf16.mxu0 %v5811_v27  ;;  %7449 = vmatprep.subr.bf16.mxu1 %v5813_v43  ;;  %v5892_v27 = vld [vmem:[#allocation2 + $0x17f0] sm:$0xff]  ;;  %v5899_v43 = vld [vmem:[#allocation2 + $0x1828] sm:$0xff] }
 0x5a7   :  { %7106 = vmatpush1.bf16.msra.mxu0 %v5810_v29  ;;  %7450 = vmatpush1.bf16.msra.mxu1 %v5812_v61  ;;  %v5901_v29 = vld [vmem:[#allocation2 + $0x1838] sm:$0xff]  ;;  %v5898_v61 = vld [vmem:[#allocation2 + $0x1820] sm:$0xff] }
 0x5a8   :  { %7107 = vmatprep.subr.bf16.mxu0 %v5819_v7  ;;  %7451 = vmatprep.subr.bf16.mxu1 %v5821_v13  ;;  %v5900_v7 = vld [vmem:[#allocation2 + $0x1830] sm:$0xff]  ;;  %v5907_v13 = vld [vmem:[#allocation2 + $0x1868] sm:$0xff] }
 0x5ab   :  { %7108 = vmatpush1.bf16.msra.mxu0 %v5818_v19  ;;  %7452 = vmatpush1.bf16.msra.mxu1 %v5820_v37  ;;  %v5909_v19 = vld [vmem:[#allocation2 + $0x1878] sm:$0xff]  ;;  %v5906_v37 = vld [vmem:[#allocation2 + $0x1860] sm:$0xff] }
 0x5ac   :  { %7109 = vmatprep.subr.bf16.mxu0 %v5827_v48  ;;  %7453 = vmatprep.subr.bf16.mxu1 %v5829_v15  ;;  %v5908_v48 = vld [vmem:[#allocation2 + $0x1870] sm:$0xff]  ;;  %v5915_v15 = vld [vmem:[#allocation2 + $0x18a8] sm:$0xff] }
 0x5af   :  { %7110 = vmatpush1.bf16.msra.mxu0 %v5826_v62  ;;  %7454 = vmatpush1.bf16.msra.mxu1 %v5828_v25  ;;  %v5917_v62 = vld [vmem:[#allocation2 + $0x18b8] sm:$0xff]  ;;  %v5914_v25 = vld [vmem:[#allocation2 + $0x18a0] sm:$0xff] }
 0x5b0   :  { %7111 = vmatprep.subr.bf16.mxu0 %v5835_v31  ;;  %7455 = vmatprep.subr.bf16.mxu1 %v5837_v57  ;;  %v5916_v31 = vld [vmem:[#allocation2 + $0x18b0] sm:$0xff]  ;;  %v5923_v57 = vld [vmem:[#allocation2 + $0x18e8] sm:$0xff] }
 0x5b3   :  { %7112 = vmatpush1.bf16.msra.mxu0 %v5834_v32  ;;  %7456 = vmatpush1.bf16.msra.mxu1 %v5836_v45  ;;  %v5922_v32 = vld [vmem:[#allocation2 + $0x18e0] sm:$0xff]  ;;  %v5924_v45 = vld [vmem:[#allocation2 + $0x18f0] sm:$0xff] }
 0x5b4   :  { %7113 = vmatprep.subr.bf16.mxu0 %v5843_v0  ;;  %7457 = vmatprep.subr.bf16.mxu1 %v5845_v41  ;;  %v5931_v0 = vld [vmem:[#allocation2 + $0x1928] sm:$0xff]  ;;  %v5933_v41 = vld [vmem:[#allocation2 + $0x1938] sm:$0xff] }
 0x5b7   :  { %7114 = vmatpush1.bf16.msra.mxu0 %v5842_v63  ;;  %7458 = vmatpush1.bf16.msra.mxu1 %v5844_v50  ;;  %v5932_v63 = vld [vmem:[#allocation2 + $0x1930] sm:$0xff]  ;;  %v5939_v50 = vld [vmem:[#allocation2 + $0x1968] sm:$0xff] }
 0x5b8   :  { %7115 = vmatprep.subr.bf16.mxu0 %v5851_v4  ;;  %7459 = vmatprep.subr.bf16.mxu1 %v5853_v55  ;;  %v5941_v4 = vld [vmem:[#allocation2 + $0x1978] sm:$0xff]  ;;  %v5938_v55 = vld [vmem:[#allocation2 + $0x1960] sm:$0xff] }
 0x5bb   :  { %7116 = vmatpush1.bf16.msra.mxu0 %v5850_v54  ;;  %7460 = vmatpush1.bf16.msra.mxu1 %v5852_v60  ;;  %v5940_v54 = vld [vmem:[#allocation2 + $0x1970] sm:$0xff]  ;;  %v5947_v60 = vld [vmem:[#allocation2 + $0x19a8] sm:$0xff] }
 0x5bc   :  { %7117 = vmatprep.subr.bf16.mxu0 %v5859_v59  ;;  %7461 = vmatprep.subr.bf16.mxu1 %v5861_v9  ;;  %v5949_v59 = vld [vmem:[#allocation2 + $0x19b8] sm:$0xff]  ;;  %v5946_v9 = vld [vmem:[#allocation2 + $0x19a0] sm:$0xff] }
 0x5bf   :  { %7118 = vmatpush1.bf16.msra.mxu0 %v5858_v51  ;;  %7462 = vmatpush1.bf16.msra.mxu1 %v5860_v14  ;;  %v5948_v51 = vld [vmem:[#allocation2 + $0x19b0] sm:$0xff]  ;;  %v5955_v14 = vld [vmem:[#allocation2 + $0x19e8] sm:$0xff] }
 0x5c0   :  { %7119 = vmatprep.subr.bf16.mxu0 %v5867_v8  ;;  %7463 = vmatprep.subr.bf16.mxu1 %v5869_v16  ;;  %v5957_v8 = vld [vmem:[#allocation2 + $0x19f8] sm:$0xff]  ;;  %v5954_v16 = vld [vmem:[#allocation2 + $0x19e0] sm:$0xff] }
 0x5c3   :  { %7120 = vmatpush1.bf16.msra.mxu0 %v5866_v17  ;;  %7464 = vmatpush1.bf16.msra.mxu1 %v5868_v20  ;;  %v5956_v17 = vld [vmem:[#allocation2 + $0x19f0] sm:$0xff]  ;;  %v5963_v20 = vld [vmem:[#allocation2 + $0x1a28] sm:$0xff] }
 0x5c4   :  { %7121 = vmatprep.subr.bf16.mxu0 %v5875_v30  ;;  %7465 = vmatprep.subr.bf16.mxu1 %v5877_v52  ;;  %v5965_v30 = vld [vmem:[#allocation2 + $0x1a38] sm:$0xff]  ;;  %v5962_v52 = vld [vmem:[#allocation2 + $0x1a20] sm:$0xff] }
 0x5c7   :  { %7122 = vmatpush1.bf16.msra.mxu0 %v5874_v56  ;;  %7466 = vmatpush1.bf16.msra.mxu1 %v5876_v58  ;;  %v5964_v56 = vld [vmem:[#allocation2 + $0x1a30] sm:$0xff]  ;;  %v5971_v58 = vld [vmem:[#allocation2 + $0x1a68] sm:$0xff] }
 0x5c8   :  { %7123 = vmatprep.subr.bf16.mxu0 %v5883_v44  ;;  %7467 = vmatprep.subr.bf16.mxu1 %v5885_v26  ;;  %v5973_v44 = vld [vmem:[#allocation2 + $0x1a78] sm:$0xff]  ;;  %v5970_v26 = vld [vmem:[#allocation2 + $0x1a60] sm:$0xff] }
 0x5cb   :  { %7124 = vmatpush1.bf16.msra.mxu0 %v5882_v40  ;;  %7468 = vmatpush1.bf16.msra.mxu1 %v5884_v34  ;;  %v5972_v40 = vld [vmem:[#allocation2 + $0x1a70] sm:$0xff]  ;;  %v5979_v34 = vld [vmem:[#allocation2 + $0x1aa8] sm:$0xff] }
 0x5cc   :  { %7125 = vmatprep.subr.bf16.mxu0 %v5891_v36  ;;  %7469 = vmatprep.subr.bf16.mxu1 %v5893_v6  ;;  %v5981_v36 = vld [vmem:[#allocation2 + $0x1ab8] sm:$0xff]  ;;  %v5978_v6 = vld [vmem:[#allocation2 + $0x1aa0] sm:$0xff] }
 0x5cf   :  { %7126 = vmatpush1.bf16.msra.mxu0 %v5890_v22  ;;  %7470 = vmatpush1.bf16.msra.mxu1 %v5892_v27  ;;  %v5980_v22 = vld [vmem:[#allocation2 + $0x1ab0] sm:$0xff]  ;;  %v5987_v27 = vld [vmem:[#allocation2 + $0x1ae8] sm:$0xff] }
 0x5d0   :  { %7138 = vmatprep.subr.bf16.mxu0 %v5899_v43  ;;  %7482 = vmatprep.subr.bf16.mxu1 %v5901_v29  ;;  %v5989_v43 = vld [vmem:[#allocation2 + $0x1af8] sm:$0xff]  ;;  %v5986_v29 = vld [vmem:[#allocation2 + $0x1ae0] sm:$0xff] }
 0x5d2   :  { %7128 = vmatmul.mubr.bf16.vlgmr.msra.gmra.mrb[16].mxu0 %v11785_v10  ;;  %7472 = vmatmul.mubr.bf16.vlgmr.msra.gmra.mrb[24].mxu1 %v11785_v10  ;;  %v5925_v10 = vld [vmem:[#allocation2 + $0x18f8] sm:$0xff] }
 0x5d3   :  { %7139 = vmatpush1.bf16.msra.mxu0 %v5898_v61  ;;  %7483 = vmatpush1.bf16.msra.mxu1 %v5900_v7  ;;  %v5988_v61 = vld [vmem:[#allocation2 + $0x1af0] sm:$0xff]  ;;  %v5995_v7 = vld [vmem:[#allocation2 + $0x1b28] sm:$0xff] }
 0x5d4   :  { %7140 = vmatprep.subr.bf16.mxu0 %v5907_v13  ;;  %7484 = vmatprep.subr.bf16.mxu1 %v5909_v19  ;;  %v5997_v13 = vld [vmem:[#allocation2 + $0x1b38] sm:$0xff]  ;;  %v5994_v19 = vld [vmem:[#allocation2 + $0x1b20] sm:$0xff] }
 0x5d5   :  { %7170 = vmatprep.mubr.bf16.mxu0 %v11787_v3  ;;  %7514 = vmatprep.mubr.bf16.mxu1 %v11787_v3  ;;  %v5930_v3 = vld [vmem:[#allocation2 + $0x1920] sm:$0xff] }
 0x5d7   :  { %7141 = vmatpush1.bf16.msra.mxu0 %v5906_v37  ;;  %7485 = vmatpush1.bf16.msra.mxu1 %v5908_v48  ;;  %v5996_v37 = vld [vmem:[#allocation2 + $0x1b30] sm:$0xff]  ;;  %v6003_v48 = vld [vmem:[#allocation2 + $0x1b68] sm:$0xff] }
 0x5d8   :  { %7142 = vmatprep.subr.bf16.mxu0 %v5915_v15  ;;  %7486 = vmatprep.subr.bf16.mxu1 %v5917_v62  ;;  %v6005_v15 = vld [vmem:[#allocation2 + $0x1b78] sm:$0xff]  ;;  %v6002_v62 = vld [vmem:[#allocation2 + $0x1b60] sm:$0xff] }
 0x5db   :  { %7143 = vmatpush1.bf16.msra.mxu0 %v5914_v25  ;;  %7487 = vmatpush1.bf16.msra.mxu1 %v5916_v31  ;;  %v6004_v25 = vld [vmem:[#allocation2 + $0x1b70] sm:$0xff]  ;;  %v6011_v31 = vld [vmem:[#allocation2 + $0x1ba8] sm:$0xff] }
 0x5dc   :  { %7144 = vmatprep.subr.bf16.mxu0 %v5923_v57  ;;  %7488 = vmatprep.subr.bf16.mxu1 %v5925_v10  ;;  %v6013_v57 = vld [vmem:[#allocation2 + $0x1bb8] sm:$0xff]  ;;  %v6010_v10 = vld [vmem:[#allocation2 + $0x1ba0] sm:$0xff] }
 0x5df   :  { %7145 = vmatpush1.bf16.msra.mxu0 %v5922_v32  ;;  %7489 = vmatpush1.bf16.msra.mxu1 %v5924_v45  ;;  %v6012_v32 = vld [vmem:[#allocation2 + $0x1bb0] sm:$0xff]  ;;  %v6019_v45 = vld [vmem:[#allocation2 + $0x1be8] sm:$0xff] }
 0x5e0   :  { %7146 = vmatprep.subr.bf16.mxu0 %v5931_v0  ;;  %7490 = vmatprep.subr.bf16.mxu1 %v5933_v41  ;;  %v6021_v0 = vld [vmem:[#allocation2 + $0x1bf8] sm:$0xff]  ;;  %v6018_v41 = vld [vmem:[#allocation2 + $0x1be0] sm:$0xff] }
 0x5e3   :  { %7147 = vmatpush1.bf16.msra.mxu0 %v5930_v3  ;;  %7491 = vmatpush1.bf16.msra.mxu1 %v5932_v63  ;;  %v6020_v3 = vld [vmem:[#allocation2 + $0x1bf0] sm:$0xff]  ;;  %v6027_v63 = vld [vmem:[#allocation2 + $0x1c28] sm:$0xff] }
 0x5e4   :  { %7148 = vmatprep.subr.bf16.mxu0 %v5939_v50  ;;  %7492 = vmatprep.subr.bf16.mxu1 %v5941_v4  ;;  %v6029_v50 = vld [vmem:[#allocation2 + $0x1c38] sm:$0xff]  ;;  %v6026_v4 = vld [vmem:[#allocation2 + $0x1c20] sm:$0xff] }
 0x5e7   :  { %7149 = vmatpush1.bf16.msra.mxu0 %v5938_v55  ;;  %7493 = vmatpush1.bf16.msra.mxu1 %v5940_v54  ;;  %v6028_v55 = vld [vmem:[#allocation2 + $0x1c30] sm:$0xff]  ;;  %v6035_v54 = vld [vmem:[#allocation2 + $0x1c68] sm:$0xff] }
 0x5e8   :  { %7150 = vmatprep.subr.bf16.mxu0 %v5947_v60  ;;  %7494 = vmatprep.subr.bf16.mxu1 %v5949_v59  ;;  %v6037_v60 = vld [vmem:[#allocation2 + $0x1c78] sm:$0xff]  ;;  %v6034_v59 = vld [vmem:[#allocation2 + $0x1c60] sm:$0xff] }
 0x5eb   :  { %7151 = vmatpush1.bf16.msra.mxu0 %v5946_v9  ;;  %7495 = vmatpush1.bf16.msra.mxu1 %v5948_v51  ;;  %v6036_v9 = vld [vmem:[#allocation2 + $0x1c70] sm:$0xff]  ;;  %v6043_v51 = vld [vmem:[#allocation2 + $0x1ca8] sm:$0xff] }
 0x5ec   :  { %7152 = vmatprep.subr.bf16.mxu0 %v5955_v14  ;;  %7496 = vmatprep.subr.bf16.mxu1 %v5957_v8  ;;  %v6045_v14 = vld [vmem:[#allocation2 + $0x1cb8] sm:$0xff]  ;;  %v6042_v8 = vld [vmem:[#allocation2 + $0x1ca0] sm:$0xff] }
 0x5ef   :  { %7153 = vmatpush1.bf16.msra.mxu0 %v5954_v16  ;;  %7497 = vmatpush1.bf16.msra.mxu1 %v5956_v17  ;;  %v6044_v16 = vld [vmem:[#allocation2 + $0x1cb0] sm:$0xff]  ;;  %v6051_v17 = vld [vmem:[#allocation2 + $0x1ce8] sm:$0xff] }
 0x5f0   :  { %7154 = vmatprep.subr.bf16.mxu0 %v5963_v20  ;;  %7498 = vmatprep.subr.bf16.mxu1 %v5965_v30  ;;  %v6050_v20 = vld [vmem:[#allocation2 + $0x1ce0] sm:$0xff]  ;;  %v6052_v30 = vld [vmem:[#allocation2 + $0x1cf0] sm:$0xff] }
 0x5f3   :  { %7155 = vmatpush1.bf16.msra.mxu0 %v5962_v52  ;;  %7499 = vmatpush1.bf16.msra.mxu1 %v5964_v56  ;;  %v6059_v52 = vld [vmem:[#allocation2 + $0x1d28] sm:$0xff]  ;;  %v6061_v56 = vld [vmem:[#allocation2 + $0x1d38] sm:$0xff] }
 0x5f4   :  { %7156 = vmatprep.subr.bf16.mxu0 %v5971_v58  ;;  %7500 = vmatprep.subr.bf16.mxu1 %v5973_v44  ;;  %v6060_v58 = vld [vmem:[#allocation2 + $0x1d30] sm:$0xff]  ;;  %v6067_v44 = vld [vmem:[#allocation2 + $0x1d68] sm:$0xff] }
 0x5f7   :  { %7157 = vmatpush1.bf16.msra.mxu0 %v5970_v26  ;;  %7501 = vmatpush1.bf16.msra.mxu1 %v5972_v40  ;;  %v6069_v26 = vld [vmem:[#allocation2 + $0x1d78] sm:$0xff]  ;;  %v6066_v40 = vld [vmem:[#allocation2 + $0x1d60] sm:$0xff] }
 0x5f8   :  { %7158 = vmatprep.subr.bf16.mxu0 %v5979_v34  ;;  %7502 = vmatprep.subr.bf16.mxu1 %v5981_v36  ;;  %v6068_v34 = vld [vmem:[#allocation2 + $0x1d70] sm:$0xff]  ;;  %v6075_v36 = vld [vmem:[#allocation2 + $0x1da8] sm:$0xff] }
 0x5fb   :  { %7159 = vmatpush1.bf16.msra.mxu0 %v5978_v6  ;;  %7503 = vmatpush1.bf16.msra.mxu1 %v5980_v22  ;;  %v6077_v6 = vld [vmem:[#allocation2 + $0x1db8] sm:$0xff]  ;;  %v6074_v22 = vld [vmem:[#allocation2 + $0x1da0] sm:$0xff] }
 0x5fc   :  { %7160 = vmatprep.subr.bf16.mxu0 %v5987_v27  ;;  %7504 = vmatprep.subr.bf16.mxu1 %v5989_v43  ;;  %v6076_v27 = vld [vmem:[#allocation2 + $0x1db0] sm:$0xff]  ;;  %v6083_v43 = vld [vmem:[#allocation2 + $0x1de8] sm:$0xff] }
 0x5ff   :  { %7161 = vmatpush1.bf16.msra.mxu0 %v5986_v29  ;;  %7505 = vmatpush1.bf16.msra.mxu1 %v5988_v61  ;;  %v6085_v29 = vld [vmem:[#allocation2 + $0x1df8] sm:$0xff]  ;;  %v6082_v61 = vld [vmem:[#allocation2 + $0x1de0] sm:$0xff] }
 0x600   :  { %7162 = vmatprep.subr.bf16.mxu0 %v5995_v7  ;;  %7506 = vmatprep.subr.bf16.mxu1 %v5997_v13  ;;  %v6084_v7 = vld [vmem:[#allocation2 + $0x1df0] sm:$0xff]  ;;  %v6091_v13 = vld [vmem:[#allocation2 + $0x1e28] sm:$0xff] }
 0x603   :  { %7163 = vmatpush1.bf16.msra.mxu0 %v5994_v19  ;;  %7507 = vmatpush1.bf16.msra.mxu1 %v5996_v37  ;;  %v6093_v19 = vld [vmem:[#allocation2 + $0x1e38] sm:$0xff]  ;;  %v6090_v37 = vld [vmem:[#allocation2 + $0x1e20] sm:$0xff] }
 0x604   :  { %7164 = vmatprep.subr.bf16.mxu0 %v6003_v48  ;;  %7508 = vmatprep.subr.bf16.mxu1 %v6005_v15  ;;  %v6092_v48 = vld [vmem:[#allocation2 + $0x1e30] sm:$0xff]  ;;  %v6099_v15 = vld [vmem:[#allocation2 + $0x1e68] sm:$0xff] }
 0x607   :  { %7165 = vmatpush1.bf16.msra.mxu0 %v6002_v62  ;;  %7509 = vmatpush1.bf16.msra.mxu1 %v6004_v25  ;;  %v6101_v62 = vld [vmem:[#allocation2 + $0x1e78] sm:$0xff]  ;;  %v6098_v25 = vld [vmem:[#allocation2 + $0x1e60] sm:$0xff] }
 0x608   :  { %7166 = vmatprep.subr.bf16.mxu0 %v6011_v31  ;;  %7510 = vmatprep.subr.bf16.mxu1 %v6013_v57  ;;  %v6100_v31 = vld [vmem:[#allocation2 + $0x1e70] sm:$0xff]  ;;  %v6107_v57 = vld [vmem:[#allocation2 + $0x1ea8] sm:$0xff] }
 0x60b   :  { %7167 = vmatpush1.bf16.msra.mxu0 %v6010_v10  ;;  %7511 = vmatpush1.bf16.msra.mxu1 %v6012_v32  ;;  %v6109_v10 = vld [vmem:[#allocation2 + $0x1eb8] sm:$0xff]  ;;  %v6106_v32 = vld [vmem:[#allocation2 + $0x1ea0] sm:$0xff] }
 0x60c   :  { %7168 = vmatprep.subr.bf16.mxu0 %v6019_v45  ;;  %7512 = vmatprep.subr.bf16.mxu1 %v6021_v0  ;;  %v6108_v45 = vld [vmem:[#allocation2 + $0x1eb0] sm:$0xff]  ;;  %v6115_v0 = vld [vmem:[#allocation2 + $0x1ee8] sm:$0xff] }
 0x60f   :  { %7169 = vmatpush1.bf16.msra.mxu0 %v6018_v41  ;;  %7513 = vmatpush1.bf16.msra.mxu1 %v6020_v3  ;;  %v6117_v41 = vld [vmem:[#allocation2 + $0x1ef8] sm:$0xff]  ;;  %v6114_v3 = vld [vmem:[#allocation2 + $0x1ee0] sm:$0xff] }
 0x610   :  { %7181 = vmatprep.subr.bf16.mxu0 %v6027_v63  ;;  %7525 = vmatprep.subr.bf16.mxu1 %v6029_v50  ;;  %v6116_v63 = vld [vmem:[#allocation2 + $0x1ef0] sm:$0xff]  ;;  %v6123_v50 = vld [vmem:[#allocation2 + $0x1f28] sm:$0xff] }
 0x612   :  { %7171 = vmatmul.mubr.bf16.vlgmr.msra.gmra.mrb[16].mxu0 %v11797_v38  ;;  %7515 = vmatmul.mubr.bf16.vlgmr.msra.gmra.mrb[24].mxu1 %v11797_v38  ;;  %v6053_v38 = vld [vmem:[#allocation2 + $0x1cf8] sm:$0xff] }
 0x613   :  { %7182 = vmatpush1.bf16.msra.mxu0 %v6026_v4  ;;  %7526 = vmatpush1.bf16.msra.mxu1 %v6028_v55  ;;  %v6125_v4 = vld [vmem:[#allocation2 + $0x1f38] sm:$0xff]  ;;  %v6122_v55 = vld [vmem:[#allocation2 + $0x1f20] sm:$0xff] }
 0x614   :  { %7183 = vmatprep.subr.bf16.mxu0 %v6035_v54  ;;  %7527 = vmatprep.subr.bf16.mxu1 %v6037_v60  ;;  %v6124_v54 = vld [vmem:[#allocation2 + $0x1f30] sm:$0xff]  ;;  %v6131_v60 = vld [vmem:[#allocation2 + $0x1f68] sm:$0xff] }
 0x615   :  { %7213 = vmatprep.mubr.bf16.mxu0 %v11799_v53  ;;  %7557 = vmatprep.mubr.bf16.mxu1 %v11799_v53  ;;  %v6058_v53 = vld [vmem:[#allocation2 + $0x1d20] sm:$0xff] }
 0x617   :  { %7184 = vmatpush1.bf16.msra.mxu0 %v6034_v59  ;;  %7528 = vmatpush1.bf16.msra.mxu1 %v6036_v9  ;;  %v6133_v59 = vld [vmem:[#allocation2 + $0x1f78] sm:$0xff]  ;;  %v6130_v9 = vld [vmem:[#allocation2 + $0x1f60] sm:$0xff] }
 0x618   :  { %7185 = vmatprep.subr.bf16.mxu0 %v6043_v51  ;;  %7529 = vmatprep.subr.bf16.mxu1 %v6045_v14  ;;  %v6132_v51 = vld [vmem:[#allocation2 + $0x1f70] sm:$0xff]  ;;  %v6139_v14 = vld [vmem:[#allocation2 + $0x1fa8] sm:$0xff] }
 0x61b   :  { %7186 = vmatpush1.bf16.msra.mxu0 %v6042_v8  ;;  %7530 = vmatpush1.bf16.msra.mxu1 %v6044_v16  ;;  %v6141_v8 = vld [vmem:[#allocation2 + $0x1fb8] sm:$0xff]  ;;  %v6138_v16 = vld [vmem:[#allocation2 + $0x1fa0] sm:$0xff] }
 0x61c   :  { %7187 = vmatprep.subr.bf16.mxu0 %v6051_v17  ;;  %7531 = vmatprep.subr.bf16.mxu1 %v6053_v38  ;;  %v6140_v17 = vld [vmem:[#allocation2 + $0x1fb0] sm:$0xff]  ;;  %v6147_v38 = vld [vmem:[#allocation2 + $0x1fe8] sm:$0xff] }
 0x61f   :  { %7188 = vmatpush1.bf16.msra.mxu0 %v6050_v20  ;;  %7532 = vmatpush1.bf16.msra.mxu1 %v6052_v30  ;;  %v6149_v20 = vld [vmem:[#allocation2 + $0x1ff8] sm:$0xff]  ;;  %v6146_v30 = vld [vmem:[#allocation2 + $0x1fe0] sm:$0xff] }
 0x620   :  { %7189 = vmatprep.subr.bf16.mxu0 %v6059_v52  ;;  %7533 = vmatprep.subr.bf16.mxu1 %v6061_v56  ;;  %v6148_v52 = vld [vmem:[#allocation2 + $0x1ff0] sm:$0xff] }
 0x621   :  { %v9834_v56 = vld [vmem:[%s12269_s11 + $0x10] sm:$0xff] }
 0x623   :  { %7190 = vmatpush1.bf16.msra.mxu0 %v6058_v53  ;;  %7534 = vmatpush1.bf16.msra.mxu1 %v6060_v58  ;;  %v6171_v53 = vrot.slane %v9834_v56, %v11622_v18  ;;  %v6179_v58 = vrot.slane %v9834_v56, %v11667_v2 }
 0x624   :  { %7191 = vmatprep.subr.bf16.mxu0 %v6067_v44  ;;  %7535 = vmatprep.subr.bf16.mxu1 %v6069_v26  ;;  %v6175_v44 = vrot.slane %v9834_v56, %v11624_v28  ;;  %v6183_v26 = vrot.slane %v9834_v56, %v11671_v5 }
 0x627   :  { %7192 = vmatpush1.bf16.msra.mxu0 %v6066_v40  ;;  %7536 = vmatpush1.bf16.msra.mxu1 %v6068_v34 }
 0x628   :  { %7193 = vmatprep.subr.bf16.mxu0 %v6075_v36  ;;  %7537 = vmatprep.subr.bf16.mxu1 %v6077_v6 }
 0x62b   :  { %7194 = vmatpush1.bf16.msra.mxu0 %v6074_v22  ;;  %7538 = vmatpush1.bf16.msra.mxu1 %v6076_v27 }
 0x62c   :  { %7195 = vmatprep.subr.bf16.mxu0 %v6083_v43  ;;  %7539 = vmatprep.subr.bf16.mxu1 %v6085_v29 }
 0x62f   :  { %7196 = vmatpush1.bf16.msra.mxu0 %v6082_v61  ;;  %7540 = vmatpush1.bf16.msra.mxu1 %v6084_v7 }
 0x630   :  { %7197 = vmatprep.subr.bf16.mxu0 %v6091_v13  ;;  %7541 = vmatprep.subr.bf16.mxu1 %v6093_v19 }
 0x633   :  { %7198 = vmatpush1.bf16.msra.mxu0 %v6090_v37  ;;  %7542 = vmatpush1.bf16.msra.mxu1 %v6092_v48 }
 0x634   :  { %7199 = vmatprep.subr.bf16.mxu0 %v6099_v15  ;;  %7543 = vmatprep.subr.bf16.mxu1 %v6101_v62 }
 0x637   :  { %7200 = vmatpush1.bf16.msra.mxu0 %v6098_v25  ;;  %7544 = vmatpush1.bf16.msra.mxu1 %v6100_v31 }
 0x638   :  { %7201 = vmatprep.subr.bf16.mxu0 %v6107_v57  ;;  %7545 = vmatprep.subr.bf16.mxu1 %v6109_v10 }
 0x63b   :  { %7202 = vmatpush1.bf16.msra.mxu0 %v6106_v32  ;;  %7546 = vmatpush1.bf16.msra.mxu1 %v6108_v45 }
 0x63c   :  { %7203 = vmatprep.subr.bf16.mxu0 %v6115_v0  ;;  %7547 = vmatprep.subr.bf16.mxu1 %v6117_v41 }
 0x63f   :  { %7204 = vmatpush1.bf16.msra.mxu0 %v6114_v3  ;;  %7548 = vmatpush1.bf16.msra.mxu1 %v6116_v63 }
 0x640   :  { %7205 = vmatprep.subr.bf16.mxu0 %v6123_v50  ;;  %7549 = vmatprep.subr.bf16.mxu1 %v6125_v4 }
 0x643   :  { %7206 = vmatpush1.bf16.msra.mxu0 %v6122_v55  ;;  %7550 = vmatpush1.bf16.msra.mxu1 %v6124_v54 }
 0x644   :  { %7207 = vmatprep.subr.bf16.mxu0 %v6131_v60  ;;  %7551 = vmatprep.subr.bf16.mxu1 %v6133_v59 }
 0x647   :  { %7208 = vmatpush1.bf16.msra.mxu0 %v6130_v9  ;;  %7552 = vmatpush1.bf16.msra.mxu1 %v6132_v51 }
 0x648   :  { %7209 = vmatprep.subr.bf16.mxu0 %v6139_v14  ;;  %7553 = vmatprep.subr.bf16.mxu1 %v6141_v8 }
 0x64b   :  { %7210 = vmatpush1.bf16.msra.mxu0 %v6138_v16  ;;  %7554 = vmatpush1.bf16.msra.mxu1 %v6140_v17 }
 0x64c   :  { %7211 = vmatprep.subr.bf16.mxu0 %v6147_v38  ;;  %7555 = vmatprep.subr.bf16.mxu1 %v6149_v20 }
 0x64f   :  { %7212 = vmatpush1.bf16.msra.mxu0 %v6146_v30  ;;  %7556 = vmatpush1.bf16.msra.mxu1 %v6148_v52 }
 0x652   :  { %7214 = vmatmul.mubr.bf16.vlgmr.msra.gmra.mrb[16].mxu0 %v11807_v21  ;;  %7558 = vmatmul.mubr.bf16.vlgmr.msra.gmra.mrb[24].mxu1 %v11807_v21 }
 0x725   :  { %v7215_v40 = vpop.f32.mrb[16].mxu0  ;;  %v7559_v34 = vpop.f32.mrb[24].mxu1 }
 0x726   :  { %v11873_v36 = vadd.f32 %v7215_v40, %v6171_v53  ;;  %v11875_v6 = vadd.f32 %v7559_v34, %v6179_v58  ;;  %v7217_v22 = vpop.f32.mrb[17].mxu0  ;;  %v7561_v21 = vpop.f32.mrb[25].mxu1 }
 0x727   :  { %v11877_v27 = vadd.f32 %v7217_v22, %v6175_v44  ;;  %v11879_v43 = vadd.f32 %v7561_v21, %v6183_v26  ;;  %v7219_v29 = vpop.f32.mrb[18].mxu0  ;;  %v7563_v18 = vpop.f32.mrb[26].mxu1 }
 0x728   :  { %v11881_v61 = vadd.f32 %v7219_v29, %v6171_v53  ;;  %v11883_v2 = vadd.f32 %v7563_v18, %v6179_v58  ;;  %v7221_v28 = vpop.f32.mrb[19].mxu0  ;;  %v7565_v5 = vpop.f32.mrb[27].mxu1 }
 0x729   :  { %v11885_v7 = vadd.f32 %v7221_v28, %v6175_v44  ;;  %v11887_v13 = vadd.f32 %v7565_v5, %v6183_v26 }
 0x72a   :  { %9964 = dma.done.wait [#allocation4 + $0x1], 32768 }
 0x72b   :  { %9965 = vsyncadd [#allocation4 + $0x1], 4294934528  ;;  %v7573_v19 = vmax.f32 %v11836_v47, 0.0  ;;  %v7581_v37 = vmax.f32 %v11844_v12, 0.0  ;;  %v7597_v15 = vld [vmem:[#allocation3 + $0x8] sm:$0xff]  ;;  %v7599_v62 = vld [vmem:[#allocation3 + $0x18] sm:$0xff] }
 0x72c   :  { %v7596_v25 = vld [vmem:[#allocation3] sm:$0xff]  ;;  %7874 = vmatprep.subr.bf16.mxu0 %v7597_v15  ;;  %8046 = vmatprep.subr.bf16.mxu1 %v7599_v62  ;;  %v7598_v31 = vld [vmem:[#allocation3 + $0x10] sm:$0xff]  ;;  %v7601_v57 = vld [vmem:[#allocation3 + $0x28] sm:$0xff]  ;;  %vm9979_vm3 = vmmov 0   ;;  %vm9051_vm4 = vcmask 523264   ;;  %vm9122_vm5 = vcmask 261120  }
 0x72d   :  { %v7589_v48 = vpack.c.bf16 %v7581_v37, %v7573_v19  ;;  %v7603_v10 = vld [vmem:[#allocation3 + $0x38] sm:$0xff]  ;;  %7875 = vmatpush1.bf16.msra.mxu0 %v7596_v25  ;;  %8047 = vmatpush1.bf16.msra.mxu1 %v7598_v31  ;;  %v7600_v32 = vld [vmem:[#allocation3 + $0x20] sm:$0xff]  ;;  %v7602_v45 = vld [vmem:[#allocation3 + $0x30] sm:$0xff]  ;;  %vm9185_vm6 = vcmask 130048   ;;  %vm9245_vm7 = vcmask 1043456   ;;  %vm9241_vm8 = vcmask 64512  }
 0x72e   :  { %7876 = vmatprep.subr.bf16.mxu0 %v7601_v57  ;;  %8048 = vmatprep.subr.bf16.mxu1 %v7603_v10  ;;  %v7605_v47 = vld [vmem:[#allocation3 + $0x48] sm:$0xff]  ;;  %v7607_v0 = vld [vmem:[#allocation3 + $0x58] sm:$0xff]  ;;  %v7604_v12 = vld [vmem:[#allocation3 + $0x40] sm:$0xff]  ;;  %vm9290_vm9 = vcmask 15360  }
 0x72f   :  { %7906 = vmatprep.mubr.bf16.mxu0 %v7589_v48  ;;  %8078 = vmatprep.mubr.bf16.mxu1 %v7589_v48  ;;  %v7606_v41 = vld [vmem:[#allocation3 + $0x50] sm:$0xff]  ;;  %v7609_v3 = vld [vmem:[#allocation3 + $0x68] sm:$0xff]  ;;  %v7611_v63 = vld [vmem:[#allocation3 + $0x78] sm:$0xff] }
 0x730   :  { %v7608_v50 = vld [vmem:[#allocation3 + $0x60] sm:$0xff]  ;;  %v7610_v4 = vld [vmem:[#allocation3 + $0x70] sm:$0xff]  ;;  %v7613_v55 = vld [vmem:[#allocation3 + $0x88] sm:$0xff] }
 0x731   :  { %7877 = vmatpush1.bf16.msra.mxu0 %v7600_v32  ;;  %8049 = vmatpush1.bf16.msra.mxu1 %v7602_v45  ;;  %v7615_v54 = vld [vmem:[#allocation3 + $0x98] sm:$0xff]  ;;  %v7612_v60 = vld [vmem:[#allocation3 + $0x80] sm:$0xff]  ;;  %v7614_v59 = vld [vmem:[#allocation3 + $0x90] sm:$0xff] }
 0x732   :  { %7878 = vmatprep.subr.bf16.mxu0 %v7605_v47  ;;  %8050 = vmatprep.subr.bf16.mxu1 %v7607_v0  ;;  %v7617_v9 = vld [vmem:[#allocation3 + $0xa8] sm:$0xff]  ;;  %v7619_v51 = vld [vmem:[#allocation3 + $0xb8] sm:$0xff]  ;;  %v7616_v14 = vld [vmem:[#allocation3 + $0xa0] sm:$0xff] }
 0x733   :  { %v7618_v8 = vld [vmem:[#allocation3 + $0xb0] sm:$0xff]  ;;  %v7621_v16 = vld [vmem:[#allocation3 + $0xc8] sm:$0xff]  ;;  %v7623_v17 = vld [vmem:[#allocation3 + $0xd8] sm:$0xff] }
 0x734   :  { %v7620_v38 = vld [vmem:[#allocation3 + $0xc0] sm:$0xff]  ;;  %v7622_v20 = vld [vmem:[#allocation3 + $0xd0] sm:$0xff]  ;;  %v7625_v30 = vld [vmem:[#allocation3 + $0xe8] sm:$0xff] }
 0x735   :  { %7879 = vmatpush1.bf16.msra.mxu0 %v7604_v12  ;;  %8051 = vmatpush1.bf16.msra.mxu1 %v7606_v41  ;;  %v7627_v52 = vld [vmem:[#allocation3 + $0xf8] sm:$0xff]  ;;  %v7624_v56 = vld [vmem:[#allocation3 + $0xe0] sm:$0xff]  ;;  %v7626_v53 = vld [vmem:[#allocation3 + $0xf0] sm:$0xff] }
 0x736   :  { %7880 = vmatprep.subr.bf16.mxu0 %v7609_v3  ;;  %8052 = vmatprep.subr.bf16.mxu1 %v7611_v63  ;;  %v7629_v58 = vld [vmem:[#allocation3 + $0x108] sm:$0xff]  ;;  %v7631_v44 = vld [vmem:[#allocation3 + $0x118] sm:$0xff]  ;;  %v7628_v26 = vld [vmem:[#allocation3 + $0x100] sm:$0xff] }
 0x737   :  { %v7630_v40 = vld [vmem:[#allocation3 + $0x110] sm:$0xff]  ;;  %v7633_v34 = vld [vmem:[#allocation3 + $0x128] sm:$0xff]  ;;  %v7635_v22 = vld [vmem:[#allocation3 + $0x138] sm:$0xff] }
 0x738   :  { %v7632_v21 = vld [vmem:[#allocation3 + $0x120] sm:$0xff]  ;;  %v7634_v29 = vld [vmem:[#allocation3 + $0x130] sm:$0xff]  ;;  %v7637_v18 = vld [vmem:[#allocation3 + $0x148] sm:$0xff] }
 0x739   :  { %7881 = vmatpush1.bf16.msra.mxu0 %v7608_v50  ;;  %8053 = vmatpush1.bf16.msra.mxu1 %v7610_v4  ;;  %v7639_v28 = vld [vmem:[#allocation3 + $0x158] sm:$0xff]  ;;  %v7636_v5 = vld [vmem:[#allocation3 + $0x140] sm:$0xff]  ;;  %v7638_v19 = vld [vmem:[#allocation3 + $0x150] sm:$0xff] }
 0x73a   :  { %7882 = vmatprep.subr.bf16.mxu0 %v7613_v55  ;;  %8054 = vmatprep.subr.bf16.mxu1 %v7615_v54  ;;  %v7641_v37 = vld [vmem:[#allocation3 + $0x168] sm:$0xff]  ;;  %v7643_v48 = vld [vmem:[#allocation3 + $0x178] sm:$0xff]  ;;  %v7640_v15 = vld [vmem:[#allocation3 + $0x160] sm:$0xff]  ;;  %v7572_v55 = vmax.f32 %v11832_v1, 0.0  ;;  %v7580_v54 = vmax.f32 %v11840_v35, 0.0 }
 0x73b   :  { %v7642_v62 = vld [vmem:[#allocation3 + $0x170] sm:$0xff]  ;;  %v7645_v25 = vld [vmem:[#allocation3 + $0x188] sm:$0xff]  ;;  %v7647_v31 = vld [vmem:[#allocation3 + $0x198] sm:$0xff] }
 0x73c   :  { %v7644_v57 = vld [vmem:[#allocation3 + $0x180] sm:$0xff]  ;;  %v7646_v10 = vld [vmem:[#allocation3 + $0x190] sm:$0xff]  ;;  %v7649_v32 = vld [vmem:[#allocation3 + $0x1a8] sm:$0xff] }
 0x73d   :  { %7883 = vmatpush1.bf16.msra.mxu0 %v7612_v60  ;;  %8055 = vmatpush1.bf16.msra.mxu1 %v7614_v59  ;;  %v7651_v45 = vld [vmem:[#allocation3 + $0x1b8] sm:$0xff]  ;;  %v7648_v47 = vld [vmem:[#allocation3 + $0x1a0] sm:$0xff]  ;;  %v7650_v0 = vld [vmem:[#allocation3 + $0x1b0] sm:$0xff] }
 0x73e   :  { %7884 = vmatprep.subr.bf16.mxu0 %v7617_v9  ;;  %8056 = vmatprep.subr.bf16.mxu1 %v7619_v51  ;;  %v7653_v12 = vld [vmem:[#allocation3 + $0x1c8] sm:$0xff]  ;;  %v7655_v41 = vld [vmem:[#allocation3 + $0x1d8] sm:$0xff]  ;;  %v7652_v3 = vld [vmem:[#allocation3 + $0x1c0] sm:$0xff] }
 0x73f   :  { %v7654_v63 = vld [vmem:[#allocation3 + $0x1d0] sm:$0xff]  ;;  %v7657_v50 = vld [vmem:[#allocation3 + $0x1e8] sm:$0xff]  ;;  %v7659_v4 = vld [vmem:[#allocation3 + $0x1f8] sm:$0xff] }
 0x740   :  { %v7656_v60 = vld [vmem:[#allocation3 + $0x1e0] sm:$0xff]  ;;  %v7658_v59 = vld [vmem:[#allocation3 + $0x1f0] sm:$0xff]  ;;  %v7661_v9 = vld [vmem:[#allocation3 + $0x208] sm:$0xff] }
 0x741   :  { %7885 = vmatpush1.bf16.msra.mxu0 %v7616_v14  ;;  %8057 = vmatpush1.bf16.msra.mxu1 %v7618_v8  ;;  %v7663_v51 = vld [vmem:[#allocation3 + $0x218] sm:$0xff]  ;;  %v7575_v14 = vmax.f32 %v11838_v33, 0.0  ;;  %v7583_v8 = vmax.f32 %v11846_v49, 0.0  ;;  %v7660_v1 = vld [vmem:[#allocation3 + $0x200] sm:$0xff]  ;;  %v7665_v35 = vld [vmem:[#allocation3 + $0x228] sm:$0xff] }
 0x742   :  { %7886 = vmatprep.subr.bf16.mxu0 %v7621_v16  ;;  %8058 = vmatprep.subr.bf16.mxu1 %v7623_v17  ;;  %v7588_v16 = vpack.c.bf16 %v7580_v54, %v7572_v55  ;;  %v7662_v17 = vld [vmem:[#allocation3 + $0x210] sm:$0xff]  ;;  %v7669_v33 = vld [vmem:[#allocation3 + $0x248] sm:$0xff]  ;;  %v7671_v49 = vld [vmem:[#allocation3 + $0x258] sm:$0xff] }
 0x743   :  { %v7700_v55 = vld [vmem:[#allocation3 + $0x340] sm:$0xff]  ;;  %v7702_v54 = vld [vmem:[#allocation3 + $0x350] sm:$0xff] }
 0x745   :  { %7887 = vmatpush1.bf16.msra.mxu0 %v7620_v38  ;;  %8059 = vmatpush1.bf16.msra.mxu1 %v7622_v20  ;;  %v7667_v38 = vld [vmem:[#allocation3 + $0x238] sm:$0xff]  ;;  %v7591_v20 = vpack.c.bf16 %v7583_v8, %v7575_v14  ;;  %v7709_v14 = vld [vmem:[#allocation3 + $0x388] sm:$0xff] }
 0x746   :  { %7888 = vmatprep.subr.bf16.mxu0 %v7625_v30  ;;  %8060 = vmatprep.subr.bf16.mxu1 %v7627_v52  ;;  %v7664_v30 = vld [vmem:[#allocation3 + $0x220] sm:$0xff]  ;;  %v7666_v52 = vld [vmem:[#allocation3 + $0x230] sm:$0xff]  ;;  %v7711_v8 = vld [vmem:[#allocation3 + $0x398] sm:$0xff] }
 0x749   :  { %7889 = vmatpush1.bf16.msra.mxu0 %v7624_v56  ;;  %8061 = vmatpush1.bf16.msra.mxu1 %v7626_v53  ;;  %v7668_v56 = vld [vmem:[#allocation3 + $0x240] sm:$0xff]  ;;  %v7670_v53 = vld [vmem:[#allocation3 + $0x250] sm:$0xff] }
 0x74a   :  { %7890 = vmatprep.subr.bf16.mxu0 %v7629_v58  ;;  %8062 = vmatprep.subr.bf16.mxu1 %v7631_v44  ;;  %v7673_v58 = vld [vmem:[#allocation3 + $0x268] sm:$0xff]  ;;  %v7675_v44 = vld [vmem:[#allocation3 + $0x278] sm:$0xff] }
 0x74d   :  { %7891 = vmatpush1.bf16.msra.mxu0 %v7628_v26  ;;  %8063 = vmatpush1.bf16.msra.mxu1 %v7630_v40  ;;  %v7672_v26 = vld [vmem:[#allocation3 + $0x260] sm:$0xff]  ;;  %v7674_v40 = vld [vmem:[#allocation3 + $0x270] sm:$0xff] }
 0x74e   :  { %7892 = vmatprep.subr.bf16.mxu0 %v7633_v34  ;;  %8064 = vmatprep.subr.bf16.mxu1 %v7635_v22  ;;  %v7677_v34 = vld [vmem:[#allocation3 + $0x288] sm:$0xff]  ;;  %v7679_v22 = vld [vmem:[#allocation3 + $0x298] sm:$0xff] }
 0x751   :  { %7893 = vmatpush1.bf16.msra.mxu0 %v7632_v21  ;;  %8065 = vmatpush1.bf16.msra.mxu1 %v7634_v29  ;;  %v7676_v21 = vld [vmem:[#allocation3 + $0x280] sm:$0xff]  ;;  %v7678_v29 = vld [vmem:[#allocation3 + $0x290] sm:$0xff] }
 0x752   :  { %7894 = vmatprep.subr.bf16.mxu0 %v7637_v18  ;;  %8066 = vmatprep.subr.bf16.mxu1 %v7639_v28  ;;  %v7681_v18 = vld [vmem:[#allocation3 + $0x2a8] sm:$0xff]  ;;  %v7683_v28 = vld [vmem:[#allocation3 + $0x2b8] sm:$0xff] }
 0x755   :  { %7895 = vmatpush1.bf16.msra.mxu0 %v7636_v5  ;;  %8067 = vmatpush1.bf16.msra.mxu1 %v7638_v19  ;;  %v7680_v5 = vld [vmem:[#allocation3 + $0x2a0] sm:$0xff]  ;;  %v7682_v19 = vld [vmem:[#allocation3 + $0x2b0] sm:$0xff] }
 0x756   :  { %7896 = vmatprep.subr.bf16.mxu0 %v7641_v37  ;;  %8068 = vmatprep.subr.bf16.mxu1 %v7643_v48  ;;  %v7685_v37 = vld [vmem:[#allocation3 + $0x2c8] sm:$0xff]  ;;  %v7687_v48 = vld [vmem:[#allocation3 + $0x2d8] sm:$0xff] }
 0x759   :  { %7897 = vmatpush1.bf16.msra.mxu0 %v7640_v15  ;;  %8069 = vmatpush1.bf16.msra.mxu1 %v7642_v62  ;;  %v7684_v15 = vld [vmem:[#allocation3 + $0x2c0] sm:$0xff]  ;;  %v7686_v62 = vld [vmem:[#allocation3 + $0x2d0] sm:$0xff] }
 0x75a   :  { %7898 = vmatprep.subr.bf16.mxu0 %v7645_v25  ;;  %8070 = vmatprep.subr.bf16.mxu1 %v7647_v31  ;;  %v7689_v25 = vld [vmem:[#allocation3 + $0x2e8] sm:$0xff]  ;;  %v7691_v31 = vld [vmem:[#allocation3 + $0x2f8] sm:$0xff] }
 0x75d   :  { %7899 = vmatpush1.bf16.msra.mxu0 %v7644_v57  ;;  %8071 = vmatpush1.bf16.msra.mxu1 %v7646_v10  ;;  %v7688_v57 = vld [vmem:[#allocation3 + $0x2e0] sm:$0xff]  ;;  %v7690_v10 = vld [vmem:[#allocation3 + $0x2f0] sm:$0xff] }
 0x75e   :  { %7900 = vmatprep.subr.bf16.mxu0 %v7649_v32  ;;  %8072 = vmatprep.subr.bf16.mxu1 %v7651_v45  ;;  %v7693_v32 = vld [vmem:[#allocation3 + $0x308] sm:$0xff]  ;;  %v7695_v45 = vld [vmem:[#allocation3 + $0x318] sm:$0xff] }
 0x761   :  { %7901 = vmatpush1.bf16.msra.mxu0 %v7648_v47  ;;  %8073 = vmatpush1.bf16.msra.mxu1 %v7650_v0  ;;  %v7692_v47 = vld [vmem:[#allocation3 + $0x300] sm:$0xff]  ;;  %v7694_v0 = vld [vmem:[#allocation3 + $0x310] sm:$0xff] }
 0x762   :  { %7902 = vmatprep.subr.bf16.mxu0 %v7653_v12  ;;  %8074 = vmatprep.subr.bf16.mxu1 %v7655_v41  ;;  %v7697_v12 = vld [vmem:[#allocation3 + $0x328] sm:$0xff]  ;;  %v7699_v41 = vld [vmem:[#allocation3 + $0x338] sm:$0xff] }
 0x765   :  { %7903 = vmatpush1.bf16.msra.mxu0 %v7652_v3  ;;  %8075 = vmatpush1.bf16.msra.mxu1 %v7654_v63  ;;  %v7696_v3 = vld [vmem:[#allocation3 + $0x320] sm:$0xff]  ;;  %v7698_v63 = vld [vmem:[#allocation3 + $0x330] sm:$0xff] }
 0x766   :  { %7904 = vmatprep.subr.bf16.mxu0 %v7657_v50  ;;  %8076 = vmatprep.subr.bf16.mxu1 %v7659_v4  ;;  %v7701_v50 = vld [vmem:[#allocation3 + $0x348] sm:$0xff]  ;;  %v7703_v4 = vld [vmem:[#allocation3 + $0x358] sm:$0xff] }
 0x769   :  { %7905 = vmatpush1.bf16.msra.mxu0 %v7656_v60  ;;  %8077 = vmatpush1.bf16.msra.mxu1 %v7658_v59  ;;  %v7705_v60 = vld [vmem:[#allocation3 + $0x368] sm:$0xff]  ;;  %v7707_v59 = vld [vmem:[#allocation3 + $0x378] sm:$0xff] }
 0x76a   :  { %7917 = vmatprep.subr.bf16.mxu0 %v7661_v9  ;;  %8089 = vmatprep.subr.bf16.mxu1 %v7663_v51  ;;  %v7704_v9 = vld [vmem:[#allocation3 + $0x360] sm:$0xff]  ;;  %v7706_v51 = vld [vmem:[#allocation3 + $0x370] sm:$0xff] }
 0x76c   :  { %7907 = vmatmul.mubr.bf16.vlgmr.msra.gmra.mrb[20].mxu0 %v7588_v16  ;;  %8079 = vmatmul.mubr.bf16.vlgmr.msra.gmra.mrb[28].mxu1 %v7588_v16  ;;  %v7708_v16 = vld [vmem:[#allocation3 + $0x380] sm:$0xff] }
 0x76d   :  { %7918 = vmatpush1.bf16.msra.mxu0 %v7660_v1  ;;  %8090 = vmatpush1.bf16.msra.mxu1 %v7662_v17  ;;  %v7710_v1 = vld [vmem:[#allocation3 + $0x390] sm:$0xff]  ;;  %v7713_v17 = vld [vmem:[#allocation3 + $0x3a8] sm:$0xff] }
 0x76e   :  { %7919 = vmatprep.subr.bf16.mxu0 %v7665_v35  ;;  %8091 = vmatprep.subr.bf16.mxu1 %v7667_v38  ;;  %v7715_v35 = vld [vmem:[#allocation3 + $0x3b8] sm:$0xff]  ;;  %v7712_v38 = vld [vmem:[#allocation3 + $0x3a0] sm:$0xff] }
 0x76f   :  { %7949 = vmatprep.mubr.bf16.mxu0 %v7591_v20  ;;  %8121 = vmatprep.mubr.bf16.mxu1 %v7591_v20  ;;  %v7714_v20 = vld [vmem:[#allocation3 + $0x3b0] sm:$0xff] }
 0x771   :  { %7920 = vmatpush1.bf16.msra.mxu0 %v7664_v30  ;;  %8092 = vmatpush1.bf16.msra.mxu1 %v7666_v52  ;;  %v7717_v30 = vld [vmem:[#allocation3 + $0x3c8] sm:$0xff]  ;;  %v7719_v52 = vld [vmem:[#allocation3 + $0x3d8] sm:$0xff] }
 0x772   :  { %7921 = vmatprep.subr.bf16.mxu0 %v7669_v33  ;;  %8093 = vmatprep.subr.bf16.mxu1 %v7671_v49  ;;  %v7716_v33 = vld [vmem:[#allocation3 + $0x3c0] sm:$0xff]  ;;  %v7718_v49 = vld [vmem:[#allocation3 + $0x3d0] sm:$0xff] }
 0x775   :  { %7922 = vmatpush1.bf16.msra.mxu0 %v7668_v56  ;;  %8094 = vmatpush1.bf16.msra.mxu1 %v7670_v53  ;;  %v7721_v56 = vld [vmem:[#allocation3 + $0x3e8] sm:$0xff]  ;;  %v7723_v53 = vld [vmem:[#allocation3 + $0x3f8] sm:$0xff] }
 0x776   :  { %7923 = vmatprep.subr.bf16.mxu0 %v7673_v58  ;;  %8095 = vmatprep.subr.bf16.mxu1 %v7675_v44  ;;  %v7574_v58 = vmax.f32 %v11834_v23, 0.0  ;;  %v7720_v44 = vld [vmem:[#allocation3 + $0x3e0] sm:$0xff]  ;;  %v7729_v23 = vld [vmem:[#allocation3 + $0x428] sm:$0xff] }
 0x779   :  { %7924 = vmatpush1.bf16.msra.mxu0 %v7672_v26  ;;  %8096 = vmatpush1.bf16.msra.mxu1 %v7674_v40  ;;  %v7582_v26 = vmax.f32 %v11842_v39, 0.0  ;;  %v7722_v40 = vld [vmem:[#allocation3 + $0x3f0] sm:$0xff]  ;;  %v7731_v39 = vld [vmem:[#allocation3 + $0x438] sm:$0xff] }
 0x77a   :  { %7925 = vmatprep.subr.bf16.mxu0 %v7677_v34  ;;  %8097 = vmatprep.subr.bf16.mxu1 %v7679_v22  ;;  %v7725_v34 = vld [vmem:[#allocation3 + $0x408] sm:$0xff]  ;;  %v7727_v22 = vld [vmem:[#allocation3 + $0x418] sm:$0xff] }
 0x77d   :  { %7926 = vmatpush1.bf16.msra.mxu0 %v7676_v21  ;;  %8098 = vmatpush1.bf16.msra.mxu1 %v7678_v29  ;;  %v7577_v21 = vmax.f32 %v11877_v27, 0.0  ;;  %v7585_v29 = vmax.f32 %v11885_v7, 0.0  ;;  %v7730_v27 = vld [vmem:[#allocation3 + $0x430] sm:$0xff]  ;;  %v7735_v7 = vld [vmem:[#allocation3 + $0x458] sm:$0xff] }
 0x77e   :  { %7927 = vmatprep.subr.bf16.mxu0 %v7681_v18  ;;  %8099 = vmatprep.subr.bf16.mxu1 %v7683_v28  ;;  %v7590_v18 = vpack.c.bf16 %v7582_v26, %v7574_v58  ;;  %v7724_v28 = vld [vmem:[#allocation3 + $0x400] sm:$0xff]  ;;  %v7773_v26 = vld [vmem:[#allocation3 + $0x588] sm:$0xff] }
 0x77f   :  { %v7768_v58 = vld [vmem:[#allocation3 + $0x560] sm:$0xff] }
 0x781   :  { %7928 = vmatpush1.bf16.msra.mxu0 %v7680_v5  ;;  %8100 = vmatpush1.bf16.msra.mxu1 %v7682_v19  ;;  %v7726_v5 = vld [vmem:[#allocation3 + $0x410] sm:$0xff]  ;;  %v7593_v19 = vpack.c.bf16 %v7585_v29, %v7577_v21  ;;  %v7777_v21 = vld [vmem:[#allocation3 + $0x5a8] sm:$0xff]  ;;  %v7779_v29 = vld [vmem:[#allocation3 + $0x5b8] sm:$0xff] }
 0x782   :  { %7929 = vmatprep.subr.bf16.mxu0 %v7685_v37  ;;  %8101 = vmatprep.subr.bf16.mxu1 %v7687_v48  ;;  %v7728_v37 = vld [vmem:[#allocation3 + $0x420] sm:$0xff]  ;;  %v7733_v48 = vld [vmem:[#allocation3 + $0x448] sm:$0xff] }
 0x785   :  { %7930 = vmatpush1.bf16.msra.mxu0 %v7684_v15  ;;  %8102 = vmatpush1.bf16.msra.mxu1 %v7686_v62  ;;  %v7732_v15 = vld [vmem:[#allocation3 + $0x440] sm:$0xff]  ;;  %v7734_v62 = vld [vmem:[#allocation3 + $0x450] sm:$0xff] }
 0x786   :  { %7931 = vmatprep.subr.bf16.mxu0 %v7689_v25  ;;  %8103 = vmatprep.subr.bf16.mxu1 %v7691_v31  ;;  %v7737_v25 = vld [vmem:[#allocation3 + $0x468] sm:$0xff]  ;;  %v7739_v31 = vld [vmem:[#allocation3 + $0x478] sm:$0xff] }
 0x789   :  { %7932 = vmatpush1.bf16.msra.mxu0 %v7688_v57  ;;  %8104 = vmatpush1.bf16.msra.mxu1 %v7690_v10  ;;  %v7736_v57 = vld [vmem:[#allocation3 + $0x460] sm:$0xff]  ;;  %v7738_v10 = vld [vmem:[#allocation3 + $0x470] sm:$0xff] }
 0x78a   :  { %7933 = vmatprep.subr.bf16.mxu0 %v7693_v32  ;;  %8105 = vmatprep.subr.bf16.mxu1 %v7695_v45  ;;  %v7741_v32 = vld [vmem:[#allocation3 + $0x488] sm:$0xff]  ;;  %v7743_v45 = vld [vmem:[#allocation3 + $0x498] sm:$0xff] }
 0x78d   :  { %7934 = vmatpush1.bf16.msra.mxu0 %v7692_v47  ;;  %8106 = vmatpush1.bf16.msra.mxu1 %v7694_v0  ;;  %v7740_v47 = vld [vmem:[#allocation3 + $0x480] sm:$0xff]  ;;  %v7742_v0 = vld [vmem:[#allocation3 + $0x490] sm:$0xff] }
 0x78e   :  { %7935 = vmatprep.subr.bf16.mxu0 %v7697_v12  ;;  %8107 = vmatprep.subr.bf16.mxu1 %v7699_v41  ;;  %v7745_v12 = vld [vmem:[#allocation3 + $0x4a8] sm:$0xff]  ;;  %v7747_v41 = vld [vmem:[#allocation3 + $0x4b8] sm:$0xff] }
 0x791   :  { %7936 = vmatpush1.bf16.msra.mxu0 %v7696_v3  ;;  %8108 = vmatpush1.bf16.msra.mxu1 %v7698_v63  ;;  %v7744_v3 = vld [vmem:[#allocation3 + $0x4a0] sm:$0xff]  ;;  %v7746_v63 = vld [vmem:[#allocation3 + $0x4b0] sm:$0xff] }
 0x792   :  { %7937 = vmatprep.subr.bf16.mxu0 %v7701_v50  ;;  %8109 = vmatprep.subr.bf16.mxu1 %v7703_v4  ;;  %v7749_v50 = vld [vmem:[#allocation3 + $0x4c8] sm:$0xff]  ;;  %v7751_v4 = vld [vmem:[#allocation3 + $0x4d8] sm:$0xff] }
 0x795   :  { %7938 = vmatpush1.bf16.msra.mxu0 %v7700_v55  ;;  %8110 = vmatpush1.bf16.msra.mxu1 %v7702_v54  ;;  %v7748_v55 = vld [vmem:[#allocation3 + $0x4c0] sm:$0xff]  ;;  %v7750_v54 = vld [vmem:[#allocation3 + $0x4d0] sm:$0xff] }
 0x796   :  { %7939 = vmatprep.subr.bf16.mxu0 %v7705_v60  ;;  %8111 = vmatprep.subr.bf16.mxu1 %v7707_v59  ;;  %v7753_v60 = vld [vmem:[#allocation3 + $0x4e8] sm:$0xff]  ;;  %v7755_v59 = vld [vmem:[#allocation3 + $0x4f8] sm:$0xff] }
 0x799   :  { %7940 = vmatpush1.bf16.msra.mxu0 %v7704_v9  ;;  %8112 = vmatpush1.bf16.msra.mxu1 %v7706_v51  ;;  %v7752_v9 = vld [vmem:[#allocation3 + $0x4e0] sm:$0xff]  ;;  %v7754_v51 = vld [vmem:[#allocation3 + $0x4f0] sm:$0xff] }
 0x79a   :  { %7941 = vmatprep.subr.bf16.mxu0 %v7709_v14  ;;  %8113 = vmatprep.subr.bf16.mxu1 %v7711_v8  ;;  %v7757_v14 = vld [vmem:[#allocation3 + $0x508] sm:$0xff]  ;;  %v7759_v8 = vld [vmem:[#allocation3 + $0x518] sm:$0xff] }
 0x79d   :  { %7942 = vmatpush1.bf16.msra.mxu0 %v7708_v16  ;;  %8114 = vmatpush1.bf16.msra.mxu1 %v7710_v1  ;;  %v7756_v16 = vld [vmem:[#allocation3 + $0x500] sm:$0xff]  ;;  %v7758_v1 = vld [vmem:[#allocation3 + $0x510] sm:$0xff] }
 0x79e   :  { %7943 = vmatprep.subr.bf16.mxu0 %v7713_v17  ;;  %8115 = vmatprep.subr.bf16.mxu1 %v7715_v35  ;;  %v7761_v17 = vld [vmem:[#allocation3 + $0x528] sm:$0xff]  ;;  %v7763_v35 = vld [vmem:[#allocation3 + $0x538] sm:$0xff] }
 0x7a1   :  { %7944 = vmatpush1.bf16.msra.mxu0 %v7712_v38  ;;  %8116 = vmatpush1.bf16.msra.mxu1 %v7714_v20  ;;  %v7760_v38 = vld [vmem:[#allocation3 + $0x520] sm:$0xff]  ;;  %v7762_v20 = vld [vmem:[#allocation3 + $0x530] sm:$0xff] }
 0x7a2   :  { %7945 = vmatprep.subr.bf16.mxu0 %v7717_v30  ;;  %8117 = vmatprep.subr.bf16.mxu1 %v7719_v52  ;;  %v7765_v30 = vld [vmem:[#allocation3 + $0x548] sm:$0xff]  ;;  %v7767_v52 = vld [vmem:[#allocation3 + $0x558] sm:$0xff] }
 0x7a5   :  { %7946 = vmatpush1.bf16.msra.mxu0 %v7716_v33  ;;  %8118 = vmatpush1.bf16.msra.mxu1 %v7718_v49  ;;  %v7764_v33 = vld [vmem:[#allocation3 + $0x540] sm:$0xff]  ;;  %v7766_v49 = vld [vmem:[#allocation3 + $0x550] sm:$0xff] }
 0x7a6   :  { %7947 = vmatprep.subr.bf16.mxu0 %v7721_v56  ;;  %8119 = vmatprep.subr.bf16.mxu1 %v7723_v53  ;;  %v7769_v56 = vld [vmem:[#allocation3 + $0x568] sm:$0xff]  ;;  %v7771_v53 = vld [vmem:[#allocation3 + $0x578] sm:$0xff] }
 0x7a9   :  { %7948 = vmatpush1.bf16.msra.mxu0 %v7720_v44  ;;  %8120 = vmatpush1.bf16.msra.mxu1 %v7722_v40  ;;  %v7770_v44 = vld [vmem:[#allocation3 + $0x570] sm:$0xff]  ;;  %v7775_v40 = vld [vmem:[#allocation3 + $0x598] sm:$0xff] }
 0x7aa   :  { %7960 = vmatprep.subr.bf16.mxu0 %v7725_v34  ;;  %8132 = vmatprep.subr.bf16.mxu1 %v7727_v22  ;;  %v7772_v34 = vld [vmem:[#allocation3 + $0x580] sm:$0xff]  ;;  %v7774_v22 = vld [vmem:[#allocation3 + $0x590] sm:$0xff] }
 0x7ac   :  { %7950 = vmatmul.mubr.bf16.vlgmr.msra.gmra.mrb[20].mxu0 %v7590_v18  ;;  %8122 = vmatmul.mubr.bf16.vlgmr.msra.gmra.mrb[28].mxu1 %v7590_v18  ;;  %v7776_v18 = vld [vmem:[#allocation3 + $0x5a0] sm:$0xff] }
 0x7ad   :  { %7961 = vmatpush1.bf16.msra.mxu0 %v7724_v28  ;;  %8133 = vmatpush1.bf16.msra.mxu1 %v7726_v5  ;;  %v7778_v28 = vld [vmem:[#allocation3 + $0x5b0] sm:$0xff]  ;;  %v7781_v5 = vld [vmem:[#allocation3 + $0x5c8] sm:$0xff] }
 0x7ae   :  { %7962 = vmatprep.subr.bf16.mxu0 %v7729_v23  ;;  %8134 = vmatprep.subr.bf16.mxu1 %v7731_v39  ;;  %v7783_v23 = vld [vmem:[#allocation3 + $0x5d8] sm:$0xff]  ;;  %v7780_v39 = vld [vmem:[#allocation3 + $0x5c0] sm:$0xff] }
 0x7af   :  { %7992 = vmatprep.mubr.bf16.mxu0 %v7593_v19  ;;  %8164 = vmatprep.mubr.bf16.mxu1 %v7593_v19  ;;  %v7782_v19 = vld [vmem:[#allocation3 + $0x5d0] sm:$0xff] }
 0x7b1   :  { %7963 = vmatpush1.bf16.msra.mxu0 %v7728_v37  ;;  %8135 = vmatpush1.bf16.msra.mxu1 %v7730_v27  ;;  %v7785_v37 = vld [vmem:[#allocation3 + $0x5e8] sm:$0xff]  ;;  %v7787_v27 = vld [vmem:[#allocation3 + $0x5f8] sm:$0xff] }
 0x7b2   :  { %7964 = vmatprep.subr.bf16.mxu0 %v7733_v48  ;;  %8136 = vmatprep.subr.bf16.mxu1 %v7735_v7  ;;  %v7576_v48 = vmax.f32 %v11873_v36, 0.0  ;;  %v7584_v7 = vmax.f32 %v11881_v61, 0.0  ;;  %v7788_v36 = vld [vmem:[#allocation3 + $0x600] sm:$0xff]  ;;  %v7793_v61 = vld [vmem:[#allocation3 + $0x628] sm:$0xff] }
 0x7b5   :  { %7965 = vmatpush1.bf16.msra.mxu0 %v7732_v15  ;;  %8137 = vmatpush1.bf16.msra.mxu1 %v7734_v62  ;;  %v7784_v15 = vld [vmem:[#allocation3 + $0x5e0] sm:$0xff]  ;;  %v7786_v62 = vld [vmem:[#allocation3 + $0x5f0] sm:$0xff] }
 0x7b6   :  { %7966 = vmatprep.subr.bf16.mxu0 %v7737_v25  ;;  %8138 = vmatprep.subr.bf16.mxu1 %v7739_v31  ;;  %v7789_v25 = vld [vmem:[#allocation3 + $0x608] sm:$0xff]  ;;  %v7791_v31 = vld [vmem:[#allocation3 + $0x618] sm:$0xff] }
 0x7b9   :  { %7967 = vmatpush1.bf16.msra.mxu0 %v7736_v57  ;;  %8139 = vmatpush1.bf16.msra.mxu1 %v7738_v10  ;;  %v7579_v57 = vmax.f32 %v11879_v43, 0.0  ;;  %v7587_v10 = vmax.f32 %v11887_v13, 0.0  ;;  %v7794_v43 = vld [vmem:[#allocation3 + $0x630] sm:$0xff]  ;;  %v7799_v13 = vld [vmem:[#allocation3 + $0x658] sm:$0xff] }
 0x7ba   :  { %7968 = vmatprep.subr.bf16.mxu0 %v7741_v32  ;;  %8140 = vmatprep.subr.bf16.mxu1 %v7743_v45  ;;  %v7592_v32 = vpack.c.bf16 %v7584_v7, %v7576_v48  ;;  %v7790_v45 = vld [vmem:[#allocation3 + $0x610] sm:$0xff]  ;;  %v7836_v48 = vld [vmem:[#allocation3 + $0x780] sm:$0xff] }
 0x7bb   :  { %v7838_v7 = vld [vmem:[#allocation3 + $0x790] sm:$0xff] }
 0x7bd   :  { %7969 = vmatpush1.bf16.msra.mxu0 %v7740_v47  ;;  %8141 = vmatpush1.bf16.msra.mxu1 %v7742_v0  ;;  %v7795_v47 = vld [vmem:[#allocation3 + $0x638] sm:$0xff]  ;;  %v7595_v0 = vpack.c.bf16 %v7587_v10, %v7579_v57  ;;  %v7845_v57 = vld [vmem:[#allocation3 + $0x7c8] sm:$0xff] }
 0x7be   :  { %7970 = vmatprep.subr.bf16.mxu0 %v7745_v12  ;;  %8142 = vmatprep.subr.bf16.mxu1 %v7747_v41  ;;  %v7792_v12 = vld [vmem:[#allocation3 + $0x620] sm:$0xff]  ;;  %v7797_v41 = vld [vmem:[#allocation3 + $0x648] sm:$0xff]  ;;  %v7847_v10 = vld [vmem:[#allocation3 + $0x7d8] sm:$0xff] }
 0x7c1   :  { %7971 = vmatpush1.bf16.msra.mxu0 %v7744_v3  ;;  %8143 = vmatpush1.bf16.msra.mxu1 %v7746_v63  ;;  %v7796_v3 = vld [vmem:[#allocation3 + $0x640] sm:$0xff]  ;;  %v7798_v63 = vld [vmem:[#allocation3 + $0x650] sm:$0xff] }
 0x7c2   :  { %7972 = vmatprep.subr.bf16.mxu0 %v7749_v50  ;;  %8144 = vmatprep.subr.bf16.mxu1 %v7751_v4  ;;  %v7801_v50 = vld [vmem:[#allocation3 + $0x668] sm:$0xff]  ;;  %v7803_v4 = vld [vmem:[#allocation3 + $0x678] sm:$0xff] }
 0x7c5   :  { %7973 = vmatpush1.bf16.msra.mxu0 %v7748_v55  ;;  %8145 = vmatpush1.bf16.msra.mxu1 %v7750_v54  ;;  %v7800_v55 = vld [vmem:[#allocation3 + $0x660] sm:$0xff]  ;;  %v7802_v54 = vld [vmem:[#allocation3 + $0x670] sm:$0xff] }
 0x7c6   :  { %7974 = vmatprep.subr.bf16.mxu0 %v7753_v60  ;;  %8146 = vmatprep.subr.bf16.mxu1 %v7755_v59  ;;  %v7805_v60 = vld [vmem:[#allocation3 + $0x688] sm:$0xff]  ;;  %v7807_v59 = vld [vmem:[#allocation3 + $0x698] sm:$0xff] }
 0x7c9   :  { %7975 = vmatpush1.bf16.msra.mxu0 %v7752_v9  ;;  %8147 = vmatpush1.bf16.msra.mxu1 %v7754_v51  ;;  %v7804_v9 = vld [vmem:[#allocation3 + $0x680] sm:$0xff]  ;;  %v7806_v51 = vld [vmem:[#allocation3 + $0x690] sm:$0xff] }
 0x7ca   :  { %7976 = vmatprep.subr.bf16.mxu0 %v7757_v14  ;;  %8148 = vmatprep.subr.bf16.mxu1 %v7759_v8  ;;  %v7809_v14 = vld [vmem:[#allocation3 + $0x6a8] sm:$0xff]  ;;  %v7811_v8 = vld [vmem:[#allocation3 + $0x6b8] sm:$0xff] }
 0x7cd   :  { %7977 = vmatpush1.bf16.msra.mxu0 %v7756_v16  ;;  %8149 = vmatpush1.bf16.msra.mxu1 %v7758_v1  ;;  %v7808_v16 = vld [vmem:[#allocation3 + $0x6a0] sm:$0xff]  ;;  %v7810_v1 = vld [vmem:[#allocation3 + $0x6b0] sm:$0xff] }
 0x7ce   :  { %7978 = vmatprep.subr.bf16.mxu0 %v7761_v17  ;;  %8150 = vmatprep.subr.bf16.mxu1 %v7763_v35  ;;  %v7813_v17 = vld [vmem:[#allocation3 + $0x6c8] sm:$0xff]  ;;  %v7815_v35 = vld [vmem:[#allocation3 + $0x6d8] sm:$0xff] }
 0x7d1   :  { %7979 = vmatpush1.bf16.msra.mxu0 %v7760_v38  ;;  %8151 = vmatpush1.bf16.msra.mxu1 %v7762_v20  ;;  %v7812_v38 = vld [vmem:[#allocation3 + $0x6c0] sm:$0xff]  ;;  %v7814_v20 = vld [vmem:[#allocation3 + $0x6d0] sm:$0xff] }
 0x7d2   :  { %7980 = vmatprep.subr.bf16.mxu0 %v7765_v30  ;;  %8152 = vmatprep.subr.bf16.mxu1 %v7767_v52  ;;  %v7817_v30 = vld [vmem:[#allocation3 + $0x6e8] sm:$0xff]  ;;  %v7819_v52 = vld [vmem:[#allocation3 + $0x6f8] sm:$0xff] }
 0x7d5   :  { %7981 = vmatpush1.bf16.msra.mxu0 %v7764_v33  ;;  %8153 = vmatpush1.bf16.msra.mxu1 %v7766_v49  ;;  %v7816_v33 = vld [vmem:[#allocation3 + $0x6e0] sm:$0xff]  ;;  %v7818_v49 = vld [vmem:[#allocation3 + $0x6f0] sm:$0xff] }
 0x7d6   :  { %7982 = vmatprep.subr.bf16.mxu0 %v7769_v56  ;;  %8154 = vmatprep.subr.bf16.mxu1 %v7771_v53  ;;  %v7821_v56 = vld [vmem:[#allocation3 + $0x708] sm:$0xff]  ;;  %v7823_v53 = vld [vmem:[#allocation3 + $0x718] sm:$0xff] }
 0x7d9   :  { %7983 = vmatpush1.bf16.msra.mxu0 %v7768_v58  ;;  %8155 = vmatpush1.bf16.msra.mxu1 %v7770_v44  ;;  %v7820_v58 = vld [vmem:[#allocation3 + $0x700] sm:$0xff]  ;;  %v7822_v44 = vld [vmem:[#allocation3 + $0x710] sm:$0xff] }
 0x7da   :  { %7984 = vmatprep.subr.bf16.mxu0 %v7773_v26  ;;  %8156 = vmatprep.subr.bf16.mxu1 %v7775_v40  ;;  %v7825_v26 = vld [vmem:[#allocation3 + $0x728] sm:$0xff]  ;;  %v7827_v40 = vld [vmem:[#allocation3 + $0x738] sm:$0xff] }
 0x7dd   :  { %7985 = vmatpush1.bf16.msra.mxu0 %v7772_v34  ;;  %8157 = vmatpush1.bf16.msra.mxu1 %v7774_v22  ;;  %v7824_v34 = vld [vmem:[#allocation3 + $0x720] sm:$0xff]  ;;  %v7826_v22 = vld [vmem:[#allocation3 + $0x730] sm:$0xff] }
 0x7de   :  { %7986 = vmatprep.subr.bf16.mxu0 %v7777_v21  ;;  %8158 = vmatprep.subr.bf16.mxu1 %v7779_v29  ;;  %v7829_v21 = vld [vmem:[#allocation3 + $0x748] sm:$0xff]  ;;  %v7831_v29 = vld [vmem:[#allocation3 + $0x758] sm:$0xff] }
 0x7e1   :  { %7987 = vmatpush1.bf16.msra.mxu0 %v7776_v18  ;;  %8159 = vmatpush1.bf16.msra.mxu1 %v7778_v28  ;;  %v7828_v18 = vld [vmem:[#allocation3 + $0x740] sm:$0xff]  ;;  %v7830_v28 = vld [vmem:[#allocation3 + $0x750] sm:$0xff] }
 0x7e2   :  { %7988 = vmatprep.subr.bf16.mxu0 %v7781_v5  ;;  %8160 = vmatprep.subr.bf16.mxu1 %v7783_v23  ;;  %v7833_v5 = vld [vmem:[#allocation3 + $0x768] sm:$0xff]  ;;  %v7835_v23 = vld [vmem:[#allocation3 + $0x778] sm:$0xff] }
 0x7e5   :  { %7989 = vmatpush1.bf16.msra.mxu0 %v7780_v39  ;;  %8161 = vmatpush1.bf16.msra.mxu1 %v7782_v19  ;;  %v7832_v39 = vld [vmem:[#allocation3 + $0x760] sm:$0xff]  ;;  %v7834_v19 = vld [vmem:[#allocation3 + $0x770] sm:$0xff] }
 0x7e6   :  { %7990 = vmatprep.subr.bf16.mxu0 %v7785_v37  ;;  %8162 = vmatprep.subr.bf16.mxu1 %v7787_v27  ;;  %v7837_v37 = vld [vmem:[#allocation3 + $0x788] sm:$0xff]  ;;  %v7839_v27 = vld [vmem:[#allocation3 + $0x798] sm:$0xff] }
 0x7e9   :  { %7991 = vmatpush1.bf16.msra.mxu0 %v7784_v15  ;;  %8163 = vmatpush1.bf16.msra.mxu1 %v7786_v62  ;;  %v7841_v15 = vld [vmem:[#allocation3 + $0x7a8] sm:$0xff]  ;;  %v7843_v62 = vld [vmem:[#allocation3 + $0x7b8] sm:$0xff] }
 0x7ea   :  { %8003 = vmatprep.subr.bf16.mxu0 %v7789_v25  ;;  %8175 = vmatprep.subr.bf16.mxu1 %v7791_v31  ;;  %v7840_v25 = vld [vmem:[#allocation3 + $0x7a0] sm:$0xff]  ;;  %v7842_v31 = vld [vmem:[#allocation3 + $0x7b0] sm:$0xff] }
 0x7ec   :  { %7993 = vmatmul.mubr.bf16.vlgmr.msra.gmra.mrb[20].mxu0 %v7592_v32  ;;  %8165 = vmatmul.mubr.bf16.vlgmr.msra.gmra.mrb[28].mxu1 %v7592_v32  ;;  %v7844_v32 = vld [vmem:[#allocation3 + $0x7c0] sm:$0xff] }
 0x7ed   :  { %8004 = vmatpush1.bf16.msra.mxu0 %v7788_v36  ;;  %8176 = vmatpush1.bf16.msra.mxu1 %v7790_v45  ;;  %v7846_v36 = vld [vmem:[#allocation3 + $0x7d0] sm:$0xff]  ;;  %v7849_v45 = vld [vmem:[#allocation3 + $0x7e8] sm:$0xff] }
 0x7ee   :  { %8005 = vmatprep.subr.bf16.mxu0 %v7793_v61  ;;  %8177 = vmatprep.subr.bf16.mxu1 %v7795_v47  ;;  %v7851_v61 = vld [vmem:[#allocation3 + $0x7f8] sm:$0xff]  ;;  %v7578_v47 = vmax.f32 %v11875_v6, 0.0 }
 0x7ef   :  { %8035 = vmatprep.mubr.bf16.mxu0 %v7595_v0  ;;  %8207 = vmatprep.mubr.bf16.mxu1 %v7595_v0  ;;  %v7586_v0 = vmax.f32 %v11883_v2, 0.0  ;;  %v9840_v6 = vld [vmem:[%s12262_s4 + $0x14] ss:$8 sps:$4 sm:$0xff]   ;;  %v9838_v2 = vld [vmem:[%s12262_s4 + $0x10] ss:$8 sps:$4 sm:$0xff]  }
 0x7f1   :  { %8006 = vmatpush1.bf16.msra.mxu0 %v7792_v12  ;;  %8178 = vmatpush1.bf16.msra.mxu1 %v7794_v43  ;;  %v7848_v12 = vld [vmem:[#allocation3 + $0x7e0] sm:$0xff]  ;;  %v7850_v43 = vld [vmem:[#allocation3 + $0x7f0] sm:$0xff] }
 0x7f2   :  { %8007 = vmatprep.subr.bf16.mxu0 %v7797_v41  ;;  %8179 = vmatprep.subr.bf16.mxu1 %v7799_v13  ;;  %v9837_v41 = vld [vmem:[%s12262_s4 + $0x4] ss:$8 sps:$4 sm:$0xff]   ;;  %v7594_v13 = vpack.c.bf16 %v7586_v0, %v7578_v47 }
 0x7f5   :  { %8008 = vmatpush1.bf16.msra.mxu0 %v7796_v3  ;;  %8180 = vmatpush1.bf16.msra.mxu1 %v7798_v63  ;;  %v9835_v3 = vld [vmem:[%s12262_s4] ss:$8 sps:$4 sm:$0xff]   ;;  %v9843_v63 = vld [vmem:[%s12262_s4 + $0x24] ss:$8 sps:$4 sm:$0xff]  }
 0x7f6   :  { %8009 = vmatprep.subr.bf16.mxu0 %v7801_v50  ;;  %8181 = vmatprep.subr.bf16.mxu1 %v7803_v4  ;;  %v9841_v50 = vld [vmem:[%s12262_s4 + $0x20] ss:$8 sps:$4 sm:$0xff]   ;;  %v9846_v4 = vld [vmem:[%s12262_s4 + $0x34] ss:$8 sps:$4 sm:$0xff]  }
 0x7f9   :  { %8010 = vmatpush1.bf16.msra.mxu0 %v7800_v55  ;;  %8182 = vmatpush1.bf16.msra.mxu1 %v7802_v54  ;;  %v9844_v55 = vld [vmem:[%s12262_s4 + $0x30] ss:$8 sps:$4 sm:$0xff]   ;;  %v9849_v54 = vld [vmem:[%s12262_s4 + $0x44] ss:$8 sps:$4 sm:$0xff]  }
 0x7fa   :  { %8011 = vmatprep.subr.bf16.mxu0 %v7805_v60  ;;  %8183 = vmatprep.subr.bf16.mxu1 %v7807_v59  ;;  %v9847_v60 = vld [vmem:[%s12262_s4 + $0x40] ss:$8 sps:$4 sm:$0xff]   ;;  %v9852_v59 = vld [vmem:[%s12262_s4 + $0x54] ss:$8 sps:$4 sm:$0xff]  }
 0x7fd   :  { %8012 = vmatpush1.bf16.msra.mxu0 %v7804_v9  ;;  %8184 = vmatpush1.bf16.msra.mxu1 %v7806_v51  ;;  %v9850_v9 = vld [vmem:[%s12262_s4 + $0x50] ss:$8 sps:$4 sm:$0xff]   ;;  %v9855_v51 = vld [vmem:[%s12262_s4 + $0x64] ss:$8 sps:$4 sm:$0xff]  }
 0x7fe   :  { %8013 = vmatprep.subr.bf16.mxu0 %v7809_v14  ;;  %8185 = vmatprep.subr.bf16.mxu1 %v7811_v8  ;;  %v9853_v14 = vld [vmem:[%s12262_s4 + $0x60] ss:$8 sps:$4 sm:$0xff]   ;;  %v9858_v8 = vld [vmem:[%s12262_s4 + $0x74] ss:$8 sps:$4 sm:$0xff]  }
 0x801   :  { %8014 = vmatpush1.bf16.msra.mxu0 %v7808_v16  ;;  %8186 = vmatpush1.bf16.msra.mxu1 %v7810_v1  ;;  %v9856_v16 = vld [vmem:[%s12262_s4 + $0x70] ss:$8 sps:$4 sm:$0xff]   ;;  %v9861_v1 = vld [vmem:[%s12262_s4 + $0x84] ss:$8 sps:$4 sm:$0xff]  }
 0x802   :  { %8015 = vmatprep.subr.bf16.mxu0 %v7813_v17  ;;  %8187 = vmatprep.subr.bf16.mxu1 %v7815_v35  ;;  %v9859_v17 = vld [vmem:[%s12262_s4 + $0x80] ss:$8 sps:$4 sm:$0xff]   ;;  %v9864_v35 = vld [vmem:[%s12262_s4 + $0x94] ss:$8 sps:$4 sm:$0xff]  }
 0x805   :  { %8016 = vmatpush1.bf16.msra.mxu0 %v7812_v38  ;;  %8188 = vmatpush1.bf16.msra.mxu1 %v7814_v20  ;;  %v9862_v38 = vld [vmem:[%s12262_s4 + $0x90] ss:$8 sps:$4 sm:$0xff]   ;;  %v9867_v20 = vld [vmem:[%s12262_s4 + $0xa4] ss:$8 sps:$4 sm:$0xff]  }
 0x806   :  { %8017 = vmatprep.subr.bf16.mxu0 %v7817_v30  ;;  %8189 = vmatprep.subr.bf16.mxu1 %v7819_v52  ;;  %v9865_v30 = vld [vmem:[%s12262_s4 + $0xa0] ss:$8 sps:$4 sm:$0xff]   ;;  %v9870_v52 = vld [vmem:[%s12262_s4 + $0xb4] ss:$8 sps:$4 sm:$0xff]  }
 0x809   :  { %8018 = vmatpush1.bf16.msra.mxu0 %v7816_v33  ;;  %8190 = vmatpush1.bf16.msra.mxu1 %v7818_v49  ;;  %v9868_v33 = vld [vmem:[%s12262_s4 + $0xb0] ss:$8 sps:$4 sm:$0xff]   ;;  %v9873_v49 = vld [vmem:[%s12262_s4 + $0xc4] ss:$8 sps:$4 sm:$0xff]  }
 0x80a   :  { %8019 = vmatprep.subr.bf16.mxu0 %v7821_v56  ;;  %8191 = vmatprep.subr.bf16.mxu1 %v7823_v53  ;;  %v9871_v56 = vld [vmem:[%s12262_s4 + $0xc0] ss:$8 sps:$4 sm:$0xff]   ;;  %v9876_v53 = vld [vmem:[%s12262_s4 + $0xd4] ss:$8 sps:$4 sm:$0xff]  }
 0x80d   :  { %8020 = vmatpush1.bf16.msra.mxu0 %v7820_v58  ;;  %8192 = vmatpush1.bf16.msra.mxu1 %v7822_v44  ;;  %v9874_v58 = vld [vmem:[%s12262_s4 + $0xd0] ss:$8 sps:$4 sm:$0xff]   ;;  %v9879_v44 = vld [vmem:[%s12262_s4 + $0xe4] ss:$8 sps:$4 sm:$0xff]  }
 0x80e   :  { %8021 = vmatprep.subr.bf16.mxu0 %v7825_v26  ;;  %8193 = vmatprep.subr.bf16.mxu1 %v7827_v40  ;;  %v9877_v26 = vld [vmem:[%s12262_s4 + $0xe0] ss:$8 sps:$4 sm:$0xff]   ;;  %v9882_v40 = vld [vmem:[%s12262_s4 + $0xf4] ss:$8 sps:$4 sm:$0xff]  }
 0x811   :  { %8022 = vmatpush1.bf16.msra.mxu0 %v7824_v34  ;;  %8194 = vmatpush1.bf16.msra.mxu1 %v7826_v22  ;;  %v9880_v34 = vld [vmem:[%s12262_s4 + $0xf0] ss:$8 sps:$4 sm:$0xff]   ;;  %v9885_v22 = vld [vmem:[%s12262_s4 + $0x104] ss:$8 sps:$4 sm:$0xff]  }
 0x812   :  { %8023 = vmatprep.subr.bf16.mxu0 %v7829_v21  ;;  %8195 = vmatprep.subr.bf16.mxu1 %v7831_v29  ;;  %v9931_v21 = vld [vmem:[%s12263_s5 + $0x40] sm:$0xff]  }
 0x813   :  { %v9932_v29 = vld [vmem:[%s12263_s5] sm:$0xff]  }
 0x815   :  { %8024 = vmatpush1.bf16.msra.mxu0 %v7828_v18  ;;  %8196 = vmatpush1.bf16.msra.mxu1 %v7830_v28  ;;  %v9933_v18 = vld [vmem:[%s12263_s5 + $0x48] sm:$0xff]  }
 0x816   :  { %8025 = vmatprep.subr.bf16.mxu0 %v7833_v5  ;;  %8197 = vmatprep.subr.bf16.mxu1 %v7835_v23  ;;  %v9934_v28 = vld [vmem:[%s12263_s5 + $0x8] sm:$0xff]   ;;  %v9935_v5 = vld [vmem:[%s12263_s5 + $0x50] sm:$0xff]  }
 0x817   :  { %v9936_v23 = vld [vmem:[%s12263_s5 + $0x10] sm:$0xff]  }
 0x819   :  { %8026 = vmatpush1.bf16.msra.mxu0 %v7832_v39  ;;  %8198 = vmatpush1.bf16.msra.mxu1 %v7834_v19  ;;  %v9937_v39 = vld [vmem:[%s12263_s5 + $0x58] sm:$0xff]  }
 0x81a   :  { %8027 = vmatprep.subr.bf16.mxu0 %v7837_v37  ;;  %8199 = vmatprep.subr.bf16.mxu1 %v7839_v27  ;;  %v9938_v19 = vld [vmem:[%s12263_s5 + $0x18] sm:$0xff]   ;;  %v9939_v37 = vld [vmem:[%s12263_s5 + $0x60] sm:$0xff]  }
 0x81b   :  { %v9940_v27 = vld [vmem:[%s12263_s5 + $0x20] sm:$0xff]  }
 0x81d   :  { %8028 = vmatpush1.bf16.msra.mxu0 %v7836_v48  ;;  %8200 = vmatpush1.bf16.msra.mxu1 %v7838_v7  ;;  %v9941_v48 = vld [vmem:[%s12263_s5 + $0x68] sm:$0xff]   ;;  %v7852_v7 = vld [vmem:[%s12269_s11 + $0x18] sm:$0xf] }
 0x81e   :  { %8029 = vmatprep.subr.bf16.mxu0 %v7841_v15  ;;  %8201 = vmatprep.subr.bf16.mxu1 %v7843_v62  ;;  %v7857_v15 = vrot.slane %v7852_v7, %v11613_v11  ;;  %v7865_v62 = vrot.slane %v7852_v7, %v11640_v42 }
 0x821   :  { %8030 = vmatpush1.bf16.msra.mxu0 %v7840_v25  ;;  %8202 = vmatpush1.bf16.msra.mxu1 %v7842_v31  ;;  %v7861_v25 = vrot.slane %v7852_v7, %v11618_v24  ;;  %v7869_v31 = vrot.slane %v7852_v7, %v11644_v46  ;;  %v9930_v7 = vld [vmem:[%s12262_s4 + $0x1f4] ss:$8 sps:$4 sm:$0xff]  }
 0x822   :  { %8031 = vmatprep.subr.bf16.mxu0 %v7845_v57  ;;  %8203 = vmatprep.subr.bf16.mxu1 %v7847_v10 }
 0x825   :  { %8032 = vmatpush1.bf16.msra.mxu0 %v7844_v32  ;;  %8204 = vmatpush1.bf16.msra.mxu1 %v7846_v36 }
 0x826   :  { %8033 = vmatprep.subr.bf16.mxu0 %v7849_v45  ;;  %8205 = vmatprep.subr.bf16.mxu1 %v7851_v61 }
 0x829   :  { %8034 = vmatpush1.bf16.msra.mxu0 %v7848_v12  ;;  %8206 = vmatpush1.bf16.msra.mxu1 %v7850_v43 }
 0x82a   :  { %8626 = vmatprep.subr.bf16.mxu0 %v9837_v41  ;;  %9541 = vmatprep.subr.bf16.mxu1 %v9931_v21  ;;  %v9910_v21 = vld [vmem:[%s12262_s4 + $0x190] ss:$8 sps:$4 sm:$0xff]  }
 0x82c   :  { %8036 = vmatmul.mubr.bf16.vlgmr.msra.gmra.mrb[20].mxu0 %v7594_v13  ;;  %8208 = vmatmul.mubr.bf16.vlgmr.msra.gmra.mrb[28].mxu1 %v7594_v13 }
 0x82d   :  { %8627 = vmatpush1.bf16.msra.mxu0 %v9835_v3  ;;  %9542 = vmatpush3.bf16.msra.mxu1 %v9932_v29  ;;  %v9915_v29 = vld [vmem:[%s12262_s4 + $0x1a4] ss:$8 sps:$4 sm:$0xff]  }
 0x82e   :  { %8628 = vmatprep.subr.bf16.mxu0 %v9840_v6  ;;  %9543 = vmatprep.subr.bf16.mxu1 %v9933_v18  ;;  %v9913_v18 = vld [vmem:[%s12262_s4 + $0x1a0] ss:$8 sps:$4 sm:$0xff]  }
 0x831   :  { %8629 = vmatpush1.bf16.msra.mxu0 %v9838_v2  ;;  %9544 = vmatpush3.bf16.msra.mxu1 %v9934_v28  ;;  %v9918_v28 = vld [vmem:[%s12262_s4 + $0x1b4] ss:$8 sps:$4 sm:$0xff]  }
 0x832   :  { %8630 = vmatprep.subr.bf16.mxu0 %v9843_v63  ;;  %9545 = vmatprep.subr.bf16.mxu1 %v9935_v5  ;;  %v9916_v5 = vld [vmem:[%s12262_s4 + $0x1b0] ss:$8 sps:$4 sm:$0xff]  }
 0x835   :  { %8631 = vmatpush1.bf16.msra.mxu0 %v9841_v50  ;;  %9546 = vmatpush3.bf16.msra.mxu1 %v9936_v23  ;;  %v9921_v23 = vld [vmem:[%s12262_s4 + $0x1c4] ss:$8 sps:$4 sm:$0xff]  }
 0x836   :  { %8632 = vmatprep.subr.bf16.mxu0 %v9846_v4  ;;  %9547 = vmatprep.subr.bf16.mxu1 %v9937_v39  ;;  %v9919_v39 = vld [vmem:[%s12262_s4 + $0x1c0] ss:$8 sps:$4 sm:$0xff]  }
 0x839   :  { %8633 = vmatpush1.bf16.msra.mxu0 %v9844_v55  ;;  %9548 = vmatpush3.bf16.msra.mxu1 %v9938_v19  ;;  %v9924_v19 = vld [vmem:[%s12262_s4 + $0x1d4] ss:$8 sps:$4 sm:$0xff]  }
 0x83a   :  { %8634 = vmatprep.subr.bf16.mxu0 %v9849_v54  ;;  %9549 = vmatprep.subr.bf16.mxu1 %v9939_v37  ;;  %v9922_v37 = vld [vmem:[%s12262_s4 + $0x1d0] ss:$8 sps:$4 sm:$0xff]  }
 0x83d   :  { %8635 = vmatpush1.bf16.msra.mxu0 %v9847_v60  ;;  %9550 = vmatpush3.bf16.msra.mxu1 %v9940_v27  ;;  %v9927_v27 = vld [vmem:[%s12262_s4 + $0x1e4] ss:$8 sps:$4 sm:$0xff]  }
 0x83e   :  { %8636 = vmatprep.subr.bf16.mxu0 %v9852_v59  ;;  %9551 = vmatprep.subr.bf16.mxu1 %v9941_v48  ;;  %v9925_v48 = vld [vmem:[%s12262_s4 + $0x1e0] ss:$8 sps:$4 sm:$0xff]  }
 0x841   :  { %8637 = vmatpush1.bf16.msra.mxu0 %v9850_v9 }
 0x842   :  { %8638 = vmatprep.subr.bf16.mxu0 %v9855_v51 }
 0x845   :  { %8639 = vmatpush1.bf16.msra.mxu0 %v9853_v14 }
 0x846   :  { %8640 = vmatprep.subr.bf16.mxu0 %v9858_v8 }
 0x849   :  { %8641 = vmatpush1.bf16.msra.mxu0 %v9856_v16  ;;  %v9883_v16 = vld [vmem:[%s12262_s4 + $0x100] ss:$8 sps:$4 sm:$0xff]  }
 0x84a   :  { %8642 = vmatprep.subr.bf16.mxu0 %v9861_v1  ;;  %v9888_v1 = vld [vmem:[%s12262_s4 + $0x114] ss:$8 sps:$4 sm:$0xff]  }
 0x84d   :  { %8643 = vmatpush1.bf16.msra.mxu0 %v9859_v17  ;;  %v9886_v17 = vld [vmem:[%s12262_s4 + $0x110] ss:$8 sps:$4 sm:$0xff]  }
 0x84e   :  { %8644 = vmatprep.subr.bf16.mxu0 %v9864_v35  ;;  %v9891_v35 = vld [vmem:[%s12262_s4 + $0x124] ss:$8 sps:$4 sm:$0xff]  }
 0x851   :  { %8645 = vmatpush1.bf16.msra.mxu0 %v9862_v38  ;;  %v9889_v38 = vld [vmem:[%s12262_s4 + $0x120] ss:$8 sps:$4 sm:$0xff]  }
 0x852   :  { %8646 = vmatprep.subr.bf16.mxu0 %v9867_v20  ;;  %v9894_v20 = vld [vmem:[%s12262_s4 + $0x134] ss:$8 sps:$4 sm:$0xff]  }
 0x855   :  { %8647 = vmatpush1.bf16.msra.mxu0 %v9865_v30  ;;  %v9892_v30 = vld [vmem:[%s12262_s4 + $0x130] ss:$8 sps:$4 sm:$0xff]  }
 0x856   :  { %8648 = vmatprep.subr.bf16.mxu0 %v9870_v52  ;;  %v9897_v52 = vld [vmem:[%s12262_s4 + $0x144] ss:$8 sps:$4 sm:$0xff]  }
 0x859   :  { %8649 = vmatpush1.bf16.msra.mxu0 %v9868_v33  ;;  %v9895_v33 = vld [vmem:[%s12262_s4 + $0x140] ss:$8 sps:$4 sm:$0xff]  }
 0x85a   :  { %8650 = vmatprep.subr.bf16.mxu0 %v9873_v49  ;;  %v9900_v49 = vld [vmem:[%s12262_s4 + $0x154] ss:$8 sps:$4 sm:$0xff]  }
 0x85d   :  { %8651 = vmatpush1.bf16.msra.mxu0 %v9871_v56  ;;  %v9898_v56 = vld [vmem:[%s12262_s4 + $0x150] ss:$8 sps:$4 sm:$0xff]  }
 0x85e   :  { %8652 = vmatprep.subr.bf16.mxu0 %v9876_v53  ;;  %v9903_v53 = vld [vmem:[%s12262_s4 + $0x164] ss:$8 sps:$4 sm:$0xff]  }
 0x861   :  { %8653 = vmatpush1.bf16.msra.mxu0 %v9874_v58  ;;  %v9901_v58 = vld [vmem:[%s12262_s4 + $0x160] ss:$8 sps:$4 sm:$0xff]  }
 0x862   :  { %8654 = vmatprep.subr.bf16.mxu0 %v9879_v44  ;;  %v9906_v44 = vld [vmem:[%s12262_s4 + $0x174] ss:$8 sps:$4 sm:$0xff]  }
 0x865   :  { %8655 = vmatpush1.bf16.msra.mxu0 %v9877_v26  ;;  %v9904_v26 = vld [vmem:[%s12262_s4 + $0x170] ss:$8 sps:$4 sm:$0xff]  }
 0x866   :  { %8656 = vmatprep.subr.bf16.mxu0 %v9882_v40  ;;  %v9909_v40 = vld [vmem:[%s12262_s4 + $0x184] ss:$8 sps:$4 sm:$0xff]  }
 0x869   :  { %8657 = vmatpush1.bf16.msra.mxu0 %v9880_v34  ;;  %v9907_v34 = vld [vmem:[%s12262_s4 + $0x180] ss:$8 sps:$4 sm:$0xff]  }
 0x86a   :  { %8669 = vmatprep.subr.bf16.mxu0 %v9885_v22  ;;  %v9912_v22 = vld [vmem:[%s12262_s4 + $0x194] ss:$8 sps:$4 sm:$0xff]  }
 0x8ff   :  { %v8037_v57 = vpop.f32.mrb[20].mxu0  ;;  %v8209_v10 = vpop.f32.mrb[28].mxu1 }
 0x900   :  { %v9652_v32 = vadd.f32 %v8037_v57, %v7857_v15  ;;  %v9656_v36 = vadd.f32 %v8209_v10, %v7865_v62  ;;  %v8039_v45 = vpop.f32.mrb[21].mxu0  ;;  %v8211_v61 = vpop.f32.mrb[29].mxu1  ;;  %v9945_v57 = vld [vmem:[%s12263_s5 + $0x78] sm:$0xff]  }
 0x901   :  { %v9653_v47 = vadd.f32 %v8039_v45, %v7861_v25  ;;  %v9657_v0 = vadd.f32 %v8211_v61, %v7869_v31  ;;  %v8041_v12 = vpop.f32.mrb[22].mxu0  ;;  %v8213_v43 = vpop.f32.mrb[30].mxu1  ;;  %v9946_v10 = vld [vmem:[%s12263_s5 + $0x38] sm:$0xff]  }
 0x902   :  { %v9654_v41 = vadd.f32 %v8041_v12, %v7857_v15  ;;  %v9658_v13 = vadd.f32 %v8213_v43, %v7865_v62  ;;  %v8043_v3 = vpop.f32.mrb[23].mxu0  ;;  %v8215_v6 = vpop.f32.mrb[31].mxu1  ;;  %v8218_v63 = vmax.f32 %v9652_v32, 0.0  ;;  %v8220_v50 = vmax.f32 %v9656_v36, 0.0  ;;  %v9928_v15 = vld [vmem:[%s12262_s4 + $0x1f0] ss:$8 sps:$4 sm:$0xff]  }
 0x903   :  { %v9655_v2 = vadd.f32 %v8043_v3, %v7861_v25  ;;  %v9659_v42 = vadd.f32 %v8215_v6, %v7869_v31  ;;  %v8219_v55 = vmax.f32 %v9653_v47, 0.0  ;;  %v8221_v54 = vmax.f32 %v9657_v0, 0.0  ;;  %v9942_v62 = vld [vmem:[%s12263_s5 + $0x28] sm:$0xff]   ;;  %v9943_v25 = vld [vmem:[%s12263_s5 + $0x70] sm:$0xff]   ;;  %v8294_v36 = vld [vmem:[%s12269_s11 + $0x1c] sm:$0x3] }
 0x904   :  { %v8222_v4 = vmax.f32 %v9654_v41, 0.0  ;;  %v8224_v46 = vmax.f32 %v9658_v13, 0.0  ;;  %9552 = vmatpush3.bf16.msra.mxu1 %v9942_v62  ;;  %v9944_v31 = vld [vmem:[%s12263_s5 + $0x30] sm:$0xff]   ;;  %v9978_v32 = vmov 0.0   ;;  %v8299_v45 = vrot.slane %v8294_v36, %v11613_v11  ;;  %v9947_v11 = vld [vmem:[%s12264_s6] sm:$0xff]  }
 0x905   :  { %v8223_v60 = vmax.f32 %v9655_v2, 0.0  ;;  %v8225_v59 = vmax.f32 %v9659_v42, 0.0  ;;  %9553 = vmatprep.subr.bf16.mxu1 %v9943_v25  ;;  %v8303_v61 = vrot.slane %v8294_v36, %v11618_v24  ;;  %v9948_v24 = vld [vmem:[%s12264_s6 + $0x8] sm:$0xff]   ;;  %v9961_v36 = vld [vmem:[%s12267_s9] sm:$0xff]  }
 0x906   :  { %v8226_v9 = vpack.c.bf16 %v8222_v4, %v8218_v63  ;;  %v12044_v51 = vpack.c.bf16 %v8224_v46, %v8220_v50 }
 0x907   :  { %v8227_v14 = vpack.c.bf16 %v8223_v60, %v8219_v55  ;;  %v8229_v8 = vpack.c.bf16 %v8225_v59, %v8221_v54  ;;  %v9949_v55 = vld [vmem:[%s12264_s6 + $0x10] sm:$0xff]   ;;  %v9950_v54 = vld [vmem:[%s12264_s6 + $0x18] sm:$0xff]   ;;  %v9951_v60 = vld [vmem:[%s12264_s6 + $0x20] sm:$0xff]  }
 0x908   :  { %9554 = vmatpush3.bf16.msra.mxu1 %v9944_v31  ;;  %v9952_v59 = vld [vmem:[%s12264_s6 + $0x28] sm:$0xff]  }
 0x909   :  { %8658 = vmatprep.mubr.bf16.mxu0 %v8227_v14  ;;  %9555 = vmatprep.subr.bf16.mxu1 %v9945_v57 }
 0x90a   :  { %8659 = vmatmul.mubr.bf16.vlgmr.msra.gmra.mrb[24].mxu0 %v8226_v9  ;;  %v9953_v9 = vld [vmem:[%s12264_s6 + $0x30] sm:$0xff]  }
 0x90b   :  { %8670 = vmatpush1.bf16.msra.mxu0 %v9883_v16  ;;  %8701 = vmatprep.mubr.bf16.mxu0 %v8229_v8  ;;  %v9498_v8 = vld [vmem:[%s12269_s11 + $0x1e] ss:$0 sm:$0xff] }
 0x90c   :  { %8671 = vmatprep.subr.bf16.mxu0 %v9888_v1  ;;  %9556 = vmatpush3.bf16.msra.mxu1 %v9946_v10 }
 0x90d   :  { %9584 = vmatprep.subr.bf16.mxu1 %v9978_v32 }
 0x90f   :  { %8672 = vmatpush1.bf16.msra.mxu0 %v9886_v17 }
 0x910   :  { %8673 = vmatprep.subr.bf16.mxu0 %v9891_v35 }
 0x913   :  { %8674 = vmatpush1.bf16.msra.mxu0 %v9889_v38 }
 0x914   :  { %8675 = vmatprep.subr.bf16.mxu0 %v9894_v20 }
 0x917   :  { %8676 = vmatpush1.bf16.msra.mxu0 %v9892_v30 }
 0x918   :  { %8677 = vmatprep.subr.bf16.mxu0 %v9897_v52 }
 0x91b   :  { %8678 = vmatpush1.bf16.msra.mxu0 %v9895_v33 }
 0x91c   :  { %8679 = vmatprep.subr.bf16.mxu0 %v9900_v49  ;;  %v9955_v49 = vld [vmem:[%s12265_s7] sm:$0xff]  }
 0x91f   :  { %8680 = vmatpush1.bf16.msra.mxu0 %v9898_v56 }
 0x920   :  { %8681 = vmatprep.subr.bf16.mxu0 %v9903_v53  ;;  %v9956_v53 = vld [vmem:[%s12265_s7 + $0x8] sm:$0xff]  }
 0x923   :  { %8682 = vmatpush1.bf16.msra.mxu0 %v9901_v58  ;;  %v9957_v58 = vld [vmem:[%s12265_s7 + $0x10] sm:$0xff]  }
 0x924   :  { %8683 = vmatprep.subr.bf16.mxu0 %v9906_v44  ;;  %v9958_v44 = vld [vmem:[%s12265_s7 + $0x18] sm:$0xff]  }
 0x927   :  { %8684 = vmatpush1.bf16.msra.mxu0 %v9904_v26  ;;  %v9515_v26 = vld [vmem:[%s12269_s11 + $0x1f] ss:$0 sm:$0xff] }
 0x928   :  { %8685 = vmatprep.subr.bf16.mxu0 %v9909_v40 }
 0x92b   :  { %8686 = vmatpush1.bf16.msra.mxu0 %v9907_v34 }
 0x92c   :  { %8687 = vmatprep.subr.bf16.mxu0 %v9912_v22 }
 0x92f   :  { %8688 = vmatpush1.bf16.msra.mxu0 %v9910_v21 }
 0x930   :  { %8689 = vmatprep.subr.bf16.mxu0 %v9915_v29 }
 0x933   :  { %8690 = vmatpush1.bf16.msra.mxu0 %v9913_v18 }
 0x934   :  { %8691 = vmatprep.subr.bf16.mxu0 %v9918_v28 }
 0x937   :  { %8692 = vmatpush1.bf16.msra.mxu0 %v9916_v5 }
 0x938   :  { %8693 = vmatprep.subr.bf16.mxu0 %v9921_v23 }
 0x93b   :  { %8694 = vmatpush1.bf16.msra.mxu0 %v9919_v39  ;;  %v9959_v39 = vld [vmem:[%s12266_s8] sm:$0xff]  }
 0x93c   :  { %8695 = vmatprep.subr.bf16.mxu0 %v9924_v19  ;;  %v9960_v19 = vld [vmem:[%s12266_s8 + $0x8] sm:$0xff]  }
 0x93f   :  { %8696 = vmatpush1.bf16.msra.mxu0 %v9922_v37  ;;  %v9524_v37 = vld [vmem:[%s12269_s11 + $0x20] ss:$0 sm:$0xff] }
 0x940   :  { %8697 = vmatprep.subr.bf16.mxu0 %v9927_v27 }
 0x943   :  { %8698 = vmatpush1.bf16.msra.mxu0 %v9925_v48 }
 0x944   :  { %8699 = vmatprep.subr.bf16.mxu0 %v9930_v7 }
 0x947   :  { %8700 = vmatpush1.bf16.msra.mxu0 %v9928_v15 }
 0x94a   :  { %8702 = vmatmul.mubr.bf16.vlgmr.msra.gmra.mrb[24].mxu0 %v12044_v51  ;;  %v9954_v51 = vld [vmem:[%s12264_s6 + $0x38] sm:$0xff]  }
 0xa1d   :  { %v8703_v47 = vpop.f32.mrb[24].mxu0 }
 0xa1e   :  { %v9660_v0 = vadd.f32 %v8703_v47, %v8299_v45  ;;  %v8705_v12 = vpop.f32.mrb[25].mxu0 }
 0xa1f   :  { %v9661_v43 = vadd.f32 %v8705_v12, %v8303_v61  ;;  %v8707_v41 = vpop.f32.mrb[26].mxu0 }
 0xa20   :  { %v9662_v13 = vadd.f32 %v8707_v41, %v8299_v45  ;;  %v8709_v3 = vpop.f32.mrb[27].mxu0  ;;  %v8712_v2 = vmax.f32 %v9660_v0, 0.0  ;;  %v9530_v45 = vld [vmem:[%s12269_s11 + $0x21] ss:$0 sm:$0xff] }
 0xa21   :  { %v9663_v6 = vadd.f32 %v8709_v3, %v8303_v61  ;;  %v8713_v63 = vmax.f32 %v9661_v43, 0.0 }
 0xa22   :  { %v8714_v42 = vmax.f32 %v9662_v13, 0.0 }
 0xa23   :  { %v8715_v50 = vmax.f32 %v9663_v6, 0.0 }
 0xa24   :  { %v8716_v4 = vpack.c.bf16 %v8714_v42, %v8712_v2  ;;  %v9233_v2 = vld [vmem:[%s12268_s10] sm:$0xf] }
 0xa25   :  { %v8717_v46 = vpack.c.bf16 %v8715_v50, %v8713_v63  ;;  %v9247_v42 = vsel %vm9245_vm7, %v9233_v2, 0  ;;  %v9534_v63 = vld [vmem:[%s12269_s11 + $0x22] ss:$0 sm:$0xff] }
 0xa27   :  { %8885 = vmatprep.mubr.bf16.mxu1 %v8717_v46 }
 0xa28   :  { %8886 = vmatmul.mubr.bf16.vlgmr.msra.gmra.mrb[32].mxu1 %v8716_v4 }
 0xa29   :  { %9585 = vmatpush3.bf16.msra.mxu1 %v9947_v11  ;;  %9600 = vmatprep.mubr.msk.bf16.mxu1 %vm9979_vm3, %v9978_v32 }
 0xa2a   :  { %9586 = vmatprep.subr.bf16.mxu1 %v9978_v32 }
 0xa2d   :  { %9587 = vmatpush3.bf16.msra.mxu1 %v9948_v24 }
 0xa2e   :  { %9588 = vmatprep.subr.bf16.mxu1 %v9978_v32 }
 0xa31   :  { %9589 = vmatpush3.bf16.msra.mxu1 %v9949_v55 }
 0xa32   :  { %9590 = vmatprep.subr.bf16.mxu1 %v9978_v32 }
 0xa35   :  { %9591 = vmatpush3.bf16.msra.mxu1 %v9950_v54 }
 0xa36   :  { %9592 = vmatprep.subr.bf16.mxu1 %v9978_v32 }
 0xa39   :  { %9593 = vmatpush3.bf16.msra.mxu1 %v9951_v60 }
 0xa3a   :  { %9594 = vmatprep.subr.bf16.mxu1 %v9978_v32 }
 0xa3d   :  { %9595 = vmatpush3.bf16.msra.mxu1 %v9952_v59  ;;  %v9537_v59 = vld [vmem:[%s12269_s11 + $0x23] ss:$0 sm:$0xff] }
 0xa3e   :  { %9596 = vmatprep.subr.bf16.mxu1 %v9978_v32 }
 0xa41   :  { %9597 = vmatpush3.bf16.msra.mxu1 %v9953_v9 }
 0xa42   :  { %9598 = vmatprep.subr.bf16.mxu1 %v9978_v32 }
 0xa45   :  { %9599 = vmatpush3.bf16.msra.mxu1 %v9954_v51 }
 0xa46   :  { %9604 = vmatprep.subr.bf16.mxu1 %v9978_v32 }
 0xafb   :  { %v9557_v14 = vpop.f32.mrb[32].mxu1 }
 0xafc   :  { %v9558_v16 = vpop.f32.mrb[33].mxu1 }
 0xafd   :  { %v9559_v1 = vadd.f32 %v9558_v16, %v9557_v14  ;;  %v9560_v17 = vpop.f32.mrb[34].mxu1 }
 0xafe   :  { %v9561_v35 = vpop.f32.mrb[35].mxu1 }
 0xaff   :  { %v8888_v38 = vadd.f32 %v9559_v1, %v9498_v8  ;;  %v9562_v20 = vadd.f32 %v9561_v35, %v9560_v17 }
 0xb01   :  { %v8891_v30 = vadd.f32 %v9562_v20, %v9498_v8  ;;  %v8894_v52 = vmax.f32 %v8888_v38, 0.0 }
 0xb03   :  { %v8895_v33 = vmax.f32 %v8891_v30, 0.0 }
 0xb05   :  { %v8896_v56 = vpack.c.bf16 %v8895_v33, %v8894_v52 }
 0xb07   :  { %9601 = vmatmul.mubr.bf16.vlgmr.msra.gmra.mrb[36].mxu1 %v8896_v56 }
 0xb08   :  { %9605 = vmatpush3.bf16.msra.mxu1 %v9955_v49  ;;  %9612 = vmatprep.mubr.msk.bf16.mxu1 %vm9979_vm3, %v9978_v32 }
 0xb09   :  { %9606 = vmatprep.subr.bf16.mxu1 %v9978_v32 }
 0xb0c   :  { %9607 = vmatpush3.bf16.msra.mxu1 %v9956_v53 }
 0xb0d   :  { %9608 = vmatprep.subr.bf16.mxu1 %v9978_v32 }
 0xb10   :  { %9609 = vmatpush3.bf16.msra.mxu1 %v9957_v58 }
 0xb11   :  { %9610 = vmatprep.subr.bf16.mxu1 %v9978_v32 }
 0xb14   :  { %9611 = vmatpush3.bf16.msra.mxu1 %v9958_v44 }
 0xb15   :  { %9616 = vmatprep.subr.bf16.mxu1 %v9978_v32 }
 0xbda   :  { %v9002_v40 = vpop.f32.mrb[36].mxu1 }
 0xbdb   :  { %v9003_v34 = vadd.f32 %v9515_v26, %v9002_v40  ;;  %v9602_v22 = vpop.f32.mrb[37].mxu1 }
 0xbdc   :  { %v9005_v21 = vpop.f32.mrb[38].mxu1 }
 0xbdd   :  { %v9006_v29 = vadd.f32 %v9515_v26, %v9005_v21  ;;  %v9603_v18 = vpop.f32.mrb[39].mxu1  ;;  %v9009_v28 = vmax.f32 %v9003_v34, 0.0 }
 0xbdf   :  { %v9010_v5 = vmax.f32 %v9006_v29, 0.0 }
 0xbe1   :  { %v9011_v23 = vpack.c.bf16 %v9010_v5, %v9009_v28 }
 0xbe3   :  { %9613 = vmatmul.mubr.msk.bf16.vlgmr.msra.gmra.mrb[40].mxu1 %vm9051_vm4, %v9011_v23 }
 0xbe4   :  { %9620 = vmatprep.mubr.msk.bf16.mxu1 %vm9979_vm3, %v9978_v32  ;;  %9617 = vmatpush3.bf16.msra.mxu1 %v9959_v39 }
 0xbe5   :  { %9618 = vmatprep.subr.bf16.mxu1 %v9978_v32 }
 0xbe8   :  { %9619 = vmatpush3.bf16.msra.mxu1 %v9960_v19 }
 0xbe9   :  { %9624 = vmatprep.subr.bf16.mxu1 %v9978_v32 }
 0xcb6   :  { %v9089_v27 = vpop.f32.mrb[40].mxu1 }
 0xcb7   :  { %v9090_v48 = vadd.f32 %v9524_v37, %v9089_v27  ;;  %v9614_v7 = vpop.f32.mrb[41].mxu1 }
 0xcb8   :  { %v9092_v15 = vpop.f32.mrb[42].mxu1 }
 0xcb9   :  { %v9093_v62 = vadd.f32 %v9524_v37, %v9092_v15  ;;  %v9615_v25 = vpop.f32.mrb[43].mxu1  ;;  %v9096_v31 = vmax.f32 %v9090_v48, 0.0 }
 0xcbb   :  { %v9097_v57 = vmax.f32 %v9093_v62, 0.0 }
 0xcbd   :  { %v9098_v10 = vpack.c.bf16 %v9097_v57, %v9096_v31 }
 0xcbf   :  { %9621 = vmatmul.mubr.msk.bf16.vlgmr.msra.gmra.mrb[44].mxu1 %vm9122_vm5, %v9098_v10 }
 0xcc0   :  { %9626 = vmatprep.mubr.msk.bf16.mxu1 %vm9979_vm3, %v9978_v32  ;;  %9625 = vmatpush3.bf16.msra.mxu1 %v9961_v36 }
 0xcc1   :  { %9630 = vmatprep.subr.bf16.mxu1 %v9978_v32 }
 0xd92   :  { %v9160_v61 = vpop.f32.mrb[44].mxu1 }
 0xd93   :  { %v9161_v47 = vadd.f32 %v9530_v45, %v9160_v61  ;;  %v9622_v0 = vpop.f32.mrb[45].mxu1 }
 0xd94   :  { %v9163_v12 = vpop.f32.mrb[46].mxu1 }
 0xd95   :  { %v9164_v43 = vadd.f32 %v9530_v45, %v9163_v12  ;;  %v9623_v41 = vpop.f32.mrb[47].mxu1  ;;  %v9167_v13 = vmax.f32 %v9161_v47, 0.0 }
 0xd97   :  { %v9168_v3 = vmax.f32 %v9164_v43, 0.0 }
 0xd99   :  { %v9169_v6 = vpack.c.bf16 %v9168_v3, %v9167_v13 }
 0xd9b   :  { %9627 = vmatmul.mubr.msk.bf16.vlgmr.msra.gmra.mrb[48].mxu1 %vm9185_vm6, %v9169_v6 }
 0xd9c   :  { %9632 = vmatprep.mubr.msk.bf16.mxu1 %vm9979_vm3, %v9978_v32  ;;  %9631 = vmatpush3.bf16.msra.mxu1 %v9247_v42 }
 0xe6e   :  { %v9223_v50 = vpop.f32.mrb[48].mxu1 }
 0xe6f   :  { %v9224_v4 = vadd.f32 %v9534_v63, %v9223_v50  ;;  %v9628_v46 = vpop.f32.mrb[49].mxu1 }
 0xe70   :  { %v9226_v11 = vpop.f32.mrb[50].mxu1 }
 0xe71   :  { %v9227_v24 = vadd.f32 %v9534_v63, %v9226_v11  ;;  %v9629_v55 = vpop.f32.mrb[51].mxu1  ;;  %v9230_v54 = vmax.f32 %v9224_v4, 0.0 }
 0xe73   :  { %v9231_v60 = vmax.f32 %v9227_v24, 0.0 }
 0xe75   :  { %v9232_v32 = vpack.c.bf16 %v9231_v60, %v9230_v54 }
 0xe77   :  { %9633 = vmatmul.mubr.msk.bf16.vlgmr.msra.gmra.mrb[52].mxu1 %vm9241_vm8, %v9232_v32 }
 0xf4a   :  { %v9283_v9 = vpop.f32.mrb[52].mxu1 }
 0xf4b   :  { %v9284_v51 = vadd.f32 %v9537_v59, %v9283_v9  ;;  %v9634_v14 = vpop.f32.mrb[53].mxu1 }
 0xf4c   :  { %v9286_v8 = vpop.f32.mrb[54].mxu1 }
 0xf4d   :  { %9291 = vst.msk [vmem:[%s12270_s12] sm:$0xff] %vm9290_vm9, %v9284_v51  ;;  %v9287_v16 = vadd.f32 %v9537_v59, %v9286_v8  ;;  %v9635_v1 = vpop.f32.mrb[55].mxu1 }
 0xf4f   :  { %9292 = vst.msk [vmem:[%s12270_s12 + $0x8] sm:$0xff] %vm9290_vm9, %v9287_v16 }
 0xf50   :  { %9297 = vsyncmov [#allocation4] }
 0xf53   :  { %s9298_s4 = vpop.sfrf %9297 }
 0xf54   :  { %p9539_p0 = scmp.ne.s32.totalorder %s9298_s4, 0 }
 0xf56   :  { %9302 = shalt.err (%p9539_p0)  }
 0xf57   :  { %9304 = vsyncmov [#allocation4 + $0x1] }
 0xf5a   :  { %s9305_s11 = vpop.sfrf %9304 }
 0xf5b   :  { %p9540_p1 = scmp.ne.s32.totalorder %s9305_s11, 0 }
 0xf5d   :  { %9309 = shalt.err (%p9540_p1)  }

</bundles_post_ra>
